<compile_context>
chip_gen: v7x
topology: tpu7x:2x2x1
jax: 0.10.0
libtpu: 0.0.40
codegen_flags: <defaults>
</compile_context>

<pallas_src>
import jax
import jax.numpy as jnp
from jax.experimental import pallas as pl
from jax.experimental.pallas import tpu as pltpu


# --------------------------- in-kernel helpers ---------------------------

def _conv3x3_relu(src_ref, w_ref, b_ref, hout, wout):
    """3x3 'same' conv + ReLU via 9 accumulating per-tap MXU dots.

    src_ref: [hout+2, wout+2, Cin] zero-padded halo (f32)
    w_ref:   [9, Cin, Cout] (bf16), tap index k = ky*3 + kx
    b_ref:   [1, Cout] (f32)
    returns: [hout*wout, Cout] f32 (post-ReLU)
    """
    cin = src_ref.shape[-1]
    cout = w_ref.shape[-1]
    acc = jnp.zeros((hout * wout, cout), jnp.float32)
    for k in range(9):
        ky, kx = k // 3, k % 3
        patch = src_ref[ky:ky + hout, kx:kx + wout, :].reshape(hout * wout, cin)
        acc = acc + jnp.dot(patch.astype(jnp.bfloat16), w_ref[k],
                            preferred_element_type=jnp.float32)
    return jnp.maximum(acc + b_ref[...], 0.0)


def _maxpool(x, ph, pw):
    """Max-pool a VMEM-resident value x: [Hh, Ww, C] -> [Hh//ph, Ww//pw, C].
    Height pool uses a free leading-dim split; width pool keeps the proven
    slice + sublane-reduce + concat form (strided/sublane-split reshapes are
    left as a TODO for production widths)."""
    hh, ww, c = x.shape
    ho, wo = hh // ph, ww // pw
    x = x.reshape(ho, ph, ww, c).max(axis=1)                          # pool rows
    cols = [x[:, j * pw:(j + 1) * pw, :].max(axis=1, keepdims=True) for j in range(wo)]
    return jnp.concatenate(cols, axis=1)                              # [ho, wo, c]


def _zero_halo(ref):
    """Zero only the 1-wide border of a padded [Hp, Wp, C] scratch."""
    hp, wp, c = ref.shape
    zrow = jnp.zeros((wp, c), ref.dtype)
    ref[0] = zrow
    ref[hp - 1] = zrow
    zcol = jnp.zeros((hp, 1, c), ref.dtype)
    ref[:, 0:1, :] = zcol
    ref[:, wp - 1:wp, :] = zcol


# --------------------------- fused conv-stack kernel ---------------------------

def conv_stack_kernel(xp_ref, w0_ref, b0_ref, w1_ref, b1_ref,
                      w2_ref, b2_ref, w3_ref, b3_ref,
                      o_ref, y0p_ref, y2p_ref, y3p_ref):
    hp, wp, _ = xp_ref.shape
    h, w = hp - 2, wp - 2
    h1, w1 = h // 3, w // 2
    c1 = w0_ref.shape[-1]
    c2 = w1_ref.shape[-1]
    c3 = w2_ref.shape[-1]
    c4 = w3_ref.shape[-1]
    t_len, _, _ = o_ref.shape
    v_out = w1 // 2

    # Halo borders must be zero; interiors are overwritten below.  Zeroed every step
    # (cheap: perimeter only) so each TensorCore's private scratch is initialised even
    # when the batch grid axis is split across cores.
    _zero_halo(y0p_ref)
    _zero_halo(y2p_ref)
    _zero_halo(y3p_ref)

    # conv0 + ReLU (1 -> 8): 9 per-tap K=1 dots (MXU idle anyway).
    y0 = _conv3x3_relu(xp_ref, w0_ref, b0_ref, h, w)
    y0p_ref[1:h + 1, 1:w + 1, :] = y0.reshape(h, w, c1)

    # conv1 + ReLU (8 -> 16); maxpool(3,2) fused, result stays in VMEM.
    y1 = _conv3x3_relu(y0p_ref, w1_ref, b1_ref, h, w).reshape(h, w, c2)
    y2p_ref[1:h1 + 1, 1:w1 + 1, :] = _maxpool(y1, 3, 2)

    # conv2 + ReLU (16 -> 16)
    y3 = _conv3x3_relu(y2p_ref, w2_ref, b2_ref, h1, w1)
    y3p_ref[1:h1 + 1, 1:w1 + 1, :] = y3.reshape(h1, w1, c3)

    # conv3 + ReLU (16 -> 32); maxpool(4,2) fused with the channel-minor feature
    # flatten (feature i = v*32 + c) -> single lane-dense [T, 1, V*32] HBM writeback.
    y4 = _conv3x3_relu(y3p_ref, w3_ref, b3_ref, h1, w1).reshape(h1, w1, c4)
    y4h = y4.reshape(t_len, 4, w1, c4).max(axis=1)                    # height pool 4
    o_ref[...] = jnp.concatenate(
        [y4h[:, 2 * v:2 * v + 2, :].max(axis=1, keepdims=True) for v in range(v_out)],
        axis=-1)                                                      # [T, 1, V*32]


def _conv_stack(xp, params, out_t, out_d):
    """xp: [B, H+2, W+2, 1] zero-padded NHWC image.  Returns [B, T, 1, V*32]."""
    bsz, hp, wp, cin0 = xp.shape
    h, w = hp - 2, wp - 2
    h1, w1 = h // 3, w // 2

    w_args, w_specs = [], []
    for i in range(4):
        wgt = params["w%d" % i]                           # [3, 3, Cin, Cout]
        cin, cout = wgt.shape[2], wgt.shape[3]
        w_args.append(wgt.reshape(9, cin, cout).astype(jnp.bfloat16))
        w_args.append(params["b%d" % i].reshape(1, cout).astype(jnp.float32))
        w_specs.append(pl.BlockSpec((9, cin, cout), lambda b: (0, 0, 0)))
        w_specs.append(pl.BlockSpec((1, cout), lambda b: (0, 0)))

    return pl.pallas_call(
        conv_stack_kernel,
        out_shape=jax.ShapeDtypeStruct((bsz, out_t, 1, out_d), jnp.float32),
        grid=(bsz,),
        in_specs=[pl.BlockSpec((None, hp, wp, cin0), lambda b: (b, 0, 0, 0))] + w_specs,
        out_specs=pl.BlockSpec((None, out_t, 1, out_d), lambda b: (b, 0, 0, 0)),
        scratch_shapes=[
            pltpu.VMEM((hp, wp, 8), jnp.float32),           # padded conv0 output
            pltpu.VMEM((h1 + 2, w1 + 2, 16), jnp.float32),  # padded pooled y2
            pltpu.VMEM((h1 + 2, w1 + 2, 16), jnp.float32),  # padded conv2 output
        ],
        compiler_params=pltpu.CompilerParams(
            dimension_semantics=("parallel",),              # batch across cores on v7x
            vmem_limit_bytes=32 * 1024 * 1024),
    )(xp, *w_args)


# --------------------------- fused bidirectional GRU kernel ---------------------------

def bigru_kernel(x_ref, h0_ref, wih_ref, whh_ref, bih_ref, bhh_ref,
                 outf_ref, outb_ref, hT_ref, gx_ref):
    # x_ref:   [T*B, D] time-major rows.
    # h0_ref:  [2, B, H]      (0 = forward, 1 = backward)
    # wih_ref: [D, 6H] bf16   columns = fwd(r|z|n) | bwd(r|z|n)   (PyTorch gate order)
    # whh_ref: [2, H, 3H] bf16;  bih_ref: [1, 6H] f32;  bhh_ref: [2, 1, 3H] f32
    # outf_ref/outb_ref: [T, B, H];  hT_ref: [2, B, H];  gx_ref scratch: [T*B, 6H] f32
    t_len, bsz, hdim = outf_ref.shape
    h3 = 3 * hdim

    # Hoisted input projection: ONE MXU matmul covers every timestep, both directions
    # and all 3 gates; single contiguous store into the scratch.
    gx_ref[...] = jnp.dot(x_ref[...].astype(jnp.bfloat16), wih_ref[...],
                          preferred_element_type=jnp.float32) + bih_ref[...]

    whh_f = whh_ref[0]
    whh_b = whh_ref[1]
    bhh_f = bhh_ref[0]
    bhh_b = bhh_ref[1]

    def gru_cell(gxt, h, whh, bhh):
        gh = jnp.dot(h.astype(jnp.bfloat16), whh,
                     preferred_element_type=jnp.float32) + bhh
        r = jax.nn.sigmoid(gxt[:, :hdim] + gh[:, :hdim])
        z = jax.nn.sigmoid(gxt[:, hdim:2 * hdim] + gh[:, hdim:2 * hdim])
        n = jnp.tanh(gxt[:, 2 * hdim:] + r * gh[:, 2 * hdim:])
        return (1.0 - z) * n + z * h

    def step(t, carry):
        # Both directions advance in the same step -> sequential critical path is T,
        # not 2*T (matters on single-TensorCore v5e/v6e).
        h_f, h_b = carry
        tb_idx = t_len - 1 - t
        rows_f = gx_ref[pl.ds(t * bsz, bsz), :]
        rows_b = gx_ref[pl.ds(tb_idx * bsz, bsz), :]
        h_f = gru_cell(rows_f[:, :h3], h_f, whh_f, bhh_f)
        h_b = gru_cell(rows_b[:, h3:], h_b, whh_b, bhh_b)
        outf_ref[t] = h_f
        outb_ref[tb_idx] = h_b
        return (h_f, h_b)

    h_f, h_b = jax.lax.fori_loop(0, t_len, step, (h0_ref[0], h0_ref[1]),
                                 unroll=min(t_len, 8))
    hT_ref[0] = h_f
    hT_ref[1] = h_b


def _bigru(x_tb, h0, wih_cat, whh, bih_cat, bhh, t_len, bsz):
    d = x_tb.shape[-1]
    hdim = h0.shape[-1]
    h3, h6 = 3 * hdim, 6 * hdim
    return pl.pallas_call(
        bigru_kernel,
        out_shape=(jax.ShapeDtypeStruct((t_len, bsz, hdim), jnp.float32),
                   jax.ShapeDtypeStruct((t_len, bsz, hdim), jnp.float32),
                   jax.ShapeDtypeStruct((2, bsz, hdim), jnp.float32)),
        grid=(1,),
        in_specs=[
            pl.BlockSpec((t_len * bsz, d), lambda i: (0, 0)),
            pl.BlockSpec((2, bsz, hdim), lambda i: (0, 0, 0)),
            pl.BlockSpec((d, h6), lambda i: (0, 0)),
            pl.BlockSpec((2, hdim, h3), lambda i: (0, 0, 0)),
            pl.BlockSpec((1, h6), lambda i: (0, 0)),
            pl.BlockSpec((2, 1, h3), lambda i: (0, 0, 0)),
        ],
        out_specs=(pl.BlockSpec((t_len, bsz, hdim), lambda i: (0, 0, 0)),
                   pl.BlockSpec((t_len, bsz, hdim), lambda i: (0, 0, 0)),
                   pl.BlockSpec((2, bsz, hdim), lambda i: (0, 0, 0))),
        scratch_shapes=[pltpu.VMEM((t_len * bsz, h6), jnp.float32)],
        compiler_params=pltpu.CompilerParams(
            dimension_semantics=("arbitrary",),
            vmem_limit_bytes=32 * 1024 * 1024),
    )(x_tb, h0, wih_cat, whh, bih_cat, bhh)


# --------------------------- encoder forward ---------------------------

def encoder_forward(params, input_image, hidden):
    """input_image: [B, 1, H, W] (NCHW); hidden: [2, B, hidden_size].
    Returns (output [B, H//12, 2*hidden_size], h_n [2, B, hidden_size])."""
    bsz, _, himg, wimg = input_image.shape
    t_len, v = himg // 12, wimg // 4
    d = v * 32

    x = jnp.transpose(input_image, (0, 2, 3, 1)).astype(jnp.float32)   # NCHW -> NHWC
    xp = jnp.pad(x, ((0, 0), (1, 1), (1, 1), (0, 0)))                  # conv0 halo

    y5 = _conv_stack(xp, params, t_len, d)                             # [B, T, 1, V*32]
    # Encoder.reshape: feature i = v*32 + c  ==  y5_nchw[b, c, t, v]; already produced
    # in that order by the kernel, so this reshape only drops the unit dim (free).
    gru_in = y5.reshape(bsz, t_len, d)
    x_tb = jnp.transpose(gru_in, (1, 0, 2)).reshape(t_len * bsz, d)    # time-major rows

    wih_cat = jnp.concatenate([params["wih"][0], params["wih"][1]],
                              axis=-1).astype(jnp.bfloat16)            # [D, 6H]
    bih_cat = jnp.concatenate([params["bih"][0], params["bih"][1]], axis=-1)  # [1, 6H]
    whh = params["whh"].astype(jnp.bfloat16)                           # [2, H, 3H]

    out_f, out_b, h_n = _bigru(x_tb, hidden, wih_cat, whh, bih_cat,
                               params["bhh"], t_len, bsz)
    out = jnp.concatenate([out_f, out_b], axis=-1)                     # [T, B, 2H]
    output = jnp.transpose(out, (1, 0, 2))                             # [B, T, 2H]
    return output, h_n


# --------------------------- deterministic parameter init ---------------------------

def init_params(key, input_dim, feature_dimension):
    hdim = feature_dimension // 2
    d = (input_dim[1] // 4) * 32               # GRU input size == hidden_shape[1]
    keys = jax.random.split(key, 12)

    def conv_w(k, cin, cout):                  # init_conv_weights: randn * 0.2
        return jax.random.normal(k, (3, 3, cin, cout), jnp.float32) * 0.2

    def conv_b(k, cin, cout):
        bound = 1.0 / (cin * 9) ** 0.5
        return jax.random.uniform(k, (cout,), jnp.float32, -bound, bound)

    def gru_p(k, shape):
        bound = 1.0 / hdim ** 0.5
        return jax.random.uniform(k, shape, jnp.float32, -bound, bound)

    return dict(
        w0=conv_w(keys[0], 1, 8),   b0=conv_b(keys[1], 1, 8),
        w1=conv_w(keys[2], 8, 16),  b1=conv_b(keys[3], 8, 16),
        w2=conv_w(keys[4], 16, 16), b2=conv_b(keys[5], 16, 16),
        w3=conv_w(keys[6], 16, 32), b3=conv_b(keys[7], 16, 32),
        # bidirectional GRU params stacked on dim 0 = direction; gate columns (r|z|n)
        wih=gru_p(keys[8], (2, d, 3 * hdim)),
        whh=gru_p(keys[9], (2, hdim, 3 * hdim)),
        bih=gru_p(keys[10], (2, 1, 3 * hdim)),
        bhh=gru_p(keys[11], (2, 1, 3 * hdim)),
    )


if __name__ == "__main__":
    key = jax.random.PRNGKey(0)
    kp, kx = jax.random.split(key)
    B = 2
    input_dim = (24, 16)        # (sec_length H, input_size W); divisible by 12 and 4
    feature_dimension = 32      # -> hidden_size = 16
    params = init_params(kp, input_dim, feature_dimension)
    x = jax.random.normal(kx, (B, 1, input_dim[0], input_dim[1]), jnp.float32)
    hidden = jnp.zeros((2, B, feature_dimension // 2), jnp.float32)   # Encoder.init_hidden

    fwd = jax.jit(encoder_forward)
    output, h_n = fwd(params, x, hidden)
    jax.block_until_ready((output, h_n))

    assert output.shape == (B, input_dim[0] // 12, feature_dimension)
    assert h_n.shape == (2, B, feature_dimension // 2)
    print("KERNEL_OK")
</pallas_src>

<mosaic_0001>
module attributes {stable_mosaic.version = 11 : i64} {
  func.func @bigru_kernel(%arg0: i32, %arg1: memref<4x128xf32, #tpu.memory_space<vmem>>, %arg2: memref<2x2x16xf32, #tpu.memory_space<vmem>>, %arg3: memref<128x96xbf16, #tpu.memory_space<vmem>>, %arg4: memref<2x16x48xbf16, #tpu.memory_space<vmem>>, %arg5: memref<1x96xf32, #tpu.memory_space<vmem>>, %arg6: memref<2x1x48xf32, #tpu.memory_space<vmem>>, %arg7: memref<2x2x16xf32, #tpu.memory_space<vmem>>, %arg8: memref<2x2x16xf32, #tpu.memory_space<vmem>>, %arg9: memref<2x2x16xf32, #tpu.memory_space<vmem>>, %arg10: memref<4x96xf32, #tpu.memory_space<vmem>>) attributes {dimension_semantics = [#tpu.dimension_semantics<arbitrary>], iteration_bounds = array<i64: 1>, scalar_prefetch = 0 : i64, scratch_operands = 1 : i64, tpu.core_type = #tpu.core_type<tc>, window_params = [{pipeline_mode = #tpu.pipeline_mode<synchronous>, transform_indices = @transform_0, window_bounds = array<i64: 4, 128>}, {pipeline_mode = #tpu.pipeline_mode<synchronous>, transform_indices = @transform_1, window_bounds = array<i64: 2, 2, 16>}, {pipeline_mode = #tpu.pipeline_mode<synchronous>, transform_indices = @transform_2, window_bounds = array<i64: 128, 96>}, {pipeline_mode = #tpu.pipeline_mode<synchronous>, transform_indices = @transform_3, window_bounds = array<i64: 2, 16, 48>}, {pipeline_mode = #tpu.pipeline_mode<synchronous>, transform_indices = @transform_4, window_bounds = array<i64: 1, 96>}, {pipeline_mode = #tpu.pipeline_mode<synchronous>, transform_indices = @transform_5, window_bounds = array<i64: 2, 1, 48>}, {pipeline_mode = #tpu.pipeline_mode<synchronous>, transform_indices = @transform_6, window_bounds = array<i64: 2, 2, 16>}, {pipeline_mode = #tpu.pipeline_mode<synchronous>, transform_indices = @transform_7, window_bounds = array<i64: 2, 2, 16>}, {pipeline_mode = #tpu.pipeline_mode<synchronous>, transform_indices = @transform_8, window_bounds = array<i64: 2, 2, 16>}]} {
    %c0 = arith.constant 0 : index
    %c0_0 = arith.constant 0 : index
    %0 = vector.load %arg1[%c0, %c0_0] : memref<4x128xf32, #tpu.memory_space<vmem>>, vector<4x128xf32>
    %1 = arith.truncf %0 : vector<4x128xf32> to vector<4x128xbf16>
    %c0_1 = arith.constant 0 : index
    %c0_2 = arith.constant 0 : index
    %2 = vector.load %arg3[%c0_1, %c0_2] : memref<128x96xbf16, #tpu.memory_space<vmem>>, vector<128x96xbf16>
    %cst = arith.constant dense<0.000000e+00> : vector<4x96xf32>
    %3 = tpu.matmul %1, %2, %cst {dimension_numbers = #tpu.dot_dimension_numbers<[1], [0], [0], [1], [0, 0, 1, 1], [], []>} : vector<4x128xbf16>, vector<128x96xbf16>, vector<4x96xf32> -> vector<4x96xf32>
    %c0_3 = arith.constant 0 : index
    %c0_4 = arith.constant 0 : index
    %4 = vector.load %arg5[%c0_3, %c0_4] : memref<1x96xf32, #tpu.memory_space<vmem>>, vector<1x96xf32>
    %5 = vector.broadcast %4 : vector<1x96xf32> to vector<4x96xf32>
    %6 = arith.addf %3, %5 : vector<4x96xf32>
    %c0_5 = arith.constant 0 : index
    %c0_6 = arith.constant 0 : index
    %7 = vector.load %arg10[%c0_5, %c0_6] : memref<4x96xf32, #tpu.memory_space<vmem>>, vector<4x96xf32>
    tpu.vector_store %arg10[%c0_5, %c0_6], %6 {strides = array<i32>} : memref<4x96xf32, #tpu.memory_space<vmem>>, vector<4x96xf32>,
    %c0_7 = arith.constant 0 : index
    %c0_8 = arith.constant 0 : index
    %c0_9 = arith.constant 0 : index
    %8 = vector.load %arg4[%c0_7, %c0_8, %c0_9] : memref<2x16x48xbf16, #tpu.memory_space<vmem>>, vector<1x16x48xbf16>
    %9 = vector.shape_cast %8 : vector<1x16x48xbf16> to vector<16x48xbf16>
    %c1 = arith.constant 1 : index
    %c0_10 = arith.constant 0 : index
    %c0_11 = arith.constant 0 : index
    %10 = vector.load %arg4[%c1, %c0_10, %c0_11] : memref<2x16x48xbf16, #tpu.memory_space<vmem>>, vector<1x16x48xbf16>
    %11 = vector.shape_cast %10 : vector<1x16x48xbf16> to vector<16x48xbf16>
    %c0_12 = arith.constant 0 : index
    %c0_13 = arith.constant 0 : index
    %c0_14 = arith.constant 0 : index
    %12 = vector.load %arg6[%c0_12, %c0_13, %c0_14] : memref<2x1x48xf32, #tpu.memory_space<vmem>>, vector<1x1x48xf32>
    %13 = vector.shape_cast %12 : vector<1x1x48xf32> to vector<1x48xf32>
    %c1_15 = arith.constant 1 : index
    %c0_16 = arith.constant 0 : index
    %c0_17 = arith.constant 0 : index
    %14 = vector.load %arg6[%c1_15, %c0_16, %c0_17] : memref<2x1x48xf32, #tpu.memory_space<vmem>>, vector<1x1x48xf32>
    %15 = vector.shape_cast %14 : vector<1x1x48xf32> to vector<1x48xf32>
    %c0_18 = arith.constant 0 : index
    %c0_19 = arith.constant 0 : index
    %c0_20 = arith.constant 0 : index
    %16 = vector.load %arg2[%c0_18, %c0_19, %c0_20] : memref<2x2x16xf32, #tpu.memory_space<vmem>>, vector<1x2x16xf32>
    %17 = vector.shape_cast %16 : vector<1x2x16xf32> to vector<2x16xf32>
    %c1_21 = arith.constant 1 : index
    %c0_22 = arith.constant 0 : index
    %c0_23 = arith.constant 0 : index
    %18 = vector.load %arg2[%c1_21, %c0_22, %c0_23] : memref<2x2x16xf32, #tpu.memory_space<vmem>>, vector<1x2x16xf32>
    %19 = vector.shape_cast %18 : vector<1x2x16xf32> to vector<2x16xf32>
    %c0_i32 = arith.constant 0 : i32
    %c1_i32 = arith.constant 1 : i32
    %20 = arith.subi %c1_i32, %c0_i32 : i32
    %c2_i32 = arith.constant 2 : i32
    %21 = arith.muli %c0_i32, %c2_i32 : i32
    %22 = arith.index_cast %21 : i32 to index
    %c0_24 = arith.constant 0 : index
    %23 = vector.load %arg10[%22, %c0_24] : memref<4x96xf32, #tpu.memory_space<vmem>>, vector<2x96xf32>
    %c2_i32_25 = arith.constant 2 : i32
    %24 = arith.muli %20, %c2_i32_25 : i32
    %25 = arith.index_cast %24 : i32 to index
    %c0_26 = arith.constant 0 : index
    %26 = vector.load %arg10[%25, %c0_26] : memref<4x96xf32, #tpu.memory_space<vmem>>, vector<2x96xf32>
    %27 = vector.extract_strided_slice %23 {offsets = [0, 0], sizes = [2, 48], strides = [1, 1]} : vector<2x96xf32> to vector<2x48xf32>
    %28 = arith.truncf %17 : vector<2x16xf32> to vector<2x16xbf16>
    %cst_27 = arith.constant dense<0.000000e+00> : vector<2x48xf32>
    %29 = tpu.matmul %28, %9, %cst_27 {dimension_numbers = #tpu.dot_dimension_numbers<[1], [0], [0], [1], [0, 0, 1, 1], [], []>} : vector<2x16xbf16>, vector<16x48xbf16>, vector<2x48xf32> -> vector<2x48xf32>
    %30 = vector.broadcast %13 : vector<1x48xf32> to vector<2x48xf32>
    %31 = arith.addf %29, %30 : vector<2x48xf32>
    %32 = vector.extract_strided_slice %27 {offsets = [0, 0], sizes = [2, 16], strides = [1, 1]} : vector<2x48xf32> to vector<2x16xf32>
    %33 = vector.extract_strided_slice %31 {offsets = [0, 0], sizes = [2, 16], strides = [1, 1]} : vector<2x48xf32> to vector<2x16xf32>
    %34 = arith.addf %32, %33 : vector<2x16xf32>
    %35 = arith.negf %34 : vector<2x16xf32>
    %36 = math.exp %35 : vector<2x16xf32>
    %cst_28 = arith.constant 1.000000e+00 : f32
    %37 = vector.broadcast %cst_28 : f32 to vector<2x16xf32>
    %38 = arith.addf %37, %36 : vector<2x16xf32>
    %39 = arith.divf %37, %38 : vector<2x16xf32>
    %40 = vector.extract_strided_slice %27 {offsets = [0, 16], sizes = [2, 16], strides = [1, 1]} : vector<2x48xf32> to vector<2x16xf32>
    %41 = vector.extract_strided_slice %31 {offsets = [0, 16], sizes = [2, 16], strides = [1, 1]} : vector<2x48xf32> to vector<2x16xf32>
    %42 = arith.addf %40, %41 : vector<2x16xf32>
    %43 = arith.negf %42 : vector<2x16xf32>
    %44 = math.exp %43 : vector<2x16xf32>
    %cst_29 = arith.constant 1.000000e+00 : f32
    %45 = vector.broadcast %cst_29 : f32 to vector<2x16xf32>
    %46 = arith.addf %45, %44 : vector<2x16xf32>
    %47 = arith.divf %45, %46 : vector<2x16xf32>
    %48 = vector.extract_strided_slice %27 {offsets = [0, 32], sizes = [2, 16], strides = [1, 1]} : vector<2x48xf32> to vector<2x16xf32>
    %49 = vector.extract_strided_slice %31 {offsets = [0, 32], sizes = [2, 16], strides = [1, 1]} : vector<2x48xf32> to vector<2x16xf32>
    %50 = arith.mulf %39, %49 : vector<2x16xf32>
    %51 = arith.addf %48, %50 : vector<2x16xf32>
    %52 = math.tanh %51 : vector<2x16xf32>
    %cst_30 = arith.constant 1.000000e+00 : f32
    %53 = vector.broadcast %cst_30 : f32 to vector<2x16xf32>
    %54 = arith.subf %53, %47 : vector<2x16xf32>
    %55 = arith.mulf %54, %52 : vector<2x16xf32>
    %56 = arith.mulf %47, %17 : vector<2x16xf32>
    %57 = arith.addf %55, %56 : vector<2x16xf32>
    %58 = vector.extract_strided_slice %26 {offsets = [0, 48], sizes = [2, 48], strides = [1, 1]} : vector<2x96xf32> to vector<2x48xf32>
    %59 = arith.truncf %19 : vector<2x16xf32> to vector<2x16xbf16>
    %cst_31 = arith.constant dense<0.000000e+00> : vector<2x48xf32>
    %60 = tpu.matmul %59, %11, %cst_31 {dimension_numbers = #tpu.dot_dimension_numbers<[1], [0], [0], [1], [0, 0, 1, 1], [], []>} : vector<2x16xbf16>, vector<16x48xbf16>, vector<2x48xf32> -> vector<2x48xf32>
    %61 = vector.broadcast %15 : vector<1x48xf32> to vector<2x48xf32>
    %62 = arith.addf %60, %61 : vector<2x48xf32>
    %63 = vector.extract_strided_slice %58 {offsets = [0, 0], sizes = [2, 16], strides = [1, 1]} : vector<2x48xf32> to vector<2x16xf32>
    %64 = vector.extract_strided_slice %62 {offsets = [0, 0], sizes = [2, 16], strides = [1, 1]} : vector<2x48xf32> to vector<2x16xf32>
    %65 = arith.addf %63, %64 : vector<2x16xf32>
    %66 = arith.negf %65 : vector<2x16xf32>
    %67 = math.exp %66 : vector<2x16xf32>
    %cst_32 = arith.constant 1.000000e+00 : f32
    %68 = vector.broadcast %cst_32 : f32 to vector<2x16xf32>
    %69 = arith.addf %68, %67 : vector<2x16xf32>
    %70 = arith.divf %68, %69 : vector<2x16xf32>
    %71 = vector.extract_strided_slice %58 {offsets = [0, 16], sizes = [2, 16], strides = [1, 1]} : vector<2x48xf32> to vector<2x16xf32>
    %72 = vector.extract_strided_slice %62 {offsets = [0, 16], sizes = [2, 16], strides = [1, 1]} : vector<2x48xf32> to vector<2x16xf32>
    %73 = arith.addf %71, %72 : vector<2x16xf32>
    %74 = arith.negf %73 : vector<2x16xf32>
    %75 = math.exp %74 : vector<2x16xf32>
    %cst_33 = arith.constant 1.000000e+00 : f32
    %76 = vector.broadcast %cst_33 : f32 to vector<2x16xf32>
    %77 = arith.addf %76, %75 : vector<2x16xf32>
    %78 = arith.divf %76, %77 : vector<2x16xf32>
    %79 = vector.extract_strided_slice %58 {offsets = [0, 32], sizes = [2, 16], strides = [1, 1]} : vector<2x48xf32> to vector<2x16xf32>
    %80 = vector.extract_strided_slice %62 {offsets = [0, 32], sizes = [2, 16], strides = [1, 1]} : vector<2x48xf32> to vector<2x16xf32>
    %81 = arith.mulf %70, %80 : vector<2x16xf32>
    %82 = arith.addf %79, %81 : vector<2x16xf32>
    %83 = math.tanh %82 : vector<2x16xf32>
    %cst_34 = arith.constant 1.000000e+00 : f32
    %84 = vector.broadcast %cst_34 : f32 to vector<2x16xf32>
    %85 = arith.subf %84, %78 : vector<2x16xf32>
    %86 = arith.mulf %85, %83 : vector<2x16xf32>
    %87 = arith.mulf %78, %19 : vector<2x16xf32>
    %88 = arith.addf %86, %87 : vector<2x16xf32>
    %89 = arith.index_cast %c0_i32 : i32 to index
    %c0_35 = arith.constant 0 : index
    %c0_36 = arith.constant 0 : index
    %90 = vector.load %arg7[%89, %c0_35, %c0_36] : memref<2x2x16xf32, #tpu.memory_space<vmem>>, vector<1x2x16xf32>
    %91 = vector.shape_cast %90 : vector<1x2x16xf32> to vector<2x16xf32>
    %92 = vector.shape_cast %57 : vector<2x16xf32> to vector<1x2x16xf32>
    tpu.vector_store %arg7[%89, %c0_35, %c0_36], %92 {strides = array<i32>} : memref<2x2x16xf32, #tpu.memory_space<vmem>>, vector<1x2x16xf32>,
    %93 = arith.index_cast %20 : i32 to index
    %c0_37 = arith.constant 0 : index
    %c0_38 = arith.constant 0 : index
    %94 = vector.load %arg8[%93, %c0_37, %c0_38] : memref<2x2x16xf32, #tpu.memory_space<vmem>>, vector<1x2x16xf32>
    %95 = vector.shape_cast %94 : vector<1x2x16xf32> to vector<2x16xf32>
    %96 = vector.shape_cast %88 : vector<2x16xf32> to vector<1x2x16xf32>
    tpu.vector_store %arg8[%93, %c0_37, %c0_38], %96 {strides = array<i32>} : memref<2x2x16xf32, #tpu.memory_space<vmem>>, vector<1x2x16xf32>,
    %c1_i32_39 = arith.constant 1 : i32
    %c1_i32_40 = arith.constant 1 : i32
    %97 = arith.subi %c1_i32_40, %c1_i32_39 : i32
    %c2_i32_41 = arith.constant 2 : i32
    %98 = arith.muli %c1_i32_39, %c2_i32_41 : i32
    %99 = arith.index_cast %98 : i32 to index
    %c0_42 = arith.constant 0 : index
    %100 = vector.load %arg10[%99, %c0_42] : memref<4x96xf32, #tpu.memory_space<vmem>>, vector<2x96xf32>
    %c2_i32_43 = arith.constant 2 : i32
    %101 = arith.muli %97, %c2_i32_43 : i32
    %102 = arith.index_cast %101 : i32 to index
    %c0_44 = arith.constant 0 : index
    %103 = vector.load %arg10[%102, %c0_44] : memref<4x96xf32, #tpu.memory_space<vmem>>, vector<2x96xf32>
    %104 = vector.extract_strided_slice %100 {offsets = [0, 0], sizes = [2, 48], strides = [1, 1]} : vector<2x96xf32> to vector<2x48xf32>
    %105 = arith.truncf %57 : vector<2x16xf32> to vector<2x16xbf16>
    %cst_45 = arith.constant dense<0.000000e+00> : vector<2x48xf32>
    %106 = tpu.matmul %105, %9, %cst_45 {dimension_numbers = #tpu.dot_dimension_numbers<[1], [0], [0], [1], [0, 0, 1, 1], [], []>} : vector<2x16xbf16>, vector<16x48xbf16>, vector<2x48xf32> -> vector<2x48xf32>
    %107 = vector.broadcast %13 : vector<1x48xf32> to vector<2x48xf32>
    %108 = arith.addf %106, %107 : vector<2x48xf32>
    %109 = vector.extract_strided_slice %104 {offsets = [0, 0], sizes = [2, 16], strides = [1, 1]} : vector<2x48xf32> to vector<2x16xf32>
    %110 = vector.extract_strided_slice %108 {offsets = [0, 0], sizes = [2, 16], strides = [1, 1]} : vector<2x48xf32> to vector<2x16xf32>
    %111 = arith.addf %109, %110 : vector<2x16xf32>
    %112 = arith.negf %111 : vector<2x16xf32>
    %113 = math.exp %112 : vector<2x16xf32>
    %cst_46 = arith.constant 1.000000e+00 : f32
    %114 = vector.broadcast %cst_46 : f32 to vector<2x16xf32>
    %115 = arith.addf %114, %113 : vector<2x16xf32>
    %116 = arith.divf %114, %115 : vector<2x16xf32>
    %117 = vector.extract_strided_slice %104 {offsets = [0, 16], sizes = [2, 16], strides = [1, 1]} : vector<2x48xf32> to vector<2x16xf32>
    %118 = vector.extract_strided_slice %108 {offsets = [0, 16], sizes = [2, 16], strides = [1, 1]} : vector<2x48xf32> to vector<2x16xf32>
    %119 = arith.addf %117, %118 : vector<2x16xf32>
    %120 = arith.negf %119 : vector<2x16xf32>
    %121 = math.exp %120 : vector<2x16xf32>
    %cst_47 = arith.constant 1.000000e+00 : f32
    %122 = vector.broadcast %cst_47 : f32 to vector<2x16xf32>
    %123 = arith.addf %122, %121 : vector<2x16xf32>
    %124 = arith.divf %122, %123 : vector<2x16xf32>
    %125 = vector.extract_strided_slice %104 {offsets = [0, 32], sizes = [2, 16], strides = [1, 1]} : vector<2x48xf32> to vector<2x16xf32>
    %126 = vector.extract_strided_slice %108 {offsets = [0, 32], sizes = [2, 16], strides = [1, 1]} : vector<2x48xf32> to vector<2x16xf32>
    %127 = arith.mulf %116, %126 : vector<2x16xf32>
    %128 = arith.addf %125, %127 : vector<2x16xf32>
    %129 = math.tanh %128 : vector<2x16xf32>
    %cst_48 = arith.constant 1.000000e+00 : f32
    %130 = vector.broadcast %cst_48 : f32 to vector<2x16xf32>
    %131 = arith.subf %130, %124 : vector<2x16xf32>
    %132 = arith.mulf %131, %129 : vector<2x16xf32>
    %133 = arith.mulf %124, %57 : vector<2x16xf32>
    %134 = arith.addf %132, %133 : vector<2x16xf32>
    %135 = vector.extract_strided_slice %103 {offsets = [0, 48], sizes = [2, 48], strides = [1, 1]} : vector<2x96xf32> to vector<2x48xf32>
    %136 = arith.truncf %88 : vector<2x16xf32> to vector<2x16xbf16>
    %cst_49 = arith.constant dense<0.000000e+00> : vector<2x48xf32>
    %137 = tpu.matmul %136, %11, %cst_49 {dimension_numbers = #tpu.dot_dimension_numbers<[1], [0], [0], [1], [0, 0, 1, 1], [], []>} : vector<2x16xbf16>, vector<16x48xbf16>, vector<2x48xf32> -> vector<2x48xf32>
    %138 = vector.broadcast %15 : vector<1x48xf32> to vector<2x48xf32>
    %139 = arith.addf %137, %138 : vector<2x48xf32>
    %140 = vector.extract_strided_slice %135 {offsets = [0, 0], sizes = [2, 16], strides = [1, 1]} : vector<2x48xf32> to vector<2x16xf32>
    %141 = vector.extract_strided_slice %139 {offsets = [0, 0], sizes = [2, 16], strides = [1, 1]} : vector<2x48xf32> to vector<2x16xf32>
    %142 = arith.addf %140, %141 : vector<2x16xf32>
    %143 = arith.negf %142 : vector<2x16xf32>
    %144 = math.exp %143 : vector<2x16xf32>
    %cst_50 = arith.constant 1.000000e+00 : f32
    %145 = vector.broadcast %cst_50 : f32 to vector<2x16xf32>
    %146 = arith.addf %145, %144 : vector<2x16xf32>
    %147 = arith.divf %145, %146 : vector<2x16xf32>
    %148 = vector.extract_strided_slice %135 {offsets = [0, 16], sizes = [2, 16], strides = [1, 1]} : vector<2x48xf32> to vector<2x16xf32>
    %149 = vector.extract_strided_slice %139 {offsets = [0, 16], sizes = [2, 16], strides = [1, 1]} : vector<2x48xf32> to vector<2x16xf32>
    %150 = arith.addf %148, %149 : vector<2x16xf32>
    %151 = arith.negf %150 : vector<2x16xf32>
    %152 = math.exp %151 : vector<2x16xf32>
    %cst_51 = arith.constant 1.000000e+00 : f32
    %153 = vector.broadcast %cst_51 : f32 to vector<2x16xf32>
    %154 = arith.addf %153, %152 : vector<2x16xf32>
    %155 = arith.divf %153, %154 : vector<2x16xf32>
    %156 = vector.extract_strided_slice %135 {offsets = [0, 32], sizes = [2, 16], strides = [1, 1]} : vector<2x48xf32> to vector<2x16xf32>
    %157 = vector.extract_strided_slice %139 {offsets = [0, 32], sizes = [2, 16], strides = [1, 1]} : vector<2x48xf32> to vector<2x16xf32>
    %158 = arith.mulf %147, %157 : vector<2x16xf32>
    %159 = arith.addf %156, %158 : vector<2x16xf32>
    %160 = math.tanh %159 : vector<2x16xf32>
    %cst_52 = arith.constant 1.000000e+00 : f32
    %161 = vector.broadcast %cst_52 : f32 to vector<2x16xf32>
    %162 = arith.subf %161, %155 : vector<2x16xf32>
    %163 = arith.mulf %162, %160 : vector<2x16xf32>
    %164 = arith.mulf %155, %88 : vector<2x16xf32>
    %165 = arith.addf %163, %164 : vector<2x16xf32>
    %166 = arith.index_cast %c1_i32_39 : i32 to index
    %c0_53 = arith.constant 0 : index
    %c0_54 = arith.constant 0 : index
    %167 = vector.load %arg7[%166, %c0_53, %c0_54] : memref<2x2x16xf32, #tpu.memory_space<vmem>>, vector<1x2x16xf32>
    %168 = vector.shape_cast %167 : vector<1x2x16xf32> to vector<2x16xf32>
    %169 = vector.shape_cast %134 : vector<2x16xf32> to vector<1x2x16xf32>
    tpu.vector_store %arg7[%166, %c0_53, %c0_54], %169 {strides = array<i32>} : memref<2x2x16xf32, #tpu.memory_space<vmem>>, vector<1x2x16xf32>,
    %170 = arith.index_cast %97 : i32 to index
    %c0_55 = arith.constant 0 : index
    %c0_56 = arith.constant 0 : index
    %171 = vector.load %arg8[%170, %c0_55, %c0_56] : memref<2x2x16xf32, #tpu.memory_space<vmem>>, vector<1x2x16xf32>
    %172 = vector.shape_cast %171 : vector<1x2x16xf32> to vector<2x16xf32>
    %173 = vector.shape_cast %165 : vector<2x16xf32> to vector<1x2x16xf32>
    tpu.vector_store %arg8[%170, %c0_55, %c0_56], %173 {strides = array<i32>} : memref<2x2x16xf32, #tpu.memory_space<vmem>>, vector<1x2x16xf32>,
    %c2_i32_57 = arith.constant 2 : i32
    %c0_58 = arith.constant 0 : index
    %c0_59 = arith.constant 0 : index
    %c0_60 = arith.constant 0 : index
    %174 = vector.load %arg9[%c0_58, %c0_59, %c0_60] : memref<2x2x16xf32, #tpu.memory_space<vmem>>, vector<1x2x16xf32>
    %175 = vector.shape_cast %174 : vector<1x2x16xf32> to vector<2x16xf32>
    %176 = vector.shape_cast %134 : vector<2x16xf32> to vector<1x2x16xf32>
    tpu.vector_store %arg9[%c0_58, %c0_59, %c0_60], %176 {strides = array<i32>} : memref<2x2x16xf32, #tpu.memory_space<vmem>>, vector<1x2x16xf32>,
    %c1_61 = arith.constant 1 : index
    %c0_62 = arith.constant 0 : index
    %c0_63 = arith.constant 0 : index
    %177 = vector.load %arg9[%c1_61, %c0_62, %c0_63] : memref<2x2x16xf32, #tpu.memory_space<vmem>>, vector<1x2x16xf32>
    %178 = vector.shape_cast %177 : vector<1x2x16xf32> to vector<2x16xf32>
    %179 = vector.shape_cast %165 : vector<2x16xf32> to vector<1x2x16xf32>
    tpu.vector_store %arg9[%c1_61, %c0_62, %c0_63], %179 {strides = array<i32>} : memref<2x2x16xf32, #tpu.memory_space<vmem>>, vector<1x2x16xf32>,
    return
  }
  func.func @transform_0(%arg0: i32) -> (i32, i32) {
    %c0_i32 = arith.constant 0 : i32
    %c0_i32_0 = arith.constant 0 : i32
    %c0_i32_1 = arith.constant 0 : i32
    return %c0_i32, %c0_i32_0 : i32, i32
  }
  func.func @transform_1(%arg0: i32) -> (i32, i32, i32) {
    %c0_i32 = arith.constant 0 : i32
    %c0_i32_0 = arith.constant 0 : i32
    %c0_i32_1 = arith.constant 0 : i32
    %c0_i32_2 = arith.constant 0 : i32
    return %c0_i32, %c0_i32_0, %c0_i32_1 : i32, i32, i32
  }
  func.func @transform_2(%arg0: i32) -> (i32, i32) {
    %c0_i32 = arith.constant 0 : i32
    %c0_i32_0 = arith.constant 0 : i32
    %c0_i32_1 = arith.constant 0 : i32
    return %c0_i32, %c0_i32_0 : i32, i32
  }
  func.func @transform_3(%arg0: i32) -> (i32, i32, i32) {
    %c0_i32 = arith.constant 0 : i32
    %c0_i32_0 = arith.constant 0 : i32
    %c0_i32_1 = arith.constant 0 : i32
    %c0_i32_2 = arith.constant 0 : i32
    return %c0_i32, %c0_i32_0, %c0_i32_1 : i32, i32, i32
  }
  func.func @transform_4(%arg0: i32) -> (i32, i32) {
    %c0_i32 = arith.constant 0 : i32
    %c0_i32_0 = arith.constant 0 : i32
    %c0_i32_1 = arith.constant 0 : i32
    return %c0_i32, %c0_i32_0 : i32, i32
  }
  func.func @transform_5(%arg0: i32) -> (i32, i32, i32) {
    %c0_i32 = arith.constant 0 : i32
    %c0_i32_0 = arith.constant 0 : i32
    %c0_i32_1 = arith.constant 0 : i32
    %c0_i32_2 = arith.constant 0 : i32
    return %c0_i32, %c0_i32_0, %c0_i32_1 : i32, i32, i32
  }
  func.func @transform_6(%arg0: i32) -> (i32, i32, i32) {
    %c0_i32 = arith.constant 0 : i32
    %c0_i32_0 = arith.constant 0 : i32
    %c0_i32_1 = arith.constant 0 : i32
    %c0_i32_2 = arith.constant 0 : i32
    return %c0_i32, %c0_i32_0, %c0_i32_1 : i32, i32, i32
  }
  func.func @transform_7(%arg0: i32) -> (i32, i32, i32) {
    %c0_i32 = arith.constant 0 : i32
    %c0_i32_0 = arith.constant 0 : i32
    %c0_i32_1 = arith.constant 0 : i32
    %c0_i32_2 = arith.constant 0 : i32
    return %c0_i32, %c0_i32_0, %c0_i32_1 : i32, i32, i32
  }
  func.func @transform_8(%arg0: i32) -> (i32, i32, i32) {
    %c0_i32 = arith.constant 0 : i32
    %c0_i32_0 = arith.constant 0 : i32
    %c0_i32_1 = arith.constant 0 : i32
    %c0_i32_2 = arith.constant 0 : i32
    return %c0_i32, %c0_i32_0, %c0_i32_1 : i32, i32, i32
  }
}

module attributes {stable_mosaic.version = 11 : i64} {
  func.func @conv_stack_kernel(%arg0: i32, %arg1: memref<1x26x18x1xf32, #tpu.memory_space<vmem>>, %arg2: memref<9x1x8xbf16, #tpu.memory_space<vmem>>, %arg3: memref<1x8xf32, #tpu.memory_space<vmem>>, %arg4: memref<9x8x16xbf16, #tpu.memory_space<vmem>>, %arg5: memref<1x16xf32, #tpu.memory_space<vmem>>, %arg6: memref<9x16x16xbf16, #tpu.memory_space<vmem>>, %arg7: memref<1x16xf32, #tpu.memory_space<vmem>>, %arg8: memref<9x16x32xbf16, #tpu.memory_space<vmem>>, %arg9: memref<1x32xf32, #tpu.memory_space<vmem>>, %arg10: memref<1x2x1x128xf32, #tpu.memory_space<vmem>>, %arg11: memref<26x18x8xf32, #tpu.memory_space<vmem>>, %arg12: memref<10x10x16xf32, #tpu.memory_space<vmem>>, %arg13: memref<10x10x16xf32, #tpu.memory_space<vmem>>) attributes {dimension_semantics = [#tpu.dimension_semantics<parallel>], iteration_bounds = array<i64: 2>, scalar_prefetch = 0 : i64, scratch_operands = 3 : i64, tpu.core_type = #tpu.core_type<tc>, window_params = [{transform_indices = @transform_0, window_bounds = array<i64: 1, 26, 18, 1>}, {pipeline_mode = #tpu.pipeline_mode<synchronous>, transform_indices = @transform_1, window_bounds = array<i64: 9, 1, 8>}, {pipeline_mode = #tpu.pipeline_mode<synchronous>, transform_indices = @transform_2, window_bounds = array<i64: 1, 8>}, {pipeline_mode = #tpu.pipeline_mode<synchronous>, transform_indices = @transform_3, window_bounds = array<i64: 9, 8, 16>}, {pipeline_mode = #tpu.pipeline_mode<synchronous>, transform_indices = @transform_4, window_bounds = array<i64: 1, 16>}, {pipeline_mode = #tpu.pipeline_mode<synchronous>, transform_indices = @transform_5, window_bounds = array<i64: 9, 16, 16>}, {pipeline_mode = #tpu.pipeline_mode<synchronous>, transform_indices = @transform_6, window_bounds = array<i64: 1, 16>}, {pipeline_mode = #tpu.pipeline_mode<synchronous>, transform_indices = @transform_7, window_bounds = array<i64: 9, 16, 32>}, {pipeline_mode = #tpu.pipeline_mode<synchronous>, transform_indices = @transform_8, window_bounds = array<i64: 1, 32>}, {transform_indices = @transform_9, window_bounds = array<i64: 1, 2, 1, 128>}]} {
    %cst = arith.constant 0.000000e+00 : f32
    %0 = vector.broadcast %cst : f32 to vector<18x8xf32>
    %c0 = arith.constant 0 : index
    %c0_0 = arith.constant 0 : index
    %c0_1 = arith.constant 0 : index
    %1 = vector.load %arg11[%c0, %c0_0, %c0_1] : memref<26x18x8xf32, #tpu.memory_space<vmem>>, vector<1x18x8xf32>
    %2 = vector.shape_cast %1 : vector<1x18x8xf32> to vector<18x8xf32>
    %3 = vector.shape_cast %0 : vector<18x8xf32> to vector<1x18x8xf32>
    tpu.vector_store %arg11[%c0, %c0_0, %c0_1], %3 {strides = array<i32>} : memref<26x18x8xf32, #tpu.memory_space<vmem>>, vector<1x18x8xf32>,
    %c25 = arith.constant 25 : index
    %c0_2 = arith.constant 0 : index
    %c0_3 = arith.constant 0 : index
    %4 = vector.load %arg11[%c25, %c0_2, %c0_3] : memref<26x18x8xf32, #tpu.memory_space<vmem>>, vector<1x18x8xf32>
    %5 = vector.shape_cast %4 : vector<1x18x8xf32> to vector<18x8xf32>
    %6 = vector.shape_cast %0 : vector<18x8xf32> to vector<1x18x8xf32>
    tpu.vector_store %arg11[%c25, %c0_2, %c0_3], %6 {strides = array<i32>} : memref<26x18x8xf32, #tpu.memory_space<vmem>>, vector<1x18x8xf32>,
    %cst_4 = arith.constant 0.000000e+00 : f32
    %7 = vector.broadcast %cst_4 : f32 to vector<26x1x8xf32>
    %c0_5 = arith.constant 0 : index
    %c0_6 = arith.constant 0 : index
    %c0_7 = arith.constant 0 : index
    %8 = vector.load %arg11[%c0_5, %c0_6, %c0_7] : memref<26x18x8xf32, #tpu.memory_space<vmem>>, vector<26x1x8xf32>
    tpu.vector_store %arg11[%c0_5, %c0_6, %c0_7], %7 {strides = array<i32>} : memref<26x18x8xf32, #tpu.memory_space<vmem>>, vector<26x1x8xf32>,
    %c0_8 = arith.constant 0 : index
    %c17 = arith.constant 17 : index
    %c0_9 = arith.constant 0 : index
    %9 = vector.load %arg11[%c0_8, %c17, %c0_9] : memref<26x18x8xf32, #tpu.memory_space<vmem>>, vector<26x1x8xf32>
    tpu.vector_store %arg11[%c0_8, %c17, %c0_9], %7 {strides = array<i32>} : memref<26x18x8xf32, #tpu.memory_space<vmem>>, vector<26x1x8xf32>,
    %cst_10 = arith.constant 0.000000e+00 : f32
    %10 = vector.broadcast %cst_10 : f32 to vector<10x16xf32>
    %c0_11 = arith.constant 0 : index
    %c0_12 = arith.constant 0 : index
    %c0_13 = arith.constant 0 : index
    %11 = vector.load %arg12[%c0_11, %c0_12, %c0_13] : memref<10x10x16xf32, #tpu.memory_space<vmem>>, vector<1x10x16xf32>
    %12 = vector.shape_cast %11 : vector<1x10x16xf32> to vector<10x16xf32>
    %13 = vector.shape_cast %10 : vector<10x16xf32> to vector<1x10x16xf32>
    tpu.vector_store %arg12[%c0_11, %c0_12, %c0_13], %13 {strides = array<i32>} : memref<10x10x16xf32, #tpu.memory_space<vmem>>, vector<1x10x16xf32>,
    %c9 = arith.constant 9 : index
    %c0_14 = arith.constant 0 : index
    %c0_15 = arith.constant 0 : index
    %14 = vector.load %arg12[%c9, %c0_14, %c0_15] : memref<10x10x16xf32, #tpu.memory_space<vmem>>, vector<1x10x16xf32>
    %15 = vector.shape_cast %14 : vector<1x10x16xf32> to vector<10x16xf32>
    %16 = vector.shape_cast %10 : vector<10x16xf32> to vector<1x10x16xf32>
    tpu.vector_store %arg12[%c9, %c0_14, %c0_15], %16 {strides = array<i32>} : memref<10x10x16xf32, #tpu.memory_space<vmem>>, vector<1x10x16xf32>,
    %cst_16 = arith.constant 0.000000e+00 : f32
    %17 = vector.broadcast %cst_16 : f32 to vector<10x1x16xf32>
    %c0_17 = arith.constant 0 : index
    %c0_18 = arith.constant 0 : index
    %c0_19 = arith.constant 0 : index
    %18 = vector.load %arg12[%c0_17, %c0_18, %c0_19] : memref<10x10x16xf32, #tpu.memory_space<vmem>>, vector<10x1x16xf32>
    tpu.vector_store %arg12[%c0_17, %c0_18, %c0_19], %17 {strides = array<i32>} : memref<10x10x16xf32, #tpu.memory_space<vmem>>, vector<10x1x16xf32>,
    %c0_20 = arith.constant 0 : index
    %c9_21 = arith.constant 9 : index
    %c0_22 = arith.constant 0 : index
    %19 = vector.load %arg12[%c0_20, %c9_21, %c0_22] : memref<10x10x16xf32, #tpu.memory_space<vmem>>, vector<10x1x16xf32>
    tpu.vector_store %arg12[%c0_20, %c9_21, %c0_22], %17 {strides = array<i32>} : memref<10x10x16xf32, #tpu.memory_space<vmem>>, vector<10x1x16xf32>,
    %cst_23 = arith.constant 0.000000e+00 : f32
    %20 = vector.broadcast %cst_23 : f32 to vector<10x16xf32>
    %c0_24 = arith.constant 0 : index
    %c0_25 = arith.constant 0 : index
    %c0_26 = arith.constant 0 : index
    %21 = vector.load %arg13[%c0_24, %c0_25, %c0_26] : memref<10x10x16xf32, #tpu.memory_space<vmem>>, vector<1x10x16xf32>
    %22 = vector.shape_cast %21 : vector<1x10x16xf32> to vector<10x16xf32>
    %23 = vector.shape_cast %20 : vector<10x16xf32> to vector<1x10x16xf32>
    tpu.vector_store %arg13[%c0_24, %c0_25, %c0_26], %23 {strides = array<i32>} : memref<10x10x16xf32, #tpu.memory_space<vmem>>, vector<1x10x16xf32>,
    %c9_27 = arith.constant 9 : index
    %c0_28 = arith.constant 0 : index
    %c0_29 = arith.constant 0 : index
    %24 = vector.load %arg13[%c9_27, %c0_28, %c0_29] : memref<10x10x16xf32, #tpu.memory_space<vmem>>, vector<1x10x16xf32>
    %25 = vector.shape_cast %24 : vector<1x10x16xf32> to vector<10x16xf32>
    %26 = vector.shape_cast %20 : vector<10x16xf32> to vector<1x10x16xf32>
    tpu.vector_store %arg13[%c9_27, %c0_28, %c0_29], %26 {strides = array<i32>} : memref<10x10x16xf32, #tpu.memory_space<vmem>>, vector<1x10x16xf32>,
    %cst_30 = arith.constant 0.000000e+00 : f32
    %27 = vector.broadcast %cst_30 : f32 to vector<10x1x16xf32>
    %c0_31 = arith.constant 0 : index
    %c0_32 = arith.constant 0 : index
    %c0_33 = arith.constant 0 : index
    %28 = vector.load %arg13[%c0_31, %c0_32, %c0_33] : memref<10x10x16xf32, #tpu.memory_space<vmem>>, vector<10x1x16xf32>
    tpu.vector_store %arg13[%c0_31, %c0_32, %c0_33], %27 {strides = array<i32>} : memref<10x10x16xf32, #tpu.memory_space<vmem>>, vector<10x1x16xf32>,
    %c0_34 = arith.constant 0 : index
    %c9_35 = arith.constant 9 : index
    %c0_36 = arith.constant 0 : index
    %29 = vector.load %arg13[%c0_34, %c9_35, %c0_36] : memref<10x10x16xf32, #tpu.memory_space<vmem>>, vector<10x1x16xf32>
    tpu.vector_store %arg13[%c0_34, %c9_35, %c0_36], %27 {strides = array<i32>} : memref<10x10x16xf32, #tpu.memory_space<vmem>>, vector<10x1x16xf32>,
    %cst_37 = arith.constant 0.000000e+00 : f32
    %30 = vector.broadcast %cst_37 : f32 to vector<384x8xf32>
    %c0_38 = arith.constant 0 : index
    %c0_39 = arith.constant 0 : index
    %c0_40 = arith.constant 0 : index
    %c0_41 = arith.constant 0 : index
    %31 = vector.load %arg1[%c0_38, %c0_39, %c0_40, %c0_41] : memref<1x26x18x1xf32, #tpu.memory_space<vmem>>, vector<1x24x16x1xf32>
    %32 = vector.shape_cast %31 : vector<1x24x16x1xf32> to vector<24x16x1xf32>
    %33 = vector.shape_cast %32 : vector<24x16x1xf32> to vector<384x1xf32>
    %34 = arith.truncf %33 : vector<384x1xf32> to vector<384x1xbf16>
    %c0_42 = arith.constant 0 : index
    %c0_43 = arith.constant 0 : index
    %c0_44 = arith.constant 0 : index
    %35 = vector.load %arg2[%c0_42, %c0_43, %c0_44] : memref<9x1x8xbf16, #tpu.memory_space<vmem>>, vector<1x1x8xbf16>
    %36 = vector.shape_cast %35 : vector<1x1x8xbf16> to vector<1x8xbf16>
    %cst_45 = arith.constant dense<0.000000e+00> : vector<384x8xf32>
    %37 = tpu.matmul %34, %36, %cst_45 {dimension_numbers = #tpu.dot_dimension_numbers<[1], [0], [0], [1], [0, 0, 1, 1], [], []>} : vector<384x1xbf16>, vector<1x8xbf16>, vector<384x8xf32> -> vector<384x8xf32>
    %38 = arith.addf %30, %37 : vector<384x8xf32>
    %c0_46 = arith.constant 0 : index
    %c0_47 = arith.constant 0 : index
    %c1 = arith.constant 1 : index
    %c0_48 = arith.constant 0 : index
    %39 = vector.load %arg1[%c0_46, %c0_47, %c1, %c0_48] : memref<1x26x18x1xf32, #tpu.memory_space<vmem>>, vector<1x24x16x1xf32>
    %40 = vector.shape_cast %39 : vector<1x24x16x1xf32> to vector<24x16x1xf32>
    %41 = vector.shape_cast %40 : vector<24x16x1xf32> to vector<384x1xf32>
    %42 = arith.truncf %41 : vector<384x1xf32> to vector<384x1xbf16>
    %c1_49 = arith.constant 1 : index
    %c0_50 = arith.constant 0 : index
    %c0_51 = arith.constant 0 : index
    %43 = vector.load %arg2[%c1_49, %c0_50, %c0_51] : memref<9x1x8xbf16, #tpu.memory_space<vmem>>, vector<1x1x8xbf16>
    %44 = vector.shape_cast %43 : vector<1x1x8xbf16> to vector<1x8xbf16>
    %cst_52 = arith.constant dense<0.000000e+00> : vector<384x8xf32>
    %45 = tpu.matmul %42, %44, %cst_52 {dimension_numbers = #tpu.dot_dimension_numbers<[1], [0], [0], [1], [0, 0, 1, 1], [], []>} : vector<384x1xbf16>, vector<1x8xbf16>, vector<384x8xf32> -> vector<384x8xf32>
    %46 = arith.addf %38, %45 : vector<384x8xf32>
    %c0_53 = arith.constant 0 : index
    %c0_54 = arith.constant 0 : index
    %c2 = arith.constant 2 : index
    %c0_55 = arith.constant 0 : index
    %47 = vector.load %arg1[%c0_53, %c0_54, %c2, %c0_55] : memref<1x26x18x1xf32, #tpu.memory_space<vmem>>, vector<1x24x16x1xf32>
    %48 = vector.shape_cast %47 : vector<1x24x16x1xf32> to vector<24x16x1xf32>
    %49 = vector.shape_cast %48 : vector<24x16x1xf32> to vector<384x1xf32>
    %50 = arith.truncf %49 : vector<384x1xf32> to vector<384x1xbf16>
    %c2_56 = arith.constant 2 : index
    %c0_57 = arith.constant 0 : index
    %c0_58 = arith.constant 0 : index
    %51 = vector.load %arg2[%c2_56, %c0_57, %c0_58] : memref<9x1x8xbf16, #tpu.memory_space<vmem>>, vector<1x1x8xbf16>
    %52 = vector.shape_cast %51 : vector<1x1x8xbf16> to vector<1x8xbf16>
    %cst_59 = arith.constant dense<0.000000e+00> : vector<384x8xf32>
    %53 = tpu.matmul %50, %52, %cst_59 {dimension_numbers = #tpu.dot_dimension_numbers<[1], [0], [0], [1], [0, 0, 1, 1], [], []>} : vector<384x1xbf16>, vector<1x8xbf16>, vector<384x8xf32> -> vector<384x8xf32>
    %54 = arith.addf %46, %53 : vector<384x8xf32>
    %c0_60 = arith.constant 0 : index
    %c1_61 = arith.constant 1 : index
    %c0_62 = arith.constant 0 : index
    %c0_63 = arith.constant 0 : index
    %55 = vector.load %arg1[%c0_60, %c1_61, %c0_62, %c0_63] : memref<1x26x18x1xf32, #tpu.memory_space<vmem>>, vector<1x24x16x1xf32>
    %56 = vector.shape_cast %55 : vector<1x24x16x1xf32> to vector<24x16x1xf32>
    %57 = vector.shape_cast %56 : vector<24x16x1xf32> to vector<384x1xf32>
    %58 = arith.truncf %57 : vector<384x1xf32> to vector<384x1xbf16>
    %c3 = arith.constant 3 : index
    %c0_64 = arith.constant 0 : index
    %c0_65 = arith.constant 0 : index
    %59 = vector.load %arg2[%c3, %c0_64, %c0_65] : memref<9x1x8xbf16, #tpu.memory_space<vmem>>, vector<1x1x8xbf16>
    %60 = vector.shape_cast %59 : vector<1x1x8xbf16> to vector<1x8xbf16>
    %cst_66 = arith.constant dense<0.000000e+00> : vector<384x8xf32>
    %61 = tpu.matmul %58, %60, %cst_66 {dimension_numbers = #tpu.dot_dimension_numbers<[1], [0], [0], [1], [0, 0, 1, 1], [], []>} : vector<384x1xbf16>, vector<1x8xbf16>, vector<384x8xf32> -> vector<384x8xf32>
    %62 = arith.addf %54, %61 : vector<384x8xf32>
    %c0_67 = arith.constant 0 : index
    %c1_68 = arith.constant 1 : index
    %c1_69 = arith.constant 1 : index
    %c0_70 = arith.constant 0 : index
    %63 = vector.load %arg1[%c0_67, %c1_68, %c1_69, %c0_70] : memref<1x26x18x1xf32, #tpu.memory_space<vmem>>, vector<1x24x16x1xf32>
    %64 = vector.shape_cast %63 : vector<1x24x16x1xf32> to vector<24x16x1xf32>
    %65 = vector.shape_cast %64 : vector<24x16x1xf32> to vector<384x1xf32>
    %66 = arith.truncf %65 : vector<384x1xf32> to vector<384x1xbf16>
    %c4 = arith.constant 4 : index
    %c0_71 = arith.constant 0 : index
    %c0_72 = arith.constant 0 : index
    %67 = vector.load %arg2[%c4, %c0_71, %c0_72] : memref<9x1x8xbf16, #tpu.memory_space<vmem>>, vector<1x1x8xbf16>
    %68 = vector.shape_cast %67 : vector<1x1x8xbf16> to vector<1x8xbf16>
    %cst_73 = arith.constant dense<0.000000e+00> : vector<384x8xf32>
    %69 = tpu.matmul %66, %68, %cst_73 {dimension_numbers = #tpu.dot_dimension_numbers<[1], [0], [0], [1], [0, 0, 1, 1], [], []>} : vector<384x1xbf16>, vector<1x8xbf16>, vector<384x8xf32> -> vector<384x8xf32>
    %70 = arith.addf %62, %69 : vector<384x8xf32>
    %c0_74 = arith.constant 0 : index
    %c1_75 = arith.constant 1 : index
    %c2_76 = arith.constant 2 : index
    %c0_77 = arith.constant 0 : index
    %71 = vector.load %arg1[%c0_74, %c1_75, %c2_76, %c0_77] : memref<1x26x18x1xf32, #tpu.memory_space<vmem>>, vector<1x24x16x1xf32>
    %72 = vector.shape_cast %71 : vector<1x24x16x1xf32> to vector<24x16x1xf32>
    %73 = vector.shape_cast %72 : vector<24x16x1xf32> to vector<384x1xf32>
    %74 = arith.truncf %73 : vector<384x1xf32> to vector<384x1xbf16>
    %c5 = arith.constant 5 : index
    %c0_78 = arith.constant 0 : index
    %c0_79 = arith.constant 0 : index
    %75 = vector.load %arg2[%c5, %c0_78, %c0_79] : memref<9x1x8xbf16, #tpu.memory_space<vmem>>, vector<1x1x8xbf16>
    %76 = vector.shape_cast %75 : vector<1x1x8xbf16> to vector<1x8xbf16>
    %cst_80 = arith.constant dense<0.000000e+00> : vector<384x8xf32>
    %77 = tpu.matmul %74, %76, %cst_80 {dimension_numbers = #tpu.dot_dimension_numbers<[1], [0], [0], [1], [0, 0, 1, 1], [], []>} : vector<384x1xbf16>, vector<1x8xbf16>, vector<384x8xf32> -> vector<384x8xf32>
    %78 = arith.addf %70, %77 : vector<384x8xf32>
    %c0_81 = arith.constant 0 : index
    %c2_82 = arith.constant 2 : index
    %c0_83 = arith.constant 0 : index
    %c0_84 = arith.constant 0 : index
    %79 = vector.load %arg1[%c0_81, %c2_82, %c0_83, %c0_84] : memref<1x26x18x1xf32, #tpu.memory_space<vmem>>, vector<1x24x16x1xf32>
    %80 = vector.shape_cast %79 : vector<1x24x16x1xf32> to vector<24x16x1xf32>
    %81 = vector.shape_cast %80 : vector<24x16x1xf32> to vector<384x1xf32>
    %82 = arith.truncf %81 : vector<384x1xf32> to vector<384x1xbf16>
    %c6 = arith.constant 6 : index
    %c0_85 = arith.constant 0 : index
    %c0_86 = arith.constant 0 : index
    %83 = vector.load %arg2[%c6, %c0_85, %c0_86] : memref<9x1x8xbf16, #tpu.memory_space<vmem>>, vector<1x1x8xbf16>
    %84 = vector.shape_cast %83 : vector<1x1x8xbf16> to vector<1x8xbf16>
    %cst_87 = arith.constant dense<0.000000e+00> : vector<384x8xf32>
    %85 = tpu.matmul %82, %84, %cst_87 {dimension_numbers = #tpu.dot_dimension_numbers<[1], [0], [0], [1], [0, 0, 1, 1], [], []>} : vector<384x1xbf16>, vector<1x8xbf16>, vector<384x8xf32> -> vector<384x8xf32>
    %86 = arith.addf %78, %85 : vector<384x8xf32>
    %c0_88 = arith.constant 0 : index
    %c2_89 = arith.constant 2 : index
    %c1_90 = arith.constant 1 : index
    %c0_91 = arith.constant 0 : index
    %87 = vector.load %arg1[%c0_88, %c2_89, %c1_90, %c0_91] : memref<1x26x18x1xf32, #tpu.memory_space<vmem>>, vector<1x24x16x1xf32>
    %88 = vector.shape_cast %87 : vector<1x24x16x1xf32> to vector<24x16x1xf32>
    %89 = vector.shape_cast %88 : vector<24x16x1xf32> to vector<384x1xf32>
    %90 = arith.truncf %89 : vector<384x1xf32> to vector<384x1xbf16>
    %c7 = arith.constant 7 : index
    %c0_92 = arith.constant 0 : index
    %c0_93 = arith.constant 0 : index
    %91 = vector.load %arg2[%c7, %c0_92, %c0_93] : memref<9x1x8xbf16, #tpu.memory_space<vmem>>, vector<1x1x8xbf16>
    %92 = vector.shape_cast %91 : vector<1x1x8xbf16> to vector<1x8xbf16>
    %cst_94 = arith.constant dense<0.000000e+00> : vector<384x8xf32>
    %93 = tpu.matmul %90, %92, %cst_94 {dimension_numbers = #tpu.dot_dimension_numbers<[1], [0], [0], [1], [0, 0, 1, 1], [], []>} : vector<384x1xbf16>, vector<1x8xbf16>, vector<384x8xf32> -> vector<384x8xf32>
    %94 = arith.addf %86, %93 : vector<384x8xf32>
    %c0_95 = arith.constant 0 : index
    %c2_96 = arith.constant 2 : index
    %c2_97 = arith.constant 2 : index
    %c0_98 = arith.constant 0 : index
    %95 = vector.load %arg1[%c0_95, %c2_96, %c2_97, %c0_98] : memref<1x26x18x1xf32, #tpu.memory_space<vmem>>, vector<1x24x16x1xf32>
    %96 = vector.shape_cast %95 : vector<1x24x16x1xf32> to vector<24x16x1xf32>
    %97 = vector.shape_cast %96 : vector<24x16x1xf32> to vector<384x1xf32>
    %98 = arith.truncf %97 : vector<384x1xf32> to vector<384x1xbf16>
    %c8 = arith.constant 8 : index
    %c0_99 = arith.constant 0 : index
    %c0_100 = arith.constant 0 : index
    %99 = vector.load %arg2[%c8, %c0_99, %c0_100] : memref<9x1x8xbf16, #tpu.memory_space<vmem>>, vector<1x1x8xbf16>
    %100 = vector.shape_cast %99 : vector<1x1x8xbf16> to vector<1x8xbf16>
    %cst_101 = arith.constant dense<0.000000e+00> : vector<384x8xf32>
    %101 = tpu.matmul %98, %100, %cst_101 {dimension_numbers = #tpu.dot_dimension_numbers<[1], [0], [0], [1], [0, 0, 1, 1], [], []>} : vector<384x1xbf16>, vector<1x8xbf16>, vector<384x8xf32> -> vector<384x8xf32>
    %102 = arith.addf %94, %101 : vector<384x8xf32>
    %c0_102 = arith.constant 0 : index
    %c0_103 = arith.constant 0 : index
    %103 = vector.load %arg3[%c0_102, %c0_103] : memref<1x8xf32, #tpu.memory_space<vmem>>, vector<1x8xf32>
    %104 = vector.broadcast %103 : vector<1x8xf32> to vector<384x8xf32>
    %105 = arith.addf %102, %104 : vector<384x8xf32>
    %cst_104 = arith.constant 0.000000e+00 : f32
    %106 = vector.broadcast %cst_104 : f32 to vector<384x8xf32>
    %107 = arith.maximumf %105, %106 : vector<384x8xf32>
    %108 = vector.shape_cast %107 : vector<384x8xf32> to vector<24x16x8xf32>
    %c1_105 = arith.constant 1 : index
    %c1_106 = arith.constant 1 : index
    %c0_107 = arith.constant 0 : index
    %109 = vector.load %arg11[%c1_105, %c1_106, %c0_107] : memref<26x18x8xf32, #tpu.memory_space<vmem>>, vector<24x16x8xf32>
    tpu.vector_store %arg11[%c1_105, %c1_106, %c0_107], %108 {strides = array<i32>} : memref<26x18x8xf32, #tpu.memory_space<vmem>>, vector<24x16x8xf32>,
    %cst_108 = arith.constant 0.000000e+00 : f32
    %110 = vector.broadcast %cst_108 : f32 to vector<384x16xf32>
    %c0_109 = arith.constant 0 : index
    %c0_110 = arith.constant 0 : index
    %c0_111 = arith.constant 0 : index
    %111 = vector.load %arg11[%c0_109, %c0_110, %c0_111] : memref<26x18x8xf32, #tpu.memory_space<vmem>>, vector<24x16x8xf32>
    %112 = vector.shape_cast %111 : vector<24x16x8xf32> to vector<384x8xf32>
    %113 = arith.truncf %112 : vector<384x8xf32> to vector<384x8xbf16>
    %c0_112 = arith.constant 0 : index
    %c0_113 = arith.constant 0 : index
    %c0_114 = arith.constant 0 : index
    %114 = vector.load %arg4[%c0_112, %c0_113, %c0_114] : memref<9x8x16xbf16, #tpu.memory_space<vmem>>, vector<1x8x16xbf16>
    %115 = vector.shape_cast %114 : vector<1x8x16xbf16> to vector<8x16xbf16>
    %cst_115 = arith.constant dense<0.000000e+00> : vector<384x16xf32>
    %116 = tpu.matmul %113, %115, %cst_115 {dimension_numbers = #tpu.dot_dimension_numbers<[1], [0], [0], [1], [0, 0, 1, 1], [], []>} : vector<384x8xbf16>, vector<8x16xbf16>, vector<384x16xf32> -> vector<384x16xf32>
    %117 = arith.addf %110, %116 : vector<384x16xf32>
    %c0_116 = arith.constant 0 : index
    %c1_117 = arith.constant 1 : index
    %c0_118 = arith.constant 0 : index
    %118 = vector.load %arg11[%c0_116, %c1_117, %c0_118] : memref<26x18x8xf32, #tpu.memory_space<vmem>>, vector<24x16x8xf32>
    %119 = vector.shape_cast %118 : vector<24x16x8xf32> to vector<384x8xf32>
    %120 = arith.truncf %119 : vector<384x8xf32> to vector<384x8xbf16>
    %c1_119 = arith.constant 1 : index
    %c0_120 = arith.constant 0 : index
    %c0_121 = arith.constant 0 : index
    %121 = vector.load %arg4[%c1_119, %c0_120, %c0_121] : memref<9x8x16xbf16, #tpu.memory_space<vmem>>, vector<1x8x16xbf16>
    %122 = vector.shape_cast %121 : vector<1x8x16xbf16> to vector<8x16xbf16>
    %cst_122 = arith.constant dense<0.000000e+00> : vector<384x16xf32>
    %123 = tpu.matmul %120, %122, %cst_122 {dimension_numbers = #tpu.dot_dimension_numbers<[1], [0], [0], [1], [0, 0, 1, 1], [], []>} : vector<384x8xbf16>, vector<8x16xbf16>, vector<384x16xf32> -> vector<384x16xf32>
    %124 = arith.addf %117, %123 : vector<384x16xf32>
    %c0_123 = arith.constant 0 : index
    %c2_124 = arith.constant 2 : index
    %c0_125 = arith.constant 0 : index
    %125 = vector.load %arg11[%c0_123, %c2_124, %c0_125] : memref<26x18x8xf32, #tpu.memory_space<vmem>>, vector<24x16x8xf32>
    %126 = vector.shape_cast %125 : vector<24x16x8xf32> to vector<384x8xf32>
    %127 = arith.truncf %126 : vector<384x8xf32> to vector<384x8xbf16>
    %c2_126 = arith.constant 2 : index
    %c0_127 = arith.constant 0 : index
    %c0_128 = arith.constant 0 : index
    %128 = vector.load %arg4[%c2_126, %c0_127, %c0_128] : memref<9x8x16xbf16, #tpu.memory_space<vmem>>, vector<1x8x16xbf16>
    %129 = vector.shape_cast %128 : vector<1x8x16xbf16> to vector<8x16xbf16>
    %cst_129 = arith.constant dense<0.000000e+00> : vector<384x16xf32>
    %130 = tpu.matmul %127, %129, %cst_129 {dimension_numbers = #tpu.dot_dimension_numbers<[1], [0], [0], [1], [0, 0, 1, 1], [], []>} : vector<384x8xbf16>, vector<8x16xbf16>, vector<384x16xf32> -> vector<384x16xf32>
    %131 = arith.addf %124, %130 : vector<384x16xf32>
    %c1_130 = arith.constant 1 : index
    %c0_131 = arith.constant 0 : index
    %c0_132 = arith.constant 0 : index
    %132 = vector.load %arg11[%c1_130, %c0_131, %c0_132] : memref<26x18x8xf32, #tpu.memory_space<vmem>>, vector<24x16x8xf32>
    %133 = vector.shape_cast %132 : vector<24x16x8xf32> to vector<384x8xf32>
    %134 = arith.truncf %133 : vector<384x8xf32> to vector<384x8xbf16>
    %c3_133 = arith.constant 3 : index
    %c0_134 = arith.constant 0 : index
    %c0_135 = arith.constant 0 : index
    %135 = vector.load %arg4[%c3_133, %c0_134, %c0_135] : memref<9x8x16xbf16, #tpu.memory_space<vmem>>, vector<1x8x16xbf16>
    %136 = vector.shape_cast %135 : vector<1x8x16xbf16> to vector<8x16xbf16>
    %cst_136 = arith.constant dense<0.000000e+00> : vector<384x16xf32>
    %137 = tpu.matmul %134, %136, %cst_136 {dimension_numbers = #tpu.dot_dimension_numbers<[1], [0], [0], [1], [0, 0, 1, 1], [], []>} : vector<384x8xbf16>, vector<8x16xbf16>, vector<384x16xf32> -> vector<384x16xf32>
    %138 = arith.addf %131, %137 : vector<384x16xf32>
    %c1_137 = arith.constant 1 : index
    %c1_138 = arith.constant 1 : index
    %c0_139 = arith.constant 0 : index
    %139 = vector.load %arg11[%c1_137, %c1_138, %c0_139] : memref<26x18x8xf32, #tpu.memory_space<vmem>>, vector<24x16x8xf32>
    %140 = vector.shape_cast %139 : vector<24x16x8xf32> to vector<384x8xf32>
    %141 = arith.truncf %140 : vector<384x8xf32> to vector<384x8xbf16>
    %c4_140 = arith.constant 4 : index
    %c0_141 = arith.constant 0 : index
    %c0_142 = arith.constant 0 : index
    %142 = vector.load %arg4[%c4_140, %c0_141, %c0_142] : memref<9x8x16xbf16, #tpu.memory_space<vmem>>, vector<1x8x16xbf16>
    %143 = vector.shape_cast %142 : vector<1x8x16xbf16> to vector<8x16xbf16>
    %cst_143 = arith.constant dense<0.000000e+00> : vector<384x16xf32>
    %144 = tpu.matmul %141, %143, %cst_143 {dimension_numbers = #tpu.dot_dimension_numbers<[1], [0], [0], [1], [0, 0, 1, 1], [], []>} : vector<384x8xbf16>, vector<8x16xbf16>, vector<384x16xf32> -> vector<384x16xf32>
    %145 = arith.addf %138, %144 : vector<384x16xf32>
    %c1_144 = arith.constant 1 : index
    %c2_145 = arith.constant 2 : index
    %c0_146 = arith.constant 0 : index
    %146 = vector.load %arg11[%c1_144, %c2_145, %c0_146] : memref<26x18x8xf32, #tpu.memory_space<vmem>>, vector<24x16x8xf32>
    %147 = vector.shape_cast %146 : vector<24x16x8xf32> to vector<384x8xf32>
    %148 = arith.truncf %147 : vector<384x8xf32> to vector<384x8xbf16>
    %c5_147 = arith.constant 5 : index
    %c0_148 = arith.constant 0 : index
    %c0_149 = arith.constant 0 : index
    %149 = vector.load %arg4[%c5_147, %c0_148, %c0_149] : memref<9x8x16xbf16, #tpu.memory_space<vmem>>, vector<1x8x16xbf16>
    %150 = vector.shape_cast %149 : vector<1x8x16xbf16> to vector<8x16xbf16>
    %cst_150 = arith.constant dense<0.000000e+00> : vector<384x16xf32>
    %151 = tpu.matmul %148, %150, %cst_150 {dimension_numbers = #tpu.dot_dimension_numbers<[1], [0], [0], [1], [0, 0, 1, 1], [], []>} : vector<384x8xbf16>, vector<8x16xbf16>, vector<384x16xf32> -> vector<384x16xf32>
    %152 = arith.addf %145, %151 : vector<384x16xf32>
    %c2_151 = arith.constant 2 : index
    %c0_152 = arith.constant 0 : index
    %c0_153 = arith.constant 0 : index
    %153 = vector.load %arg11[%c2_151, %c0_152, %c0_153] : memref<26x18x8xf32, #tpu.memory_space<vmem>>, vector<24x16x8xf32>
    %154 = vector.shape_cast %153 : vector<24x16x8xf32> to vector<384x8xf32>
    %155 = arith.truncf %154 : vector<384x8xf32> to vector<384x8xbf16>
    %c6_154 = arith.constant 6 : index
    %c0_155 = arith.constant 0 : index
    %c0_156 = arith.constant 0 : index
    %156 = vector.load %arg4[%c6_154, %c0_155, %c0_156] : memref<9x8x16xbf16, #tpu.memory_space<vmem>>, vector<1x8x16xbf16>
    %157 = vector.shape_cast %156 : vector<1x8x16xbf16> to vector<8x16xbf16>
    %cst_157 = arith.constant dense<0.000000e+00> : vector<384x16xf32>
    %158 = tpu.matmul %155, %157, %cst_157 {dimension_numbers = #tpu.dot_dimension_numbers<[1], [0], [0], [1], [0, 0, 1, 1], [], []>} : vector<384x8xbf16>, vector<8x16xbf16>, vector<384x16xf32> -> vector<384x16xf32>
    %159 = arith.addf %152, %158 : vector<384x16xf32>
    %c2_158 = arith.constant 2 : index
    %c1_159 = arith.constant 1 : index
    %c0_160 = arith.constant 0 : index
    %160 = vector.load %arg11[%c2_158, %c1_159, %c0_160] : memref<26x18x8xf32, #tpu.memory_space<vmem>>, vector<24x16x8xf32>
    %161 = vector.shape_cast %160 : vector<24x16x8xf32> to vector<384x8xf32>
    %162 = arith.truncf %161 : vector<384x8xf32> to vector<384x8xbf16>
    %c7_161 = arith.constant 7 : index
    %c0_162 = arith.constant 0 : index
    %c0_163 = arith.constant 0 : index
    %163 = vector.load %arg4[%c7_161, %c0_162, %c0_163] : memref<9x8x16xbf16, #tpu.memory_space<vmem>>, vector<1x8x16xbf16>
    %164 = vector.shape_cast %163 : vector<1x8x16xbf16> to vector<8x16xbf16>
    %cst_164 = arith.constant dense<0.000000e+00> : vector<384x16xf32>
    %165 = tpu.matmul %162, %164, %cst_164 {dimension_numbers = #tpu.dot_dimension_numbers<[1], [0], [0], [1], [0, 0, 1, 1], [], []>} : vector<384x8xbf16>, vector<8x16xbf16>, vector<384x16xf32> -> vector<384x16xf32>
    %166 = arith.addf %159, %165 : vector<384x16xf32>
    %c2_165 = arith.constant 2 : index
    %c2_166 = arith.constant 2 : index
    %c0_167 = arith.constant 0 : index
    %167 = vector.load %arg11[%c2_165, %c2_166, %c0_167] : memref<26x18x8xf32, #tpu.memory_space<vmem>>, vector<24x16x8xf32>
    %168 = vector.shape_cast %167 : vector<24x16x8xf32> to vector<384x8xf32>
    %169 = arith.truncf %168 : vector<384x8xf32> to vector<384x8xbf16>
    %c8_168 = arith.constant 8 : index
    %c0_169 = arith.constant 0 : index
    %c0_170 = arith.constant 0 : index
    %170 = vector.load %arg4[%c8_168, %c0_169, %c0_170] : memref<9x8x16xbf16, #tpu.memory_space<vmem>>, vector<1x8x16xbf16>
    %171 = vector.shape_cast %170 : vector<1x8x16xbf16> to vector<8x16xbf16>
    %cst_171 = arith.constant dense<0.000000e+00> : vector<384x16xf32>
    %172 = tpu.matmul %169, %171, %cst_171 {dimension_numbers = #tpu.dot_dimension_numbers<[1], [0], [0], [1], [0, 0, 1, 1], [], []>} : vector<384x8xbf16>, vector<8x16xbf16>, vector<384x16xf32> -> vector<384x16xf32>
    %173 = arith.addf %166, %172 : vector<384x16xf32>
    %c0_172 = arith.constant 0 : index
    %c0_173 = arith.constant 0 : index
    %174 = vector.load %arg5[%c0_172, %c0_173] : memref<1x16xf32, #tpu.memory_space<vmem>>, vector<1x16xf32>
    %175 = vector.broadcast %174 : vector<1x16xf32> to vector<384x16xf32>
    %176 = arith.addf %173, %175 : vector<384x16xf32>
    %cst_174 = arith.constant 0.000000e+00 : f32
    %177 = vector.broadcast %cst_174 : f32 to vector<384x16xf32>
    %178 = arith.maximumf %176, %177 : vector<384x16xf32>
    %179 = vector.shape_cast %178 : vector<384x16xf32> to vector<24x16x16xf32>
    %180 = vector.shape_cast %179 : vector<24x16x16xf32> to vector<8x3x16x16xf32>
    %cst_175 = arith.constant dense<0xFF800000> : vector<8x16x16xf32>
    %181 = vector.multi_reduction <maximumf>, %180, %cst_175 [1] : vector<8x3x16x16xf32> to vector<8x16x16xf32>
    %182 = vector.extract_strided_slice %181 {offsets = [0, 0, 0], sizes = [8, 2, 16], strides = [1, 1, 1]} : vector<8x16x16xf32> to vector<8x2x16xf32>
    %cst_176 = arith.constant dense<0xFF800000> : vector<8x16xf32>
    %183 = vector.multi_reduction <maximumf>, %182, %cst_176 [1] : vector<8x2x16xf32> to vector<8x16xf32>
    %184 = vector.shape_cast %183 : vector<8x16xf32> to vector<8x1x16xf32>
    %185 = vector.extract_strided_slice %181 {offsets = [0, 2, 0], sizes = [8, 2, 16], strides = [1, 1, 1]} : vector<8x16x16xf32> to vector<8x2x16xf32>
    %cst_177 = arith.constant dense<0xFF800000> : vector<8x16xf32>
    %186 = vector.multi_reduction <maximumf>, %185, %cst_177 [1] : vector<8x2x16xf32> to vector<8x16xf32>
    %187 = vector.shape_cast %186 : vector<8x16xf32> to vector<8x1x16xf32>
    %188 = vector.extract_strided_slice %181 {offsets = [0, 4, 0], sizes = [8, 2, 16], strides = [1, 1, 1]} : vector<8x16x16xf32> to vector<8x2x16xf32>
    %cst_178 = arith.constant dense<0xFF800000> : vector<8x16xf32>
    %189 = vector.multi_reduction <maximumf>, %188, %cst_178 [1] : vector<8x2x16xf32> to vector<8x16xf32>
    %190 = vector.shape_cast %189 : vector<8x16xf32> to vector<8x1x16xf32>
    %191 = vector.extract_strided_slice %181 {offsets = [0, 6, 0], sizes = [8, 2, 16], strides = [1, 1, 1]} : vector<8x16x16xf32> to vector<8x2x16xf32>
    %cst_179 = arith.constant dense<0xFF800000> : vector<8x16xf32>
    %192 = vector.multi_reduction <maximumf>, %191, %cst_179 [1] : vector<8x2x16xf32> to vector<8x16xf32>
    %193 = vector.shape_cast %192 : vector<8x16xf32> to vector<8x1x16xf32>
    %194 = vector.extract_strided_slice %181 {offsets = [0, 8, 0], sizes = [8, 2, 16], strides = [1, 1, 1]} : vector<8x16x16xf32> to vector<8x2x16xf32>
    %cst_180 = arith.constant dense<0xFF800000> : vector<8x16xf32>
    %195 = vector.multi_reduction <maximumf>, %194, %cst_180 [1] : vector<8x2x16xf32> to vector<8x16xf32>
    %196 = vector.shape_cast %195 : vector<8x16xf32> to vector<8x1x16xf32>
    %197 = vector.extract_strided_slice %181 {offsets = [0, 10, 0], sizes = [8, 2, 16], strides = [1, 1, 1]} : vector<8x16x16xf32> to vector<8x2x16xf32>
    %cst_181 = arith.constant dense<0xFF800000> : vector<8x16xf32>
    %198 = vector.multi_reduction <maximumf>, %197, %cst_181 [1] : vector<8x2x16xf32> to vector<8x16xf32>
    %199 = vector.shape_cast %198 : vector<8x16xf32> to vector<8x1x16xf32>
    %200 = vector.extract_strided_slice %181 {offsets = [0, 12, 0], sizes = [8, 2, 16], strides = [1, 1, 1]} : vector<8x16x16xf32> to vector<8x2x16xf32>
    %cst_182 = arith.constant dense<0xFF800000> : vector<8x16xf32>
    %201 = vector.multi_reduction <maximumf>, %200, %cst_182 [1] : vector<8x2x16xf32> to vector<8x16xf32>
    %202 = vector.shape_cast %201 : vector<8x16xf32> to vector<8x1x16xf32>
    %203 = vector.extract_strided_slice %181 {offsets = [0, 14, 0], sizes = [8, 2, 16], strides = [1, 1, 1]} : vector<8x16x16xf32> to vector<8x2x16xf32>
    %cst_183 = arith.constant dense<0xFF800000> : vector<8x16xf32>
    %204 = vector.multi_reduction <maximumf>, %203, %cst_183 [1] : vector<8x2x16xf32> to vector<8x16xf32>
    %205 = vector.shape_cast %204 : vector<8x16xf32> to vector<8x1x16xf32>
    %206 = tpu.concatenate %184, %187, %190, %193, %196, %199, %202, %205 in 1 : vector<8x1x16xf32>, vector<8x1x16xf32>, vector<8x1x16xf32>, vector<8x1x16xf32>, vector<8x1x16xf32>, vector<8x1x16xf32>, vector<8x1x16xf32>, vector<8x1x16xf32> -> vector<8x8x16xf32>
    %c1_184 = arith.constant 1 : index
    %c1_185 = arith.constant 1 : index
    %c0_186 = arith.constant 0 : index
    %207 = vector.load %arg12[%c1_184, %c1_185, %c0_186] : memref<10x10x16xf32, #tpu.memory_space<vmem>>, vector<8x8x16xf32>
    tpu.vector_store %arg12[%c1_184, %c1_185, %c0_186], %206 {strides = array<i32>} : memref<10x10x16xf32, #tpu.memory_space<vmem>>, vector<8x8x16xf32>,
    %cst_187 = arith.constant 0.000000e+00 : f32
    %208 = vector.broadcast %cst_187 : f32 to vector<64x16xf32>
    %c0_188 = arith.constant 0 : index
    %c0_189 = arith.constant 0 : index
    %c0_190 = arith.constant 0 : index
    %209 = vector.load %arg12[%c0_188, %c0_189, %c0_190] : memref<10x10x16xf32, #tpu.memory_space<vmem>>, vector<8x8x16xf32>
    %210 = vector.shape_cast %209 : vector<8x8x16xf32> to vector<64x16xf32>
    %211 = arith.truncf %210 : vector<64x16xf32> to vector<64x16xbf16>
    %c0_191 = arith.constant 0 : index
    %c0_192 = arith.constant 0 : index
    %c0_193 = arith.constant 0 : index
    %212 = vector.load %arg6[%c0_191, %c0_192, %c0_193] : memref<9x16x16xbf16, #tpu.memory_space<vmem>>, vector<1x16x16xbf16>
    %213 = vector.shape_cast %212 : vector<1x16x16xbf16> to vector<16x16xbf16>
    %cst_194 = arith.constant dense<0.000000e+00> : vector<64x16xf32>
    %214 = tpu.matmul %211, %213, %cst_194 {dimension_numbers = #tpu.dot_dimension_numbers<[1], [0], [0], [1], [0, 0, 1, 1], [], []>} : vector<64x16xbf16>, vector<16x16xbf16>, vector<64x16xf32> -> vector<64x16xf32>
    %215 = arith.addf %208, %214 : vector<64x16xf32>
    %c0_195 = arith.constant 0 : index
    %c1_196 = arith.constant 1 : index
    %c0_197 = arith.constant 0 : index
    %216 = vector.load %arg12[%c0_195, %c1_196, %c0_197] : memref<10x10x16xf32, #tpu.memory_space<vmem>>, vector<8x8x16xf32>
    %217 = vector.shape_cast %216 : vector<8x8x16xf32> to vector<64x16xf32>
    %218 = arith.truncf %217 : vector<64x16xf32> to vector<64x16xbf16>
    %c1_198 = arith.constant 1 : index
    %c0_199 = arith.constant 0 : index
    %c0_200 = arith.constant 0 : index
    %219 = vector.load %arg6[%c1_198, %c0_199, %c0_200] : memref<9x16x16xbf16, #tpu.memory_space<vmem>>, vector<1x16x16xbf16>
    %220 = vector.shape_cast %219 : vector<1x16x16xbf16> to vector<16x16xbf16>
    %cst_201 = arith.constant dense<0.000000e+00> : vector<64x16xf32>
    %221 = tpu.matmul %218, %220, %cst_201 {dimension_numbers = #tpu.dot_dimension_numbers<[1], [0], [0], [1], [0, 0, 1, 1], [], []>} : vector<64x16xbf16>, vector<16x16xbf16>, vector<64x16xf32> -> vector<64x16xf32>
    %222 = arith.addf %215, %221 : vector<64x16xf32>
    %c0_202 = arith.constant 0 : index
    %c2_203 = arith.constant 2 : index
    %c0_204 = arith.constant 0 : index
    %223 = vector.load %arg12[%c0_202, %c2_203, %c0_204] : memref<10x10x16xf32, #tpu.memory_space<vmem>>, vector<8x8x16xf32>
    %224 = vector.shape_cast %223 : vector<8x8x16xf32> to vector<64x16xf32>
    %225 = arith.truncf %224 : vector<64x16xf32> to vector<64x16xbf16>
    %c2_205 = arith.constant 2 : index
    %c0_206 = arith.constant 0 : index
    %c0_207 = arith.constant 0 : index
    %226 = vector.load %arg6[%c2_205, %c0_206, %c0_207] : memref<9x16x16xbf16, #tpu.memory_space<vmem>>, vector<1x16x16xbf16>
    %227 = vector.shape_cast %226 : vector<1x16x16xbf16> to vector<16x16xbf16>
    %cst_208 = arith.constant dense<0.000000e+00> : vector<64x16xf32>
    %228 = tpu.matmul %225, %227, %cst_208 {dimension_numbers = #tpu.dot_dimension_numbers<[1], [0], [0], [1], [0, 0, 1, 1], [], []>} : vector<64x16xbf16>, vector<16x16xbf16>, vector<64x16xf32> -> vector<64x16xf32>
    %229 = arith.addf %222, %228 : vector<64x16xf32>
    %c1_209 = arith.constant 1 : index
    %c0_210 = arith.constant 0 : index
    %c0_211 = arith.constant 0 : index
    %230 = vector.load %arg12[%c1_209, %c0_210, %c0_211] : memref<10x10x16xf32, #tpu.memory_space<vmem>>, vector<8x8x16xf32>
    %231 = vector.shape_cast %230 : vector<8x8x16xf32> to vector<64x16xf32>
    %232 = arith.truncf %231 : vector<64x16xf32> to vector<64x16xbf16>
    %c3_212 = arith.constant 3 : index
    %c0_213 = arith.constant 0 : index
    %c0_214 = arith.constant 0 : index
    %233 = vector.load %arg6[%c3_212, %c0_213, %c0_214] : memref<9x16x16xbf16, #tpu.memory_space<vmem>>, vector<1x16x16xbf16>
    %234 = vector.shape_cast %233 : vector<1x16x16xbf16> to vector<16x16xbf16>
    %cst_215 = arith.constant dense<0.000000e+00> : vector<64x16xf32>
    %235 = tpu.matmul %232, %234, %cst_215 {dimension_numbers = #tpu.dot_dimension_numbers<[1], [0], [0], [1], [0, 0, 1, 1], [], []>} : vector<64x16xbf16>, vector<16x16xbf16>, vector<64x16xf32> -> vector<64x16xf32>
    %236 = arith.addf %229, %235 : vector<64x16xf32>
    %c1_216 = arith.constant 1 : index
    %c1_217 = arith.constant 1 : index
    %c0_218 = arith.constant 0 : index
    %237 = vector.load %arg12[%c1_216, %c1_217, %c0_218] : memref<10x10x16xf32, #tpu.memory_space<vmem>>, vector<8x8x16xf32>
    %238 = vector.shape_cast %237 : vector<8x8x16xf32> to vector<64x16xf32>
    %239 = arith.truncf %238 : vector<64x16xf32> to vector<64x16xbf16>
    %c4_219 = arith.constant 4 : index
    %c0_220 = arith.constant 0 : index
    %c0_221 = arith.constant 0 : index
    %240 = vector.load %arg6[%c4_219, %c0_220, %c0_221] : memref<9x16x16xbf16, #tpu.memory_space<vmem>>, vector<1x16x16xbf16>
    %241 = vector.shape_cast %240 : vector<1x16x16xbf16> to vector<16x16xbf16>
    %cst_222 = arith.constant dense<0.000000e+00> : vector<64x16xf32>
    %242 = tpu.matmul %239, %241, %cst_222 {dimension_numbers = #tpu.dot_dimension_numbers<[1], [0], [0], [1], [0, 0, 1, 1], [], []>} : vector<64x16xbf16>, vector<16x16xbf16>, vector<64x16xf32> -> vector<64x16xf32>
    %243 = arith.addf %236, %242 : vector<64x16xf32>
    %c1_223 = arith.constant 1 : index
    %c2_224 = arith.constant 2 : index
    %c0_225 = arith.constant 0 : index
    %244 = vector.load %arg12[%c1_223, %c2_224, %c0_225] : memref<10x10x16xf32, #tpu.memory_space<vmem>>, vector<8x8x16xf32>
    %245 = vector.shape_cast %244 : vector<8x8x16xf32> to vector<64x16xf32>
    %246 = arith.truncf %245 : vector<64x16xf32> to vector<64x16xbf16>
    %c5_226 = arith.constant 5 : index
    %c0_227 = arith.constant 0 : index
    %c0_228 = arith.constant 0 : index
    %247 = vector.load %arg6[%c5_226, %c0_227, %c0_228] : memref<9x16x16xbf16, #tpu.memory_space<vmem>>, vector<1x16x16xbf16>
    %248 = vector.shape_cast %247 : vector<1x16x16xbf16> to vector<16x16xbf16>
    %cst_229 = arith.constant dense<0.000000e+00> : vector<64x16xf32>
    %249 = tpu.matmul %246, %248, %cst_229 {dimension_numbers = #tpu.dot_dimension_numbers<[1], [0], [0], [1], [0, 0, 1, 1], [], []>} : vector<64x16xbf16>, vector<16x16xbf16>, vector<64x16xf32> -> vector<64x16xf32>
    %250 = arith.addf %243, %249 : vector<64x16xf32>
    %c2_230 = arith.constant 2 : index
    %c0_231 = arith.constant 0 : index
    %c0_232 = arith.constant 0 : index
    %251 = vector.load %arg12[%c2_230, %c0_231, %c0_232] : memref<10x10x16xf32, #tpu.memory_space<vmem>>, vector<8x8x16xf32>
    %252 = vector.shape_cast %251 : vector<8x8x16xf32> to vector<64x16xf32>
    %253 = arith.truncf %252 : vector<64x16xf32> to vector<64x16xbf16>
    %c6_233 = arith.constant 6 : index
    %c0_234 = arith.constant 0 : index
    %c0_235 = arith.constant 0 : index
    %254 = vector.load %arg6[%c6_233, %c0_234, %c0_235] : memref<9x16x16xbf16, #tpu.memory_space<vmem>>, vector<1x16x16xbf16>
    %255 = vector.shape_cast %254 : vector<1x16x16xbf16> to vector<16x16xbf16>
    %cst_236 = arith.constant dense<0.000000e+00> : vector<64x16xf32>
    %256 = tpu.matmul %253, %255, %cst_236 {dimension_numbers = #tpu.dot_dimension_numbers<[1], [0], [0], [1], [0, 0, 1, 1], [], []>} : vector<64x16xbf16>, vector<16x16xbf16>, vector<64x16xf32> -> vector<64x16xf32>
    %257 = arith.addf %250, %256 : vector<64x16xf32>
    %c2_237 = arith.constant 2 : index
    %c1_238 = arith.constant 1 : index
    %c0_239 = arith.constant 0 : index
    %258 = vector.load %arg12[%c2_237, %c1_238, %c0_239] : memref<10x10x16xf32, #tpu.memory_space<vmem>>, vector<8x8x16xf32>
    %259 = vector.shape_cast %258 : vector<8x8x16xf32> to vector<64x16xf32>
    %260 = arith.truncf %259 : vector<64x16xf32> to vector<64x16xbf16>
    %c7_240 = arith.constant 7 : index
    %c0_241 = arith.constant 0 : index
    %c0_242 = arith.constant 0 : index
    %261 = vector.load %arg6[%c7_240, %c0_241, %c0_242] : memref<9x16x16xbf16, #tpu.memory_space<vmem>>, vector<1x16x16xbf16>
    %262 = vector.shape_cast %261 : vector<1x16x16xbf16> to vector<16x16xbf16>
    %cst_243 = arith.constant dense<0.000000e+00> : vector<64x16xf32>
    %263 = tpu.matmul %260, %262, %cst_243 {dimension_numbers = #tpu.dot_dimension_numbers<[1], [0], [0], [1], [0, 0, 1, 1], [], []>} : vector<64x16xbf16>, vector<16x16xbf16>, vector<64x16xf32> -> vector<64x16xf32>
    %264 = arith.addf %257, %263 : vector<64x16xf32>
    %c2_244 = arith.constant 2 : index
    %c2_245 = arith.constant 2 : index
    %c0_246 = arith.constant 0 : index
    %265 = vector.load %arg12[%c2_244, %c2_245, %c0_246] : memref<10x10x16xf32, #tpu.memory_space<vmem>>, vector<8x8x16xf32>
    %266 = vector.shape_cast %265 : vector<8x8x16xf32> to vector<64x16xf32>
    %267 = arith.truncf %266 : vector<64x16xf32> to vector<64x16xbf16>
    %c8_247 = arith.constant 8 : index
    %c0_248 = arith.constant 0 : index
    %c0_249 = arith.constant 0 : index
    %268 = vector.load %arg6[%c8_247, %c0_248, %c0_249] : memref<9x16x16xbf16, #tpu.memory_space<vmem>>, vector<1x16x16xbf16>
    %269 = vector.shape_cast %268 : vector<1x16x16xbf16> to vector<16x16xbf16>
    %cst_250 = arith.constant dense<0.000000e+00> : vector<64x16xf32>
    %270 = tpu.matmul %267, %269, %cst_250 {dimension_numbers = #tpu.dot_dimension_numbers<[1], [0], [0], [1], [0, 0, 1, 1], [], []>} : vector<64x16xbf16>, vector<16x16xbf16>, vector<64x16xf32> -> vector<64x16xf32>
    %271 = arith.addf %264, %270 : vector<64x16xf32>
    %c0_251 = arith.constant 0 : index
    %c0_252 = arith.constant 0 : index
    %272 = vector.load %arg7[%c0_251, %c0_252] : memref<1x16xf32, #tpu.memory_space<vmem>>, vector<1x16xf32>
    %273 = vector.broadcast %272 : vector<1x16xf32> to vector<64x16xf32>
    %274 = arith.addf %271, %273 : vector<64x16xf32>
    %cst_253 = arith.constant 0.000000e+00 : f32
    %275 = vector.broadcast %cst_253 : f32 to vector<64x16xf32>
    %276 = arith.maximumf %274, %275 : vector<64x16xf32>
    %277 = vector.shape_cast %276 : vector<64x16xf32> to vector<8x8x16xf32>
    %c1_254 = arith.constant 1 : index
    %c1_255 = arith.constant 1 : index
    %c0_256 = arith.constant 0 : index
    %278 = vector.load %arg13[%c1_254, %c1_255, %c0_256] : memref<10x10x16xf32, #tpu.memory_space<vmem>>, vector<8x8x16xf32>
    tpu.vector_store %arg13[%c1_254, %c1_255, %c0_256], %277 {strides = array<i32>} : memref<10x10x16xf32, #tpu.memory_space<vmem>>, vector<8x8x16xf32>,
    %cst_257 = arith.constant 0.000000e+00 : f32
    %279 = vector.broadcast %cst_257 : f32 to vector<64x32xf32>
    %c0_258 = arith.constant 0 : index
    %c0_259 = arith.constant 0 : index
    %c0_260 = arith.constant 0 : index
    %280 = vector.load %arg13[%c0_258, %c0_259, %c0_260] : memref<10x10x16xf32, #tpu.memory_space<vmem>>, vector<8x8x16xf32>
    %281 = vector.shape_cast %280 : vector<8x8x16xf32> to vector<64x16xf32>
    %282 = arith.truncf %281 : vector<64x16xf32> to vector<64x16xbf16>
    %c0_261 = arith.constant 0 : index
    %c0_262 = arith.constant 0 : index
    %c0_263 = arith.constant 0 : index
    %283 = vector.load %arg8[%c0_261, %c0_262, %c0_263] : memref<9x16x32xbf16, #tpu.memory_space<vmem>>, vector<1x16x32xbf16>
    %284 = vector.shape_cast %283 : vector<1x16x32xbf16> to vector<16x32xbf16>
    %cst_264 = arith.constant dense<0.000000e+00> : vector<64x32xf32>
    %285 = tpu.matmul %282, %284, %cst_264 {dimension_numbers = #tpu.dot_dimension_numbers<[1], [0], [0], [1], [0, 0, 1, 1], [], []>} : vector<64x16xbf16>, vector<16x32xbf16>, vector<64x32xf32> -> vector<64x32xf32>
    %286 = arith.addf %279, %285 : vector<64x32xf32>
    %c0_265 = arith.constant 0 : index
    %c1_266 = arith.constant 1 : index
    %c0_267 = arith.constant 0 : index
    %287 = vector.load %arg13[%c0_265, %c1_266, %c0_267] : memref<10x10x16xf32, #tpu.memory_space<vmem>>, vector<8x8x16xf32>
    %288 = vector.shape_cast %287 : vector<8x8x16xf32> to vector<64x16xf32>
    %289 = arith.truncf %288 : vector<64x16xf32> to vector<64x16xbf16>
    %c1_268 = arith.constant 1 : index
    %c0_269 = arith.constant 0 : index
    %c0_270 = arith.constant 0 : index
    %290 = vector.load %arg8[%c1_268, %c0_269, %c0_270] : memref<9x16x32xbf16, #tpu.memory_space<vmem>>, vector<1x16x32xbf16>
    %291 = vector.shape_cast %290 : vector<1x16x32xbf16> to vector<16x32xbf16>
    %cst_271 = arith.constant dense<0.000000e+00> : vector<64x32xf32>
    %292 = tpu.matmul %289, %291, %cst_271 {dimension_numbers = #tpu.dot_dimension_numbers<[1], [0], [0], [1], [0, 0, 1, 1], [], []>} : vector<64x16xbf16>, vector<16x32xbf16>, vector<64x32xf32> -> vector<64x32xf32>
    %293 = arith.addf %286, %292 : vector<64x32xf32>
    %c0_272 = arith.constant 0 : index
    %c2_273 = arith.constant 2 : index
    %c0_274 = arith.constant 0 : index
    %294 = vector.load %arg13[%c0_272, %c2_273, %c0_274] : memref<10x10x16xf32, #tpu.memory_space<vmem>>, vector<8x8x16xf32>
    %295 = vector.shape_cast %294 : vector<8x8x16xf32> to vector<64x16xf32>
    %296 = arith.truncf %295 : vector<64x16xf32> to vector<64x16xbf16>
    %c2_275 = arith.constant 2 : index
    %c0_276 = arith.constant 0 : index
    %c0_277 = arith.constant 0 : index
    %297 = vector.load %arg8[%c2_275, %c0_276, %c0_277] : memref<9x16x32xbf16, #tpu.memory_space<vmem>>, vector<1x16x32xbf16>
    %298 = vector.shape_cast %297 : vector<1x16x32xbf16> to vector<16x32xbf16>
    %cst_278 = arith.constant dense<0.000000e+00> : vector<64x32xf32>
    %299 = tpu.matmul %296, %298, %cst_278 {dimension_numbers = #tpu.dot_dimension_numbers<[1], [0], [0], [1], [0, 0, 1, 1], [], []>} : vector<64x16xbf16>, vector<16x32xbf16>, vector<64x32xf32> -> vector<64x32xf32>
    %300 = arith.addf %293, %299 : vector<64x32xf32>
    %c1_279 = arith.constant 1 : index
    %c0_280 = arith.constant 0 : index
    %c0_281 = arith.constant 0 : index
    %301 = vector.load %arg13[%c1_279, %c0_280, %c0_281] : memref<10x10x16xf32, #tpu.memory_space<vmem>>, vector<8x8x16xf32>
    %302 = vector.shape_cast %301 : vector<8x8x16xf32> to vector<64x16xf32>
    %303 = arith.truncf %302 : vector<64x16xf32> to vector<64x16xbf16>
    %c3_282 = arith.constant 3 : index
    %c0_283 = arith.constant 0 : index
    %c0_284 = arith.constant 0 : index
    %304 = vector.load %arg8[%c3_282, %c0_283, %c0_284] : memref<9x16x32xbf16, #tpu.memory_space<vmem>>, vector<1x16x32xbf16>
    %305 = vector.shape_cast %304 : vector<1x16x32xbf16> to vector<16x32xbf16>
    %cst_285 = arith.constant dense<0.000000e+00> : vector<64x32xf32>
    %306 = tpu.matmul %303, %305, %cst_285 {dimension_numbers = #tpu.dot_dimension_numbers<[1], [0], [0], [1], [0, 0, 1, 1], [], []>} : vector<64x16xbf16>, vector<16x32xbf16>, vector<64x32xf32> -> vector<64x32xf32>
    %307 = arith.addf %300, %306 : vector<64x32xf32>
    %c1_286 = arith.constant 1 : index
    %c1_287 = arith.constant 1 : index
    %c0_288 = arith.constant 0 : index
    %308 = vector.load %arg13[%c1_286, %c1_287, %c0_288] : memref<10x10x16xf32, #tpu.memory_space<vmem>>, vector<8x8x16xf32>
    %309 = vector.shape_cast %308 : vector<8x8x16xf32> to vector<64x16xf32>
    %310 = arith.truncf %309 : vector<64x16xf32> to vector<64x16xbf16>
    %c4_289 = arith.constant 4 : index
    %c0_290 = arith.constant 0 : index
    %c0_291 = arith.constant 0 : index
    %311 = vector.load %arg8[%c4_289, %c0_290, %c0_291] : memref<9x16x32xbf16, #tpu.memory_space<vmem>>, vector<1x16x32xbf16>
    %312 = vector.shape_cast %311 : vector<1x16x32xbf16> to vector<16x32xbf16>
    %cst_292 = arith.constant dense<0.000000e+00> : vector<64x32xf32>
    %313 = tpu.matmul %310, %312, %cst_292 {dimension_numbers = #tpu.dot_dimension_numbers<[1], [0], [0], [1], [0, 0, 1, 1], [], []>} : vector<64x16xbf16>, vector<16x32xbf16>, vector<64x32xf32> -> vector<64x32xf32>
    %314 = arith.addf %307, %313 : vector<64x32xf32>
    %c1_293 = arith.constant 1 : index
    %c2_294 = arith.constant 2 : index
    %c0_295 = arith.constant 0 : index
    %315 = vector.load %arg13[%c1_293, %c2_294, %c0_295] : memref<10x10x16xf32, #tpu.memory_space<vmem>>, vector<8x8x16xf32>
    %316 = vector.shape_cast %315 : vector<8x8x16xf32> to vector<64x16xf32>
    %317 = arith.truncf %316 : vector<64x16xf32> to vector<64x16xbf16>
    %c5_296 = arith.constant 5 : index
    %c0_297 = arith.constant 0 : index
    %c0_298 = arith.constant 0 : index
    %318 = vector.load %arg8[%c5_296, %c0_297, %c0_298] : memref<9x16x32xbf16, #tpu.memory_space<vmem>>, vector<1x16x32xbf16>
    %319 = vector.shape_cast %318 : vector<1x16x32xbf16> to vector<16x32xbf16>
    %cst_299 = arith.constant dense<0.000000e+00> : vector<64x32xf32>
    %320 = tpu.matmul %317, %319, %cst_299 {dimension_numbers = #tpu.dot_dimension_numbers<[1], [0], [0], [1], [0, 0, 1, 1], [], []>} : vector<64x16xbf16>, vector<16x32xbf16>, vector<64x32xf32> -> vector<64x32xf32>
    %321 = arith.addf %314, %320 : vector<64x32xf32>
    %c2_300 = arith.constant 2 : index
    %c0_301 = arith.constant 0 : index
    %c0_302 = arith.constant 0 : index
    %322 = vector.load %arg13[%c2_300, %c0_301, %c0_302] : memref<10x10x16xf32, #tpu.memory_space<vmem>>, vector<8x8x16xf32>
    %323 = vector.shape_cast %322 : vector<8x8x16xf32> to vector<64x16xf32>
    %324 = arith.truncf %323 : vector<64x16xf32> to vector<64x16xbf16>
    %c6_303 = arith.constant 6 : index
    %c0_304 = arith.constant 0 : index
    %c0_305 = arith.constant 0 : index
    %325 = vector.load %arg8[%c6_303, %c0_304, %c0_305] : memref<9x16x32xbf16, #tpu.memory_space<vmem>>, vector<1x16x32xbf16>
    %326 = vector.shape_cast %325 : vector<1x16x32xbf16> to vector<16x32xbf16>
    %cst_306 = arith.constant dense<0.000000e+00> : vector<64x32xf32>
    %327 = tpu.matmul %324, %326, %cst_306 {dimension_numbers = #tpu.dot_dimension_numbers<[1], [0], [0], [1], [0, 0, 1, 1], [], []>} : vector<64x16xbf16>, vector<16x32xbf16>, vector<64x32xf32> -> vector<64x32xf32>
    %328 = arith.addf %321, %327 : vector<64x32xf32>
    %c2_307 = arith.constant 2 : index
    %c1_308 = arith.constant 1 : index
    %c0_309 = arith.constant 0 : index
    %329 = vector.load %arg13[%c2_307, %c1_308, %c0_309] : memref<10x10x16xf32, #tpu.memory_space<vmem>>, vector<8x8x16xf32>
    %330 = vector.shape_cast %329 : vector<8x8x16xf32> to vector<64x16xf32>
    %331 = arith.truncf %330 : vector<64x16xf32> to vector<64x16xbf16>
    %c7_310 = arith.constant 7 : index
    %c0_311 = arith.constant 0 : index
    %c0_312 = arith.constant 0 : index
    %332 = vector.load %arg8[%c7_310, %c0_311, %c0_312] : memref<9x16x32xbf16, #tpu.memory_space<vmem>>, vector<1x16x32xbf16>
    %333 = vector.shape_cast %332 : vector<1x16x32xbf16> to vector<16x32xbf16>
    %cst_313 = arith.constant dense<0.000000e+00> : vector<64x32xf32>
    %334 = tpu.matmul %331, %333, %cst_313 {dimension_numbers = #tpu.dot_dimension_numbers<[1], [0], [0], [1], [0, 0, 1, 1], [], []>} : vector<64x16xbf16>, vector<16x32xbf16>, vector<64x32xf32> -> vector<64x32xf32>
    %335 = arith.addf %328, %334 : vector<64x32xf32>
    %c2_314 = arith.constant 2 : index
    %c2_315 = arith.constant 2 : index
    %c0_316 = arith.constant 0 : index
    %336 = vector.load %arg13[%c2_314, %c2_315, %c0_316] : memref<10x10x16xf32, #tpu.memory_space<vmem>>, vector<8x8x16xf32>
    %337 = vector.shape_cast %336 : vector<8x8x16xf32> to vector<64x16xf32>
    %338 = arith.truncf %337 : vector<64x16xf32> to vector<64x16xbf16>
    %c8_317 = arith.constant 8 : index
    %c0_318 = arith.constant 0 : index
    %c0_319 = arith.constant 0 : index
    %339 = vector.load %arg8[%c8_317, %c0_318, %c0_319] : memref<9x16x32xbf16, #tpu.memory_space<vmem>>, vector<1x16x32xbf16>
    %340 = vector.shape_cast %339 : vector<1x16x32xbf16> to vector<16x32xbf16>
    %cst_320 = arith.constant dense<0.000000e+00> : vector<64x32xf32>
    %341 = tpu.matmul %338, %340, %cst_320 {dimension_numbers = #tpu.dot_dimension_numbers<[1], [0], [0], [1], [0, 0, 1, 1], [], []>} : vector<64x16xbf16>, vector<16x32xbf16>, vector<64x32xf32> -> vector<64x32xf32>
    %342 = arith.addf %335, %341 : vector<64x32xf32>
    %c0_321 = arith.constant 0 : index
    %c0_322 = arith.constant 0 : index
    %343 = vector.load %arg9[%c0_321, %c0_322] : memref<1x32xf32, #tpu.memory_space<vmem>>, vector<1x32xf32>
    %344 = vector.broadcast %343 : vector<1x32xf32> to vector<64x32xf32>
    %345 = arith.addf %342, %344 : vector<64x32xf32>
    %cst_323 = arith.constant 0.000000e+00 : f32
    %346 = vector.broadcast %cst_323 : f32 to vector<64x32xf32>
    %347 = arith.maximumf %345, %346 : vector<64x32xf32>
    %348 = vector.shape_cast %347 : vector<64x32xf32> to vector<8x8x32xf32>
    %349 = vector.shape_cast %348 : vector<8x8x32xf32> to vector<2x4x8x32xf32>
    %cst_324 = arith.constant dense<0xFF800000> : vector<2x8x32xf32>
    %350 = vector.multi_reduction <maximumf>, %349, %cst_324 [1] : vector<2x4x8x32xf32> to vector<2x8x32xf32>
    %351 = vector.extract_strided_slice %350 {offsets = [0, 0, 0], sizes = [2, 2, 32], strides = [1, 1, 1]} : vector<2x8x32xf32> to vector<2x2x32xf32>
    %cst_325 = arith.constant dense<0xFF800000> : vector<2x32xf32>
    %352 = vector.multi_reduction <maximumf>, %351, %cst_325 [1] : vector<2x2x32xf32> to vector<2x32xf32>
    %353 = vector.shape_cast %352 : vector<2x32xf32> to vector<2x1x32xf32>
    %354 = vector.extract_strided_slice %350 {offsets = [0, 2, 0], sizes = [2, 2, 32], strides = [1, 1, 1]} : vector<2x8x32xf32> to vector<2x2x32xf32>
    %cst_326 = arith.constant dense<0xFF800000> : vector<2x32xf32>
    %355 = vector.multi_reduction <maximumf>, %354, %cst_326 [1] : vector<2x2x32xf32> to vector<2x32xf32>
    %356 = vector.shape_cast %355 : vector<2x32xf32> to vector<2x1x32xf32>
    %357 = vector.extract_strided_slice %350 {offsets = [0, 4, 0], sizes = [2, 2, 32], strides = [1, 1, 1]} : vector<2x8x32xf32> to vector<2x2x32xf32>
    %cst_327 = arith.constant dense<0xFF800000> : vector<2x32xf32>
    %358 = vector.multi_reduction <maximumf>, %357, %cst_327 [1] : vector<2x2x32xf32> to vector<2x32xf32>
    %359 = vector.shape_cast %358 : vector<2x32xf32> to vector<2x1x32xf32>
    %360 = vector.extract_strided_slice %350 {offsets = [0, 6, 0], sizes = [2, 2, 32], strides = [1, 1, 1]} : vector<2x8x32xf32> to vector<2x2x32xf32>
    %cst_328 = arith.constant dense<0xFF800000> : vector<2x32xf32>
    %361 = vector.multi_reduction <maximumf>, %360, %cst_328 [1] : vector<2x2x32xf32> to vector<2x32xf32>
    %362 = vector.shape_cast %361 : vector<2x32xf32> to vector<2x1x32xf32>
    %363 = tpu.concatenate %353, %356, %359, %362 in 2 : vector<2x1x32xf32>, vector<2x1x32xf32>, vector<2x1x32xf32>, vector<2x1x32xf32> -> vector<2x1x128xf32>
    %c0_329 = arith.constant 0 : index
    %c0_330 = arith.constant 0 : index
    %c0_331 = arith.constant 0 : index
    %c0_332 = arith.constant 0 : index
    %364 = vector.load %arg10[%c0_329, %c0_330, %c0_331, %c0_332] : memref<1x2x1x128xf32, #tpu.memory_space<vmem>>, vector<1x2x1x128xf32>
    %365 = vector.shape_cast %364 : vector<1x2x1x128xf32> to vector<2x1x128xf32>
    %366 = vector.shape_cast %363 : vector<2x1x128xf32> to vector<1x2x1x128xf32>
    tpu.vector_store %arg10[%c0_329, %c0_330, %c0_331, %c0_332], %366 {strides = array<i32>} : memref<1x2x1x128xf32, #tpu.memory_space<vmem>>, vector<1x2x1x128xf32>,
    return
  }
  func.func @transform_0(%arg0: i32) -> (i32, i32, i32, i32) {
    %c0_i32 = arith.constant 0 : i32
    %c0_i32_0 = arith.constant 0 : i32
    %c0_i32_1 = arith.constant 0 : i32
    %c0_i32_2 = arith.constant 0 : i32
    return %arg0, %c0_i32, %c0_i32_0, %c0_i32_1 : i32, i32, i32, i32
  }
  func.func @transform_1(%arg0: i32) -> (i32, i32, i32) {
    %c0_i32 = arith.constant 0 : i32
    %c0_i32_0 = arith.constant 0 : i32
    %c0_i32_1 = arith.constant 0 : i32
    %c0_i32_2 = arith.constant 0 : i32
    return %c0_i32, %c0_i32_0, %c0_i32_1 : i32, i32, i32
  }
  func.func @transform_2(%arg0: i32) -> (i32, i32) {
    %c0_i32 = arith.constant 0 : i32
    %c0_i32_0 = arith.constant 0 : i32
    %c0_i32_1 = arith.constant 0 : i32
    return %c0_i32, %c0_i32_0 : i32, i32
  }
  func.func @transform_3(%arg0: i32) -> (i32, i32, i32) {
    %c0_i32 = arith.constant 0 : i32
    %c0_i32_0 = arith.constant 0 : i32
    %c0_i32_1 = arith.constant 0 : i32
    %c0_i32_2 = arith.constant 0 : i32
    return %c0_i32, %c0_i32_0, %c0_i32_1 : i32, i32, i32
  }
  func.func @transform_4(%arg0: i32) -> (i32, i32) {
    %c0_i32 = arith.constant 0 : i32
    %c0_i32_0 = arith.constant 0 : i32
    %c0_i32_1 = arith.constant 0 : i32
    return %c0_i32, %c0_i32_0 : i32, i32
  }
  func.func @transform_5(%arg0: i32) -> (i32, i32, i32) {
    %c0_i32 = arith.constant 0 : i32
    %c0_i32_0 = arith.constant 0 : i32
    %c0_i32_1 = arith.constant 0 : i32
    %c0_i32_2 = arith.constant 0 : i32
    return %c0_i32, %c0_i32_0, %c0_i32_1 : i32, i32, i32
  }
  func.func @transform_6(%arg0: i32) -> (i32, i32) {
    %c0_i32 = arith.constant 0 : i32
    %c0_i32_0 = arith.constant 0 : i32
    %c0_i32_1 = arith.constant 0 : i32
    return %c0_i32, %c0_i32_0 : i32, i32
  }
  func.func @transform_7(%arg0: i32) -> (i32, i32, i32) {
    %c0_i32 = arith.constant 0 : i32
    %c0_i32_0 = arith.constant 0 : i32
    %c0_i32_1 = arith.constant 0 : i32
    %c0_i32_2 = arith.constant 0 : i32
    return %c0_i32, %c0_i32_0, %c0_i32_1 : i32, i32, i32
  }
  func.func @transform_8(%arg0: i32) -> (i32, i32) {
    %c0_i32 = arith.constant 0 : i32
    %c0_i32_0 = arith.constant 0 : i32
    %c0_i32_1 = arith.constant 0 : i32
    return %c0_i32, %c0_i32_0 : i32, i32
  }
  func.func @transform_9(%arg0: i32) -> (i32, i32, i32, i32) {
    %c0_i32 = arith.constant 0 : i32
    %c0_i32_0 = arith.constant 0 : i32
    %c0_i32_1 = arith.constant 0 : i32
    %c0_i32_2 = arith.constant 0 : i32
    return %arg0, %c0_i32, %c0_i32_0, %c0_i32_1 : i32, i32, i32, i32
  }
}

</mosaic_0001>

<bundles_post_ra>
// kernel: encoder_forward.3
= control target key start
LH: loop header
LB: loop body
LE: loop exit
PB: predicated region body
PF: predicated region fallthrough
CT: control target
= control target key end

     0   :  { %v689_v1 = vmov 0.0   ;;  %vm690_vm0 = vmmov 0   ;;  %vm169_vm1 = vcmask 130048   ;;  %s906_s0 = inlined_call_operand.vmem [shape: f32[4,128], index: 0, kind: input, shape index: {}]   ;;  %s907_s1 = inlined_call_operand.vmem [shape: f32[2,2,16], index: 1, kind: input, shape index: {}]   ;;  %s908_s2 = inlined_call_operand.vmem [shape: bf16[128,96], index: 2, kind: input, shape index: {}]   ;;  %s909_s3 = inlined_call_operand.vmem [shape: bf16[2,16,48], index: 3, kind: input, shape index: {}]   ;;  %s910_s4 = inlined_call_operand.vmem [shape: f32[1,96], index: 4, kind: input, shape index: {}]   ;;  %s911_s5 = inlined_call_operand.vmem [shape: f32[2,1,48], index: 5, kind: input, shape index: {}]   ;;  %s912_s6 = inlined_call_operand.vmem [shape: f32[2,2,16], index: 6, kind: output, shape index: {0}]   ;;  %s913_s7 = inlined_call_operand.vmem [shape: f32[2,2,16], index: 7, kind: output, shape index: {1}]   ;;  %s914_s8 = inlined_call_operand.hbm [shape: f32[2,2,16], index: 8, kind: output, shape index: {2}]  }
   0x1   :  { %v631_v0 = vld [vmem:[%s908_s2] sm:$0xff]   ;;  %577 = vmatprep.subr.bf16.mxu0 %v689_v1  ;;  %597 = vmatprep.subr.bf16.mxu1 %v689_v1  ;;  %v633_v4 = vld [vmem:[%s908_s2 + $0x8] sm:$0xff]   ;;  %v635_v7 = vld [vmem:[%s908_s2 + $0x10] sm:$0xff]  }
   0x2   :  { %v632_v2 = vld [vmem:[%s909_s3] sm:$0xff]   ;;  %578 = vmatpush3.bf16.msra.mxu0 %v631_v0  ;;  %599 = vmatprep.mubr.msk.bf16.mxu1 %vm690_vm0, %v689_v1  ;;  %v769_v6 = vld [vmem:[%s909_s3 + $0x8] sm:$0xff]   ;;  %v636_v10 = vld [vmem:[%s908_s2 + $0x18] sm:$0xff]  }
   0x3   :  { %v757_v3 = vld [vmem:[%s907_s1] sm:$0x3]  ;;  %598 = vmatpush3.bf16.msra.mxu1 %v632_v2  ;;  %579 = vmatprep.subr.bf16.mxu0 %v689_v1  ;;  %v782_v8 = vld [vmem:[%s907_s1 + $0x2] sm:$0x3] }
   0x4   :  { %v156_v5 = vpack.c.bf16 %v757_v3, %v757_v3  ;;  %603 = vmatprep.subr.bf16.mxu1 %v689_v1  ;;  %593 = vmatprep.mubr.msk.bf16.mxu0 %vm690_vm0, %v689_v1  ;;  %v243_v9 = vpack.c.bf16 %v782_v8, %v782_v8 }
   0x6   :  { %600 = vmatmul.mubr.msk.bf16.vlgmr.msra.gmra.mrb[0].mxu1 %vm169_vm1, %v156_v5  ;;  %580 = vmatpush3.bf16.msra.mxu0 %v633_v4 }
   0x7   :  { %604 = vmatpush3.bf16.msra.mxu1 %v769_v6  ;;  %581 = vmatprep.subr.bf16.mxu0 %v689_v1 }
   0x8   :  { %605 = vmatprep.mubr.msk.bf16.mxu1 %vm690_vm0, %v689_v1  ;;  %609 = vmatprep.subr.bf16.mxu1 %v689_v1 }
   0xa   :  { %582 = vmatpush3.bf16.msra.mxu0 %v635_v7 }
   0xb   :  { %583 = vmatprep.subr.bf16.mxu0 %v689_v1 }
   0xc   :  { %14 = vsyncpa [#allocation4], 0  ;;  %v637_v11 = vld [vmem:[%s908_s2 + $0x20] sm:$0xff]   ;;  %v638_v12 = vld [vmem:[%s908_s2 + $0x28] sm:$0xff]   ;;  %s691_s9 = smov 48   ;;  %s692_s10 = smov 16  }
   0xd   :  { %v639_v13 = vld [vmem:[%s908_s2 + $0x30] sm:$0xff]   ;;  %v640_v14 = vld [vmem:[%s908_s2 + $0x38] sm:$0xff]   ;;  %v28_v15 = vld [vmem:[%s906_s0] sm:$0xf]  ;;  %s693_s11 = smov 96   ;;  %vm141_vm2 = vcmask 781312  }
   0xe   :  { %606 = vmatmul.mubr.msk.bf16.vlgmr.msra.gmra.mrb[4].mxu1 %vm169_vm1, %v243_v9  ;;  %584 = vmatpush3.bf16.msra.mxu0 %v636_v10  ;;  %v29_v16 = vpack.c.bf16 %v28_v15, %v28_v15  ;;  %v819_v21 = vld [vmem:[%s911_s5 + $0x1] ss:$0 sm:$0xff]  ;;  %v825_v25 = vld [vmem:[%s911_s5] ss:$0 sm:$0xff]  ;;  %s695_s5 = smov 64   ;;  %s696_s14 = smov 112  }
   0xf   :  { %585 = vmatprep.subr.bf16.mxu0 %v689_v1  ;;  %610 = vmatpush3.bf16.msra.mxu1 %v632_v2  ;;  %v533_v29 = vld [vmem:[%s910_s4] ss:$0 sm:$0xff]  ;;  %s694_s4 = smov 32   ;;  %vm336_vm3 = vcmask 123904   ;;  %s697_s3 = smov [#allocation3]  }
  0x10   :  { %611 = vmatprep.mubr.msk.bf16.mxu1 %vm690_vm0, %v689_v1  ;;  %615 = vmatprep.subr.bf16.mxu1 %v689_v1  ;;  %s518_s19 = sshll.u32 %s697_s3, 4  ;;  %s519_s19 = int_to_ptr.vmem [resolvable:$true] %s518_s19 }
  0x11   :  { %s665_s21 = scalar_lea.vmem %s519_s19, 64  ;;  %p670_p1 = scmp.lt.s32.totalorder %s519_s19, %s519_s19 }
  0x12   :  { %586 = vmatpush3.bf16.msra.mxu0 %v637_v11  ;;  %p666_p0 = scmp.ne.s32.totalorder %s519_s19, %s665_s21  ;;  %p671_p2 = scmp.lt.s32.totalorder %s665_s21, %s665_s21 }
  0x13   :  { %587 = vmatprep.subr.bf16.mxu0 %v689_v1 }
  0x14   :  { %p672_p3 = por %p671_p2, %p670_p1 }
  0x16   :  { %588 = vmatpush3.bf16.msra.mxu0 %v638_v12  ;;  %p673_p4 = pnand %p672_p3, %p666_p0 }
  0x17   :  { %589 = vmatprep.subr.bf16.mxu0 %v689_v1 }
  0x1a   :  { %590 = vmatpush3.bf16.msra.mxu0 %v639_v13 }
  0x1b   :  { %591 = vmatprep.subr.bf16.mxu0 %v689_v1 }
  0x1e   :  { %592 = vmatpush3.bf16.msra.mxu0 %v640_v14 }
  0x21   :  { %594 = vmatmul.mubr.bf16.vlgmr.msra.gmra.mrb[0].mxu0 %v29_v16 }
  0xd9   :  { %v207_v17 = vpop.f32.mrb[0].mxu1 }
  0xda   :  { %v601_v18 = vpop.f32.mrb[1].mxu1  ;;  %v208_v28 = vadd.f32 %v825_v25, %v207_v17 }
  0xdb   :  { %v210_v19 = vpop.f32.mrb[2].mxu1 }
  0xdc   :  { %v602_v20 = vpop.f32.mrb[3].mxu1 }
  0xe1   :  { %v293_v22 = vpop.f32.mrb[4].mxu1 }
  0xe2   :  { %v294_v23 = vadd.f32 %v819_v21, %v293_v22  ;;  %v607_v24 = vpop.f32.mrb[5].mxu1 }
  0xe3   :  { %v296_v26 = vpop.f32.mrb[6].mxu1 }
  0xe4   :  { %300 = vrot.lane.b32.xlu0 %v294_v23, %s691_s9  ;;  %v608_v27 = vpop.f32.mrb[7].mxu1  ;;  %310 = vrot.lane.b32.xlu1 %v294_v23, %s692_s10 }
  0xe8   :  { %221 = vrot.lane.b32.xlu0 %v208_v28, %s693_s11 }
  0xf4   :  { %v135_v30 = vpop.f32.mrb[0].mxu0 }
  0xf5   :  { %v136_v31 = vadd.f32 %v533_v29, %v135_v30  ;;  %v595_v32 = vpop.f32.mrb[1].mxu0 }
  0xf6   :  { %v138_v33 = vpop.f32.mrb[2].mxu0 }
  0xf7   :  { %142 = vst.msk [vmem:[#allocation2] sm:$0xf] %vm141_vm2, %v136_v31  ;;  %v596_v34 = vpop.f32.mrb[3].mxu0 }
  0xfe   :  { %v154_v35 = vld [vmem:[#allocation2] sm:$0x3]  ;;  %v155_v41 = vld [vmem:[#allocation2 + $0x2] sm:$0x3] }
  0xff   :  { %v213_v36 = vadd.f32 %v208_v28, %v154_v35 }
 0x101   :  { %v549_v37 = vmul.f32 -1.442695, %v213_v36 }
 0x103   :  { %641 = vpow2.f32 %v549_v37 }
 0x10d   :  { %v642_v38 = vpop.eup %641 }
 0x10e   :  { %v217_v39 = vadd.f32 1.0, %v642_v38 }
 0x110   :  { %643 = vrcp.f32 %v217_v39 }
 0x11a   :  { %v644_v44 = vpop.eup %643 }
 0x11b   :  { %v231_v59 = vsub.f32 1.0, %v644_v44 }
 0x156   :  { %v301_v40 = vpop.permute.xlu0 %300  ;;  %v311_v50 = vpop.permute.xlu1 %310 }
 0x157   :  { %v303_v42 = vadd.f32 %v301_v40, %v155_v41 }
 0x159   :  { %v553_v43 = vmul.f32 -1.442695, %v303_v42 }
 0x15a   :  { %v222_v45 = vpop.permute.xlu0 %221 }
 0x15b   :  { %645 = vpow2.f32 %v553_v43  ;;  %v224_v46 = vmul.f32 %v644_v44, %v222_v45 }
 0x15d   :  { %226 = vrot.lane.b32.xlu1 %v224_v46, %s694_s4 }
 0x165   :  { %v646_v47 = vpop.eup %645 }
 0x166   :  { %v307_v48 = vadd.f32 1.0, %v646_v47 }
 0x168   :  { %647 = vrcp.f32 %v307_v48 }
 0x172   :  { %v648_v49 = vpop.eup %647 }
 0x173   :  { %v313_v51 = vmul.f32 %v648_v49, %v311_v50 }
 0x175   :  { %315 = vrot.lane.b32.xlu0 %v313_v51, %s694_s4 }
 0x179   :  { %238 = vrot.lane.b32.xlu0 %v757_v3, %s692_s10  ;;  %v320_v3 = vsub.f32 1.0, %v648_v49 }
 0x17d   :  { %327 = vrot.lane.b32.xlu0 %v782_v8, %s695_s5 }
 0x1cf   :  { %v227_v52 = vpop.permute.xlu1 %226 }
 0x1d0   :  { %v229_v53 = vadd.f32 %v227_v52, %v154_v35 }
 0x1d2   :  { %649 = vtanh.f32 %v229_v53 }
 0x1dc   :  { %v650_v54 = vpop.eup %649 }
 0x1dd   :  { %233 = vrot.lane.b32.xlu1 %v650_v54, %s696_s14 }
 0x1e7   :  { %v316_v55 = vpop.permute.xlu0 %315 }
 0x1e8   :  { %v318_v56 = vadd.f32 %v316_v55, %v155_v41 }
 0x1ea   :  { %651 = vtanh.f32 %v318_v56 }
 0x1eb   :  { %v239_v58 = vpop.permute.xlu0 %238 }
 0x1ec   :  { %v241_v61 = vmul.f32 %v644_v44, %v239_v58 }
 0x1ef   :  { %v328_v2 = vpop.permute.xlu0 %327 }
 0x1f0   :  { %v330_v5 = vmul.f32 %v648_v49, %v328_v2 }
 0x1f4   :  { %v652_v57 = vpop.eup %651 }
 0x1f5   :  { %322 = vrot.lane.b32.xlu1 %v652_v57, %s696_s14 }
 0x24f   :  { %v234_v60 = vpop.permute.xlu1 %233 }
 0x250   :  { %v236_v62 = vmul.f32 %v234_v60, %v231_v59 }
 0x252   :  { %v842_v63 = vadd.f32 %v241_v61, %v236_v62 }
 0x254   :  { %v346_v0 = vpack.c.bf16 %v842_v63, %v842_v63 }
 0x256   :  { %348 = vrot.lane.b32.xlu1 %v346_v0, %s696_s14 }
 0x267   :  { %v323_v4 = vpop.permute.xlu1 %322 }
 0x268   :  { %v325_v7 = vmul.f32 %v323_v4, %v320_v3 }
 0x26a   :  { %v847_v8 = vadd.f32 %v330_v5, %v325_v7 }
 0x26c   :  { %v419_v9 = vpack.c.bf16 %v847_v8, %v847_v8 }
 0x26e   :  { %421 = vrot.lane.b32.xlu0 %v419_v9, %s695_s5 }
 0x2c8   :  { %v349_v10 = vpop.permute.xlu1 %348 }
 0x2c9   :  { %612 = vmatmul.mubr.msk.bf16.vlgmr.msra.gmra.mrb[8].mxu1 %vm169_vm1, %v349_v10 }
 0x2ca   :  { %616 = vmatpush3.bf16.msra.mxu1 %v769_v6  ;;  %617 = vmatprep.mubr.msk.bf16.mxu1 %vm690_vm0, %v689_v1  ;;  %v344_v1 = vld [vmem:[#allocation2 + $0x2] sm:$0x3] }
 0x2e0   :  { %v422_v11 = vpop.permute.xlu0 %421 }
 0x2e1   :  { %618 = vmatmul.mubr.msk.bf16.vlgmr.msra.gmra.mrb[12].mxu1 %vm169_vm1, %v422_v11 }
 0x39c   :  { %v387_v12 = vpop.f32.mrb[8].mxu1 }
 0x39d   :  { %v388_v13 = vadd.f32 %v825_v25, %v387_v12  ;;  %v613_v14 = vpop.f32.mrb[9].mxu1 }
 0x39e   :  { %v390_v15 = vpop.f32.mrb[10].mxu1 }
 0x39f   :  { %401 = vrot.lane.b32.xlu0 %v388_v13, %s693_s11  ;;  %v614_v16 = vpop.f32.mrb[11].mxu1  ;;  %v393_v22 = vadd.f32 %v388_v13, %v344_v1 }
 0x3a1   :  { %v556_v23 = vmul.f32 -1.442695, %v393_v22 }
 0x3a3   :  { %653 = vpow2.f32 %v556_v23 }
 0x3ad   :  { %v654_v24 = vpop.eup %653 }
 0x3ae   :  { %v397_v25 = vadd.f32 1.0, %v654_v24 }
 0x3b0   :  { %655 = vrcp.f32 %v397_v25 }
 0x3b4   :  { %v460_v17 = vpop.f32.mrb[12].mxu1 }
 0x3b5   :  { %v461_v18 = vadd.f32 %v819_v21, %v460_v17  ;;  %v619_v19 = vpop.f32.mrb[13].mxu1  ;;  %v345_v21 = vld [vmem:[#allocation2] sm:$0x3] }
 0x3b6   :  { %v463_v20 = vpop.f32.mrb[14].mxu1 }
 0x3b7   :  { %467 = vrot.lane.b32.xlu1 %v461_v18, %s691_s9  ;;  %v620_v6 = vpop.f32.mrb[15].mxu1 }
 0x3ba   :  { %v656_v26 = vpop.eup %655 }
 0x3bb   :  { %477 = vrot.lane.b32.xlu1 %v461_v18, %s692_s10  ;;  %v411_v43 = vsub.f32 1.0, %v656_v26  ;;  %v417_v45 = vmul.f32 %v656_v26, %v842_v63 }
 0x411   :  { %v402_v27 = vpop.permute.xlu0 %401 }
 0x412   :  { %v404_v28 = vmul.f32 %v656_v26, %v402_v27 }
 0x414   :  { %406 = vrot.lane.b32.xlu0 %v404_v28, %s694_s4 }
 0x429   :  { %v468_v29 = vpop.permute.xlu1 %467 }
 0x42a   :  { %v470_v30 = vadd.f32 %v468_v29, %v345_v21 }
 0x42c   :  { %v558_v31 = vmul.f32 -1.442695, %v470_v30 }
 0x42d   :  { %v478_v35 = vpop.permute.xlu1 %477 }
 0x42e   :  { %657 = vpow2.f32 %v558_v31 }
 0x438   :  { %v658_v32 = vpop.eup %657 }
 0x439   :  { %v474_v33 = vadd.f32 1.0, %v658_v32 }
 0x43b   :  { %659 = vrcp.f32 %v474_v33 }
 0x445   :  { %v660_v34 = vpop.eup %659 }
 0x446   :  { %v480_v36 = vmul.f32 %v660_v34, %v478_v35  ;;  %v487_v48 = vsub.f32 1.0, %v660_v34  ;;  %v493_v50 = vmul.f32 %v660_v34, %v847_v8 }
 0x448   :  { %482 = vrot.lane.b32.xlu1 %v480_v36, %s694_s4 }
 0x486   :  { %v407_v37 = vpop.permute.xlu0 %406 }
 0x487   :  { %v409_v38 = vadd.f32 %v407_v37, %v344_v1 }
 0x489   :  { %661 = vtanh.f32 %v409_v38 }
 0x493   :  { %v662_v39 = vpop.eup %661 }
 0x494   :  { %413 = vrot.lane.b32.xlu0 %v662_v39, %s696_s14 }
 0x4ba   :  { %v483_v40 = vpop.permute.xlu1 %482 }
 0x4bb   :  { %v485_v41 = vadd.f32 %v483_v40, %v345_v21 }
 0x4bd   :  { %663 = vtanh.f32 %v485_v41 }
 0x4c7   :  { %v664_v42 = vpop.eup %663 }
 0x4c8   :  { %489 = vrot.lane.b32.xlu1 %v664_v42, %s696_s14 }
 0x506   :  { %v414_v44 = vpop.permute.xlu0 %413 }
 0x507   :  { %v416_v46 = vmul.f32 %v414_v44, %v411_v43 }
 0x509   :  { %v418_v47 = vadd.f32 %v417_v45, %v416_v46 }
 0x50b   :  { %496 = vrot.lane.b32.xlu0 %v418_v47, %s696_s14 }
 0x50f   :  { %333 = vrot.lane.b32.xlu0 %v842_v63, %s696_s14 }
 0x53a   :  { %v490_v49 = vpop.permute.xlu1 %489 }
 0x53b   :  { %v492_v51 = vmul.f32 %v490_v49, %v487_v48 }
 0x53d   :  { %v494_v52 = vadd.f32 %v493_v50, %v492_v51 }
 0x53f   :  { %502 = vrot.lane.b32.xlu1 %v494_v52, %s695_s5 }
 0x543   :  { %339 = vrot.lane.b32.xlu1 %v847_v8, %s695_s5 }
 0x57d   :  { %v497_v53 = vpop.permute.xlu0 %496 }
 0x57e   :  { %559 = vst.msk [vmem:[%s912_s6 + $0x2] sm:$0x3] %vm336_vm3, %v497_v53  ;;  %506 = vst.msk [vmem:[#allocation3] sm:$0x3] %vm336_vm3, %v497_v53 }
 0x581   :  { %v334_v54 = vpop.permute.xlu0 %333 }
 0x582   :  { %337 = vst.msk [vmem:[%s912_s6] sm:$0x3] %vm336_vm3, %v334_v54 }
 0x5b1   :  { %v503_v55 = vpop.permute.xlu1 %502 }
 0x5b2   :  { %505 = vst.msk [vmem:[%s913_s7] sm:$0x3] %vm336_vm3, %v503_v55  ;;  %508 = vst.msk [vmem:[#allocation3 + $0x2] sm:$0x3] %vm336_vm3, %v503_v55 }
 0x5b3   :  { %676 = shalt.err (!%p673_p4)
}
 0x5b4   :  { %s677_s23 = scalar_lea.hbm %s914_s8, 64 }
 0x5b5   :  { %p678_p5 = scmp.ne.s32.totalorder %s914_s8, %s677_s23  ;;  %p681_p6 = scmp.lt.u32.totalorder %s677_s23, %s914_s8 }
 0x5b7   :  { %p683_p7 = pnand %p681_p6, %p678_p5 }
 0x5b9   :  { %686 = shalt.err (!%p683_p7)
}
 0x5ba   :  { %s698_s28 = smov 2   ;;  %v340_v56 = vpop.permute.xlu1 %339 }
 0x5bb   :  { %524 = dma.vmem_to_hbm [thread:$0]  %s519_s19, 64, %s914_s8, [#allocation4], %s694_s4, %s694_s4, %s698_s28  }
 0x5bc   :  { %554 = vst.msk [vmem:[%s913_s7 + $0x2] sm:$0x3] %vm336_vm3, %v340_v56 }
 0x5bd   :  { %687 = dma.done.wait [#allocation4], 64  }
 0x5be   :  { %688 = vsyncadd [#allocation4], 4294967232 }
 0x5bf   :  { %532 = vsyncpa [#allocation4], 1 }

// kernel: encoder_forward.2
= control target key start
LH: loop header
LB: loop body
LE: loop exit
PB: predicated region body
PF: predicated region fallthrough
CT: control target
= control target key end

     0   :  { %s14298_s30 = smov 0   ;;  %s16711_s0 = inlined_call_operand.vmem [shape: f32[2,26,18,1], index: 0, kind: input, shape index: {}]   ;;  %s16712_s1 = inlined_call_operand.vmem [shape: bf16[9,1,8], index: 1, kind: input, shape index: {}]   ;;  %s16713_s2 = inlined_call_operand.vmem [shape: f32[1,8], index: 2, kind: input, shape index: {}]   ;;  %s16714_s3 = inlined_call_operand.vmem [shape: bf16[9,8,16], index: 3, kind: input, shape index: {}]   ;;  %s16715_s4 = inlined_call_operand.vmem [shape: f32[1,16], index: 4, kind: input, shape index: {}]   ;;  %s16716_s5 = inlined_call_operand.vmem [shape: bf16[9,16,16], index: 5, kind: input, shape index: {}]   ;;  %s16717_s6 = inlined_call_operand.vmem [shape: f32[1,16], index: 6, kind: input, shape index: {}]   ;;  %s16718_s7 = inlined_call_operand.vmem [shape: bf16[9,16,32], index: 7, kind: input, shape index: {}]   ;;  %s16719_s8 = inlined_call_operand.vmem [shape: f32[1,32], index: 8, kind: input, shape index: {}]   ;;  %s16720_s9 = inlined_call_operand.vmem [shape: f32[2,2,1,128], index: 9, kind: output, shape index: {}]  }
   0x1 LB: > { %s10806_s10 = sadd.s32 4294967295, %s14241_s30   ;;  %p10810_p0 = scmp.ge.s32.totalorder %s14241_s30, 1  ;;  %s14241_s30 = sphi %s14298_s30, %s19_s30  }
   0x2   : > { %p287_p1 = scmp.lt.s32.totalorder %s14241_s30, 3 }
   0x4   : > { %p288_p2 = pnand %p10810_p0, %p287_p1 }
   0x6   : > { %291 = sbr.rel (%p288_p2) target bundleno = 3022 (0xbce), region = 56 }
   0xd   : > { %v10813_v0 = vld [vmem:[%s16712_s1 + $0x1] sm:$0x1]  ;;  %vm667_vm0 = vcmask 1040384   ;;  %p322_p3 = scmp.lt.s32.totalorder %s10806_s10, 1  ;;  %v14243_v1 = vmov 0   ;;  %vm594_vm1 = vcmask 7168  }
   0xe   : > { %v14310_v2 = vsel %vm667_vm0, 65535, %v14243_v1  ;;  %v519_v3 = vld [vmem:[%s16712_s1] sm:$0x1]  ;;  %v10862_v6 = vld [vmem:[%s16712_s1 + $0x2] sm:$0x1]  ;;  %vm332_vm2 = vcmask 64512  }
   0xf   : > { %v671_v4 = vand.u32 %v10813_v0, %v14310_v2  ;;  %s16809_s10 = smov (!%p322_p3, %s10806_s10), 1  ;;  %v971_v5 = vand.u32 %v14310_v2, %v519_v3  ;;  %v14339_v16 = vand.u32 %v10862_v6, %v14310_v2  ;;  %vm341_vm3 = vcmask 57344   ;;  %s14245_s21 = smov 64  }
  0x10   : > { %s14202_s15 = smul.u32 624, %s16809_s10  ;;  %vm335_vm4 = vcmask 58368   ;;  %vm4525_vm5 = vcmask 1043456   ;;  %vm394_vm6 = vcmask 130048   ;;  %vm396_vm7 = vcmask 123904   ;;  %s14246_s22 = smov 32  }
  0x11   : > { %12217 = vmatprep.subr.bf16.mxu0 %v671_v4  ;;  %vm401_vm8 = vcmask 122880   ;;  %vm8248_vm9 = vcmask 125954   ;;  %vm8305_vm10 = vcmask 128004   ;;  %vm8362_vm11 = vcmask 130054   ;;  %s14247_s23 = smov 96   ;;  %s10812_s24 = sshll.u32 %s16809_s10, 1 }
  0x12   : > { %12218 = vmatpush3.bf16.msra.mxu0 %v671_v4  ;;  %s14326_s20 = scalar_lea.vmem %s16711_s0, %s14202_s15  ;;  %vm8651_vm12 = vcmask 1041408   ;;  %vm8660_vm13 = vcmask 1042432   ;;  %vm8677_vm14 = vcmask 1044480   ;;  %vm8686_vm15 = vcmask 1045504   ;;  %s330_s27 = scalar_lea.vmem %s16720_s9, %s10812_s24 }
  0x13   : > { %12267 = vmatprep.subr.bf16.mxu0 %v971_v5  ;;  %v520_v7 = vld [vmem:[%s14326_s20 + $0x1] sm:$0xff]  ;;  %v521_v8 = vld [vmem:[%s14326_s20 + $0x9] sm:$0xff]  ;;  %v522_v9 = vld [vmem:[%s14326_s20 + $0x19] sm:$0xff] }
  0x14   : > { %v568_v10 = vpack.c.bf16 %v521_v8, %v520_v7  ;;  %v523_v11 = vld [vmem:[%s14326_s20 + $0x21] sm:$0xff]  ;;  %v524_v12 = vld [vmem:[%s14326_s20 + $0x31] sm:$0xff]  ;;  %v525_v13 = vld [vmem:[%s14326_s20 + $0x39] sm:$0xff] }
  0x15   : > { %v14334_v14 = vpack.c.bf16 %v523_v11, %v522_v9  ;;  %v14336_v15 = vpack.c.bf16 %v525_v13, %v524_v12  ;;  %v526_v17 = vld [vmem:[%s14326_s20 + $0x49] sm:$0xff]  ;;  %v527_v18 = vld [vmem:[%s14326_s20 + $0x51] sm:$0xff]  ;;  %v528_v19 = vld [vmem:[%s14326_s20 + $0x61] sm:$0xff] }
  0x16   : > { %12219 = vmatprep.mubr.msk.bf16.mxu0 %vm594_vm1, %v568_v10  ;;  %v529_v20 = vld [vmem:[%s14326_s20 + $0x69] sm:$0xff]  ;;  %v14351_v21 = vpack.c.bf16 %v527_v18, %v526_v17  ;;  %v530_v23 = vld [vmem:[%s14326_s20 + $0x79] sm:$0xff]  ;;  %v531_v24 = vld [vmem:[%s14326_s20 + $0x81] sm:$0xff] }
  0x17   : > { %12220 = vmatmul.mubr.msk.bf16.vlgmr.msra.gmra.mrb[0].mxu0 %vm594_vm1, %v14334_v14  ;;  %v14353_v22 = vpack.c.bf16 %v529_v20, %v528_v19  ;;  %v532_v25 = vld [vmem:[%s14326_s20 + $0x91] sm:$0xff]  ;;  %v533_v26 = vld [vmem:[%s14326_s20 + $0x99] sm:$0xff]  ;;  %v14363_v27 = vpack.c.bf16 %v531_v24, %v530_v23  ;;  %v534_v29 = vld [vmem:[%s14326_s20 + $0xa9] sm:$0xff] }
  0x18   : > { %12268 = vmatpush3.bf16.msra.mxu0 %v971_v5  ;;  %12223 = vmatprep.mubr.msk.bf16.mxu0 %vm594_vm1, %v14336_v15  ;;  %v14365_v28 = vpack.c.bf16 %v533_v26, %v532_v25  ;;  %v535_v30 = vld [vmem:[%s14326_s20 + $0xb1] sm:$0xff]  ;;  %v536_v31 = vld [vmem:[%s14326_s20 + $0xc1] sm:$0xff]  ;;  %v537_v32 = vld [vmem:[%s14326_s20 + $0xc9] sm:$0xff] }
  0x19   : > { %12317 = vmatprep.subr.bf16.mxu0 %v14339_v16  ;;  %v14375_v33 = vpack.c.bf16 %v535_v30, %v534_v29  ;;  %v14377_v34 = vpack.c.bf16 %v537_v32, %v536_v31  ;;  %v538_v35 = vld [vmem:[%s14326_s20 + $0xd9] sm:$0xff]  ;;  %v539_v36 = vld [vmem:[%s14326_s20 + $0xe1] sm:$0xff]  ;;  %v540_v37 = vld [vmem:[%s14326_s20 + $0xf1] sm:$0xff] }
  0x1a   : > { %v541_v38 = vld [vmem:[%s14326_s20 + $0xf9] sm:$0xff]  ;;  %v14387_v39 = vpack.c.bf16 %v539_v36, %v538_v35  ;;  %v542_v41 = vld [vmem:[%s14326_s20 + $0x109] sm:$0xff]  ;;  %v543_v42 = vld [vmem:[%s14326_s20 + $0x111] sm:$0xff] }
  0x1b   : > { %v14389_v40 = vpack.c.bf16 %v541_v38, %v540_v37  ;;  %v544_v43 = vld [vmem:[%s14326_s20 + $0x121] sm:$0xff]  ;;  %v545_v44 = vld [vmem:[%s14326_s20 + $0x129] sm:$0xff]  ;;  %v14399_v45 = vpack.c.bf16 %v543_v42, %v542_v41  ;;  %v546_v47 = vld [vmem:[%s14326_s20 + $0x139] sm:$0xff] }
  0x1c   : > { %v14401_v46 = vpack.c.bf16 %v545_v44, %v544_v43  ;;  %v547_v48 = vld [vmem:[%s14326_s20 + $0x141] sm:$0xff]  ;;  %v548_v49 = vld [vmem:[%s14326_s20 + $0x151] sm:$0xff]  ;;  %v549_v50 = vld [vmem:[%s14326_s20 + $0x159] sm:$0xff] }
  0x1d   : > { %v14411_v51 = vpack.c.bf16 %v547_v48, %v546_v47  ;;  %v14413_v52 = vpack.c.bf16 %v549_v50, %v548_v49  ;;  %v550_v53 = vld [vmem:[%s14326_s20 + $0x169] sm:$0xff]  ;;  %v551_v54 = vld [vmem:[%s14326_s20 + $0x171] sm:$0xff]  ;;  %v552_v55 = vld [vmem:[%s14326_s20 + $0x181] sm:$0xff] }
  0x1e   : > { %v553_v56 = vld [vmem:[%s14326_s20 + $0x189] sm:$0xff]  ;;  %v14423_v57 = vpack.c.bf16 %v551_v54, %v550_v53  ;;  %v554_v59 = vld [vmem:[%s14326_s20 + $0x199] sm:$0xff]  ;;  %v555_v60 = vld [vmem:[%s14326_s20 + $0x1a1] sm:$0xff] }
  0x1f   : > { %12224 = vmatmul.mubr.msk.bf16.gmra.mrb[4].mxu0 %vm594_vm1, %v14351_v21  ;;  %v14425_v58 = vpack.c.bf16 %v553_v56, %v552_v55  ;;  %v556_v61 = vld [vmem:[%s14326_s20 + $0x1b1] sm:$0xff]  ;;  %v557_v62 = vld [vmem:[%s14326_s20 + $0x1b9] sm:$0xff]  ;;  %v14435_v63 = vpack.c.bf16 %v555_v60, %v554_v59  ;;  %v558_v1 = vld [vmem:[%s14326_s20 + $0x1c9] sm:$0xff] }
  0x20   : > { %12227 = vmatprep.mubr.msk.bf16.mxu0 %vm594_vm1, %v14353_v22  ;;  %v14437_v0 = vpack.c.bf16 %v557_v62, %v556_v61  ;;  %v559_v3 = vld [vmem:[%s14326_s20 + $0x1d1] sm:$0xff]  ;;  %v560_v4 = vld [vmem:[%s14326_s20 + $0x1e1] sm:$0xff]  ;;  %v561_v5 = vld [vmem:[%s14326_s20 + $0x1e9] sm:$0xff] }
  0x21   : > { %v14447_v6 = vpack.c.bf16 %v559_v3, %v558_v1  ;;  %v14449_v7 = vpack.c.bf16 %v561_v5, %v560_v4  ;;  %v562_v8 = vld [vmem:[%s14326_s20 + $0x1f9] sm:$0xff]  ;;  %v563_v9 = vld [vmem:[%s14326_s20 + $0x201] sm:$0xff]  ;;  %v564_v10 = vld [vmem:[%s14326_s20 + $0x211] sm:$0xff] }
  0x22   : > { %v565_v11 = vld [vmem:[%s14326_s20 + $0x219] sm:$0xff]  ;;  %v14459_v12 = vpack.c.bf16 %v563_v9, %v562_v8  ;;  %v566_v17 = vld [vmem:[%s14326_s20 + $0x229] sm:$0xff]  ;;  %v567_v18 = vld [vmem:[%s14326_s20 + $0x231] sm:$0xff] }
  0x23   : > { %v14461_v13 = vpack.c.bf16 %v565_v11, %v564_v10  ;;  %v447_v19 = vld [vmem:[%s14326_s20] sm:$0xff]  ;;  %v448_v20 = vld [vmem:[%s14326_s20 + $0x8] sm:$0xff]  ;;  %v14471_v23 = vpack.c.bf16 %v567_v18, %v566_v17  ;;  %v449_v25 = vld [vmem:[%s14326_s20 + $0x18] sm:$0xff] }
  0x24   : > { %v495_v24 = vpack.c.bf16 %v448_v20, %v447_v19  ;;  %v450_v26 = vld [vmem:[%s14326_s20 + $0x20] sm:$0xff]  ;;  %v451_v29 = vld [vmem:[%s14326_s20 + $0x30] sm:$0xff]  ;;  %v452_v30 = vld [vmem:[%s14326_s20 + $0x38] sm:$0xff] }
  0x25   : > { %v10935_v31 = vld [vmem:[%s16712_s1 + $0x3] sm:$0x1]  ;;  %v14483_v32 = vpack.c.bf16 %v450_v26, %v449_v25  ;;  %v14485_v35 = vpack.c.bf16 %v452_v30, %v451_v29  ;;  %v453_v37 = vld [vmem:[%s14326_s20 + $0x48] sm:$0xff]  ;;  %v454_v38 = vld [vmem:[%s14326_s20 + $0x50] sm:$0xff] }
  0x26   : > { %v14488_v36 = vand.u32 %v10935_v31, %v14310_v2  ;;  %v455_v41 = vld [vmem:[%s14326_s20 + $0x60] sm:$0xff]  ;;  %v456_v42 = vld [vmem:[%s14326_s20 + $0x68] sm:$0xff]  ;;  %v14500_v43 = vpack.c.bf16 %v454_v38, %v453_v37  ;;  %v459_v48 = vld [vmem:[%s14326_s20 + $0x90] sm:$0xff] }
  0x27   : > { %12228 = vmatmul.mubr.msk.bf16.gmra.mrb[8].mxu0 %vm594_vm1, %v14363_v27  ;;  %v14502_v44 = vpack.c.bf16 %v456_v42, %v455_v41  ;;  %v458_v47 = vld [vmem:[%s14326_s20 + $0x80] sm:$0xff]  ;;  %v460_v49 = vld [vmem:[%s14326_s20 + $0x98] sm:$0xff]  ;;  %v461_v54 = vld [vmem:[%s14326_s20 + $0xa8] sm:$0xff] }
  0x28   : > { %12231 = vmatprep.mubr.msk.bf16.mxu0 %vm594_vm1, %v14365_v28  ;;  %v14514_v53 = vpack.c.bf16 %v460_v49, %v459_v48  ;;  %v462_v55 = vld [vmem:[%s14326_s20 + $0xb0] sm:$0xff]  ;;  %v463_v56 = vld [vmem:[%s14326_s20 + $0xc0] sm:$0xff]  ;;  %v464_v59 = vld [vmem:[%s14326_s20 + $0xc8] sm:$0xff] }
  0x29   : > { %v14524_v60 = vpack.c.bf16 %v462_v55, %v461_v54  ;;  %v14526_v61 = vpack.c.bf16 %v464_v59, %v463_v56  ;;  %v465_v62 = vld [vmem:[%s14326_s20 + $0xd8] sm:$0xff]  ;;  %v466_v1 = vld [vmem:[%s14326_s20 + $0xe0] sm:$0xff]  ;;  %v467_v3 = vld [vmem:[%s14326_s20 + $0xf0] sm:$0xff] }
  0x2a   : > { %v468_v4 = vld [vmem:[%s14326_s20 + $0xf8] sm:$0xff]  ;;  %v14536_v5 = vpack.c.bf16 %v466_v1, %v465_v62  ;;  %v469_v9 = vld [vmem:[%s14326_s20 + $0x108] sm:$0xff]  ;;  %v470_v10 = vld [vmem:[%s14326_s20 + $0x110] sm:$0xff] }
  0x2b   : > { %v14538_v8 = vpack.c.bf16 %v468_v4, %v467_v3  ;;  %v471_v11 = vld [vmem:[%s14326_s20 + $0x120] sm:$0xff]  ;;  %v472_v17 = vld [vmem:[%s14326_s20 + $0x128] sm:$0xff]  ;;  %v14548_v18 = vpack.c.bf16 %v470_v10, %v469_v9  ;;  %v473_v20 = vld [vmem:[%s14326_s20 + $0x138] sm:$0xff] }
  0x2c   : > { %v14550_v19 = vpack.c.bf16 %v472_v17, %v471_v11  ;;  %v475_v25 = vld [vmem:[%s14326_s20 + $0x150] sm:$0xff]  ;;  %v476_v26 = vld [vmem:[%s14326_s20 + $0x158] sm:$0xff]  ;;  %v477_v31 = vld [vmem:[%s14326_s20 + $0x168] sm:$0xff] }
  0x2d   : > { %v14562_v30 = vpack.c.bf16 %v476_v26, %v475_v25  ;;  %v478_v37 = vld [vmem:[%s14326_s20 + $0x170] sm:$0xff]  ;;  %v479_v38 = vld [vmem:[%s14326_s20 + $0x180] sm:$0xff]  ;;  %v480_v41 = vld [vmem:[%s14326_s20 + $0x188] sm:$0xff] }
  0x2e   : > { %v14572_v42 = vpack.c.bf16 %v478_v37, %v477_v31  ;;  %v482_v48 = vld [vmem:[%s14326_s20 + $0x1a0] sm:$0xff]  ;;  %v483_v49 = vld [vmem:[%s14326_s20 + $0x1b0] sm:$0xff]  ;;  %v484_v54 = vld [vmem:[%s14326_s20 + $0x1b8] sm:$0xff] }
  0x2f   : > { %12232 = vmatmul.mubr.msk.bf16.gmra.mrb[12].mxu0 %vm594_vm1, %v14375_v33  ;;  %v14586_v56 = vpack.c.bf16 %v484_v54, %v483_v49  ;;  %v485_v59 = vld [vmem:[%s14326_s20 + $0x1c8] sm:$0xff]  ;;  %v486_v62 = vld [vmem:[%s14326_s20 + $0x1d0] sm:$0xff]  ;;  %v487_v1 = vld [vmem:[%s14326_s20 + $0x1e0] sm:$0xff] }
  0x30   : > { %12235 = vmatprep.mubr.msk.bf16.mxu0 %vm594_vm1, %v14377_v34  ;;  %v488_v3 = vld [vmem:[%s14326_s20 + $0x1e8] sm:$0xff]  ;;  %v14596_v4 = vpack.c.bf16 %v486_v62, %v485_v59  ;;  %v489_v10 = vld [vmem:[%s14326_s20 + $0x1f8] sm:$0xff]  ;;  %v490_v11 = vld [vmem:[%s14326_s20 + $0x200] sm:$0xff] }
  0x31   : > { %v14598_v9 = vpack.c.bf16 %v488_v3, %v487_v1  ;;  %v491_v17 = vld [vmem:[%s14326_s20 + $0x210] sm:$0xff]  ;;  %v493_v26 = vld [vmem:[%s14326_s20 + $0x228] sm:$0xff]  ;;  %v1203_v59 = vld [vmem:[%s14326_s20 + $0x3a] sm:$0xff] }
  0x32   : > { %v494_v31 = vld [vmem:[%s14326_s20 + $0x230] sm:$0xff]  ;;  %v1198_v37 = vld [vmem:[%s14326_s20 + $0x2] sm:$0xff] }
  0x33   : > { %v1201_v49 = vld [vmem:[%s14326_s20 + $0x22] sm:$0xff]  ;;  %v1202_v54 = vld [vmem:[%s14326_s20 + $0x32] sm:$0xff] }
  0x34   : > { %v11008_v62 = vld [vmem:[%s16712_s1 + $0x4] sm:$0x1]  ;;  %v14634_v3 = vpack.c.bf16 %v1203_v59, %v1202_v54  ;;  %v1212_v59 = vld [vmem:[%s14326_s20 + $0xaa] sm:$0xff] }
  0x37   : > { %12236 = vmatmul.mubr.msk.bf16.gmra.mrb[16].mxu0 %vm594_vm1, %v14387_v39 }
  0x38   : > { %12239 = vmatprep.mubr.msk.bf16.mxu0 %vm594_vm1, %v14389_v40 }
  0x3f   : > { %12240 = vmatmul.mubr.msk.bf16.gmra.mrb[20].mxu0 %vm594_vm1, %v14399_v45 }
  0x40   : > { %12243 = vmatprep.mubr.msk.bf16.mxu0 %vm594_vm1, %v14401_v46 }
  0x47   : > { %12244 = vmatmul.mubr.msk.bf16.gmra.mrb[24].mxu0 %vm594_vm1, %v14411_v51 }
  0x48   : > { %12247 = vmatprep.mubr.msk.bf16.mxu0 %vm594_vm1, %v14413_v52 }
  0x4f   : > { %12248 = vmatmul.mubr.msk.bf16.gmra.mrb[28].mxu0 %vm594_vm1, %v14423_v57 }
  0x50   : > { %12251 = vmatprep.mubr.msk.bf16.mxu0 %vm594_vm1, %v14425_v58 }
  0x57   : > { %12252 = vmatmul.mubr.msk.bf16.gmra.mrb[32].mxu0 %vm594_vm1, %v14435_v63 }
  0x58   : > { %12255 = vmatprep.mubr.msk.bf16.mxu0 %vm594_vm1, %v14437_v0 }
  0x5f   : > { %12256 = vmatmul.mubr.msk.bf16.gmra.mrb[36].mxu0 %vm594_vm1, %v14447_v6 }
  0x60   : > { %12259 = vmatprep.mubr.msk.bf16.mxu0 %vm594_vm1, %v14449_v7 }
  0x67   : > { %12260 = vmatmul.mubr.msk.bf16.gmra.mrb[40].mxu0 %vm594_vm1, %v14459_v12 }
  0x68   : > { %12263 = vmatprep.mubr.msk.bf16.mxu0 %vm594_vm1, %v14461_v13 }
  0x6f   : > { %12264 = vmatmul.mubr.msk.bf16.gmra.mrb[44].mxu0 %vm594_vm1, %v14471_v23 }
  0x70   : > { %12269 = vmatprep.mubr.msk.bf16.mxu0 %vm594_vm1, %v495_v24  ;;  %v474_v24 = vld [vmem:[%s14326_s20 + $0x140] sm:$0xff] }
  0x71   : > { %v14560_v29 = vpack.c.bf16 %v474_v24, %v473_v20  ;;  %v492_v20 = vld [vmem:[%s14326_s20 + $0x218] sm:$0xff]  ;;  %v14608_v24 = vpack.c.bf16 %v490_v11, %v489_v10  ;;  %v14637_v10 = vand.u32 %v11008_v62, %v14310_v2  ;;  %v1204_v11 = vld [vmem:[%s14326_s20 + $0x4a] sm:$0xff] }
  0x72   : > { %v14610_v25 = vpack.c.bf16 %v492_v20, %v491_v17  ;;  %v1205_v17 = vld [vmem:[%s14326_s20 + $0x52] sm:$0xff]  ;;  %v1206_v20 = vld [vmem:[%s14326_s20 + $0x62] sm:$0xff] }
  0x73   : > { %v1213_v62 = vld [vmem:[%s14326_s20 + $0xb2] sm:$0xff] }
  0x77   : > { %12270 = vmatmul.mubr.msk.bf16.vlgmr.msra.gmra.mrb[0].mxu0 %vm594_vm1, %v14483_v32 }
  0x78   : > { %12318 = vmatpush3.bf16.msra.mxu0 %v14339_v16  ;;  %12273 = vmatprep.mubr.msk.bf16.mxu0 %vm594_vm1, %v14485_v35  ;;  %v457_v16 = vld [vmem:[%s14326_s20 + $0x78] sm:$0xff] }
  0x79   : > { %12367 = vmatprep.subr.bf16.mxu0 %v14488_v36  ;;  %v14512_v50 = vpack.c.bf16 %v458_v47, %v457_v16  ;;  %v14574_v16 = vpack.c.bf16 %v480_v41, %v479_v38  ;;  %v481_v47 = vld [vmem:[%s14326_s20 + $0x198] sm:$0xff]  ;;  %v1199_v38 = vld [vmem:[%s14326_s20 + $0xa] sm:$0xff]  ;;  %v14620_v41 = vpack.c.bf16 %v494_v31, %v493_v26  ;;  %v14649_v31 = vpack.c.bf16 %v1205_v17, %v1204_v11  ;;  %v1214_v11 = vld [vmem:[%s14326_s20 + $0xc2] sm:$0xff] }
  0x7a   : > { %v14584_v55 = vpack.c.bf16 %v482_v48, %v481_v47  ;;  %v1246_v47 = vpack.c.bf16 %v1199_v38, %v1198_v37  ;;  %v1200_v48 = vld [vmem:[%s14326_s20 + $0x1a] sm:$0xff]  ;;  %v1207_v26 = vld [vmem:[%s14326_s20 + $0x6a] sm:$0xff]  ;;  %v1209_v38 = vld [vmem:[%s14326_s20 + $0x82] sm:$0xff] }
  0x7b   : > { %v14632_v1 = vpack.c.bf16 %v1201_v49, %v1200_v48  ;;  %v14651_v37 = vpack.c.bf16 %v1207_v26, %v1206_v20  ;;  %v1211_v48 = vld [vmem:[%s14326_s20 + $0x9a] sm:$0xff]  ;;  %v1215_v17 = vld [vmem:[%s14326_s20 + $0xca] sm:$0xff]  ;;  %v14673_v20 = vpack.c.bf16 %v1213_v62, %v1212_v59 }
  0x7c   : > { %v14675_v26 = vpack.c.bf16 %v1215_v17, %v1214_v11  ;;  %v1220_v62 = vld [vmem:[%s14326_s20 + $0x10a] sm:$0xff]  ;;  %v1221_v11 = vld [vmem:[%s14326_s20 + $0x112] sm:$0xff]  ;;  %v1222_v17 = vld [vmem:[%s14326_s20 + $0x122] sm:$0xff] }
  0x7d   : > { %16753 = vst [vmem:[#allocation7_spill] sm:$0xff] %v14673_v20 }
  0x7e   : > { %16754 = vst [vmem:[#allocation8_spill] sm:$0xff] %v14675_v26 }
  0x7f   : > { %12274 = vmatmul.mubr.msk.bf16.gmra.mrb[4].mxu0 %vm594_vm1, %v14500_v43 }
  0x80   : > { %12277 = vmatprep.mubr.msk.bf16.mxu0 %vm594_vm1, %v14502_v44 }
  0x87   : > { %12278 = vmatmul.mubr.msk.bf16.gmra.mrb[8].mxu0 %vm594_vm1, %v14512_v50 }
  0x88   : > { %12281 = vmatprep.mubr.msk.bf16.mxu0 %vm594_vm1, %v14514_v53 }
  0x8f   : > { %12282 = vmatmul.mubr.msk.bf16.gmra.mrb[12].mxu0 %vm594_vm1, %v14524_v60 }
  0x90   : > { %12285 = vmatprep.mubr.msk.bf16.mxu0 %vm594_vm1, %v14526_v61 }
  0x97   : > { %12286 = vmatmul.mubr.msk.bf16.gmra.mrb[16].mxu0 %vm594_vm1, %v14536_v5 }
  0x98   : > { %12289 = vmatprep.mubr.msk.bf16.mxu0 %vm594_vm1, %v14538_v8 }
  0x9f   : > { %12290 = vmatmul.mubr.msk.bf16.gmra.mrb[20].mxu0 %vm594_vm1, %v14548_v18 }
  0xa0   : > { %12293 = vmatprep.mubr.msk.bf16.mxu0 %vm594_vm1, %v14550_v19 }
  0xa7   : > { %12294 = vmatmul.mubr.msk.bf16.gmra.mrb[24].mxu0 %vm594_vm1, %v14560_v29 }
  0xa8   : > { %12297 = vmatprep.mubr.msk.bf16.mxu0 %vm594_vm1, %v14562_v30 }
  0xaf   : > { %12298 = vmatmul.mubr.msk.bf16.gmra.mrb[28].mxu0 %vm594_vm1, %v14572_v42 }
  0xb0   : > { %12301 = vmatprep.mubr.msk.bf16.mxu0 %vm594_vm1, %v14574_v16 }
  0xb7   : > { %12302 = vmatmul.mubr.msk.bf16.gmra.mrb[32].mxu0 %vm594_vm1, %v14584_v55 }
  0xb8   : > { %12305 = vmatprep.mubr.msk.bf16.mxu0 %vm594_vm1, %v14586_v56 }
  0xbf   : > { %12306 = vmatmul.mubr.msk.bf16.gmra.mrb[36].mxu0 %vm594_vm1, %v14596_v4 }
  0xc0   : > { %12309 = vmatprep.mubr.msk.bf16.mxu0 %vm594_vm1, %v14598_v9 }
  0xc7   : > { %12310 = vmatmul.mubr.msk.bf16.gmra.mrb[40].mxu0 %vm594_vm1, %v14608_v24 }
  0xc8   : > { %12313 = vmatprep.mubr.msk.bf16.mxu0 %vm594_vm1, %v14610_v25 }
  0xcf   : > { %12314 = vmatmul.mubr.msk.bf16.gmra.mrb[44].mxu0 %vm594_vm1, %v14620_v41 }
  0xd0   : > { %12319 = vmatprep.mubr.msk.bf16.mxu0 %vm594_vm1, %v1246_v47  ;;  %v1210_v47 = vld [vmem:[%s14326_s20 + $0x92] sm:$0xff] }
  0xd1   : > { %v14663_v54 = vpack.c.bf16 %v1211_v48, %v1210_v47  ;;  %v1218_v47 = vld [vmem:[%s14326_s20 + $0xf2] sm:$0xff]  ;;  %v1219_v48 = vld [vmem:[%s14326_s20 + $0xfa] sm:$0xff] }
  0xd2   : > { %v14687_v59 = vpack.c.bf16 %v1219_v48, %v1218_v47  ;;  %v1225_v47 = vld [vmem:[%s14326_s20 + $0x142] sm:$0xff]  ;;  %v1226_v48 = vld [vmem:[%s14326_s20 + $0x152] sm:$0xff] }
  0xd3   : > { %16752 = vst [vmem:[#allocation6_spill] sm:$0xff] %v14663_v54 }
  0xd4   : > { %16756 = vst [vmem:[#allocation10_spill] sm:$0xff] %v14687_v59 }
  0xd7   : > { %12320 = vmatmul.mubr.msk.bf16.vlgmr.msra.gmra.mrb[0].mxu0 %vm594_vm1, %v14632_v1 }
  0xd8   : > { %12368 = vmatpush3.bf16.msra.mxu0 %v14488_v36  ;;  %12323 = vmatprep.mubr.msk.bf16.mxu0 %vm594_vm1, %v14634_v3  ;;  %v1208_v36 = vld [vmem:[%s14326_s20 + $0x7a] sm:$0xff] }
  0xd9   : > { %12417 = vmatprep.subr.bf16.mxu0 %v14637_v10  ;;  %v14661_v49 = vpack.c.bf16 %v1209_v38, %v1208_v36  ;;  %v1216_v36 = vld [vmem:[%s14326_s20 + $0xda] sm:$0xff]  ;;  %v1217_v38 = vld [vmem:[%s14326_s20 + $0xe2] sm:$0xff] }
  0xdb   : > { %16751 = vst [vmem:[#allocation5_spill] sm:$0xff] %v14661_v49 }
  0xdf   : > { %12324 = vmatmul.mubr.msk.bf16.gmra.mrb[4].mxu0 %vm594_vm1, %v14649_v31 }
  0xe0   : > { %12327 = vmatprep.mubr.msk.bf16.mxu0 %vm594_vm1, %v14651_v37 }
  0xe7   : > { %12328 = vmatmul.mubr.msk.bf16.gmra.mrb[8].mxu0 %vm594_vm1, %v14661_v49 }
  0xe8   : > { %12331 = vmatprep.mubr.msk.bf16.mxu0 %vm594_vm1, %v14663_v54  ;;  %v14685_v54 = vpack.c.bf16 %v1217_v38, %v1216_v36  ;;  %v1224_v38 = vld [vmem:[%s14326_s20 + $0x13a] sm:$0xff] }
  0xea   : > { %16755 = vst [vmem:[#allocation9_spill] sm:$0xff] %v14685_v54 }
  0xef   : > { %12332 = vmatmul.mubr.msk.bf16.gmra.mrb[12].mxu0 %vm594_vm1, %v14673_v20  ;;  %v14697_v20 = vpack.c.bf16 %v1221_v11, %v1220_v62  ;;  %v1229_v11 = vld [vmem:[%s14326_s20 + $0x172] sm:$0xff] }
  0xf0   : > { %12335 = vmatprep.mubr.msk.bf16.mxu0 %vm594_vm1, %v14675_v26  ;;  %v1223_v26 = vld [vmem:[%s14326_s20 + $0x12a] sm:$0xff] }
  0xf1   : > { %16757 = vst [vmem:[#allocation11_spill] sm:$0xff] %v14697_v20  ;;  %v14699_v36 = vpack.c.bf16 %v1223_v26, %v1222_v17  ;;  %v1228_v26 = vld [vmem:[%s14326_s20 + $0x16a] sm:$0xff]  ;;  %v1230_v17 = vld [vmem:[%s14326_s20 + $0x182] sm:$0xff] }
  0xf3   : > { %16758 = vst [vmem:[#allocation12_spill] sm:$0xff] %v14699_v36 }
  0xf7   : > { %12336 = vmatmul.mubr.msk.bf16.gmra.mrb[16].mxu0 %vm594_vm1, %v14685_v54  ;;  %v14709_v54 = vpack.c.bf16 %v1225_v47, %v1224_v38  ;;  %v1233_v47 = vld [vmem:[%s14326_s20 + $0x1a2] sm:$0xff] }
  0xf8   : > { %12339 = vmatprep.mubr.msk.bf16.mxu0 %vm594_vm1, %v14687_v59  ;;  %v1227_v59 = vld [vmem:[%s14326_s20 + $0x15a] sm:$0xff] }
  0xf9   : > { %16759 = vst [vmem:[#allocation13_spill] sm:$0xff] %v14709_v54  ;;  %v14711_v62 = vpack.c.bf16 %v1227_v59, %v1226_v48  ;;  %v1232_v59 = vld [vmem:[%s14326_s20 + $0x19a] sm:$0xff]  ;;  %v1234_v48 = vld [vmem:[%s14326_s20 + $0x1b2] sm:$0xff] }
  0xfb   : > { %16760 = vst [vmem:[#allocation14_spill] sm:$0xff] %v14711_v62 }
  0xff   : > { %12340 = vmatmul.mubr.msk.bf16.gmra.mrb[20].mxu0 %vm594_vm1, %v14697_v20  ;;  %v14721_v20 = vpack.c.bf16 %v1229_v11, %v1228_v26  ;;  %v1237_v11 = vld [vmem:[%s14326_s20 + $0x1d2] sm:$0xff] }
 0x100   : > { %12343 = vmatprep.mubr.msk.bf16.mxu0 %vm594_vm1, %v14699_v36  ;;  %v1231_v36 = vld [vmem:[%s14326_s20 + $0x18a] sm:$0xff] }
 0x101   : > { %16761 = vst [vmem:[#allocation15_spill] sm:$0xff] %v14721_v20  ;;  %v14723_v38 = vpack.c.bf16 %v1231_v36, %v1230_v17  ;;  %v1236_v36 = vld [vmem:[%s14326_s20 + $0x1ca] sm:$0xff]  ;;  %v1238_v17 = vld [vmem:[%s14326_s20 + $0x1e2] sm:$0xff] }
 0x103   : > { %16762 = vst [vmem:[#allocation16_spill] sm:$0xff] %v14723_v38 }
 0x107   : > { %12344 = vmatmul.mubr.msk.bf16.gmra.mrb[24].mxu0 %vm594_vm1, %v14709_v54  ;;  %v14733_v54 = vpack.c.bf16 %v1233_v47, %v1232_v59  ;;  %v1241_v59 = vld [vmem:[%s14326_s20 + $0x202] sm:$0xff]  ;;  %v1242_v47 = vld [vmem:[%s14326_s20 + $0x212] sm:$0xff] }
 0x108   : > { %12347 = vmatprep.mubr.msk.bf16.mxu0 %vm594_vm1, %v14711_v62  ;;  %v1235_v62 = vld [vmem:[%s14326_s20 + $0x1ba] sm:$0xff] }
 0x109   : > { %16763 = vst [vmem:[#allocation17_spill] sm:$0xff] %v14733_v54  ;;  %v14735_v26 = vpack.c.bf16 %v1235_v62, %v1234_v48  ;;  %v1240_v62 = vld [vmem:[%s14326_s20 + $0x1fa] sm:$0xff] }
 0x10a   : > { %v1243_v48 = vld [vmem:[%s14326_s20 + $0x21a] sm:$0xff] }
 0x10b   : > { %16764 = vst [vmem:[#allocation18_spill] sm:$0xff] %v14735_v26 }
 0x10f   : > { %12348 = vmatmul.mubr.msk.bf16.gmra.mrb[28].mxu0 %vm594_vm1, %v14721_v20  ;;  %v14745_v20 = vpack.c.bf16 %v1237_v11, %v1236_v36  ;;  %v1245_v36 = vld [vmem:[%s14326_s20 + $0x232] sm:$0xff] }
 0x110   : > { %12351 = vmatprep.mubr.msk.bf16.mxu0 %vm594_vm1, %v14723_v38  ;;  %v1239_v38 = vld [vmem:[%s14326_s20 + $0x1ea] sm:$0xff] }
 0x111   : > { %v14747_v49 = vpack.c.bf16 %v1239_v38, %v1238_v17  ;;  %v1244_v38 = vld [vmem:[%s14326_s20 + $0x22a] sm:$0xff]  ;;  %v11081_v17 = vld [vmem:[%s16712_s1 + $0x5] sm:$0x1] }
 0x112   : > { %v14767_v11 = vpack.c.bf16 %v1245_v36, %v1244_v38  ;;  %v11197_v38 = vld [vmem:[%s14326_s20 + $0x109] sm:$0xff]  ;;  %v11198_v36 = vld [vmem:[%s14326_s20 + $0x111] sm:$0xff] }
 0x117   : > { %12352 = vmatmul.mubr.msk.bf16.gmra.mrb[32].mxu0 %vm594_vm1, %v14733_v54  ;;  %v14759_v54 = vpack.c.bf16 %v1243_v48, %v1242_v47  ;;  %v11154_v47 = vld [vmem:[%s16712_s1 + $0x6] sm:$0x1] }
 0x118   : > { %12355 = vmatprep.mubr.msk.bf16.mxu0 %vm594_vm1, %v14735_v26  ;;  %v14757_v26 = vpack.c.bf16 %v1241_v59, %v1240_v62  ;;  %v2612_v62 = vand.u32 %v11081_v17, %v14310_v2  ;;  %v3035_v48 = vand.u32 %v11154_v47, %v14310_v2  ;;  %v11200_v17 = vld [vmem:[%s14326_s20 + $0x129] sm:$0xff]  ;;  %v11203_v47 = vld [vmem:[%s14326_s20 + $0x151] sm:$0xff] }
 0x11f   : > { %12356 = vmatmul.mubr.msk.bf16.gmra.mrb[36].mxu0 %vm594_vm1, %v14745_v20 }
 0x120   : > { %12359 = vmatprep.mubr.msk.bf16.mxu0 %vm594_vm1, %v14747_v49 }
 0x127   : > { %12360 = vmatmul.mubr.msk.bf16.gmra.mrb[40].mxu0 %vm594_vm1, %v14757_v26 }
 0x128   : > { %12363 = vmatprep.mubr.msk.bf16.mxu0 %vm594_vm1, %v14759_v54 }
 0x12f   : > { %12364 = vmatmul.mubr.msk.bf16.gmra.mrb[44].mxu0 %vm594_vm1, %v14767_v11 }
 0x130   : > { %12369 = vmatprep.mubr.msk.bf16.mxu0 %vm594_vm1, %v14483_v32  ;;  %v10933_v32 = vld [vmem:[%s14326_s20 + $0x240] sm:$0xff] }
 0x137   : > { %12370 = vmatmul.mubr.msk.bf16.vlgmr.msra.gmra.mrb[0].mxu0 %vm594_vm1, %v14485_v35 }
 0x138   : > { %12418 = vmatpush3.bf16.msra.mxu0 %v14637_v10  ;;  %12373 = vmatprep.mubr.msk.bf16.mxu0 %vm594_vm1, %v14500_v43  ;;  %v10934_v10 = vld [vmem:[%s14326_s20 + $0x248] sm:$0xff] }
 0x139   : > { %12467 = vmatprep.subr.bf16.mxu0 %v2612_v62  ;;  %v14824_v59 = vpack.c.bf16 %v10934_v10, %v10933_v32  ;;  %v11201_v10 = vld [vmem:[%s14326_s20 + $0x139] sm:$0xff] }
 0x13f   : > { %12374 = vmatmul.mubr.msk.bf16.gmra.mrb[4].mxu0 %vm594_vm1, %v14502_v44 }
 0x140   : > { %12377 = vmatprep.mubr.msk.bf16.mxu0 %vm594_vm1, %v14512_v50 }
 0x147   : > { %12378 = vmatmul.mubr.msk.bf16.gmra.mrb[8].mxu0 %vm594_vm1, %v14514_v53 }
 0x148   : > { %12381 = vmatprep.mubr.msk.bf16.mxu0 %vm594_vm1, %v14524_v60 }
 0x14f   : > { %12382 = vmatmul.mubr.msk.bf16.gmra.mrb[12].mxu0 %vm594_vm1, %v14526_v61 }
 0x150   : > { %12385 = vmatprep.mubr.msk.bf16.mxu0 %vm594_vm1, %v14536_v5 }
 0x157   : > { %12386 = vmatmul.mubr.msk.bf16.gmra.mrb[16].mxu0 %vm594_vm1, %v14538_v8 }
 0x158   : > { %12389 = vmatprep.mubr.msk.bf16.mxu0 %vm594_vm1, %v14548_v18 }
 0x15f   : > { %12390 = vmatmul.mubr.msk.bf16.gmra.mrb[20].mxu0 %vm594_vm1, %v14550_v19 }
 0x160   : > { %12393 = vmatprep.mubr.msk.bf16.mxu0 %vm594_vm1, %v14560_v29 }
 0x167   : > { %12394 = vmatmul.mubr.msk.bf16.gmra.mrb[24].mxu0 %vm594_vm1, %v14562_v30 }
 0x168   : > { %12397 = vmatprep.mubr.msk.bf16.mxu0 %vm594_vm1, %v14572_v42 }
 0x16f   : > { %12398 = vmatmul.mubr.msk.bf16.gmra.mrb[28].mxu0 %vm594_vm1, %v14574_v16 }
 0x170   : > { %12401 = vmatprep.mubr.msk.bf16.mxu0 %vm594_vm1, %v14584_v55 }
 0x177   : > { %12402 = vmatmul.mubr.msk.bf16.gmra.mrb[32].mxu0 %vm594_vm1, %v14586_v56 }
 0x178   : > { %12405 = vmatprep.mubr.msk.bf16.mxu0 %vm594_vm1, %v14596_v4 }
 0x17f   : > { %12406 = vmatmul.mubr.msk.bf16.gmra.mrb[36].mxu0 %vm594_vm1, %v14598_v9 }
 0x180   : > { %12409 = vmatprep.mubr.msk.bf16.mxu0 %vm594_vm1, %v14608_v24 }
 0x187   : > { %12410 = vmatmul.mubr.msk.bf16.gmra.mrb[40].mxu0 %vm594_vm1, %v14610_v25 }
 0x188   : > { %12413 = vmatprep.mubr.msk.bf16.mxu0 %vm594_vm1, %v14620_v41 }
 0x18f   : > { %12414 = vmatmul.mubr.msk.bf16.gmra.mrb[44].mxu0 %vm594_vm1, %v14824_v59 }
 0x190   : > { %12419 = vmatprep.mubr.msk.bf16.mxu0 %vm594_vm1, %v14334_v14  ;;  %v11006_v14 = vld [vmem:[%s14326_s20 + $0x241] sm:$0xff] }
 0x197   : > { %12420 = vmatmul.mubr.msk.bf16.vlgmr.msra.gmra.mrb[0].mxu0 %vm594_vm1, %v14336_v15  ;;  %v11007_v15 = vld [vmem:[%s14326_s20 + $0x249] sm:$0xff] }
 0x198   : > { %12468 = vmatpush3.bf16.msra.mxu0 %v2612_v62  ;;  %12423 = vmatprep.mubr.msk.bf16.mxu0 %vm594_vm1, %v14351_v21  ;;  %v14880_v21 = vpack.c.bf16 %v11007_v15, %v11006_v14  ;;  %v3367_v62 = vpack.c.bf16 %v11198_v36, %v11197_v38  ;;  %v11266_v38 = vld [vmem:[%s14326_s20 + $0xda] sm:$0xff]  ;;  %v11267_v36 = vld [vmem:[%s14326_s20 + $0xe2] sm:$0xff] }
 0x199   : > { %12517 = vmatprep.subr.bf16.mxu0 %v3035_v48 }
 0x19f   : > { %12424 = vmatmul.mubr.msk.bf16.gmra.mrb[4].mxu0 %vm594_vm1, %v14353_v22  ;;  %v11227_v22 = vld [vmem:[%s16712_s1 + $0x7] sm:$0x1] }
 0x1a0   : > { %12427 = vmatprep.mubr.msk.bf16.mxu0 %vm594_vm1, %v14363_v27  ;;  %v3457_v27 = vand.u32 %v11227_v22, %v14310_v2  ;;  %v11205_v22 = vld [vmem:[%s14326_s20 + $0x169] sm:$0xff] }
 0x1a7   : > { %12428 = vmatmul.mubr.msk.bf16.gmra.mrb[8].mxu0 %vm594_vm1, %v14365_v28  ;;  %v16765_v28 = vld [vmem:[#allocation5_spill] sm:$0xff] }
 0x1a8   : > { %12431 = vmatprep.mubr.msk.bf16.mxu0 %vm594_vm1, %v14375_v33  ;;  %v16766_v33 = vld [vmem:[#allocation6_spill] sm:$0xff] }
 0x1af   : > { %12432 = vmatmul.mubr.msk.bf16.gmra.mrb[12].mxu0 %vm594_vm1, %v14377_v34  ;;  %v16767_v34 = vld [vmem:[#allocation7_spill] sm:$0xff] }
 0x1b0   : > { %12435 = vmatprep.mubr.msk.bf16.mxu0 %vm594_vm1, %v14387_v39  ;;  %v16768_v39 = vld [vmem:[#allocation8_spill] sm:$0xff] }
 0x1b7   : > { %12436 = vmatmul.mubr.msk.bf16.gmra.mrb[16].mxu0 %vm594_vm1, %v14389_v40  ;;  %v16769_v40 = vld [vmem:[#allocation9_spill] sm:$0xff] }
 0x1b8   : > { %12439 = vmatprep.mubr.msk.bf16.mxu0 %vm594_vm1, %v14399_v45  ;;  %v16770_v45 = vld [vmem:[#allocation10_spill] sm:$0xff] }
 0x1bf   : > { %12440 = vmatmul.mubr.msk.bf16.gmra.mrb[20].mxu0 %vm594_vm1, %v14401_v46  ;;  %v16771_v46 = vld [vmem:[#allocation11_spill] sm:$0xff] }
 0x1c0   : > { %12443 = vmatprep.mubr.msk.bf16.mxu0 %vm594_vm1, %v14411_v51  ;;  %v16772_v51 = vld [vmem:[#allocation12_spill] sm:$0xff] }
 0x1c7   : > { %12444 = vmatmul.mubr.msk.bf16.gmra.mrb[24].mxu0 %vm594_vm1, %v14413_v52  ;;  %v16773_v52 = vld [vmem:[#allocation13_spill] sm:$0xff] }
 0x1c8   : > { %12447 = vmatprep.mubr.msk.bf16.mxu0 %vm594_vm1, %v14423_v57  ;;  %v16774_v57 = vld [vmem:[#allocation14_spill] sm:$0xff] }
 0x1cf   : > { %12448 = vmatmul.mubr.msk.bf16.gmra.mrb[28].mxu0 %vm594_vm1, %v14425_v58  ;;  %v16775_v58 = vld [vmem:[#allocation15_spill] sm:$0xff] }
 0x1d0   : > { %12451 = vmatprep.mubr.msk.bf16.mxu0 %vm594_vm1, %v14435_v63  ;;  %v16776_v63 = vld [vmem:[#allocation16_spill] sm:$0xff] }
 0x1d7   : > { %12452 = vmatmul.mubr.msk.bf16.gmra.mrb[32].mxu0 %vm594_vm1, %v14437_v0  ;;  %v16777_v0 = vld [vmem:[#allocation17_spill] sm:$0xff] }
 0x1d8   : > { %12455 = vmatprep.mubr.msk.bf16.mxu0 %vm594_vm1, %v14447_v6  ;;  %v16778_v6 = vld [vmem:[#allocation18_spill] sm:$0xff] }
 0x1df   : > { %12456 = vmatmul.mubr.msk.bf16.gmra.mrb[36].mxu0 %vm594_vm1, %v14449_v7  ;;  %v11079_v7 = vld [vmem:[%s14326_s20 + $0x242] sm:$0xff] }
 0x1e0   : > { %12459 = vmatprep.mubr.msk.bf16.mxu0 %vm594_vm1, %v14459_v12  ;;  %v11080_v12 = vld [vmem:[%s14326_s20 + $0x24a] sm:$0xff] }
 0x1e7   : > { %12460 = vmatmul.mubr.msk.bf16.gmra.mrb[40].mxu0 %vm594_vm1, %v14461_v13  ;;  %v14936_v13 = vpack.c.bf16 %v11080_v12, %v11079_v7 }
 0x1e8   : > { %12463 = vmatprep.mubr.msk.bf16.mxu0 %vm594_vm1, %v14471_v23  ;;  %v11300_v23 = vld [vmem:[%s16712_s1 + $0x8] sm:$0x1] }
 0x1ef   : > { %12464 = vmatmul.mubr.msk.bf16.gmra.mrb[44].mxu0 %vm594_vm1, %v14880_v21 }
 0x1f0   : > { %12469 = vmatprep.mubr.msk.bf16.mxu0 %vm594_vm1, %v14632_v1  ;;  %v3879_v1 = vand.u32 %v11300_v23, %v14310_v2  ;;  %v11152_v2 = vld [vmem:[%s14326_s20 + $0x258] sm:$0xff] }
 0x1f1   : > { %v11217_v23 = vld [vmem:[%s14326_s20 + $0x1f9] sm:$0xff] }
 0x1f7   : > { %12470 = vmatmul.mubr.msk.bf16.vlgmr.msra.gmra.mrb[0].mxu0 %vm594_vm1, %v14634_v3 }
 0x1f8   : > { %12518 = vmatpush3.bf16.msra.mxu0 %v3035_v48  ;;  %12473 = vmatprep.mubr.msk.bf16.mxu0 %vm594_vm1, %v14649_v31  ;;  %v11193_v31 = vld [vmem:[%s14326_s20 + $0xd9] sm:$0xff] }
 0x1f9   : > { %12567 = vmatprep.subr.bf16.mxu0 %v3457_v27  ;;  %v11204_v48 = vld [vmem:[%s14326_s20 + $0x159] sm:$0xff] }
 0x1fa   : > { %v3370_v15 = vpack.c.bf16 %v11204_v48, %v11203_v47  ;;  %v11272_v47 = vld [vmem:[%s14326_s20 + $0x122] sm:$0xff]  ;;  %v11273_v48 = vld [vmem:[%s14326_s20 + $0x12a] sm:$0xff] }
 0x1ff   : > { %12474 = vmatmul.mubr.msk.bf16.gmra.mrb[4].mxu0 %vm594_vm1, %v14651_v37  ;;  %v11194_v37 = vld [vmem:[%s14326_s20 + $0xe1] sm:$0xff] }
 0x200   : > { %12477 = vmatprep.mubr.msk.bf16.mxu0 %vm594_vm1, %v16765_v28  ;;  %v11207_v28 = vld [vmem:[%s14326_s20 + $0x181] sm:$0xff] }
 0x207   : > { %12478 = vmatmul.mubr.msk.bf16.gmra.mrb[8].mxu0 %vm594_vm1, %v16766_v33  ;;  %v11208_v33 = vld [vmem:[%s14326_s20 + $0x189] sm:$0xff] }
 0x208   : > { %12481 = vmatprep.mubr.msk.bf16.mxu0 %vm594_vm1, %v16767_v34 }
 0x20f   : > { %12482 = vmatmul.mubr.msk.bf16.gmra.mrb[12].mxu0 %vm594_vm1, %v16768_v39  ;;  %v3372_v39 = vpack.c.bf16 %v11208_v33, %v11207_v28  ;;  %v11276_v28 = vld [vmem:[%s14326_s20 + $0x152] sm:$0xff]  ;;  %v11277_v33 = vld [vmem:[%s14326_s20 + $0x15a] sm:$0xff] }
 0x210   : > { %12485 = vmatprep.mubr.msk.bf16.mxu0 %vm594_vm1, %v16769_v40  ;;  %v11209_v40 = vld [vmem:[%s14326_s20 + $0x199] sm:$0xff] }
 0x217   : > { %12486 = vmatmul.mubr.msk.bf16.gmra.mrb[16].mxu0 %vm594_vm1, %v16770_v45  ;;  %v11210_v45 = vld [vmem:[%s14326_s20 + $0x1a1] sm:$0xff] }
 0x218   : > { %12489 = vmatprep.mubr.msk.bf16.mxu0 %vm594_vm1, %v16771_v46  ;;  %v11211_v46 = vld [vmem:[%s14326_s20 + $0x1b1] sm:$0xff] }
 0x21f   : > { %12490 = vmatmul.mubr.msk.bf16.gmra.mrb[20].mxu0 %vm594_vm1, %v16772_v51  ;;  %v11212_v51 = vld [vmem:[%s14326_s20 + $0x1b9] sm:$0xff] }
 0x220   : > { %12493 = vmatprep.mubr.msk.bf16.mxu0 %vm594_vm1, %v16773_v52  ;;  %v3373_v52 = vpack.c.bf16 %v11210_v45, %v11209_v40  ;;  %v11278_v40 = vld [vmem:[%s14326_s20 + $0x16a] sm:$0xff]  ;;  %v11279_v45 = vld [vmem:[%s14326_s20 + $0x172] sm:$0xff] }
 0x227   : > { %12494 = vmatmul.mubr.msk.bf16.gmra.mrb[24].mxu0 %vm594_vm1, %v16774_v57  ;;  %v3374_v57 = vpack.c.bf16 %v11212_v51, %v11211_v46  ;;  %v11280_v46 = vld [vmem:[%s14326_s20 + $0x182] sm:$0xff]  ;;  %v11281_v51 = vld [vmem:[%s14326_s20 + $0x18a] sm:$0xff] }
 0x228   : > { %12497 = vmatprep.mubr.msk.bf16.mxu0 %vm594_vm1, %v16775_v58  ;;  %v11213_v58 = vld [vmem:[%s14326_s20 + $0x1c9] sm:$0xff] }
 0x22f   : > { %12498 = vmatmul.mubr.msk.bf16.gmra.mrb[28].mxu0 %vm594_vm1, %v16776_v63  ;;  %v11214_v63 = vld [vmem:[%s14326_s20 + $0x1d1] sm:$0xff] }
 0x230   : > { %12501 = vmatprep.mubr.msk.bf16.mxu0 %vm594_vm1, %v16777_v0  ;;  %v11215_v0 = vld [vmem:[%s14326_s20 + $0x1e1] sm:$0xff]  ;;  %v3375_v7 = vpack.c.bf16 %v11214_v63, %v11213_v58 }
 0x231   : > { %v11282_v58 = vld [vmem:[%s14326_s20 + $0x19a] sm:$0xff]  ;;  %v11283_v63 = vld [vmem:[%s14326_s20 + $0x1a2] sm:$0xff] }
 0x237   : > { %12502 = vmatmul.mubr.msk.bf16.gmra.mrb[32].mxu0 %vm594_vm1, %v16778_v6  ;;  %v11216_v6 = vld [vmem:[%s14326_s20 + $0x1e9] sm:$0xff] }
 0x238   : > { %12505 = vmatprep.mubr.msk.bf16.mxu0 %vm594_vm1, %v14745_v20  ;;  %v3365_v20 = vpack.c.bf16 %v11194_v37, %v11193_v31  ;;  %v3376_v12 = vpack.c.bf16 %v11216_v6, %v11215_v0  ;;  %v11262_v31 = vld [vmem:[%s14326_s20 + $0xaa] sm:$0xff]  ;;  %v11263_v37 = vld [vmem:[%s14326_s20 + $0xb2] sm:$0xff]  ;;  %v11285_v6 = vld [vmem:[%s14326_s20 + $0x1ba] sm:$0xff] }
 0x239   : > { %v11284_v0 = vld [vmem:[%s14326_s20 + $0x1b2] sm:$0xff] }
 0x23f   : > { %12506 = vmatmul.mubr.msk.bf16.gmra.mrb[36].mxu0 %vm594_vm1, %v14747_v49  ;;  %v11195_v49 = vld [vmem:[%s14326_s20 + $0xf1] sm:$0xff] }
 0x240   : > { %12509 = vmatprep.mubr.msk.bf16.mxu0 %vm594_vm1, %v14757_v26 }
 0x247   : > { %12510 = vmatmul.mubr.msk.bf16.gmra.mrb[40].mxu0 %vm594_vm1, %v14759_v54  ;;  %v11196_v54 = vld [vmem:[%s14326_s20 + $0xf9] sm:$0xff] }
 0x248   : > { %12513 = vmatprep.mubr.msk.bf16.mxu0 %vm594_vm1, %v14767_v11  ;;  %v3366_v26 = vpack.c.bf16 %v11196_v54, %v11195_v49  ;;  %v11199_v11 = vld [vmem:[%s14326_s20 + $0x121] sm:$0xff]  ;;  %v11265_v54 = vld [vmem:[%s14326_s20 + $0xca] sm:$0xff] }
 0x249   : > { %v3368_v32 = vpack.c.bf16 %v11200_v17, %v11199_v11  ;;  %v11264_v49 = vld [vmem:[%s14326_s20 + $0xc2] sm:$0xff]  ;;  %v11268_v11 = vld [vmem:[%s14326_s20 + $0xf2] sm:$0xff]  ;;  %v11269_v17 = vld [vmem:[%s14326_s20 + $0xfa] sm:$0xff] }
 0x24f   : > { %12514 = vmatmul.mubr.msk.bf16.gmra.mrb[44].mxu0 %vm594_vm1, %v14936_v13 }
 0x250   : > { %12519 = vmatprep.mubr.msk.bf16.mxu0 %vm594_vm1, %v14485_v35  ;;  %v11153_v35 = vld [vmem:[%s14326_s20 + $0x260] sm:$0xff] }
 0x257   : > { %12520 = vmatmul.mubr.msk.bf16.vlgmr.msra.gmra.mrb[0].mxu0 %vm594_vm1, %v14500_v43  ;;  %v11179_v43 = vld [vmem:[%s14326_s20 + $0x31] sm:$0xff] }
 0x258   : > { %12568 = vmatpush3.bf16.msra.mxu0 %v3457_v27  ;;  %12523 = vmatprep.mubr.msk.bf16.mxu0 %vm594_vm1, %v14502_v44  ;;  %v11180_v44 = vld [vmem:[%s14326_s20 + $0x39] sm:$0xff]  ;;  %v11206_v27 = vld [vmem:[%s14326_s20 + $0x171] sm:$0xff] }
 0x259   : > { %12617 = vmatprep.subr.bf16.mxu0 %v3879_v1  ;;  %v3371_v34 = vpack.c.bf16 %v11206_v27, %v11205_v22  ;;  %v11274_v22 = vld [vmem:[%s14326_s20 + $0x13a] sm:$0xff]  ;;  %v11275_v27 = vld [vmem:[%s14326_s20 + $0x142] sm:$0xff] }
 0x25f   : > { %12524 = vmatmul.mubr.msk.bf16.gmra.mrb[4].mxu0 %vm594_vm1, %v14512_v50  ;;  %v2959_v50 = vpack.c.bf16 %v11153_v35, %v11152_v2  ;;  %v11219_v2 = vld [vmem:[%s14326_s20 + $0x211] sm:$0xff]  ;;  %v11220_v35 = vld [vmem:[%s14326_s20 + $0x219] sm:$0xff] }
 0x260   : > { %12527 = vmatprep.mubr.msk.bf16.mxu0 %vm594_vm1, %v14514_v53  ;;  %v3358_v53 = vpack.c.bf16 %v11180_v44, %v11179_v43  ;;  %v3378_v44 = vpack.c.bf16 %v11220_v35, %v11219_v2  ;;  %v11288_v2 = vld [vmem:[%s14326_s20 + $0x1e2] sm:$0xff]  ;;  %v11289_v35 = vld [vmem:[%s14326_s20 + $0x1ea] sm:$0xff] }
 0x267   : > { %12528 = vmatmul.mubr.msk.bf16.gmra.mrb[8].mxu0 %vm594_vm1, %v14524_v60  ;;  %v11181_v60 = vld [vmem:[%s14326_s20 + $0x49] sm:$0xff] }
 0x268   : > { %12531 = vmatprep.mubr.msk.bf16.mxu0 %vm594_vm1, %v14526_v61  ;;  %v11182_v61 = vld [vmem:[%s14326_s20 + $0x51] sm:$0xff] }
 0x26f   : > { %12532 = vmatmul.mubr.msk.bf16.gmra.mrb[12].mxu0 %vm594_vm1, %v14536_v5  ;;  %v11183_v5 = vld [vmem:[%s14326_s20 + $0x61] sm:$0xff] }
 0x270   : > { %12535 = vmatprep.mubr.msk.bf16.mxu0 %vm594_vm1, %v14538_v8  ;;  %v11184_v8 = vld [vmem:[%s14326_s20 + $0x69] sm:$0xff] }
 0x277   : > { %12536 = vmatmul.mubr.msk.bf16.gmra.mrb[16].mxu0 %vm594_vm1, %v14548_v18  ;;  %v3359_v18 = vpack.c.bf16 %v11182_v61, %v11181_v60  ;;  %v11225_v61 = vld [vmem:[%s14326_s20 + $0x259] sm:$0xff] }
 0x278   : > { %12539 = vmatprep.mubr.msk.bf16.mxu0 %vm594_vm1, %v14550_v19  ;;  %v3360_v19 = vpack.c.bf16 %v11184_v8, %v11183_v5  ;;  %v11226_v5 = vld [vmem:[%s14326_s20 + $0x261] sm:$0xff]  ;;  %v11252_v8 = vld [vmem:[%s14326_s20 + $0x32] sm:$0xff] }
 0x27f   : > { %12540 = vmatmul.mubr.msk.bf16.gmra.mrb[20].mxu0 %vm594_vm1, %v14560_v29  ;;  %v11185_v29 = vld [vmem:[%s14326_s20 + $0x79] sm:$0xff] }
 0x280   : > { %12543 = vmatprep.mubr.msk.bf16.mxu0 %vm594_vm1, %v14562_v30  ;;  %v11186_v30 = vld [vmem:[%s14326_s20 + $0x81] sm:$0xff] }
 0x287   : > { %12544 = vmatmul.mubr.msk.bf16.gmra.mrb[24].mxu0 %vm594_vm1, %v14572_v42  ;;  %v11187_v42 = vld [vmem:[%s14326_s20 + $0x91] sm:$0xff] }
 0x288   : > { %12547 = vmatprep.mubr.msk.bf16.mxu0 %vm594_vm1, %v14574_v16  ;;  %v11188_v16 = vld [vmem:[%s14326_s20 + $0x99] sm:$0xff] }
 0x28f   : > { %12548 = vmatmul.mubr.msk.bf16.gmra.mrb[28].mxu0 %vm594_vm1, %v14584_v55  ;;  %v3361_v55 = vpack.c.bf16 %v11186_v30, %v11185_v29  ;;  %v11254_v30 = vld [vmem:[%s14326_s20 + $0x4a] sm:$0xff] }
 0x290   : > { %12551 = vmatprep.mubr.msk.bf16.mxu0 %vm594_vm1, %v14586_v56  ;;  %v3362_v56 = vpack.c.bf16 %v11188_v16, %v11187_v42  ;;  %v11255_v42 = vld [vmem:[%s14326_s20 + $0x52] sm:$0xff]  ;;  %v11256_v16 = vld [vmem:[%s14326_s20 + $0x62] sm:$0xff] }
 0x297   : > { %12552 = vmatmul.mubr.msk.bf16.gmra.mrb[32].mxu0 %vm594_vm1, %v14596_v4  ;;  %v11189_v4 = vld [vmem:[%s14326_s20 + $0xa9] sm:$0xff] }
 0x298   : > { %12555 = vmatprep.mubr.msk.bf16.mxu0 %vm594_vm1, %v14598_v9  ;;  %v11190_v9 = vld [vmem:[%s14326_s20 + $0xb1] sm:$0xff] }
 0x29f   : > { %12556 = vmatmul.mubr.msk.bf16.gmra.mrb[36].mxu0 %vm594_vm1, %v14608_v24  ;;  %v11191_v24 = vld [vmem:[%s14326_s20 + $0xc1] sm:$0xff] }
 0x2a0   : > { %12559 = vmatprep.mubr.msk.bf16.mxu0 %vm594_vm1, %v14610_v25  ;;  %v11192_v25 = vld [vmem:[%s14326_s20 + $0xc9] sm:$0xff] }
 0x2a1   : > { %v3364_v3 = vpack.c.bf16 %v11192_v25, %v11191_v24  ;;  %v11260_v24 = vld [vmem:[%s14326_s20 + $0x92] sm:$0xff]  ;;  %v11261_v25 = vld [vmem:[%s14326_s20 + $0x9a] sm:$0xff] }
 0x2a7   : > { %12560 = vmatmul.mubr.msk.bf16.gmra.mrb[40].mxu0 %vm594_vm1, %v14620_v41  ;;  %v3363_v41 = vpack.c.bf16 %v11190_v9, %v11189_v4  ;;  %v11258_v4 = vld [vmem:[%s14326_s20 + $0x7a] sm:$0xff]  ;;  %v11259_v9 = vld [vmem:[%s14326_s20 + $0x82] sm:$0xff] }
 0x2a8   : > { %12563 = vmatprep.mubr.msk.bf16.mxu0 %vm594_vm1, %v14824_v59  ;;  %v11202_v59 = vld [vmem:[%s14326_s20 + $0x141] sm:$0xff] }
 0x2a9   : > { %v3369_v14 = vpack.c.bf16 %v11202_v59, %v11201_v10  ;;  %v11270_v10 = vld [vmem:[%s14326_s20 + $0x10a] sm:$0xff]  ;;  %v11271_v59 = vld [vmem:[%s14326_s20 + $0x112] sm:$0xff] }
 0x2af   : > { %12564 = vmatmul.mubr.msk.bf16.gmra.mrb[44].mxu0 %vm594_vm1, %v2959_v50  ;;  %v11221_v50 = vld [vmem:[%s14326_s20 + $0x229] sm:$0xff] }
 0x2b0   : > { %12569 = vmatprep.mubr.msk.bf16.mxu0 %vm594_vm1, %v3358_v53  ;;  %v11222_v53 = vld [vmem:[%s14326_s20 + $0x231] sm:$0xff] }
 0x2b1   : > { %v3379_v60 = vpack.c.bf16 %v11222_v53, %v11221_v50  ;;  %v11290_v50 = vld [vmem:[%s14326_s20 + $0x1fa] sm:$0xff]  ;;  %v11291_v53 = vld [vmem:[%s14326_s20 + $0x202] sm:$0xff] }
 0x2b7   : > { %12570 = vmatmul.mubr.msk.bf16.vlgmr.msra.gmra.mrb[0].mxu0 %vm594_vm1, %v3359_v18  ;;  %v11253_v18 = vld [vmem:[%s14326_s20 + $0x3a] sm:$0xff] }
 0x2b8   : > { %12618 = vmatpush3.bf16.msra.mxu0 %v3879_v1  ;;  %12573 = vmatprep.mubr.msk.bf16.mxu0 %vm594_vm1, %v3360_v19  ;;  %v11218_v1 = vld [vmem:[%s14326_s20 + $0x201] sm:$0xff]  ;;  %v3381_v19 = vpack.c.bf16 %v11226_v5, %v11225_v61  ;;  %v3780_v29 = vpack.c.bf16 %v11253_v18, %v11252_v8  ;;  %v3799_v5 = vpack.c.bf16 %v11291_v53, %v11290_v50  ;;  %v11294_v18 = vld [vmem:[%s14326_s20 + $0x22a] sm:$0xff] }
 0x2b9   : > { %v3377_v43 = vpack.c.bf16 %v11218_v1, %v11217_v23  ;;  %v11286_v23 = vld [vmem:[%s14326_s20 + $0x1ca] sm:$0xff]  ;;  %v11287_v1 = vld [vmem:[%s14326_s20 + $0x1d2] sm:$0xff]  ;;  %v11293_v61 = vld [vmem:[%s14326_s20 + $0x21a] sm:$0xff] }
 0x2bf   : > { %12574 = vmatmul.mubr.msk.bf16.gmra.mrb[4].mxu0 %vm594_vm1, %v3361_v55  ;;  %v3781_v55 = vpack.c.bf16 %v11255_v42, %v11254_v30  ;;  %v11298_v30 = vld [vmem:[%s14326_s20 + $0x25a] sm:$0xff]  ;;  %v11299_v42 = vld [vmem:[%s14326_s20 + $0x262] sm:$0xff] }
 0x2c0   : > { %12577 = vmatprep.mubr.msk.bf16.mxu0 %vm594_vm1, %v3362_v56 }
 0x2c7   : > { %12578 = vmatmul.mubr.msk.bf16.gmra.mrb[8].mxu0 %vm594_vm1, %v3363_v41  ;;  %v3783_v41 = vpack.c.bf16 %v11259_v9, %v11258_v4 }
 0x2c8   : > { %12581 = vmatprep.mubr.msk.bf16.mxu0 %vm594_vm1, %v3364_v3  ;;  %v3784_v3 = vpack.c.bf16 %v11261_v25, %v11260_v24  ;;  %v4378_v24 = vld [vmem:[%s16714_s3] sm:$0xf] }
 0x2c9   : > { %v15262_v25 = vld [vmem:[%s16713_s2] ss:$0 sm:$0xff] }
 0x2cf   : > { %12582 = vmatmul.mubr.msk.bf16.gmra.mrb[12].mxu0 %vm594_vm1, %v3365_v20  ;;  %v3785_v20 = vpack.c.bf16 %v11263_v37, %v11262_v31 }
 0x2d0   : > { %12585 = vmatprep.mubr.msk.bf16.mxu0 %vm594_vm1, %v3366_v26  ;;  %v3786_v26 = vpack.c.bf16 %v11265_v54, %v11264_v49 }
 0x2d7   : > { %12586 = vmatmul.mubr.msk.bf16.gmra.mrb[16].mxu0 %vm594_vm1, %v3367_v62  ;;  %v3787_v62 = vpack.c.bf16 %v11267_v36, %v11266_v38 }
 0x2d8   : > { %12589 = vmatprep.mubr.msk.bf16.mxu0 %vm594_vm1, %v3368_v32  ;;  %v3788_v32 = vpack.c.bf16 %v11269_v17, %v11268_v11 }
 0x2df   : > { %12590 = vmatmul.mubr.msk.bf16.gmra.mrb[20].mxu0 %vm594_vm1, %v3369_v14  ;;  %v3789_v14 = vpack.c.bf16 %v11271_v59, %v11270_v10 }
 0x2e0   : > { %12593 = vmatprep.mubr.msk.bf16.mxu0 %vm594_vm1, %v3370_v15  ;;  %v3790_v15 = vpack.c.bf16 %v11273_v48, %v11272_v47 }
 0x2e7   : > { %12594 = vmatmul.mubr.msk.bf16.gmra.mrb[24].mxu0 %vm594_vm1, %v3371_v34  ;;  %v3791_v34 = vpack.c.bf16 %v11275_v27, %v11274_v22 }
 0x2e8   : > { %12597 = vmatprep.mubr.msk.bf16.mxu0 %vm594_vm1, %v3372_v39  ;;  %v3792_v39 = vpack.c.bf16 %v11277_v33, %v11276_v28 }
 0x2ef   : > { %12598 = vmatmul.mubr.msk.bf16.gmra.mrb[28].mxu0 %vm594_vm1, %v3373_v52  ;;  %v3793_v52 = vpack.c.bf16 %v11279_v45, %v11278_v40 }
 0x2f0   : > { %12601 = vmatprep.mubr.msk.bf16.mxu0 %vm594_vm1, %v3374_v57  ;;  %v3794_v57 = vpack.c.bf16 %v11281_v51, %v11280_v46  ;;  %v4827_v51 = vsel %vm4525_vm5, %v4378_v24, 0 }
 0x2f7   : > { %12602 = vmatmul.mubr.msk.bf16.gmra.mrb[32].mxu0 %vm594_vm1, %v3375_v7  ;;  %v3795_v7 = vpack.c.bf16 %v11283_v63, %v11282_v58 }
 0x2f8   : > { %12605 = vmatprep.mubr.msk.bf16.mxu0 %vm594_vm1, %v3376_v12  ;;  %v3796_v12 = vpack.c.bf16 %v11285_v6, %v11284_v0  ;;  %v15285_v0 = vld [vmem:[%s16714_s3 + $0x8] sm:$0xf] }
 0x2ff   : > { %12606 = vmatmul.mubr.msk.bf16.gmra.mrb[36].mxu0 %vm594_vm1, %v3377_v43  ;;  %v3797_v43 = vpack.c.bf16 %v11287_v1, %v11286_v23 }
 0x300   : > { %12609 = vmatprep.mubr.msk.bf16.mxu0 %vm594_vm1, %v3378_v44  ;;  %v3798_v44 = vpack.c.bf16 %v11289_v35, %v11288_v2 }
 0x307   : > { %12610 = vmatmul.mubr.msk.bf16.gmra.mrb[40].mxu0 %vm594_vm1, %v3379_v60  ;;  %v11292_v60 = vld [vmem:[%s14326_s20 + $0x212] sm:$0xff] }
 0x308   : > { %12613 = vmatprep.mubr.msk.bf16.mxu0 %vm594_vm1, %v14880_v21  ;;  %v11257_v21 = vld [vmem:[%s14326_s20 + $0x6a] sm:$0xff]  ;;  %v3800_v8 = vpack.c.bf16 %v11293_v61, %v11292_v60 }
 0x309   : > { %v3782_v56 = vpack.c.bf16 %v11257_v21, %v11256_v16  ;;  %v3803_v16 = vpack.c.bf16 %v11299_v42, %v11298_v30  ;;  %v16735_v21 = vmov 0.0  }
 0x30a   : > { %333 = vst.msk [vmem:[#allocation2] sm:$0xff] %vm332_vm2, %v16735_v21  ;;  %334 = vst.msk [vmem:[#allocation2 + $0x8] sm:$0xff] %vm332_vm2, %v16735_v21 }
 0x30b   : > { %338 = vst.msk [vmem:[#allocation2 + $0x258] sm:$0xff] %vm332_vm2, %v16735_v21  ;;  %339 = vst.msk [vmem:[#allocation2 + $0x260] sm:$0xff] %vm332_vm2, %v16735_v21 }
 0x30c   : > { %343 = vst.msk [vmem:[#allocation2 + $0x18] sm:$0x1] %vm341_vm3, %v16735_v21  ;;  %344 = vst.msk [vmem:[#allocation2 + $0x30] sm:$0x1] %vm341_vm3, %v16735_v21 }
 0x30d   : > { %345 = vst.msk [vmem:[#allocation2 + $0x48] sm:$0x1] %vm341_vm3, %v16735_v21  ;;  %346 = vst.msk [vmem:[#allocation2 + $0x60] sm:$0x1] %vm341_vm3, %v16735_v21 }
 0x30e   : > { %347 = vst.msk [vmem:[#allocation2 + $0x78] sm:$0x1] %vm341_vm3, %v16735_v21  ;;  %348 = vst.msk [vmem:[#allocation2 + $0x90] sm:$0x1] %vm341_vm3, %v16735_v21 }
 0x30f   : > { %12614 = vmatmul.mubr.msk.bf16.gmra.mrb[44].mxu0 %vm594_vm1, %v3381_v19  ;;  %v11295_v19 = vld [vmem:[%s14326_s20 + $0x232] sm:$0xff]  ;;  %349 = vst.msk [vmem:[#allocation2 + $0xa8] sm:$0x1] %vm341_vm3, %v16735_v21  ;;  %350 = vst.msk [vmem:[#allocation2 + $0xc0] sm:$0x1] %vm341_vm3, %v16735_v21 }
 0x310   : > { %12619 = vmatprep.mubr.msk.bf16.mxu0 %vm594_vm1, %v3780_v29  ;;  %v3801_v29 = vpack.c.bf16 %v11295_v19, %v11294_v18  ;;  %351 = vst.msk [vmem:[#allocation2 + $0xd8] sm:$0x1] %vm341_vm3, %v16735_v21  ;;  %352 = vst.msk [vmem:[#allocation2 + $0xf0] sm:$0x1] %vm341_vm3, %v16735_v21 }
 0x311   : > { %353 = vst.msk [vmem:[#allocation2 + $0x108] sm:$0x1] %vm341_vm3, %v16735_v21  ;;  %354 = vst.msk [vmem:[#allocation2 + $0x120] sm:$0x1] %vm341_vm3, %v16735_v21 }
 0x312   : > { %355 = vst.msk [vmem:[#allocation2 + $0x138] sm:$0x1] %vm341_vm3, %v16735_v21  ;;  %356 = vst.msk [vmem:[#allocation2 + $0x150] sm:$0x1] %vm341_vm3, %v16735_v21 }
 0x313   : > { %357 = vst.msk [vmem:[#allocation2 + $0x168] sm:$0x1] %vm341_vm3, %v16735_v21  ;;  %358 = vst.msk [vmem:[#allocation2 + $0x180] sm:$0x1] %vm341_vm3, %v16735_v21 }
 0x314   : > { %359 = vst.msk [vmem:[#allocation2 + $0x198] sm:$0x1] %vm341_vm3, %v16735_v21  ;;  %360 = vst.msk [vmem:[#allocation2 + $0x1b0] sm:$0x1] %vm341_vm3, %v16735_v21 }
 0x315   : > { %361 = vst.msk [vmem:[#allocation2 + $0x1c8] sm:$0x1] %vm341_vm3, %v16735_v21  ;;  %362 = vst.msk [vmem:[#allocation2 + $0x1e0] sm:$0x1] %vm341_vm3, %v16735_v21 }
 0x316   : > { %363 = vst.msk [vmem:[#allocation2 + $0x1f8] sm:$0x1] %vm341_vm3, %v16735_v21  ;;  %364 = vst.msk [vmem:[#allocation2 + $0x210] sm:$0x1] %vm341_vm3, %v16735_v21 }
 0x317   : > { %12620 = vmatmul.mubr.msk.bf16.vlgmr.msra.gmra.mrb[0].mxu0 %vm594_vm1, %v3781_v55  ;;  %365 = vst.msk [vmem:[#allocation2 + $0x228] sm:$0x1] %vm341_vm3, %v16735_v21  ;;  %366 = vst.msk [vmem:[#allocation2 + $0x240] sm:$0x1] %vm341_vm3, %v16735_v21 }
 0x318   : > { %12623 = vmatprep.mubr.msk.bf16.mxu0 %vm594_vm1, %v3782_v56  ;;  %369 = vst.msk [vmem:[#allocation2 + $0x29] sm:$0x1] %vm341_vm3, %v16735_v21  ;;  %370 = vst.msk [vmem:[#allocation2 + $0x41] sm:$0x1] %vm341_vm3, %v16735_v21  ;;  %v4379_v56 = vld [vmem:[#allocation2 + $0x1] sm:$0xff] }
 0x319   : > { %371 = vst.msk [vmem:[#allocation2 + $0x59] sm:$0x1] %vm341_vm3, %v16735_v21  ;;  %372 = vst.msk [vmem:[#allocation2 + $0x71] sm:$0x1] %vm341_vm3, %v16735_v21 }
 0x31a   : > { %373 = vst.msk [vmem:[#allocation2 + $0x89] sm:$0x1] %vm341_vm3, %v16735_v21  ;;  %374 = vst.msk [vmem:[#allocation2 + $0xa1] sm:$0x1] %vm341_vm3, %v16735_v21 }
 0x31b   : > { %375 = vst.msk [vmem:[#allocation2 + $0xb9] sm:$0x1] %vm341_vm3, %v16735_v21  ;;  %376 = vst.msk [vmem:[#allocation2 + $0xd1] sm:$0x1] %vm341_vm3, %v16735_v21 }
 0x31c   : > { %377 = vst.msk [vmem:[#allocation2 + $0xe9] sm:$0x1] %vm341_vm3, %v16735_v21  ;;  %378 = vst.msk [vmem:[#allocation2 + $0x101] sm:$0x1] %vm341_vm3, %v16735_v21 }
 0x31d   : > { %379 = vst.msk [vmem:[#allocation2 + $0x119] sm:$0x1] %vm341_vm3, %v16735_v21  ;;  %380 = vst.msk [vmem:[#allocation2 + $0x131] sm:$0x1] %vm341_vm3, %v16735_v21 }
 0x31e   : > { %381 = vst.msk [vmem:[#allocation2 + $0x149] sm:$0x1] %vm341_vm3, %v16735_v21  ;;  %382 = vst.msk [vmem:[#allocation2 + $0x161] sm:$0x1] %vm341_vm3, %v16735_v21 }
 0x31f   : > { %12624 = vmatmul.mubr.msk.bf16.gmra.mrb[4].mxu0 %vm594_vm1, %v3783_v41  ;;  %383 = vst.msk [vmem:[#allocation2 + $0x179] sm:$0x1] %vm341_vm3, %v16735_v21  ;;  %384 = vst.msk [vmem:[#allocation2 + $0x191] sm:$0x1] %vm341_vm3, %v16735_v21 }
 0x320   : > { %12627 = vmatprep.mubr.msk.bf16.mxu0 %vm594_vm1, %v3784_v3  ;;  %385 = vst.msk [vmem:[#allocation2 + $0x1a9] sm:$0x1] %vm341_vm3, %v16735_v21  ;;  %386 = vst.msk [vmem:[#allocation2 + $0x1c1] sm:$0x1] %vm341_vm3, %v16735_v21 }
 0x321   : > { %387 = vst.msk [vmem:[#allocation2 + $0x1d9] sm:$0x1] %vm341_vm3, %v16735_v21  ;;  %388 = vst.msk [vmem:[#allocation2 + $0x1f1] sm:$0x1] %vm341_vm3, %v16735_v21 }
 0x322   : > { %389 = vst.msk [vmem:[#allocation2 + $0x209] sm:$0x1] %vm341_vm3, %v16735_v21  ;;  %390 = vst.msk [vmem:[#allocation2 + $0x221] sm:$0x1] %vm341_vm3, %v16735_v21 }
 0x323   : > { %391 = vst.msk [vmem:[#allocation2 + $0x239] sm:$0x1] %vm341_vm3, %v16735_v21  ;;  %392 = vst.msk [vmem:[#allocation2 + $0x251] sm:$0x1] %vm341_vm3, %v16735_v21 }
 0x324   : > { %342 = vst.msk [vmem:[#allocation2] sm:$0x1] %vm341_vm3, %v16735_v21  ;;  %367 = vst.msk [vmem:[#allocation2 + $0x258] sm:$0x1] %vm341_vm3, %v16735_v21 }
 0x325   : > { %336 = vst.msk [vmem:[#allocation2 + $0x10] sm:$0x3] %vm335_vm4, %v16735_v21  ;;  %340 = vst.msk [vmem:[#allocation2 + $0x268] sm:$0x3] %vm335_vm4, %v16735_v21  ;;  %vm10704_vm4 = vcmask 261126  }
 0x326   : > { %368 = vst.msk [vmem:[#allocation2 + $0x11] sm:$0x1] %vm341_vm3, %v16735_v21  ;;  %393 = vst.msk [vmem:[#allocation2 + $0x269] sm:$0x1] %vm341_vm3, %v16735_v21  ;;  %vm10674_vm3 = vcmask 257026  }
 0x327   : > { %12628 = vmatmul.mubr.msk.bf16.gmra.mrb[8].mxu0 %vm594_vm1, %v3785_v20 }
 0x328   : > { %12631 = vmatprep.mubr.msk.bf16.mxu0 %vm594_vm1, %v3786_v26 }
 0x32c   : > { %v4380_v4 = vld [vmem:[#allocation2 + $0x9] sm:$0xff] }
 0x32d   : > { %v4427_v9 = vpack.c.bf16 %v4380_v4, %v4379_v56 }
 0x32f   : > { %12632 = vmatmul.mubr.msk.bf16.gmra.mrb[12].mxu0 %vm594_vm1, %v3787_v62  ;;  %12669 = vmatprep.mubr.msk.bf16.mxu1 %vm332_vm2, %v4427_v9 }
 0x330   : > { %12635 = vmatprep.mubr.msk.bf16.mxu0 %vm594_vm1, %v3788_v32 }
 0x337   : > { %12636 = vmatmul.mubr.msk.bf16.gmra.mrb[16].mxu0 %vm594_vm1, %v3789_v14 }
 0x338   : > { %12639 = vmatprep.mubr.msk.bf16.mxu0 %vm594_vm1, %v3790_v15 }
 0x33f   : > { %12640 = vmatmul.mubr.msk.bf16.gmra.mrb[20].mxu0 %vm594_vm1, %v3791_v34 }
 0x340   : > { %12643 = vmatprep.mubr.msk.bf16.mxu0 %vm594_vm1, %v3792_v39 }
 0x347   : > { %12644 = vmatmul.mubr.msk.bf16.gmra.mrb[24].mxu0 %vm594_vm1, %v3793_v52 }
 0x348   : > { %12647 = vmatprep.mubr.msk.bf16.mxu0 %vm594_vm1, %v3794_v57 }
 0x34f   : > { %12648 = vmatmul.mubr.msk.bf16.gmra.mrb[28].mxu0 %vm594_vm1, %v3795_v7 }
 0x350   : > { %12651 = vmatprep.mubr.msk.bf16.mxu0 %vm594_vm1, %v3796_v12 }
 0x357   : > { %12652 = vmatmul.mubr.msk.bf16.gmra.mrb[32].mxu0 %vm594_vm1, %v3797_v43 }
 0x358   : > { %12655 = vmatprep.mubr.msk.bf16.mxu0 %vm594_vm1, %v3798_v44 }
 0x35f   : > { %12656 = vmatmul.mubr.msk.bf16.gmra.mrb[36].mxu0 %vm594_vm1, %v3799_v5 }
 0x360   : > { %12659 = vmatprep.mubr.msk.bf16.mxu0 %vm594_vm1, %v3800_v8 }
 0x367   : > { %12660 = vmatmul.mubr.msk.bf16.gmra.mrb[40].mxu0 %vm594_vm1, %v3801_v29 }
 0x368   : > { %12663 = vmatprep.mubr.msk.bf16.mxu0 %vm594_vm1, %v14936_v13  ;;  %v11326_v13 = vld [vmem:[%s16714_s3 + $0x4] sm:$0xf] }
 0x369   : > { %14193 = vmatprep.subr.msk.bf16.mxu1 %vm4525_vm5, %v11326_v13  ;;  %v4527_v55 = vsel %vm4525_vm5, %v11326_v13, 0 }
 0x36a   : > { %12668 = vmatpush3.bf16.msra.mxu1 %v4527_v55 }
 0x36b   : > { %14194 = vmatprep.subr.msk.bf16.mxu1 %vm4525_vm5, %v4378_v24 }
 0x36f   : > { %12664 = vmatmul.mubr.msk.bf16.gmra.mrb[44].mxu0 %vm594_vm1, %v3803_v16  ;;  %vm8695_vm1 = vcmask 1046528  }
 0x3ea   : > { %v12621_v41 = vpop.f32.mrb[0].mxu0 }
 0x3eb   : > { %v4163_v3 = vadd.f32 %v12621_v41, %v15262_v25  ;;  %v3915_v31 = vpop.f32.mrb[1].mxu0 }
 0x3ec   : > { %v4161_v37 = vadd.f32 %v15262_v25, %v3915_v31  ;;  %v12622_v49 = vpop.f32.mrb[2].mxu0 }
 0x3ed   : > { %v4211_v54 = vmax.f32 %v4163_v3, 0.0  ;;  %v4164_v20 = vadd.f32 %v12622_v49, %v15262_v25  ;;  %v3918_v26 = vpop.f32.mrb[3].mxu0 }
 0x3ee   : > { %v4209_v38 = vmax.f32 %v4161_v37, 0.0  ;;  %v4162_v36 = vadd.f32 %v15262_v25, %v3918_v26 }
 0x3ef   : > { %4260 = vst.msk [vmem:[#allocation2 + $0x31] sm:$0xff] %vm332_vm2, %v4211_v54  ;;  %v4212_v11 = vmax.f32 %v4164_v20, 0.0 }
 0x3f0   : > { %4258 = vst.msk [vmem:[#allocation2 + $0x19] sm:$0xff] %vm332_vm2, %v4209_v38  ;;  %v4210_v17 = vmax.f32 %v4162_v36, 0.0 }
 0x3f1   : > { %4261 = vst.msk [vmem:[#allocation2 + $0x39] sm:$0xff] %vm332_vm2, %v4212_v11 }
 0x3f2   : > { %4259 = vst.msk [vmem:[#allocation2 + $0x21] sm:$0xff] %vm332_vm2, %v4210_v17  ;;  %v12625_v62 = vpop.f32.mrb[4].mxu0 }
 0x3f3   : > { %v4167_v32 = vadd.f32 %v12625_v62, %v15262_v25  ;;  %v3931_v10 = vpop.f32.mrb[5].mxu0 }
 0x3f4   : > { %v4165_v59 = vadd.f32 %v15262_v25, %v3931_v10  ;;  %v12626_v47 = vpop.f32.mrb[6].mxu0 }
 0x3f5   : > { %v4215_v48 = vmax.f32 %v4167_v32, 0.0  ;;  %v4168_v14 = vadd.f32 %v12626_v47, %v15262_v25  ;;  %v3934_v15 = vpop.f32.mrb[7].mxu0 }
 0x3f6   : > { %v4213_v22 = vmax.f32 %v4165_v59, 0.0  ;;  %v4166_v27 = vadd.f32 %v15262_v25, %v3934_v15  ;;  %v4383_v52 = vld [vmem:[#allocation2 + $0x31] sm:$0xff] }
 0x3f7   : > { %4264 = vst.msk [vmem:[#allocation2 + $0x61] sm:$0xff] %vm332_vm2, %v4215_v48  ;;  %v4216_v28 = vmax.f32 %v4168_v14, 0.0  ;;  %v4381_v39 = vld [vmem:[#allocation2 + $0x19] sm:$0xff] }
 0x3f8   : > { %4262 = vst.msk [vmem:[#allocation2 + $0x49] sm:$0xff] %vm332_vm2, %v4213_v22  ;;  %v4214_v33 = vmax.f32 %v4166_v27, 0.0  ;;  %v4384_v34 = vld [vmem:[#allocation2 + $0x39] sm:$0xff] }
 0x3f9   : > { %4265 = vst.msk [vmem:[#allocation2 + $0x69] sm:$0xff] %vm332_vm2, %v4216_v28  ;;  %v4382_v40 = vld [vmem:[#allocation2 + $0x21] sm:$0xff]  ;;  %v4429_v63 = vpack.c.bf16 %v4384_v34, %v4383_v52 }
 0x3fa   : > { %4263 = vst.msk [vmem:[#allocation2 + $0x51] sm:$0xff] %vm332_vm2, %v4214_v33  ;;  %v12629_v45 = vpop.f32.mrb[8].mxu0  ;;  %v4428_v46 = vpack.c.bf16 %v4382_v40, %v4381_v39 }
 0x3fb   : > { %v4171_v57 = vadd.f32 %v12629_v45, %v15262_v25  ;;  %v3947_v58 = vpop.f32.mrb[9].mxu0 }
 0x3fc   : > { %v4169_v6 = vadd.f32 %v15262_v25, %v3947_v58  ;;  %v12630_v7 = vpop.f32.mrb[10].mxu0  ;;  %12670 = vmatmul.mubr.msk.bf16.vlgmr.msra.gmra.mrb[0].mxu1 %vm332_vm2, %v4428_v46 }
 0x3fd   : > { %v4219_v12 = vmax.f32 %v4171_v57, 0.0  ;;  %v4172_v23 = vadd.f32 %v12630_v7, %v15262_v25  ;;  %12718 = vmatpush3.bf16.msra.mxu1 %v4827_v51  ;;  %v3950_v1 = vpop.f32.mrb[11].mxu0  ;;  %12673 = vmatprep.mubr.msk.bf16.mxu1 %vm332_vm2, %v4429_v63 }
 0x3fe   : > { %v4217_v2 = vmax.f32 %v4169_v6, 0.0  ;;  %v4170_v35 = vadd.f32 %v15262_v25, %v3950_v1  ;;  %14195 = vmatprep.subr.msk.bf16.mxu1 %vm4525_vm5, %v15285_v0  ;;  %v4387_v8 = vld [vmem:[#allocation2 + $0x61] sm:$0xff] }
 0x3ff   : > { %4268 = vst.msk [vmem:[#allocation2 + $0x91] sm:$0xff] %vm332_vm2, %v4219_v12  ;;  %v4220_v43 = vmax.f32 %v4172_v23, 0.0  ;;  %v4385_v53 = vld [vmem:[#allocation2 + $0x49] sm:$0xff] }
 0x400   : > { %4266 = vst.msk [vmem:[#allocation2 + $0x79] sm:$0xff] %vm332_vm2, %v4217_v2  ;;  %v4218_v44 = vmax.f32 %v4170_v35, 0.0  ;;  %v4388_v50 = vld [vmem:[#allocation2 + $0x69] sm:$0xff] }
 0x401   : > { %4269 = vst.msk [vmem:[#allocation2 + $0x99] sm:$0xff] %vm332_vm2, %v4220_v43  ;;  %v4386_v60 = vld [vmem:[#allocation2 + $0x51] sm:$0xff]  ;;  %v4431_v29 = vpack.c.bf16 %v4388_v50, %v4387_v8 }
 0x402   : > { %4267 = vst.msk [vmem:[#allocation2 + $0x81] sm:$0xff] %vm332_vm2, %v4218_v44  ;;  %v12633_v61 = vpop.f32.mrb[12].mxu0  ;;  %v4430_v5 = vpack.c.bf16 %v4386_v60, %v4385_v53 }
 0x403   : > { %v4175_v18 = vadd.f32 %v12633_v61, %v15262_v25  ;;  %v3963_v19 = vpop.f32.mrb[13].mxu0 }
 0x404   : > { %v4173_v30 = vadd.f32 %v15262_v25, %v3963_v19  ;;  %v12634_v42 = vpop.f32.mrb[14].mxu0  ;;  %12674 = vmatmul.mubr.msk.bf16.gmra.mrb[4].mxu1 %vm332_vm2, %v4430_v5 }
 0x405   : > { %v4223_v16 = vmax.f32 %v4175_v18, 0.0  ;;  %v4176_v13 = vadd.f32 %v12634_v42, %v15262_v25  ;;  %v3966_v55 = vpop.f32.mrb[15].mxu0  ;;  %12677 = vmatprep.mubr.msk.bf16.mxu1 %vm332_vm2, %v4431_v29 }
 0x406   : > { %v4221_v56 = vmax.f32 %v4173_v30, 0.0  ;;  %v4174_v4 = vadd.f32 %v15262_v25, %v3966_v55  ;;  %v4391_v54 = vld [vmem:[#allocation2 + $0x91] sm:$0xff] }
 0x407   : > { %4272 = vst.msk [vmem:[#allocation2 + $0xc1] sm:$0xff] %vm332_vm2, %v4223_v16  ;;  %v4224_v9 = vmax.f32 %v4176_v13, 0.0  ;;  %v4389_v3 = vld [vmem:[#allocation2 + $0x79] sm:$0xff] }
 0x408   : > { %4270 = vst.msk [vmem:[#allocation2 + $0xa9] sm:$0xff] %vm332_vm2, %v4221_v56  ;;  %v4222_v24 = vmax.f32 %v4174_v4, 0.0  ;;  %v4392_v41 = vld [vmem:[#allocation2 + $0x99] sm:$0xff] }
 0x409   : > { %4273 = vst.msk [vmem:[#allocation2 + $0xc9] sm:$0xff] %vm332_vm2, %v4224_v9  ;;  %v4390_v31 = vld [vmem:[#allocation2 + $0x81] sm:$0xff]  ;;  %v15311_v38 = vpack.c.bf16 %v4392_v41, %v4391_v54 }
 0x40a   : > { %4271 = vst.msk [vmem:[#allocation2 + $0xb1] sm:$0xff] %vm332_vm2, %v4222_v24  ;;  %v12637_v37 = vpop.f32.mrb[16].mxu0  ;;  %v15308_v49 = vpack.c.bf16 %v4390_v31, %v4389_v3 }
 0x40b   : > { %v4179_v20 = vadd.f32 %v12637_v37, %v15262_v25  ;;  %v3979_v26 = vpop.f32.mrb[17].mxu0 }
 0x40c   : > { %v4177_v36 = vadd.f32 %v15262_v25, %v3979_v26  ;;  %v12638_v11 = vpop.f32.mrb[18].mxu0  ;;  %12678 = vmatmul.mubr.msk.bf16.gmra.mrb[8].mxu1 %vm332_vm2, %v15308_v49 }
 0x40d   : > { %v4227_v17 = vmax.f32 %v4179_v20, 0.0  ;;  %v4180_v62 = vadd.f32 %v12638_v11, %v15262_v25  ;;  %v3982_v32 = vpop.f32.mrb[19].mxu0  ;;  %12681 = vmatprep.mubr.msk.bf16.mxu1 %vm332_vm2, %v15311_v38 }
 0x40e   : > { %v4225_v10 = vmax.f32 %v4177_v36, 0.0  ;;  %v4178_v59 = vadd.f32 %v15262_v25, %v3982_v32  ;;  %v4395_v33 = vld [vmem:[#allocation2 + $0xc1] sm:$0xff] }
 0x40f   : > { %4276 = vst.msk [vmem:[#allocation2 + $0xf1] sm:$0xff] %vm332_vm2, %v4227_v17  ;;  %v4228_v47 = vmax.f32 %v4180_v62, 0.0  ;;  %v4393_v15 = vld [vmem:[#allocation2 + $0xa9] sm:$0xff] }
 0x410   : > { %4274 = vst.msk [vmem:[#allocation2 + $0xd9] sm:$0xff] %vm332_vm2, %v4225_v10  ;;  %v4226_v48 = vmax.f32 %v4178_v59, 0.0  ;;  %v4396_v14 = vld [vmem:[#allocation2 + $0xc9] sm:$0xff] }
 0x411   : > { %4277 = vst.msk [vmem:[#allocation2 + $0xf9] sm:$0xff] %vm332_vm2, %v4228_v47  ;;  %v4394_v22 = vld [vmem:[#allocation2 + $0xb1] sm:$0xff]  ;;  %v15327_v40 = vpack.c.bf16 %v4396_v14, %v4395_v33 }
 0x412   : > { %4275 = vst.msk [vmem:[#allocation2 + $0xe1] sm:$0xff] %vm332_vm2, %v4226_v48  ;;  %v12641_v27 = vpop.f32.mrb[20].mxu0  ;;  %v15324_v28 = vpack.c.bf16 %v4394_v22, %v4393_v15 }
 0x413   : > { %v4183_v34 = vadd.f32 %v12641_v27, %v15262_v25  ;;  %v3995_v39 = vpop.f32.mrb[21].mxu0 }
 0x414   : > { %v4181_v45 = vadd.f32 %v15262_v25, %v3995_v39  ;;  %v12642_v46 = vpop.f32.mrb[22].mxu0  ;;  %12682 = vmatmul.mubr.msk.bf16.gmra.mrb[12].mxu1 %vm332_vm2, %v15324_v28 }
 0x415   : > { %v4231_v51 = vmax.f32 %v4183_v34, 0.0  ;;  %v4184_v52 = vadd.f32 %v12642_v46, %v15262_v25  ;;  %v3998_v57 = vpop.f32.mrb[23].mxu0  ;;  %12685 = vmatprep.mubr.msk.bf16.mxu1 %vm332_vm2, %v15327_v40 }
 0x416   : > { %v4229_v58 = vmax.f32 %v4181_v45, 0.0  ;;  %v4182_v63 = vadd.f32 %v15262_v25, %v3998_v57  ;;  %v4399_v43 = vld [vmem:[#allocation2 + $0xf1] sm:$0xff] }
 0x417   : > { %4280 = vst.msk [vmem:[#allocation2 + $0x121] sm:$0xff] %vm332_vm2, %v4231_v51  ;;  %v4232_v6 = vmax.f32 %v4184_v52, 0.0  ;;  %v4397_v23 = vld [vmem:[#allocation2 + $0xd9] sm:$0xff] }
 0x418   : > { %4278 = vst.msk [vmem:[#allocation2 + $0x109] sm:$0xff] %vm332_vm2, %v4229_v58  ;;  %v4230_v7 = vmax.f32 %v4182_v63, 0.0  ;;  %v4400_v12 = vld [vmem:[#allocation2 + $0xf9] sm:$0xff] }
 0x419   : > { %4281 = vst.msk [vmem:[#allocation2 + $0x129] sm:$0xff] %vm332_vm2, %v4232_v6  ;;  %v4398_v1 = vld [vmem:[#allocation2 + $0xe1] sm:$0xff]  ;;  %v15343_v53 = vpack.c.bf16 %v4400_v12, %v4399_v43 }
 0x41a   : > { %4279 = vst.msk [vmem:[#allocation2 + $0x111] sm:$0xff] %vm332_vm2, %v4230_v7  ;;  %v12645_v2 = vpop.f32.mrb[24].mxu0  ;;  %v15340_v35 = vpack.c.bf16 %v4398_v1, %v4397_v23 }
 0x41b   : > { %v4187_v44 = vadd.f32 %v12645_v2, %v15262_v25  ;;  %v4011_v50 = vpop.f32.mrb[25].mxu0 }
 0x41c   : > { %v4185_v60 = vadd.f32 %v15262_v25, %v4011_v50  ;;  %v12646_v61 = vpop.f32.mrb[26].mxu0  ;;  %12686 = vmatmul.mubr.msk.bf16.gmra.mrb[16].mxu1 %vm332_vm2, %v15340_v35 }
 0x41d   : > { %v4235_v5 = vmax.f32 %v4187_v44, 0.0  ;;  %v4188_v8 = vadd.f32 %v12646_v61, %v15262_v25  ;;  %v4014_v18 = vpop.f32.mrb[27].mxu0  ;;  %12689 = vmatprep.mubr.msk.bf16.mxu1 %vm332_vm2, %v15343_v53 }
 0x41e   : > { %v4233_v19 = vmax.f32 %v4185_v60, 0.0  ;;  %v4186_v29 = vadd.f32 %v15262_v25, %v4014_v18  ;;  %v4403_v9 = vld [vmem:[#allocation2 + $0x121] sm:$0xff] }
 0x41f   : > { %4284 = vst.msk [vmem:[#allocation2 + $0x151] sm:$0xff] %vm332_vm2, %v4235_v5  ;;  %v4236_v30 = vmax.f32 %v4188_v8, 0.0  ;;  %v4401_v13 = vld [vmem:[#allocation2 + $0x109] sm:$0xff] }
 0x420   : > { %4282 = vst.msk [vmem:[#allocation2 + $0x139] sm:$0xff] %vm332_vm2, %v4233_v19  ;;  %v4234_v42 = vmax.f32 %v4186_v29, 0.0  ;;  %v4404_v16 = vld [vmem:[#allocation2 + $0x129] sm:$0xff] }
 0x421   : > { %4285 = vst.msk [vmem:[#allocation2 + $0x159] sm:$0xff] %vm332_vm2, %v4236_v30  ;;  %v4402_v55 = vld [vmem:[#allocation2 + $0x111] sm:$0xff]  ;;  %v15359_v3 = vpack.c.bf16 %v4404_v16, %v4403_v9 }
 0x422   : > { %4283 = vst.msk [vmem:[#allocation2 + $0x141] sm:$0xff] %vm332_vm2, %v4234_v42  ;;  %v12649_v56 = vpop.f32.mrb[28].mxu0  ;;  %v15356_v4 = vpack.c.bf16 %v4402_v55, %v4401_v13 }
 0x423   : > { %v4191_v24 = vadd.f32 %v12649_v56, %v15262_v25  ;;  %v4027_v41 = vpop.f32.mrb[29].mxu0 }
 0x424   : > { %v4189_v31 = vadd.f32 %v15262_v25, %v4027_v41  ;;  %v12650_v37 = vpop.f32.mrb[30].mxu0  ;;  %12690 = vmatmul.mubr.msk.bf16.gmra.mrb[20].mxu1 %vm332_vm2, %v15356_v4 }
 0x425   : > { %v4239_v54 = vmax.f32 %v4191_v24, 0.0  ;;  %v4192_v20 = vadd.f32 %v12650_v37, %v15262_v25  ;;  %v4030_v26 = vpop.f32.mrb[31].mxu0  ;;  %12693 = vmatprep.mubr.msk.bf16.mxu1 %vm332_vm2, %v15359_v3 }
 0x426   : > { %v4237_v36 = vmax.f32 %v4189_v31, 0.0  ;;  %v4190_v11 = vadd.f32 %v15262_v25, %v4030_v26  ;;  %v4407_v14 = vld [vmem:[#allocation2 + $0x151] sm:$0xff] }
 0x427   : > { %4288 = vst.msk [vmem:[#allocation2 + $0x181] sm:$0xff] %vm332_vm2, %v4239_v54  ;;  %v4240_v17 = vmax.f32 %v4192_v20, 0.0  ;;  %v4405_v10 = vld [vmem:[#allocation2 + $0x139] sm:$0xff] }
 0x428   : > { %4286 = vst.msk [vmem:[#allocation2 + $0x169] sm:$0xff] %vm332_vm2, %v4237_v36  ;;  %v4238_v62 = vmax.f32 %v4190_v11, 0.0  ;;  %v4408_v32 = vld [vmem:[#allocation2 + $0x159] sm:$0xff] }
 0x429   : > { %4289 = vst.msk [vmem:[#allocation2 + $0x189] sm:$0xff] %vm332_vm2, %v4240_v17  ;;  %v4406_v59 = vld [vmem:[#allocation2 + $0x141] sm:$0xff]  ;;  %v15375_v27 = vpack.c.bf16 %v4408_v32, %v4407_v14 }
 0x42a   : > { %4287 = vst.msk [vmem:[#allocation2 + $0x171] sm:$0xff] %vm332_vm2, %v4238_v62  ;;  %v12653_v47 = vpop.f32.mrb[32].mxu0  ;;  %v15372_v48 = vpack.c.bf16 %v4406_v59, %v4405_v10 }
 0x42b   : > { %v4195_v15 = vadd.f32 %v12653_v47, %v15262_v25  ;;  %v4043_v22 = vpop.f32.mrb[33].mxu0 }
 0x42c   : > { %v4193_v33 = vadd.f32 %v15262_v25, %v4043_v22  ;;  %v12654_v34 = vpop.f32.mrb[34].mxu0  ;;  %12694 = vmatmul.mubr.msk.bf16.gmra.mrb[24].mxu1 %vm332_vm2, %v15372_v48 }
 0x42d   : > { %v4243_v39 = vmax.f32 %v4195_v15, 0.0  ;;  %v4196_v45 = vadd.f32 %v12654_v34, %v15262_v25  ;;  %v4046_v46 = vpop.f32.mrb[35].mxu0  ;;  %12697 = vmatprep.mubr.msk.bf16.mxu1 %vm332_vm2, %v15375_v27 }
 0x42e   : > { %v4241_v51 = vmax.f32 %v4193_v33, 0.0  ;;  %v4194_v52 = vadd.f32 %v15262_v25, %v4046_v46  ;;  %v4411_v1 = vld [vmem:[#allocation2 + $0x181] sm:$0xff] }
 0x42f   : > { %4292 = vst.msk [vmem:[#allocation2 + $0x1b1] sm:$0xff] %vm332_vm2, %v4243_v39  ;;  %v4244_v57 = vmax.f32 %v4196_v45, 0.0  ;;  %v4409_v6 = vld [vmem:[#allocation2 + $0x169] sm:$0xff] }
 0x430   : > { %4290 = vst.msk [vmem:[#allocation2 + $0x199] sm:$0xff] %vm332_vm2, %v4241_v51  ;;  %v4242_v58 = vmax.f32 %v4194_v52, 0.0  ;;  %v4412_v63 = vld [vmem:[#allocation2 + $0x189] sm:$0xff] }
 0x431   : > { %4293 = vst.msk [vmem:[#allocation2 + $0x1b9] sm:$0xff] %vm332_vm2, %v4244_v57  ;;  %v4410_v7 = vld [vmem:[#allocation2 + $0x171] sm:$0xff]  ;;  %v15391_v44 = vpack.c.bf16 %v4412_v63, %v4411_v1 }
 0x432   : > { %4291 = vst.msk [vmem:[#allocation2 + $0x1a1] sm:$0xff] %vm332_vm2, %v4242_v58  ;;  %v12657_v12 = vpop.f32.mrb[36].mxu0  ;;  %v15388_v23 = vpack.c.bf16 %v4410_v7, %v4409_v6 }
 0x433   : > { %v4199_v2 = vadd.f32 %v12657_v12, %v15262_v25  ;;  %v4059_v43 = vpop.f32.mrb[37].mxu0 }
 0x434   : > { %v4197_v50 = vadd.f32 %v15262_v25, %v4059_v43  ;;  %v12658_v60 = vpop.f32.mrb[38].mxu0  ;;  %12698 = vmatmul.mubr.msk.bf16.gmra.mrb[28].mxu1 %vm332_vm2, %v15388_v23 }
 0x435   : > { %v4247_v61 = vmax.f32 %v4199_v2, 0.0  ;;  %v4200_v5 = vadd.f32 %v12658_v60, %v15262_v25  ;;  %v4062_v8 = vpop.f32.mrb[39].mxu0  ;;  %12701 = vmatprep.mubr.msk.bf16.mxu1 %vm332_vm2, %v15391_v44 }
 0x436   : > { %v4245_v18 = vmax.f32 %v4197_v50, 0.0  ;;  %v4198_v19 = vadd.f32 %v15262_v25, %v4062_v8  ;;  %v4415_v9 = vld [vmem:[#allocation2 + $0x1b1] sm:$0xff] }
 0x437   : > { %4296 = vst.msk [vmem:[#allocation2 + $0x1e1] sm:$0xff] %vm332_vm2, %v4247_v61  ;;  %v4248_v29 = vmax.f32 %v4200_v5, 0.0  ;;  %v4413_v16 = vld [vmem:[#allocation2 + $0x199] sm:$0xff]  ;;  %v4307_v61 = vld [vmem:[#allocation2 + $0x8] sm:$0xff] }
 0x438   : > { %4294 = vst.msk [vmem:[#allocation2 + $0x1c9] sm:$0xff] %vm332_vm2, %v4245_v18  ;;  %v4246_v30 = vmax.f32 %v4198_v19, 0.0  ;;  %v4416_v42 = vld [vmem:[#allocation2 + $0x1b9] sm:$0xff] }
 0x439   : > { %4297 = vst.msk [vmem:[#allocation2 + $0x1e9] sm:$0xff] %vm332_vm2, %v4248_v29  ;;  %v4414_v13 = vld [vmem:[#allocation2 + $0x1a1] sm:$0xff]  ;;  %v15407_v31 = vpack.c.bf16 %v4416_v42, %v4415_v9  ;;  %v4308_v42 = vld [vmem:[#allocation2 + $0x18] sm:$0xff] }
 0x43a   : > { %4295 = vst.msk [vmem:[#allocation2 + $0x1d1] sm:$0xff] %vm332_vm2, %v4246_v30  ;;  %v12661_v55 = vpop.f32.mrb[40].mxu0  ;;  %v15404_v56 = vpack.c.bf16 %v4414_v13, %v4413_v16  ;;  %v4309_v29 = vld [vmem:[#allocation2 + $0x20] sm:$0xff]  ;;  %v4311_v30 = vld [vmem:[#allocation2 + $0x38] sm:$0xff]  ;;  %v5201_v13 = vsel %vm4525_vm5, %v15285_v0, 0  ;;  %v4315_v0 = vld [vmem:[#allocation2 + $0x68] sm:$0xff] }
 0x43b   : > { %v4203_v24 = vadd.f32 %v12661_v55, %v15262_v25  ;;  %v4075_v41 = vpop.f32.mrb[41].mxu0  ;;  %v15449_v16 = vpack.c.bf16 %v4309_v29, %v4308_v42  ;;  %v4310_v55 = vld [vmem:[#allocation2 + $0x30] sm:$0xff]  ;;  %v4336_v42 = vld [vmem:[#allocation2 + $0x168] sm:$0xff] }
 0x43c   : > { %v4201_v37 = vadd.f32 %v15262_v25, %v4075_v41  ;;  %v12662_v54 = vpop.f32.mrb[42].mxu0  ;;  %12702 = vmatmul.mubr.msk.bf16.gmra.mrb[32].mxu1 %vm332_vm2, %v15404_v56  ;;  %v15453_v9 = vpack.c.bf16 %v4311_v30, %v4310_v55  ;;  %v4313_v41 = vld [vmem:[#allocation2 + $0x50] sm:$0xff]  ;;  %v4339_v30 = vld [vmem:[#allocation2 + $0x188] sm:$0xff]  ;;  %v4338_v55 = vld [vmem:[#allocation2 + $0x180] sm:$0xff] }
 0x43d   : > { %v4251_v20 = vmax.f32 %v4203_v24, 0.0  ;;  %v4204_v26 = vadd.f32 %v12662_v54, %v15262_v25  ;;  %v4078_v36 = vpop.f32.mrb[43].mxu0  ;;  %12705 = vmatprep.mubr.msk.bf16.mxu1 %vm332_vm2, %v15407_v31  ;;  %v15458_v24 = vld [vmem:[%s16714_s3 + $0xc] sm:$0xf]  ;;  %v4337_v29 = vld [vmem:[#allocation2 + $0x170] sm:$0xff] }
 0x43e   : > { %v4249_v11 = vmax.f32 %v4201_v37, 0.0  ;;  %v4202_v17 = vadd.f32 %v15262_v25, %v4078_v36  ;;  %v4419_v22 = vld [vmem:[#allocation2 + $0x1e1] sm:$0xff] }
 0x43f   : > { %4300 = vst.msk [vmem:[#allocation2 + $0x211] sm:$0xff] %vm332_vm2, %v4251_v20  ;;  %v4252_v62 = vmax.f32 %v4204_v26, 0.0  ;;  %v4417_v59 = vld [vmem:[#allocation2 + $0x1c9] sm:$0xff]  ;;  %v4314_v20 = vld [vmem:[#allocation2 + $0x60] sm:$0xff] }
 0x440   : > { %4298 = vst.msk [vmem:[#allocation2 + $0x1f9] sm:$0xff] %vm332_vm2, %v4249_v11  ;;  %v4250_v32 = vmax.f32 %v4202_v17, 0.0  ;;  %v4420_v10 = vld [vmem:[#allocation2 + $0x1e9] sm:$0xff]  ;;  %v15468_v26 = vpack.c.bf16 %v4315_v0, %v4314_v20  ;;  %v4317_v36 = vld [vmem:[#allocation2 + $0x80] sm:$0xff]  ;;  %v4319_v11 = vld [vmem:[#allocation2 + $0x98] sm:$0xff] }
 0x441   : > { %4301 = vst.msk [vmem:[#allocation2 + $0x219] sm:$0xff] %vm332_vm2, %v4252_v62  ;;  %v4418_v47 = vld [vmem:[#allocation2 + $0x1d1] sm:$0xff]  ;;  %v15423_v39 = vpack.c.bf16 %v4420_v10, %v4419_v22  ;;  %v4312_v37 = vld [vmem:[#allocation2 + $0x48] sm:$0xff]  ;;  %v4341_v0 = vld [vmem:[#allocation2 + $0x1a0] sm:$0xff] }
 0x442   : > { %4299 = vst.msk [vmem:[#allocation2 + $0x201] sm:$0xff] %vm332_vm2, %v4250_v32  ;;  %v12665_v14 = vpop.f32.mrb[44].mxu0  ;;  %v15420_v15 = vpack.c.bf16 %v4418_v47, %v4417_v59  ;;  %v15466_v54 = vpack.c.bf16 %v4313_v41, %v4312_v37  ;;  %v4316_v17 = vld [vmem:[#allocation2 + $0x78] sm:$0xff]  ;;  %v4318_v32 = vld [vmem:[#allocation2 + $0x90] sm:$0xff]  ;;  %v4323_v47 = vld [vmem:[#allocation2 + $0xc8] sm:$0xff]  ;;  %v15516_v41 = vpack.c.bf16 %v4339_v30, %v4338_v55 }
 0x443   : > { %v4207_v33 = vadd.f32 %v12665_v14, %v15262_v25  ;;  %v4091_v34 = vpop.f32.mrb[45].mxu0  ;;  %v15474_v62 = vpack.c.bf16 %v4317_v36, %v4316_v17  ;;  %v15476_v10 = vpack.c.bf16 %v4319_v11, %v4318_v32  ;;  %v4321_v59 = vld [vmem:[#allocation2 + $0xb0] sm:$0xff]  ;;  %v4320_v14 = vld [vmem:[#allocation2 + $0xa8] sm:$0xff]  ;;  %v4343_v37 = vld [vmem:[#allocation2 + $0x1b8] sm:$0xff] }
 0x444   : > { %v4205_v45 = vadd.f32 %v15262_v25, %v4091_v34  ;;  %v12666_v46 = vpop.f32.mrb[46].mxu0  ;;  %12706 = vmatmul.mubr.msk.bf16.gmra.mrb[36].mxu1 %vm332_vm2, %v15420_v15  ;;  %v15482_v22 = vpack.c.bf16 %v4321_v59, %v4320_v14  ;;  %v4340_v20 = vld [vmem:[#allocation2 + $0x198] sm:$0xff]  ;;  %v4342_v11 = vld [vmem:[#allocation2 + $0x1b0] sm:$0xff]  ;;  %v4347_v59 = vld [vmem:[#allocation2 + $0x1e8] sm:$0xff] }
 0x445   : > { %v4255_v51 = vmax.f32 %v4207_v33, 0.0  ;;  %v4208_v52 = vadd.f32 %v12666_v46, %v15262_v25  ;;  %v4094_v57 = vpop.f32.mrb[47].mxu0  ;;  %12709 = vmatprep.mubr.msk.bf16.mxu1 %vm332_vm2, %v15423_v39  ;;  %v4322_v33 = vld [vmem:[#allocation2 + $0xc0] sm:$0xff]  ;;  %v4327_v46 = vld [vmem:[#allocation2 + $0xf8] sm:$0xff]  ;;  %v15522_v36 = vpack.c.bf16 %v4341_v0, %v4340_v20  ;;  %v15524_v17 = vpack.c.bf16 %v4343_v37, %v4342_v11  ;;  %v4345_v32 = vld [vmem:[#allocation2 + $0x1d0] sm:$0xff] }
 0x446   : > { %v4253_v58 = vmax.f32 %v4205_v45, 0.0  ;;  %v4206_v63 = vadd.f32 %v15262_v25, %v4094_v57  ;;  %v4423_v50 = vld [vmem:[#allocation2 + $0x211] sm:$0xff]  ;;  %v4306_v25 = vld [vmem:[#allocation2] sm:$0xff]  ;;  %v15484_v34 = vpack.c.bf16 %v4323_v47, %v4322_v33  ;;  %v4344_v47 = vld [vmem:[#allocation2 + $0x1c8] sm:$0xff]  ;;  %v5623_v20 = vsel %vm4525_vm5, %v15458_v24, 0 }
 0x447   : > { %4304 = vst.msk [vmem:[#allocation2 + $0x241] sm:$0xff] %vm332_vm2, %v4255_v51  ;;  %v4256_v6 = vmax.f32 %v4208_v52, 0.0  ;;  %v4421_v1 = vld [vmem:[#allocation2 + $0x1f9] sm:$0xff]  ;;  %v4354_v18 = vpack.c.bf16 %v4307_v61, %v4306_v25  ;;  %v4326_v57 = vld [vmem:[#allocation2 + $0xf0] sm:$0xff]  ;;  %v15530_v14 = vpack.c.bf16 %v4345_v32, %v4344_v47 }
 0x448   : > { %4302 = vst.msk [vmem:[#allocation2 + $0x229] sm:$0xff] %vm332_vm2, %v4253_v58  ;;  %v4254_v7 = vmax.f32 %v4206_v63, 0.0  ;;  %v4424_v12 = vld [vmem:[#allocation2 + $0x219] sm:$0xff]  ;;  %v15492_v58 = vpack.c.bf16 %v4327_v46, %v4326_v57  ;;  %v4329_v63 = vld [vmem:[#allocation2 + $0x110] sm:$0xff] }
 0x449   : > { %4305 = vst.msk [vmem:[#allocation2 + $0x249] sm:$0xff] %vm332_vm2, %v4256_v6  ;;  %v4422_v2 = vld [vmem:[#allocation2 + $0x201] sm:$0xff]  ;;  %v15438_v60 = vpack.c.bf16 %v4424_v12, %v4423_v50  ;;  %v4324_v51 = vld [vmem:[#allocation2 + $0xd8] sm:$0xff]  ;;  %16779 = vst [vmem:[#allocation5_spill] sm:$0xff] %v15530_v14 }
 0x44a   : > { %4303 = vst.msk [vmem:[#allocation2 + $0x231] sm:$0xff] %vm332_vm2, %v4254_v7  ;;  %v15436_v43 = vpack.c.bf16 %v4422_v2, %v4421_v1  ;;  %v4325_v45 = vld [vmem:[#allocation2 + $0xe0] sm:$0xff]  ;;  %v4331_v6 = vld [vmem:[#allocation2 + $0x128] sm:$0xff]  ;;  %v4335_v25 = vld [vmem:[#allocation2 + $0x158] sm:$0xff] }
 0x44b   : > { %v15490_v52 = vpack.c.bf16 %v4325_v45, %v4324_v51  ;;  %v4328_v7 = vld [vmem:[#allocation2 + $0x108] sm:$0xff]  ;;  %v4330_v1 = vld [vmem:[#allocation2 + $0x120] sm:$0xff]  ;;  %v4332_v61 = vld [vmem:[#allocation2 + $0x138] sm:$0xff] }
 0x44c   : > { %12710 = vmatmul.mubr.msk.bf16.gmra.mrb[40].mxu1 %vm332_vm2, %v15436_v43  ;;  %v15498_v12 = vpack.c.bf16 %v4329_v63, %v4328_v7  ;;  %v15500_v2 = vpack.c.bf16 %v4331_v6, %v4330_v1  ;;  %v4333_v50 = vld [vmem:[#allocation2 + $0x140] sm:$0xff]  ;;  %v4351_v51 = vld [vmem:[#allocation2 + $0x218] sm:$0xff]  ;;  %v4350_v6 = vld [vmem:[#allocation2 + $0x210] sm:$0xff] }
 0x44d   : > { %12713 = vmatprep.mubr.msk.bf16.mxu1 %vm332_vm2, %v15438_v60  ;;  %v4346_v33 = vld [vmem:[#allocation2 + $0x1e0] sm:$0xff]  ;;  %v4348_v57 = vld [vmem:[#allocation2 + $0x1f8] sm:$0xff]  ;;  %v15540_v7 = vpack.c.bf16 %v4351_v51, %v4350_v6  ;;  %v15560_v32 = vld [vmem:[%s16714_s3 + $0x10] sm:$0xf] }
 0x44e   : > { %v15532_v45 = vpack.c.bf16 %v4347_v59, %v4346_v33  ;;  %v4349_v46 = vld [vmem:[#allocation2 + $0x200] sm:$0xff]  ;;  %v5058_v55 = vld [vmem:[#allocation2 + $0x32] sm:$0xff]  ;;  %v5060_v59 = vld [vmem:[#allocation2 + $0x4a] sm:$0xff] }
 0x44f   : > { %v4425_v5 = vld [vmem:[#allocation2 + $0x229] sm:$0xff]  ;;  %v15538_v63 = vpack.c.bf16 %v4349_v46, %v4348_v57  ;;  %16782 = vst [vmem:[#allocation8_spill] sm:$0xff] %v15540_v7  ;;  %v5056_v30 = vld [vmem:[#allocation2 + $0x1a] sm:$0xff]  ;;  %v5061_v47 = vld [vmem:[#allocation2 + $0x52] sm:$0xff] }
 0x450   : > { %16780 = vst [vmem:[#allocation6_spill] sm:$0xff] %v15532_v45  ;;  %v5054_v1 = vld [vmem:[#allocation2 + $0x2] sm:$0xff]  ;;  %v5059_v0 = vld [vmem:[#allocation2 + $0x3a] sm:$0xff]  ;;  %v5063_v33 = vld [vmem:[#allocation2 + $0x6a] sm:$0xff]  ;;  %v15568_v46 = vpack.c.bf16 %v5061_v47, %v5060_v59 }
 0x451   : > { %v4426_v8 = vld [vmem:[#allocation2 + $0x231] sm:$0xff]  ;;  %16781 = vst [vmem:[#allocation7_spill] sm:$0xff] %v15538_v63  ;;  %v15555_v11 = vpack.c.bf16 %v5059_v0, %v5058_v55  ;;  %v5064_v57 = vld [vmem:[#allocation2 + $0x7a] sm:$0xff]  ;;  %v5065_v6 = vld [vmem:[#allocation2 + $0x82] sm:$0xff] }
 0x452   : > { %v15444_v19 = vpack.c.bf16 %v4426_v8, %v4425_v5  ;;  %v15506_v5 = vpack.c.bf16 %v4333_v50, %v4332_v61  ;;  %v4334_v8 = vld [vmem:[#allocation2 + $0x150] sm:$0xff]  ;;  %v4352_v61 = vld [vmem:[#allocation2 + $0x228] sm:$0xff]  ;;  %v5072_v59 = vld [vmem:[#allocation2 + $0xda] sm:$0xff] }
 0x453   : > { %v5055_v50 = vld [vmem:[#allocation2 + $0xa] sm:$0xff]  ;;  %v5073_v47 = vld [vmem:[#allocation2 + $0xe2] sm:$0xff] }
 0x454   : > { %12714 = vmatmul.mubr.msk.bf16.gmra.mrb[44].mxu1 %vm332_vm2, %v15444_v19  ;;  %v5071_v55 = vld [vmem:[#allocation2 + $0xca] sm:$0xff] }
 0x455   : > { %12719 = vmatprep.mubr.msk.bf16.mxu1 %vm332_vm2, %v4354_v18  ;;  %v15508_v18 = vpack.c.bf16 %v4335_v25, %v4334_v8  ;;  %v4353_v25 = vld [vmem:[#allocation2 + $0x230] sm:$0xff]  ;;  %v5102_v8 = vpack.c.bf16 %v5055_v50, %v5054_v1  ;;  %v5067_v50 = vld [vmem:[#allocation2 + $0x9a] sm:$0xff] }
 0x456   : > { %v5066_v1 = vld [vmem:[#allocation2 + $0x92] sm:$0xff] }
 0x45c   : > { %12720 = vmatmul.mubr.msk.bf16.vlgmr.msra.gmra.mrb[0].mxu1 %vm332_vm2, %v15449_v16 }
 0x45d   : > { %12768 = vmatpush3.bf16.msra.mxu1 %v5201_v13  ;;  %12723 = vmatprep.mubr.msk.bf16.mxu1 %vm332_vm2, %v15453_v9  ;;  %v15514_v13 = vpack.c.bf16 %v4337_v29, %v4336_v42  ;;  %v15546_v29 = vpack.c.bf16 %v4353_v25, %v4352_v61  ;;  %v5057_v42 = vld [vmem:[#allocation2 + $0x22] sm:$0xff]  ;;  %v15576_v25 = vpack.c.bf16 %v5065_v6, %v5064_v57 }
 0x45e   : > { %14196 = vmatprep.subr.msk.bf16.mxu1 %vm4525_vm5, %v15458_v24  ;;  %v15551_v37 = vpack.c.bf16 %v5057_v42, %v5056_v30  ;;  %v5062_v24 = vld [vmem:[#allocation2 + $0x62] sm:$0xff]  ;;  %v15578_v61 = vpack.c.bf16 %v5067_v50, %v5066_v1  ;;  %v5069_v30 = vld [vmem:[#allocation2 + $0xb2] sm:$0xff]  ;;  %v15592_v57 = vpack.c.bf16 %v5073_v47, %v5072_v59  ;;  %v5076_v1 = vld [vmem:[#allocation2 + $0x10a] sm:$0xff] }
 0x45f   : > { %16783 = vst [vmem:[#allocation9_spill] sm:$0xff] %v15546_v29  ;;  %v15570_v51 = vpack.c.bf16 %v5063_v33, %v5062_v24  ;;  %v5070_v42 = vld [vmem:[#allocation2 + $0xc2] sm:$0xff]  ;;  %v5074_v24 = vld [vmem:[#allocation2 + $0xf2] sm:$0xff]  ;;  %v5075_v33 = vld [vmem:[#allocation2 + $0xfa] sm:$0xff] }
 0x460   : > { %v15594_v6 = vpack.c.bf16 %v5075_v33, %v5074_v24  ;;  %v5077_v50 = vld [vmem:[#allocation2 + $0x112] sm:$0xff]  ;;  %v5080_v59 = vld [vmem:[#allocation2 + $0x13a] sm:$0xff]  ;;  %v5081_v47 = vld [vmem:[#allocation2 + $0x142] sm:$0xff] }
 0x461   : > { %v5082_v24 = vld [vmem:[#allocation2 + $0x152] sm:$0xff]  ;;  %v5083_v33 = vld [vmem:[#allocation2 + $0x15a] sm:$0xff]  ;;  %v15608_v21 = vpack.c.bf16 %v5081_v47, %v5080_v59  ;;  %v5089_v47 = vld [vmem:[#allocation2 + $0x1a2] sm:$0xff] }
 0x462   : > { %16784 = vst [vmem:[#allocation10_spill] sm:$0xff] %v15594_v6  ;;  %v5088_v59 = vld [vmem:[#allocation2 + $0x19a] sm:$0xff] }
 0x463   : > { %16787 = vst [vmem:[#allocation13_spill] sm:$0xff] %v15608_v21 }
 0x464   : > { %12724 = vmatmul.mubr.msk.bf16.gmra.mrb[4].mxu1 %vm332_vm2, %v15466_v54 }
 0x465   : > { %12727 = vmatprep.mubr.msk.bf16.mxu1 %vm332_vm2, %v15468_v26 }
 0x46c   : > { %12728 = vmatmul.mubr.msk.bf16.gmra.mrb[8].mxu1 %vm332_vm2, %v15474_v62 }
 0x46d   : > { %12731 = vmatprep.mubr.msk.bf16.mxu1 %vm332_vm2, %v15476_v10 }
 0x474   : > { %12732 = vmatmul.mubr.msk.bf16.gmra.mrb[12].mxu1 %vm332_vm2, %v15482_v22 }
 0x475   : > { %12735 = vmatprep.mubr.msk.bf16.mxu1 %vm332_vm2, %v15484_v34 }
 0x47c   : > { %12736 = vmatmul.mubr.msk.bf16.gmra.mrb[16].mxu1 %vm332_vm2, %v15490_v52 }
 0x47d   : > { %12739 = vmatprep.mubr.msk.bf16.mxu1 %vm332_vm2, %v15492_v58 }
 0x484   : > { %12740 = vmatmul.mubr.msk.bf16.gmra.mrb[20].mxu1 %vm332_vm2, %v15498_v12 }
 0x485   : > { %12743 = vmatprep.mubr.msk.bf16.mxu1 %vm332_vm2, %v15500_v2 }
 0x48c   : > { %12744 = vmatmul.mubr.msk.bf16.gmra.mrb[24].mxu1 %vm332_vm2, %v15506_v5 }
 0x48d   : > { %12747 = vmatprep.mubr.msk.bf16.mxu1 %vm332_vm2, %v15508_v18 }
 0x494   : > { %12748 = vmatmul.mubr.msk.bf16.gmra.mrb[28].mxu1 %vm332_vm2, %v15514_v13 }
 0x495   : > { %12751 = vmatprep.mubr.msk.bf16.mxu1 %vm332_vm2, %v15516_v41 }
 0x49c   : > { %12752 = vmatmul.mubr.msk.bf16.gmra.mrb[32].mxu1 %vm332_vm2, %v15522_v36 }
 0x49d   : > { %12755 = vmatprep.mubr.msk.bf16.mxu1 %vm332_vm2, %v15524_v17 }
 0x4a4   : > { %12756 = vmatmul.mubr.msk.bf16.gmra.mrb[36].mxu1 %vm332_vm2, %v15530_v14 }
 0x4a5   : > { %12759 = vmatprep.mubr.msk.bf16.mxu1 %vm332_vm2, %v15532_v45 }
 0x4ac   : > { %12760 = vmatmul.mubr.msk.bf16.gmra.mrb[40].mxu1 %vm332_vm2, %v15538_v63 }
 0x4ad   : > { %12763 = vmatprep.mubr.msk.bf16.mxu1 %vm332_vm2, %v15540_v7 }
 0x4b4   : > { %12764 = vmatmul.mubr.msk.bf16.gmra.mrb[44].mxu1 %vm332_vm2, %v15546_v29 }
 0x4b5   : > { %12769 = vmatprep.mubr.msk.bf16.mxu1 %vm332_vm2, %v5102_v8  ;;  %v5068_v8 = vld [vmem:[#allocation2 + $0xaa] sm:$0xff] }
 0x4b6   : > { %v15584_v0 = vpack.c.bf16 %v5069_v30, %v5068_v8  ;;  %v5078_v8 = vld [vmem:[#allocation2 + $0x122] sm:$0xff]  ;;  %v5079_v30 = vld [vmem:[#allocation2 + $0x12a] sm:$0xff] }
 0x4bc   : > { %12770 = vmatmul.mubr.msk.bf16.vlgmr.msra.gmra.mrb[0].mxu1 %vm332_vm2, %v15551_v37 }
 0x4bd   : > { %12818 = vmatpush3.bf16.msra.mxu1 %v5623_v20  ;;  %12773 = vmatprep.mubr.msk.bf16.mxu1 %vm332_vm2, %v15555_v11  ;;  %v15586_v20 = vpack.c.bf16 %v5071_v55, %v5070_v42  ;;  %v15600_v42 = vpack.c.bf16 %v5077_v50, %v5076_v1  ;;  %v15602_v55 = vpack.c.bf16 %v5079_v30, %v5078_v8  ;;  %v5084_v1 = vld [vmem:[#allocation2 + $0x16a] sm:$0xff]  ;;  %v5085_v50 = vld [vmem:[#allocation2 + $0x172] sm:$0xff]  ;;  %v5086_v8 = vld [vmem:[#allocation2 + $0x182] sm:$0xff] }
 0x4be   : > { %14197 = vmatprep.subr.msk.bf16.mxu1 %vm4525_vm5, %v15560_v32  ;;  %v5087_v30 = vld [vmem:[#allocation2 + $0x18a] sm:$0xff] }
 0x4bf   : > { %16785 = vst [vmem:[#allocation11_spill] sm:$0xff] %v15600_v42  ;;  %16786 = vst [vmem:[#allocation12_spill] sm:$0xff] %v15602_v55 }
 0x4c4   : > { %12774 = vmatmul.mubr.msk.bf16.gmra.mrb[4].mxu1 %vm332_vm2, %v15568_v46 }
 0x4c5   : > { %12777 = vmatprep.mubr.msk.bf16.mxu1 %vm332_vm2, %v15570_v51 }
 0x4cc   : > { %12778 = vmatmul.mubr.msk.bf16.gmra.mrb[8].mxu1 %vm332_vm2, %v15576_v25 }
 0x4cd   : > { %12781 = vmatprep.mubr.msk.bf16.mxu1 %vm332_vm2, %v15578_v61 }
 0x4d4   : > { %12782 = vmatmul.mubr.msk.bf16.gmra.mrb[12].mxu1 %vm332_vm2, %v15584_v0 }
 0x4d5   : > { %12785 = vmatprep.mubr.msk.bf16.mxu1 %vm332_vm2, %v15586_v20 }
 0x4dc   : > { %12786 = vmatmul.mubr.msk.bf16.gmra.mrb[16].mxu1 %vm332_vm2, %v15592_v57 }
 0x4dd   : > { %12789 = vmatprep.mubr.msk.bf16.mxu1 %vm332_vm2, %v15594_v6  ;;  %v15610_v6 = vpack.c.bf16 %v5083_v33, %v5082_v24  ;;  %v5090_v24 = vld [vmem:[#allocation2 + $0x1b2] sm:$0xff]  ;;  %v5091_v33 = vld [vmem:[#allocation2 + $0x1ba] sm:$0xff] }
 0x4df   : > { %16788 = vst [vmem:[#allocation14_spill] sm:$0xff] %v15610_v6 }
 0x4e4   : > { %12790 = vmatmul.mubr.msk.bf16.gmra.mrb[20].mxu1 %vm332_vm2, %v15600_v42  ;;  %v15616_v42 = vpack.c.bf16 %v5085_v50, %v5084_v1  ;;  %v5092_v1 = vld [vmem:[#allocation2 + $0x1ca] sm:$0xff]  ;;  %v5093_v50 = vld [vmem:[#allocation2 + $0x1d2] sm:$0xff] }
 0x4e5   : > { %12793 = vmatprep.mubr.msk.bf16.mxu1 %vm332_vm2, %v15602_v55  ;;  %v15618_v55 = vpack.c.bf16 %v5087_v30, %v5086_v8  ;;  %v5094_v8 = vld [vmem:[#allocation2 + $0x1e2] sm:$0xff]  ;;  %v5095_v30 = vld [vmem:[#allocation2 + $0x1ea] sm:$0xff] }
 0x4e6   : > { %16789 = vst [vmem:[#allocation15_spill] sm:$0xff] %v15616_v42 }
 0x4e7   : > { %16790 = vst [vmem:[#allocation16_spill] sm:$0xff] %v15618_v55 }
 0x4ec   : > { %12794 = vmatmul.mubr.msk.bf16.gmra.mrb[24].mxu1 %vm332_vm2, %v15608_v21  ;;  %v15624_v21 = vpack.c.bf16 %v5089_v47, %v5088_v59  ;;  %v5096_v59 = vld [vmem:[#allocation2 + $0x1fa] sm:$0xff]  ;;  %v5097_v47 = vld [vmem:[#allocation2 + $0x202] sm:$0xff] }
 0x4ed   : > { %12797 = vmatprep.mubr.msk.bf16.mxu1 %vm332_vm2, %v15610_v6  ;;  %v15626_v6 = vpack.c.bf16 %v5091_v33, %v5090_v24  ;;  %v5098_v24 = vld [vmem:[#allocation2 + $0x212] sm:$0xff]  ;;  %v5099_v33 = vld [vmem:[#allocation2 + $0x21a] sm:$0xff] }
 0x4ee   : > { %16791 = vst [vmem:[#allocation17_spill] sm:$0xff] %v15624_v21 }
 0x4ef   : > { %16792 = vst [vmem:[#allocation18_spill] sm:$0xff] %v15626_v6 }
 0x4f4   : > { %12798 = vmatmul.mubr.msk.bf16.gmra.mrb[28].mxu1 %vm332_vm2, %v15616_v42  ;;  %v15632_v42 = vpack.c.bf16 %v5093_v50, %v5092_v1  ;;  %v5100_v1 = vld [vmem:[#allocation2 + $0x22a] sm:$0xff]  ;;  %v5101_v50 = vld [vmem:[#allocation2 + $0x232] sm:$0xff] }
 0x4f5   : > { %12801 = vmatprep.mubr.msk.bf16.mxu1 %vm332_vm2, %v15618_v55  ;;  %v15634_v55 = vpack.c.bf16 %v5095_v30, %v5094_v8  ;;  %v15648_v8 = vpack.c.bf16 %v5101_v50, %v5100_v1  ;;  %v6045_v30 = vsel %vm4525_vm5, %v15560_v32, 0  ;;  %v5899_v32 = vld [vmem:[#allocation2 + $0x21] sm:$0xff]  ;;  %v5901_v50 = vld [vmem:[#allocation2 + $0x39] sm:$0xff] }
 0x4fc   : > { %12802 = vmatmul.mubr.msk.bf16.gmra.mrb[32].mxu1 %vm332_vm2, %v15624_v21  ;;  %v15640_v21 = vpack.c.bf16 %v5097_v47, %v5096_v59  ;;  %v11450_v59 = vld [vmem:[%s16714_s3 + $0x14] sm:$0xf]  ;;  %v5522_v47 = vld [vmem:[#allocation2 + $0x240] sm:$0xff] }
 0x4fd   : > { %12805 = vmatprep.mubr.msk.bf16.mxu1 %vm332_vm2, %v15626_v6  ;;  %v15642_v6 = vpack.c.bf16 %v5099_v33, %v5098_v24  ;;  %v5898_v33 = vld [vmem:[#allocation2 + $0x19] sm:$0xff] }
 0x4fe   : > { %v5946_v1 = vpack.c.bf16 %v5899_v32, %v5898_v33  ;;  %v5904_v32 = vld [vmem:[#allocation2 + $0x61] sm:$0xff]  ;;  %v7189_v33 = vld [vmem:[#allocation2 + $0x151] sm:$0xff] }
 0x504   : > { %12806 = vmatmul.mubr.msk.bf16.gmra.mrb[36].mxu1 %vm332_vm2, %v15632_v42 }
 0x505   : > { %12809 = vmatprep.mubr.msk.bf16.mxu1 %vm332_vm2, %v15634_v55 }
 0x50c   : > { %12810 = vmatmul.mubr.msk.bf16.gmra.mrb[40].mxu1 %vm332_vm2, %v15640_v21 }
 0x50d   : > { %12813 = vmatprep.mubr.msk.bf16.mxu1 %vm332_vm2, %v15642_v6 }
 0x514   : > { %12814 = vmatmul.mubr.msk.bf16.gmra.mrb[44].mxu1 %vm332_vm2, %v15648_v8 }
 0x515   : > { %12819 = vmatprep.mubr.msk.bf16.mxu1 %vm332_vm2, %v15449_v16  ;;  %v5523_v16 = vld [vmem:[#allocation2 + $0x248] sm:$0xff] }
 0x516   : > { %v15704_v24 = vpack.c.bf16 %v5523_v16, %v5522_v47  ;;  %v11475_v16 = vld [vmem:[%s16714_s3 + $0x18] sm:$0xf] }
 0x51c   : > { %12820 = vmatmul.mubr.msk.bf16.vlgmr.msra.gmra.mrb[0].mxu1 %vm332_vm2, %v15453_v9 }
 0x51d   : > { %12868 = vmatpush3.bf16.msra.mxu1 %v6045_v30  ;;  %12823 = vmatprep.mubr.msk.bf16.mxu1 %vm332_vm2, %v15466_v54  ;;  %v5903_v30 = vld [vmem:[#allocation2 + $0x51] sm:$0xff] }
 0x51e   : > { %14198 = vmatprep.subr.msk.bf16.mxu1 %vm4525_vm5, %v11450_v59 }
 0x524   : > { %12824 = vmatmul.mubr.msk.bf16.gmra.mrb[4].mxu1 %vm332_vm2, %v15468_v26 }
 0x525   : > { %12827 = vmatprep.mubr.msk.bf16.mxu1 %vm332_vm2, %v15474_v62 }
 0x52c   : > { %12828 = vmatmul.mubr.msk.bf16.gmra.mrb[8].mxu1 %vm332_vm2, %v15476_v10 }
 0x52d   : > { %12831 = vmatprep.mubr.msk.bf16.mxu1 %vm332_vm2, %v15482_v22 }
 0x534   : > { %12832 = vmatmul.mubr.msk.bf16.gmra.mrb[12].mxu1 %vm332_vm2, %v15484_v34 }
 0x535   : > { %12835 = vmatprep.mubr.msk.bf16.mxu1 %vm332_vm2, %v15490_v52 }
 0x53c   : > { %12836 = vmatmul.mubr.msk.bf16.gmra.mrb[16].mxu1 %vm332_vm2, %v15492_v58 }
 0x53d   : > { %12839 = vmatprep.mubr.msk.bf16.mxu1 %vm332_vm2, %v15498_v12 }
 0x544   : > { %12840 = vmatmul.mubr.msk.bf16.gmra.mrb[20].mxu1 %vm332_vm2, %v15500_v2 }
 0x545   : > { %12843 = vmatprep.mubr.msk.bf16.mxu1 %vm332_vm2, %v15506_v5 }
 0x54c   : > { %12844 = vmatmul.mubr.msk.bf16.gmra.mrb[24].mxu1 %vm332_vm2, %v15508_v18 }
 0x54d   : > { %12847 = vmatprep.mubr.msk.bf16.mxu1 %vm332_vm2, %v15514_v13 }
 0x554   : > { %12848 = vmatmul.mubr.msk.bf16.gmra.mrb[28].mxu1 %vm332_vm2, %v15516_v41 }
 0x555   : > { %12851 = vmatprep.mubr.msk.bf16.mxu1 %vm332_vm2, %v15522_v36 }
 0x55c   : > { %12852 = vmatmul.mubr.msk.bf16.gmra.mrb[32].mxu1 %vm332_vm2, %v15524_v17 }
 0x55d   : > { %12855 = vmatprep.mubr.msk.bf16.mxu1 %vm332_vm2, %v15530_v14 }
 0x564   : > { %12856 = vmatmul.mubr.msk.bf16.gmra.mrb[36].mxu1 %vm332_vm2, %v15532_v45 }
 0x565   : > { %12859 = vmatprep.mubr.msk.bf16.mxu1 %vm332_vm2, %v15538_v63  ;;  %v5900_v63 = vld [vmem:[#allocation2 + $0x31] sm:$0xff] }
 0x566   : > { %v15709_v45 = vpack.c.bf16 %v5901_v50, %v5900_v63  ;;  %v5905_v63 = vld [vmem:[#allocation2 + $0x69] sm:$0xff]  ;;  %v7192_v50 = vld [vmem:[#allocation2 + $0x171] sm:$0xff] }
 0x567   : > { %v15722_v47 = vpack.c.bf16 %v5905_v63, %v5904_v32  ;;  %v7193_v32 = vld [vmem:[#allocation2 + $0x181] sm:$0xff] }
 0x56c   : > { %12860 = vmatmul.mubr.msk.bf16.gmra.mrb[40].mxu1 %vm332_vm2, %v15540_v7  ;;  %v6467_v7 = vsel %vm4525_vm5, %v11450_v59, 0  ;;  %v7187_v59 = vld [vmem:[#allocation2 + $0x139] sm:$0xff] }
 0x56d   : > { %12863 = vmatprep.mubr.msk.bf16.mxu1 %vm332_vm2, %v15546_v29  ;;  %v5902_v29 = vld [vmem:[#allocation2 + $0x49] sm:$0xff] }
 0x56e   : > { %v15712_v14 = vpack.c.bf16 %v5903_v30, %v5902_v29  ;;  %v7180_v29 = vld [vmem:[#allocation2 + $0xe1] sm:$0xff]  ;;  %v7194_v30 = vld [vmem:[#allocation2 + $0x189] sm:$0xff] }
 0x574   : > { %12864 = vmatmul.mubr.msk.bf16.gmra.mrb[44].mxu1 %vm332_vm2, %v15704_v24 }
 0x575   : > { %12869 = vmatprep.mubr.msk.bf16.mxu1 %vm332_vm2, %v5946_v1 }
 0x57c   : > { %12870 = vmatmul.mubr.msk.bf16.vlgmr.msra.gmra.mrb[0].mxu1 %vm332_vm2, %v15709_v45 }
 0x57d   : > { %12918 = vmatpush3.bf16.msra.mxu1 %v6467_v7  ;;  %12873 = vmatprep.mubr.msk.bf16.mxu1 %vm332_vm2, %v15712_v14  ;;  %v7177_v7 = vld [vmem:[#allocation2 + $0xc1] sm:$0xff] }
 0x57e   : > { %14199 = vmatprep.subr.msk.bf16.mxu1 %vm4525_vm5, %v11475_v16 }
 0x584   : > { %12874 = vmatmul.mubr.msk.bf16.gmra.mrb[4].mxu1 %vm332_vm2, %v15722_v47 }
 0x585   : > { %12877 = vmatprep.mubr.msk.bf16.mxu1 %vm332_vm2, %v15308_v49  ;;  %v5945_v49 = vld [vmem:[#allocation2 + $0x249] sm:$0xff] }
 0x58c   : > { %12878 = vmatmul.mubr.msk.bf16.gmra.mrb[8].mxu1 %vm332_vm2, %v15311_v38  ;;  %v5944_v38 = vld [vmem:[#allocation2 + $0x241] sm:$0xff] }
 0x58d   : > { %12881 = vmatprep.mubr.msk.bf16.mxu1 %vm332_vm2, %v15324_v28  ;;  %v15764_v28 = vpack.c.bf16 %v5945_v49, %v5944_v38  ;;  %v7196_v49 = vld [vmem:[#allocation2 + $0x1a1] sm:$0xff]  ;;  %v7198_v38 = vld [vmem:[#allocation2 + $0x1b9] sm:$0xff] }
 0x594   : > { %12882 = vmatmul.mubr.msk.bf16.gmra.mrb[12].mxu1 %vm332_vm2, %v15327_v40  ;;  %v6890_v40 = vsel %vm4525_vm5, %v11475_v16, 0  ;;  %v7191_v16 = vld [vmem:[#allocation2 + $0x169] sm:$0xff] }
 0x595   : > { %12885 = vmatprep.mubr.msk.bf16.mxu1 %vm332_vm2, %v15340_v35  ;;  %v11500_v35 = vld [vmem:[%s16714_s3 + $0x1c] sm:$0xf]  ;;  %v7226_v63 = vpack.c.bf16 %v7192_v50, %v7191_v16  ;;  %v7610_v16 = vld [vmem:[#allocation2 + $0x142] sm:$0xff] }
 0x59c   : > { %12886 = vmatmul.mubr.msk.bf16.gmra.mrb[16].mxu1 %vm332_vm2, %v15343_v53  ;;  %v16793_v53 = vld [vmem:[#allocation10_spill] sm:$0xff] }
 0x59d   : > { %12889 = vmatprep.mubr.msk.bf16.mxu1 %vm332_vm2, %v15356_v4  ;;  %v16794_v4 = vld [vmem:[#allocation11_spill] sm:$0xff] }
 0x5a4   : > { %12890 = vmatmul.mubr.msk.bf16.gmra.mrb[20].mxu1 %vm332_vm2, %v15359_v3  ;;  %v16795_v3 = vld [vmem:[#allocation12_spill] sm:$0xff] }
 0x5a5   : > { %12893 = vmatprep.mubr.msk.bf16.mxu1 %vm332_vm2, %v15372_v48  ;;  %v16796_v48 = vld [vmem:[#allocation13_spill] sm:$0xff] }
 0x5ac   : > { %12894 = vmatmul.mubr.msk.bf16.gmra.mrb[24].mxu1 %vm332_vm2, %v15375_v27  ;;  %v16797_v27 = vld [vmem:[#allocation14_spill] sm:$0xff] }
 0x5ad   : > { %12897 = vmatprep.mubr.msk.bf16.mxu1 %vm332_vm2, %v15388_v23  ;;  %v16798_v23 = vld [vmem:[#allocation15_spill] sm:$0xff] }
 0x5b4   : > { %12898 = vmatmul.mubr.msk.bf16.gmra.mrb[28].mxu1 %vm332_vm2, %v15391_v44  ;;  %v16799_v44 = vld [vmem:[#allocation16_spill] sm:$0xff] }
 0x5b5   : > { %12901 = vmatprep.mubr.msk.bf16.mxu1 %vm332_vm2, %v15404_v56  ;;  %v16800_v56 = vld [vmem:[#allocation17_spill] sm:$0xff] }
 0x5bc   : > { %12902 = vmatmul.mubr.msk.bf16.gmra.mrb[32].mxu1 %vm332_vm2, %v15407_v31  ;;  %v16801_v31 = vld [vmem:[#allocation18_spill] sm:$0xff] }
 0x5bd   : > { %12905 = vmatprep.mubr.msk.bf16.mxu1 %vm332_vm2, %v15420_v15  ;;  %v6366_v15 = vld [vmem:[#allocation2 + $0x242] sm:$0xff] }
 0x5c4   : > { %12906 = vmatmul.mubr.msk.bf16.gmra.mrb[36].mxu1 %vm332_vm2, %v15423_v39  ;;  %v6367_v39 = vld [vmem:[#allocation2 + $0x24a] sm:$0xff] }
 0x5c5   : > { %12909 = vmatprep.mubr.msk.bf16.mxu1 %vm332_vm2, %v15436_v43  ;;  %v15819_v43 = vpack.c.bf16 %v6367_v39, %v6366_v15  ;;  %v7204_v15 = vld [vmem:[#allocation2 + $0x201] sm:$0xff]  ;;  %v7206_v39 = vld [vmem:[#allocation2 + $0x219] sm:$0xff] }
 0x5cc   : > { %12910 = vmatmul.mubr.msk.bf16.gmra.mrb[40].mxu1 %vm332_vm2, %v15438_v60  ;;  %v7312_v60 = vsel %vm4525_vm5, %v11500_v35, 0 }
 0x5cd   : > { %12913 = vmatprep.mubr.msk.bf16.mxu1 %vm332_vm2, %v15444_v19  ;;  %v16802_v19 = vld [vmem:[#allocation5_spill] sm:$0xff] }
 0x5d4   : > { %12914 = vmatmul.mubr.msk.bf16.gmra.mrb[44].mxu1 %vm332_vm2, %v15764_v28 }
 0x5d5   : > { %12919 = vmatprep.mubr.msk.bf16.mxu1 %vm332_vm2, %v15551_v37  ;;  %v7182_v37 = vld [vmem:[#allocation2 + $0xf9] sm:$0xff] }
 0x5dc   : > { %12920 = vmatmul.mubr.msk.bf16.vlgmr.msra.gmra.mrb[0].mxu1 %vm332_vm2, %v15555_v11  ;;  %v7179_v11 = vld [vmem:[#allocation2 + $0xd9] sm:$0xff] }
 0x5dd   : > { %12968 = vmatpush3.bf16.msra.mxu1 %v6890_v40  ;;  %12923 = vmatprep.mubr.msk.bf16.mxu1 %vm332_vm2, %v15568_v46  ;;  %v7220_v46 = vpack.c.bf16 %v7180_v29, %v7179_v11  ;;  %v7195_v40 = vld [vmem:[#allocation2 + $0x199] sm:$0xff] }
 0x5de   : > { %14200 = vmatprep.subr.msk.bf16.mxu1 %vm4525_vm5, %v11500_v35  ;;  %v7228_v35 = vpack.c.bf16 %v7196_v49, %v7195_v40  ;;  %v7598_v11 = vld [vmem:[#allocation2 + $0xb2] sm:$0xff] }
 0x5df   : > { %v7614_v40 = vld [vmem:[#allocation2 + $0x172] sm:$0xff] }
 0x5e4   : > { %12924 = vmatmul.mubr.msk.bf16.gmra.mrb[4].mxu1 %vm332_vm2, %v15570_v51  ;;  %v7181_v51 = vld [vmem:[#allocation2 + $0xf1] sm:$0xff] }
 0x5e5   : > { %12927 = vmatprep.mubr.msk.bf16.mxu1 %vm332_vm2, %v15576_v25  ;;  %v7221_v25 = vpack.c.bf16 %v7182_v37, %v7181_v51  ;;  %v7597_v37 = vld [vmem:[#allocation2 + $0xaa] sm:$0xff] }
 0x5e6   : > { %v7600_v51 = vld [vmem:[#allocation2 + $0xca] sm:$0xff] }
 0x5ec   : > { %12928 = vmatmul.mubr.msk.bf16.gmra.mrb[8].mxu1 %vm332_vm2, %v15578_v61  ;;  %v7184_v61 = vld [vmem:[#allocation2 + $0x111] sm:$0xff] }
 0x5ed   : > { %12931 = vmatprep.mubr.msk.bf16.mxu1 %vm332_vm2, %v15584_v0  ;;  %v7186_v0 = vld [vmem:[#allocation2 + $0x129] sm:$0xff] }
 0x5f4   : > { %12932 = vmatmul.mubr.msk.bf16.gmra.mrb[12].mxu1 %vm332_vm2, %v15586_v20  ;;  %v7183_v20 = vld [vmem:[#allocation2 + $0x109] sm:$0xff] }
 0x5f5   : > { %12935 = vmatprep.mubr.msk.bf16.mxu1 %vm332_vm2, %v15592_v57  ;;  %v7222_v57 = vpack.c.bf16 %v7184_v61, %v7183_v20  ;;  %v7602_v20 = vld [vmem:[#allocation2 + $0xe2] sm:$0xff] }
 0x5fc   : > { %12936 = vmatmul.mubr.msk.bf16.gmra.mrb[16].mxu1 %vm332_vm2, %v16793_v53  ;;  %v7197_v53 = vld [vmem:[#allocation2 + $0x1b1] sm:$0xff] }
 0x5fd   : > { %12939 = vmatprep.mubr.msk.bf16.mxu1 %vm332_vm2, %v16794_v4  ;;  %v7229_v4 = vpack.c.bf16 %v7198_v38, %v7197_v53  ;;  %v7613_v38 = vld [vmem:[#allocation2 + $0x16a] sm:$0xff] }
 0x5fe   : > { %v7616_v53 = vld [vmem:[#allocation2 + $0x18a] sm:$0xff] }
 0x604   : > { %12940 = vmatmul.mubr.msk.bf16.gmra.mrb[20].mxu1 %vm332_vm2, %v16795_v3  ;;  %v16807_v3 = vmov 0.0  }
 0x605   : > { %12943 = vmatprep.mubr.msk.bf16.mxu1 %vm332_vm2, %v16796_v48  ;;  %395 = vst.msk [vmem:[#allocation3] sm:$0xff] %vm394_vm6, %v16807_v3  ;;  %399 = vst.msk [vmem:[#allocation3 + $0x90] sm:$0xff] %vm394_vm6, %v16807_v3  ;;  %v7200_v48 = vld [vmem:[#allocation2 + $0x1d1] sm:$0xff] }
 0x606   : > { %422 = vst.msk [vmem:[#allocation4] sm:$0xff] %vm394_vm6, %v16807_v3  ;;  %425 = vst.msk [vmem:[#allocation4 + $0x90] sm:$0xff] %vm394_vm6, %v16807_v3 }
 0x607   : > { %397 = vst.msk [vmem:[#allocation3 + $0x8] sm:$0x3] %vm396_vm7, %v16807_v3  ;;  %400 = vst.msk [vmem:[#allocation3 + $0x98] sm:$0x3] %vm396_vm7, %v16807_v3 }
 0x608   : > { %423 = vst.msk [vmem:[#allocation4 + $0x8] sm:$0x3] %vm396_vm7, %v16807_v3  ;;  %426 = vst.msk [vmem:[#allocation4 + $0x98] sm:$0x3] %vm396_vm7, %v16807_v3 }
 0x609   : > { %402 = vst.msk [vmem:[#allocation3] sm:$0x1] %vm401_vm8, %v16807_v3  ;;  %403 = vst.msk [vmem:[#allocation3 + $0x10] sm:$0x1] %vm401_vm8, %v16807_v3 }
 0x60a   : > { %404 = vst.msk [vmem:[#allocation3 + $0x20] sm:$0x1] %vm401_vm8, %v16807_v3  ;;  %405 = vst.msk [vmem:[#allocation3 + $0x30] sm:$0x1] %vm401_vm8, %v16807_v3 }
 0x60b   : > { %406 = vst.msk [vmem:[#allocation3 + $0x40] sm:$0x1] %vm401_vm8, %v16807_v3  ;;  %407 = vst.msk [vmem:[#allocation3 + $0x50] sm:$0x1] %vm401_vm8, %v16807_v3 }
 0x60c   : > { %12944 = vmatmul.mubr.msk.bf16.gmra.mrb[24].mxu1 %vm332_vm2, %v16797_v27  ;;  %v7202_v27 = vld [vmem:[#allocation2 + $0x1e9] sm:$0xff]  ;;  %408 = vst.msk [vmem:[#allocation3 + $0x60] sm:$0x1] %vm401_vm8, %v16807_v3  ;;  %409 = vst.msk [vmem:[#allocation3 + $0x70] sm:$0x1] %vm401_vm8, %v16807_v3 }
 0x60d   : > { %12947 = vmatprep.mubr.msk.bf16.mxu1 %vm332_vm2, %v16798_v23  ;;  %v7199_v23 = vld [vmem:[#allocation2 + $0x1c9] sm:$0xff]  ;;  %410 = vst.msk [vmem:[#allocation3 + $0x80] sm:$0x1] %vm401_vm8, %v16807_v3  ;;  %411 = vst.msk [vmem:[#allocation3 + $0x90] sm:$0x1] %vm401_vm8, %v16807_v3 }
 0x60e   : > { %412 = vst.msk [vmem:[#allocation3 + $0x9] sm:$0x1] %vm401_vm8, %v16807_v3  ;;  %413 = vst.msk [vmem:[#allocation3 + $0x19] sm:$0x1] %vm401_vm8, %v16807_v3 }
 0x60f   : > { %414 = vst.msk [vmem:[#allocation3 + $0x29] sm:$0x1] %vm401_vm8, %v16807_v3  ;;  %415 = vst.msk [vmem:[#allocation3 + $0x39] sm:$0x1] %vm401_vm8, %v16807_v3 }
 0x610   : > { %416 = vst.msk [vmem:[#allocation3 + $0x49] sm:$0x1] %vm401_vm8, %v16807_v3  ;;  %417 = vst.msk [vmem:[#allocation3 + $0x59] sm:$0x1] %vm401_vm8, %v16807_v3 }
 0x611   : > { %418 = vst.msk [vmem:[#allocation3 + $0x69] sm:$0x1] %vm401_vm8, %v16807_v3  ;;  %419 = vst.msk [vmem:[#allocation3 + $0x79] sm:$0x1] %vm401_vm8, %v16807_v3 }
 0x612   : > { %420 = vst.msk [vmem:[#allocation3 + $0x89] sm:$0x1] %vm401_vm8, %v16807_v3  ;;  %421 = vst.msk [vmem:[#allocation3 + $0x99] sm:$0x1] %vm401_vm8, %v16807_v3 }
 0x613   : > { %427 = vst.msk [vmem:[#allocation4] sm:$0x1] %vm401_vm8, %v16807_v3  ;;  %428 = vst.msk [vmem:[#allocation4 + $0x10] sm:$0x1] %vm401_vm8, %v16807_v3 }
 0x614   : > { %12948 = vmatmul.mubr.msk.bf16.gmra.mrb[28].mxu1 %vm332_vm2, %v16799_v44  ;;  %v7230_v44 = vpack.c.bf16 %v7200_v48, %v7199_v23  ;;  %v7618_v23 = vld [vmem:[#allocation2 + $0x1a2] sm:$0xff]  ;;  %429 = vst.msk [vmem:[#allocation4 + $0x20] sm:$0x1] %vm401_vm8, %v16807_v3  ;;  %430 = vst.msk [vmem:[#allocation4 + $0x30] sm:$0x1] %vm401_vm8, %v16807_v3 }
 0x615   : > { %12951 = vmatprep.mubr.msk.bf16.mxu1 %vm332_vm2, %v16800_v56  ;;  %v7201_v56 = vld [vmem:[#allocation2 + $0x1e1] sm:$0xff]  ;;  %431 = vst.msk [vmem:[#allocation4 + $0x40] sm:$0x1] %vm401_vm8, %v16807_v3  ;;  %432 = vst.msk [vmem:[#allocation4 + $0x50] sm:$0x1] %vm401_vm8, %v16807_v3 }
 0x616   : > { %433 = vst.msk [vmem:[#allocation4 + $0x60] sm:$0x1] %vm401_vm8, %v16807_v3  ;;  %434 = vst.msk [vmem:[#allocation4 + $0x70] sm:$0x1] %vm401_vm8, %v16807_v3 }
 0x617   : > { %435 = vst.msk [vmem:[#allocation4 + $0x80] sm:$0x1] %vm401_vm8, %v16807_v3  ;;  %436 = vst.msk [vmem:[#allocation4 + $0x90] sm:$0x1] %vm401_vm8, %v16807_v3 }
 0x618   : > { %437 = vst.msk [vmem:[#allocation4 + $0x9] sm:$0x1] %vm401_vm8, %v16807_v3  ;;  %438 = vst.msk [vmem:[#allocation4 + $0x19] sm:$0x1] %vm401_vm8, %v16807_v3 }
 0x619   : > { %439 = vst.msk [vmem:[#allocation4 + $0x29] sm:$0x1] %vm401_vm8, %v16807_v3  ;;  %440 = vst.msk [vmem:[#allocation4 + $0x39] sm:$0x1] %vm401_vm8, %v16807_v3 }
 0x61a   : > { %441 = vst.msk [vmem:[#allocation4 + $0x49] sm:$0x1] %vm401_vm8, %v16807_v3  ;;  %442 = vst.msk [vmem:[#allocation4 + $0x59] sm:$0x1] %vm401_vm8, %v16807_v3 }
 0x61b   : > { %443 = vst.msk [vmem:[#allocation4 + $0x69] sm:$0x1] %vm401_vm8, %v16807_v3  ;;  %444 = vst.msk [vmem:[#allocation4 + $0x79] sm:$0x1] %vm401_vm8, %v16807_v3 }
 0x61c   : > { %12952 = vmatmul.mubr.msk.bf16.gmra.mrb[32].mxu1 %vm332_vm2, %v16801_v31  ;;  %v7231_v31 = vpack.c.bf16 %v7202_v27, %v7201_v56  ;;  %v7617_v27 = vld [vmem:[#allocation2 + $0x19a] sm:$0xff]  ;;  %445 = vst.msk [vmem:[#allocation4 + $0x89] sm:$0x1] %vm401_vm8, %v16807_v3  ;;  %446 = vst.msk [vmem:[#allocation4 + $0x99] sm:$0x1] %vm401_vm8, %v16807_v3 }
 0x61d   : > { %12955 = vmatprep.mubr.msk.bf16.mxu1 %vm332_vm2, %v15632_v42  ;;  %v7620_v56 = vld [vmem:[#allocation2 + $0x1ba] sm:$0xff] }
 0x624   : > { %12956 = vmatmul.mubr.msk.bf16.gmra.mrb[36].mxu1 %vm332_vm2, %v15634_v55  ;;  %v7188_v55 = vld [vmem:[#allocation2 + $0x141] sm:$0xff] }
 0x625   : > { %12959 = vmatprep.mubr.msk.bf16.mxu1 %vm332_vm2, %v15640_v21  ;;  %v11525_v21 = vld [vmem:[%s16714_s3 + $0x20] sm:$0xf] }
 0x62c   : > { %12960 = vmatmul.mubr.msk.bf16.gmra.mrb[40].mxu1 %vm332_vm2, %v15642_v6  ;;  %v7185_v6 = vld [vmem:[#allocation2 + $0x121] sm:$0xff] }
 0x62d   : > { %12963 = vmatprep.mubr.msk.bf16.mxu1 %vm332_vm2, %v15648_v8  ;;  %v7223_v42 = vpack.c.bf16 %v7186_v0, %v7185_v6  ;;  %v7190_v8 = vld [vmem:[#allocation2 + $0x159] sm:$0xff] }
 0x62e   : > { %v7225_v1 = vpack.c.bf16 %v7190_v8, %v7189_v33  ;;  %v7601_v0 = vld [vmem:[#allocation2 + $0xda] sm:$0xff]  ;;  %v7605_v8 = vld [vmem:[#allocation2 + $0x10a] sm:$0xff] }
 0x62f   : > { %v7604_v6 = vld [vmem:[#allocation2 + $0xfa] sm:$0xff]  ;;  %v7608_v33 = vld [vmem:[#allocation2 + $0x12a] sm:$0xff] }
 0x634   : > { %12964 = vmatmul.mubr.msk.bf16.gmra.mrb[44].mxu1 %vm332_vm2, %v15819_v43 }
 0x635   : > { %12969 = vmatprep.mubr.msk.bf16.mxu1 %vm332_vm2, %v15453_v9  ;;  %v16803_v9 = vld [vmem:[#allocation6_spill] sm:$0xff] }
 0x63c   : > { %12970 = vmatmul.mubr.msk.bf16.vlgmr.msra.gmra.mrb[0].mxu1 %vm332_vm2, %v15466_v54  ;;  %v16804_v54 = vld [vmem:[#allocation7_spill] sm:$0xff] }
 0x63d   : > { %13018 = vmatpush3.bf16.msra.mxu1 %v7312_v60  ;;  %12973 = vmatprep.mubr.msk.bf16.mxu1 %vm332_vm2, %v15468_v26  ;;  %v16805_v26 = vld [vmem:[#allocation8_spill] sm:$0xff]  ;;  %v7203_v60 = vld [vmem:[#allocation2 + $0x1f9] sm:$0xff] }
 0x63e   : > { %14201 = vmatprep.subr.msk.bf16.mxu1 %vm4525_vm5, %v11525_v21 }
 0x644   : > { %12974 = vmatmul.mubr.msk.bf16.gmra.mrb[4].mxu1 %vm332_vm2, %v15474_v62  ;;  %v16806_v62 = vld [vmem:[#allocation9_spill] sm:$0xff] }
 0x645   : > { %12977 = vmatprep.mubr.msk.bf16.mxu1 %vm332_vm2, %v15476_v10  ;;  %v6789_v10 = vld [vmem:[#allocation2 + $0x258] sm:$0xff] }
 0x64c   : > { %12978 = vmatmul.mubr.msk.bf16.gmra.mrb[8].mxu1 %vm332_vm2, %v15482_v22  ;;  %v6790_v22 = vld [vmem:[#allocation2 + $0x260] sm:$0xff] }
 0x64d   : > { %12981 = vmatprep.mubr.msk.bf16.mxu1 %vm332_vm2, %v15484_v34  ;;  %v6814_v34 = vpack.c.bf16 %v6790_v22, %v6789_v10  ;;  %v7211_v10 = vld [vmem:[#allocation2 + $0x259] sm:$0xff]  ;;  %v7212_v22 = vld [vmem:[#allocation2 + $0x261] sm:$0xff] }
 0x654   : > { %12982 = vmatmul.mubr.msk.bf16.gmra.mrb[12].mxu1 %vm332_vm2, %v15490_v52  ;;  %v7734_v52 = vsel %vm4525_vm5, %v11525_v21, 0  ;;  %v7232_v21 = vpack.c.bf16 %v7204_v15, %v7203_v60  ;;  %v7622_v60 = vld [vmem:[#allocation2 + $0x1d2] sm:$0xff] }
 0x655   : > { %12985 = vmatprep.mubr.msk.bf16.mxu1 %vm332_vm2, %v15492_v58  ;;  %v7172_v58 = vld [vmem:[#allocation2 + $0x81] sm:$0xff] }
 0x65c   : > { %12986 = vmatmul.mubr.msk.bf16.gmra.mrb[16].mxu1 %vm332_vm2, %v15498_v12  ;;  %v7174_v12 = vld [vmem:[#allocation2 + $0x99] sm:$0xff] }
 0x65d   : > { %12989 = vmatprep.mubr.msk.bf16.mxu1 %vm332_vm2, %v15500_v2  ;;  %v7171_v2 = vld [vmem:[#allocation2 + $0x79] sm:$0xff] }
 0x664   : > { %12990 = vmatmul.mubr.msk.bf16.gmra.mrb[20].mxu1 %vm332_vm2, %v15506_v5  ;;  %v7216_v5 = vpack.c.bf16 %v7172_v58, %v7171_v2  ;;  %v7588_v58 = vld [vmem:[#allocation2 + $0x3a] sm:$0xff]  ;;  %v7589_v2 = vld [vmem:[#allocation2 + $0x4a] sm:$0xff] }
 0x665   : > { %12993 = vmatprep.mubr.msk.bf16.mxu1 %vm332_vm2, %v15508_v18  ;;  %v7173_v18 = vld [vmem:[#allocation2 + $0x91] sm:$0xff] }
 0x66c   : > { %12994 = vmatmul.mubr.msk.bf16.gmra.mrb[24].mxu1 %vm332_vm2, %v15514_v13  ;;  %v7217_v13 = vpack.c.bf16 %v7174_v12, %v7173_v18  ;;  %v7591_v18 = vld [vmem:[#allocation2 + $0x62] sm:$0xff] }
 0x66d   : > { %12997 = vmatprep.mubr.msk.bf16.mxu1 %vm332_vm2, %v15516_v41  ;;  %v7176_v41 = vld [vmem:[#allocation2 + $0xb1] sm:$0xff] }
 0x674   : > { %12998 = vmatmul.mubr.msk.bf16.gmra.mrb[28].mxu1 %vm332_vm2, %v15522_v36  ;;  %v7178_v36 = vld [vmem:[#allocation2 + $0xc9] sm:$0xff] }
 0x675   : > { %13001 = vmatprep.mubr.msk.bf16.mxu1 %vm332_vm2, %v15524_v17  ;;  %v7175_v17 = vld [vmem:[#allocation2 + $0xa9] sm:$0xff] }
 0x67c   : > { %13002 = vmatmul.mubr.msk.bf16.gmra.mrb[32].mxu1 %vm332_vm2, %v16802_v19  ;;  %v7205_v19 = vld [vmem:[#allocation2 + $0x211] sm:$0xff] }
 0x67d   : > { %13005 = vmatprep.mubr.msk.bf16.mxu1 %vm332_vm2, %v16803_v9  ;;  %v7233_v9 = vpack.c.bf16 %v7206_v39, %v7205_v19  ;;  %v7621_v39 = vld [vmem:[#allocation2 + $0x1ca] sm:$0xff] }
 0x67e   : > { %v7624_v19 = vld [vmem:[#allocation2 + $0x1ea] sm:$0xff] }
 0x684   : > { %13006 = vmatmul.mubr.msk.bf16.gmra.mrb[36].mxu1 %vm332_vm2, %v16804_v54  ;;  %v7208_v54 = vld [vmem:[#allocation2 + $0x231] sm:$0xff] }
 0x685   : > { %13009 = vmatprep.mubr.msk.bf16.mxu1 %vm332_vm2, %v16805_v26  ;;  %v7207_v26 = vld [vmem:[#allocation2 + $0x229] sm:$0xff] }
 0x68c   : > { %13010 = vmatmul.mubr.msk.bf16.gmra.mrb[40].mxu1 %vm332_vm2, %v16806_v62  ;;  %v7234_v62 = vpack.c.bf16 %v7208_v54, %v7207_v26  ;;  %v7625_v26 = vld [vmem:[#allocation2 + $0x1fa] sm:$0xff] }
 0x68d   : > { %13013 = vmatprep.mubr.msk.bf16.mxu1 %vm332_vm2, %v15704_v24  ;;  %v7224_v24 = vpack.c.bf16 %v7188_v55, %v7187_v59  ;;  %v7606_v59 = vld [vmem:[#allocation2 + $0x112] sm:$0xff] }
 0x694   : > { %13014 = vmatmul.mubr.msk.bf16.gmra.mrb[44].mxu1 %vm332_vm2, %v6814_v34  ;;  %v7236_v34 = vpack.c.bf16 %v7212_v22, %v7211_v10  ;;  %v7627_v10 = vld [vmem:[#allocation2 + $0x212] sm:$0xff]  ;;  %v7628_v22 = vld [vmem:[#allocation2 + $0x21a] sm:$0xff] }
 0x695   : > { %13019 = vmatprep.mubr.msk.bf16.mxu1 %vm332_vm2, %v15709_v45  ;;  %v7218_v45 = vpack.c.bf16 %v7176_v41, %v7175_v17  ;;  %v7594_v17 = vld [vmem:[#allocation2 + $0x82] sm:$0xff] }
 0x69c   : > { %13020 = vmatmul.mubr.msk.bf16.vlgmr.msra.gmra.mrb[0].mxu1 %vm332_vm2, %v15712_v14  ;;  %v7219_v14 = vpack.c.bf16 %v7178_v36, %v7177_v7  ;;  %v7596_v7 = vld [vmem:[#allocation2 + $0x9a] sm:$0xff] }
 0x69d   : > { %13068 = vmatpush3.bf16.msra.mxu1 %v7734_v52  ;;  %13023 = vmatprep.mubr.msk.bf16.mxu1 %vm332_vm2, %v15722_v47  ;;  %v7227_v47 = vpack.c.bf16 %v7194_v30, %v7193_v32  ;;  %v7587_v52 = vld [vmem:[#allocation2 + $0x32] sm:$0xff]  ;;  %v7609_v30 = vld [vmem:[#allocation2 + $0x13a] sm:$0xff] }
 0x69e   : > { %v7635_v12 = vpack.c.bf16 %v7588_v58, %v7587_v52  ;;  %v7612_v32 = vld [vmem:[#allocation2 + $0x15a] sm:$0xff]  ;;  %v7655_v52 = vpack.c.bf16 %v7628_v22, %v7627_v10  ;;  %v7629_v58 = vld [vmem:[#allocation2 + $0x22a] sm:$0xff] }
 0x6a4   : > { %13024 = vmatmul.mubr.msk.bf16.gmra.mrb[4].mxu1 %vm332_vm2, %v7216_v5  ;;  %v7590_v5 = vld [vmem:[#allocation2 + $0x52] sm:$0xff] }
 0x6a5   : > { %13027 = vmatprep.mubr.msk.bf16.mxu1 %vm332_vm2, %v7217_v13  ;;  %v7592_v13 = vld [vmem:[#allocation2 + $0x6a] sm:$0xff]  ;;  %v7636_v41 = vpack.c.bf16 %v7590_v5, %v7589_v2  ;;  %v7633_v5 = vld [vmem:[#allocation2 + $0x25a] sm:$0xff] }
 0x6a6   : > { %v7637_v36 = vpack.c.bf16 %v7592_v13, %v7591_v18  ;;  %v7634_v18 = vld [vmem:[#allocation2 + $0x262] sm:$0xff] }
 0x6a7   : > { %v7658_v13 = vpack.c.bf16 %v7634_v18, %v7633_v5 }
 0x6ac   : > { %13028 = vmatmul.mubr.msk.bf16.gmra.mrb[8].mxu1 %vm332_vm2, %v7218_v45  ;;  %v7595_v45 = vld [vmem:[#allocation2 + $0x92] sm:$0xff] }
 0x6ad   : > { %13031 = vmatprep.mubr.msk.bf16.mxu1 %vm332_vm2, %v7219_v14  ;;  %v7639_v29 = vpack.c.bf16 %v7596_v7, %v7595_v45 }
 0x6b4   : > { %13032 = vmatmul.mubr.msk.bf16.gmra.mrb[12].mxu1 %vm332_vm2, %v7220_v46  ;;  %v7599_v46 = vld [vmem:[#allocation2 + $0xc2] sm:$0xff] }
 0x6b5   : > { %13035 = vmatprep.mubr.msk.bf16.mxu1 %vm332_vm2, %v7221_v25  ;;  %v7640_v25 = vpack.c.bf16 %v7598_v11, %v7597_v37  ;;  %v7641_v61 = vpack.c.bf16 %v7600_v51, %v7599_v46 }
 0x6bc   : > { %13036 = vmatmul.mubr.msk.bf16.gmra.mrb[16].mxu1 %vm332_vm2, %v7222_v57  ;;  %v7603_v57 = vld [vmem:[#allocation2 + $0xf2] sm:$0xff] }
 0x6bd   : > { %13039 = vmatprep.mubr.msk.bf16.mxu1 %vm332_vm2, %v7223_v42  ;;  %v7642_v42 = vpack.c.bf16 %v7602_v20, %v7601_v0  ;;  %v7643_v55 = vpack.c.bf16 %v7604_v6, %v7603_v57 }
 0x6c4   : > { %13040 = vmatmul.mubr.msk.bf16.gmra.mrb[20].mxu1 %vm332_vm2, %v7224_v24  ;;  %v7607_v24 = vld [vmem:[#allocation2 + $0x122] sm:$0xff] }
 0x6c5   : > { %13043 = vmatprep.mubr.msk.bf16.mxu1 %vm332_vm2, %v7225_v1  ;;  %v7644_v1 = vpack.c.bf16 %v7606_v59, %v7605_v8  ;;  %v7645_v50 = vpack.c.bf16 %v7608_v33, %v7607_v24 }
 0x6cc   : > { %13044 = vmatmul.mubr.msk.bf16.gmra.mrb[24].mxu1 %vm332_vm2, %v7226_v63  ;;  %v7611_v63 = vld [vmem:[#allocation2 + $0x152] sm:$0xff] }
 0x6cd   : > { %13047 = vmatprep.mubr.msk.bf16.mxu1 %vm332_vm2, %v7227_v47  ;;  %v7646_v47 = vpack.c.bf16 %v7610_v16, %v7609_v30  ;;  %v7647_v49 = vpack.c.bf16 %v7612_v32, %v7611_v63 }
 0x6d4   : > { %13048 = vmatmul.mubr.msk.bf16.gmra.mrb[28].mxu1 %vm332_vm2, %v7228_v35  ;;  %v7615_v35 = vld [vmem:[#allocation2 + $0x182] sm:$0xff] }
 0x6d5   : > { %13051 = vmatprep.mubr.msk.bf16.mxu1 %vm332_vm2, %v7229_v4  ;;  %v7648_v4 = vpack.c.bf16 %v7614_v40, %v7613_v38  ;;  %v7649_v48 = vpack.c.bf16 %v7616_v53, %v7615_v35 }
 0x6dc   : > { %13052 = vmatmul.mubr.msk.bf16.gmra.mrb[32].mxu1 %vm332_vm2, %v7230_v44  ;;  %v7619_v44 = vld [vmem:[#allocation2 + $0x1b2] sm:$0xff] }
 0x6dd   : > { %13055 = vmatprep.mubr.msk.bf16.mxu1 %vm332_vm2, %v7231_v31  ;;  %v7650_v31 = vpack.c.bf16 %v7618_v23, %v7617_v27  ;;  %v7651_v15 = vpack.c.bf16 %v7620_v56, %v7619_v44 }
 0x6e4   : > { %13056 = vmatmul.mubr.msk.bf16.gmra.mrb[36].mxu1 %vm332_vm2, %v7232_v21  ;;  %v7623_v21 = vld [vmem:[#allocation2 + $0x1e2] sm:$0xff] }
 0x6e5   : > { %13059 = vmatprep.mubr.msk.bf16.mxu1 %vm332_vm2, %v7233_v9  ;;  %v7652_v9 = vpack.c.bf16 %v7622_v60, %v7621_v39  ;;  %v7653_v54 = vpack.c.bf16 %v7624_v19, %v7623_v21 }
 0x6ec   : > { %13060 = vmatmul.mubr.msk.bf16.gmra.mrb[40].mxu1 %vm332_vm2, %v7234_v62  ;;  %v7626_v62 = vld [vmem:[#allocation2 + $0x202] sm:$0xff] }
 0x6ed   : > { %13063 = vmatprep.mubr.msk.bf16.mxu1 %vm332_vm2, %v15764_v28  ;;  %v7593_v28 = vld [vmem:[#allocation2 + $0x7a] sm:$0xff] }
 0x6ee   : > { %v7638_v14 = vpack.c.bf16 %v7594_v17, %v7593_v28 }
 0x6f4   : > { %13064 = vmatmul.mubr.msk.bf16.gmra.mrb[44].mxu1 %vm332_vm2, %v7236_v34  ;;  %v7654_v34 = vpack.c.bf16 %v7626_v62, %v7625_v26 }
 0x6f5   : > { %13069 = vmatprep.mubr.msk.bf16.mxu1 %vm332_vm2, %v7635_v12  ;;  %v7630_v12 = vld [vmem:[#allocation2 + $0x232] sm:$0xff] }
 0x6f6   : > { %v7656_v2 = vpack.c.bf16 %v7630_v12, %v7629_v58 }
 0x6fc   : > { %13070 = vmatmul.mubr.msk.bf16.vlgmr.msra.gmra.mrb[0].mxu1 %vm332_vm2, %v7636_v41  ;;  %v16031_v41 = vld [vmem:[%s16715_s4] ss:$0 sm:$0xff] }
 0x6fd   : > { %13073 = vmatprep.mubr.msk.bf16.mxu1 %vm332_vm2, %v7637_v36 }
 0x704   : > { %13074 = vmatmul.mubr.msk.bf16.gmra.mrb[4].mxu1 %vm332_vm2, %v7638_v14 }
 0x705   : > { %13077 = vmatprep.mubr.msk.bf16.mxu1 %vm332_vm2, %v7639_v29 }
 0x70c   : > { %13078 = vmatmul.mubr.msk.bf16.gmra.mrb[8].mxu1 %vm332_vm2, %v7640_v25 }
 0x70d   : > { %13081 = vmatprep.mubr.msk.bf16.mxu1 %vm332_vm2, %v7641_v61 }
 0x714   : > { %13082 = vmatmul.mubr.msk.bf16.gmra.mrb[12].mxu1 %vm332_vm2, %v7642_v42 }
 0x715   : > { %13085 = vmatprep.mubr.msk.bf16.mxu1 %vm332_vm2, %v7643_v55 }
 0x71c   : > { %13086 = vmatmul.mubr.msk.bf16.gmra.mrb[16].mxu1 %vm332_vm2, %v7644_v1 }
 0x71d   : > { %13089 = vmatprep.mubr.msk.bf16.mxu1 %vm332_vm2, %v7645_v50 }
 0x724   : > { %13090 = vmatmul.mubr.msk.bf16.gmra.mrb[20].mxu1 %vm332_vm2, %v7646_v47 }
 0x725   : > { %13093 = vmatprep.mubr.msk.bf16.mxu1 %vm332_vm2, %v7647_v49 }
 0x72c   : > { %13094 = vmatmul.mubr.msk.bf16.gmra.mrb[24].mxu1 %vm332_vm2, %v7648_v4 }
 0x72d   : > { %13097 = vmatprep.mubr.msk.bf16.mxu1 %vm332_vm2, %v7649_v48 }
 0x734   : > { %13098 = vmatmul.mubr.msk.bf16.gmra.mrb[28].mxu1 %vm332_vm2, %v7650_v31 }
 0x735   : > { %13101 = vmatprep.mubr.msk.bf16.mxu1 %vm332_vm2, %v7651_v15 }
 0x73c   : > { %13102 = vmatmul.mubr.msk.bf16.gmra.mrb[32].mxu1 %vm332_vm2, %v7652_v9 }
 0x73d   : > { %13105 = vmatprep.mubr.msk.bf16.mxu1 %vm332_vm2, %v7653_v54 }
 0x744   : > { %13106 = vmatmul.mubr.msk.bf16.gmra.mrb[36].mxu1 %vm332_vm2, %v7654_v34 }
 0x745   : > { %13109 = vmatprep.mubr.msk.bf16.mxu1 %vm332_vm2, %v7655_v52 }
 0x74c   : > { %13110 = vmatmul.mubr.msk.bf16.gmra.mrb[40].mxu1 %vm332_vm2, %v7656_v2 }
 0x74d   : > { %13113 = vmatprep.mubr.msk.bf16.mxu1 %vm332_vm2, %v15819_v43  ;;  %v14216_v43 = vld [vmem:[%s16716_s5 + $0x8] sm:$0xff]  }
 0x74e   : > { %13117 = vmatprep.subr.bf16.mxu0 %v14216_v43 }
 0x74f   : > { %13118 = vmatpush3.bf16.msra.mxu0 %v14216_v43 }
 0x754   : > { %13114 = vmatmul.mubr.msk.bf16.gmra.mrb[44].mxu1 %vm332_vm2, %v7658_v13  ;;  %vm10689_vm2 = vcmask 259076  }
 0x7cf   : > { %v13071_v36 = vpop.f32.mrb[0].mxu1 }
 0x7d0   : > { %v8018_v28 = vadd.f32 %v13071_v36, %v16031_v41  ;;  %v7770_v17 = vpop.f32.mrb[1].mxu1 }
 0x7d1   : > { %v8016_v45 = vadd.f32 %v16031_v41, %v7770_v17  ;;  %v13072_v7 = vpop.f32.mrb[2].mxu1 }
 0x7d2   : > { %v8066_v14 = vmax.f32 %v8018_v28, 0.0  ;;  %v8019_v29 = vadd.f32 %v13072_v7, %v16031_v41  ;;  %v7773_v37 = vpop.f32.mrb[3].mxu1 }
 0x7d3   : > { %v8064_v11 = vmax.f32 %v8016_v45, 0.0  ;;  %v8017_v46 = vadd.f32 %v16031_v41, %v7773_v37 }
 0x7d4   : > { %v8113_v3 = vsel %vm394_vm6, %v8066_v14, -inf  ;;  %v8067_v51 = vmax.f32 %v8019_v29, 0.0 }
 0x7d5   : > { %v8112_v25 = vsel %vm394_vm6, %v8064_v11, -inf  ;;  %v8065_v61 = vmax.f32 %v8017_v46, 0.0 }
 0x7d6   : > { %v8114_v0 = vmax.f32 %v8112_v25, %v8113_v3  ;;  %v8118_v20 = vsel %vm394_vm6, %v8067_v51, -inf }
 0x7d7   : > { %v8117_v57 = vsel %vm394_vm6, %v8065_v61, -inf  ;;  %v13075_v6 = vpop.f32.mrb[4].mxu1 }
 0x7d8   : > { %v8119_v42 = vmax.f32 %v8117_v57, %v8118_v20  ;;  %v8022_v55 = vadd.f32 %v13075_v6, %v16031_v41  ;;  %v7786_v8 = vpop.f32.mrb[5].mxu1 }
 0x7d9   : > { %v8020_v59 = vadd.f32 %v16031_v41, %v7786_v8  ;;  %v13076_v24 = vpop.f32.mrb[6].mxu1 }
 0x7da   : > { %v8023_v33 = vadd.f32 %v13076_v24, %v16031_v41  ;;  %v7789_v1 = vpop.f32.mrb[7].mxu1  ;;  %v8070_v50 = vmax.f32 %v8022_v55, 0.0 }
 0x7db   : > { %v8068_v30 = vmax.f32 %v8020_v59, 0.0  ;;  %v8021_v16 = vadd.f32 %v16031_v41, %v7789_v1 }
 0x7dc   : > { %v8071_v63 = vmax.f32 %v8023_v33, 0.0  ;;  %v16047_v38 = vsel %vm394_vm6, %v8070_v50, -inf }
 0x7dd   : > { %v8115_v32 = vsel %vm394_vm6, %v8068_v30, -inf  ;;  %v8069_v47 = vmax.f32 %v8021_v16, 0.0 }
 0x7de   : > { %v8116_v49 = vmax.f32 %v8114_v0, %v8115_v32  ;;  %v16050_v40 = vsel %vm394_vm6, %v8071_v63, -inf }
 0x7df   : > { %v8120_v35 = vsel %vm394_vm6, %v8069_v47, -inf  ;;  %v13079_v53 = vpop.f32.mrb[8].mxu1 }
 0x7e0   : > { %v8192_v4 = vsel %vm396_vm7, %v8116_v49, -inf  ;;  %v8249_v48 = vsel %vm8248_vm9, %v8116_v49, -inf  ;;  %v8306_v27 = vsel %vm8305_vm10, %v8116_v49, -inf  ;;  %v8363_v23 = vsel %vm8362_vm11, %v8116_v49, -inf  ;;  %v7802_v44 = vpop.f32.mrb[9].mxu1 }
 0x7e1   : > { %v8193_v56 = vrot.slane %v8192_v4, 4  ;;  %v8250_v31 = vrot.slane %v8249_v48, 4  ;;  %v8307_v15 = vrot.slane %v8306_v27, 4  ;;  %v8364_v39 = vrot.slane %v8363_v23, 4  ;;  %v13080_v60 = vpop.f32.mrb[10].mxu1 }
 0x7e2   : > { %v8121_v21 = vmax.f32 %v8119_v42, %v8120_v35  ;;  %v16058_v19 = vadd.f32 %v13079_v53, %v16031_v41  ;;  %v16061_v9 = vadd.f32 %v16031_v41, %v7802_v44  ;;  %v16064_v54 = vadd.f32 %v13080_v60, %v16031_v41  ;;  %v16066_v26 = vpop.f32.mrb[11].mxu1 }
 0x7e3   : > { %v8194_v62 = vmax.f32 %v8192_v4, %v8193_v56  ;;  %v8251_v10 = vmax.f32 %v8249_v48, %v8250_v31  ;;  %v8308_v22 = vmax.f32 %v8306_v27, %v8307_v15  ;;  %v8365_v34 = vmax.f32 %v8363_v23, %v8364_v39 }
 0x7e4   : > { %v8419_v52 = vsel %vm396_vm7, %v8121_v21, -inf  ;;  %v8475_v58 = vsel %vm8248_vm9, %v8121_v21, -inf  ;;  %v8531_v12 = vsel %vm8305_vm10, %v8121_v21, -inf  ;;  %v8587_v2 = vsel %vm8362_vm11, %v8121_v21, -inf }
 0x7e5   : > { %v8195_v5 = vrot.slane %v8194_v62, 2  ;;  %v8252_v18 = vrot.slane %v8251_v10, 2  ;;  %v8309_v13 = vrot.slane %v8308_v22, 2  ;;  %v8366_v43 = vrot.slane %v8365_v34, 2 }
 0x7e6   : > { %v8420_v36 = vrot.slane %v8419_v52, 4  ;;  %v8476_v28 = vrot.slane %v8475_v58, 4  ;;  %v8532_v17 = vrot.slane %v8531_v12, 4  ;;  %v8588_v45 = vrot.slane %v8587_v2, 4 }
 0x7e7   : > { %v8196_v7 = vmax.f32 %v8194_v62, %v8195_v5  ;;  %v8253_v14 = vmax.f32 %v8251_v10, %v8252_v18  ;;  %v8310_v29 = vmax.f32 %v8308_v22, %v8309_v13  ;;  %v8367_v37 = vmax.f32 %v8365_v34, %v8366_v43  ;;  %v13083_v11 = vpop.f32.mrb[12].mxu1 }
 0x7e8   : > { %v8421_v46 = vmax.f32 %v8419_v52, %v8420_v36  ;;  %v8477_v3 = vmax.f32 %v8475_v58, %v8476_v28  ;;  %v8533_v51 = vmax.f32 %v8531_v12, %v8532_v17  ;;  %v8589_v25 = vmax.f32 %v8587_v2, %v8588_v45  ;;  %v7818_v61 = vpop.f32.mrb[13].mxu1 }
 0x7e9   : > { %v8197_v0 = vrot.slane %v8196_v7, 1  ;;  %v8254_v20 = vrot.slane %v8253_v14, 1  ;;  %v8311_v57 = vrot.slane %v8310_v29, 1  ;;  %v8368_v6 = vrot.slane %v8367_v37, 1  ;;  %v13084_v42 = vpop.f32.mrb[14].mxu1 }
 0x7ea   : > { %v8422_v55 = vrot.slane %v8421_v46, 2  ;;  %v8478_v8 = vrot.slane %v8477_v3, 2  ;;  %v8534_v59 = vrot.slane %v8533_v51, 2  ;;  %v8590_v24 = vrot.slane %v8589_v25, 2  ;;  %v7821_v33 = vpop.f32.mrb[15].mxu1 }
 0x7eb   : > { %v8198_v1 = vmax.f32 %v8196_v7, %v8197_v0  ;;  %v8255_v50 = vmax.f32 %v8253_v14, %v8254_v20  ;;  %v8312_v30 = vmax.f32 %v8310_v29, %v8311_v57  ;;  %v8369_v16 = vmax.f32 %v8367_v37, %v8368_v6 }
 0x7ec   : > { %v8423_v63 = vmax.f32 %v8421_v46, %v8422_v55  ;;  %v8479_v32 = vmax.f32 %v8477_v3, %v8478_v8  ;;  %v8535_v47 = vmax.f32 %v8533_v51, %v8534_v59  ;;  %v8591_v49 = vmax.f32 %v8589_v25, %v8590_v24 }
 0x7ed   : > { %v8643_v35 = vsel %vm667_vm0, %v8198_v1, %v8255_v50  ;;  %v8074_v53 = vmax.f32 %v16058_v19, 0.0  ;;  %v8072_v4 = vmax.f32 %v16061_v9, 0.0  ;;  %v8075_v48 = vmax.f32 %v16064_v54, 0.0 }
 0x7ee   : > { %v8652_v27 = vsel %vm8651_vm12, %v8643_v35, %v8312_v30  ;;  %v8424_v23 = vrot.slane %v8423_v63, 1  ;;  %v8480_v44 = vrot.slane %v8479_v32, 1  ;;  %v8536_v56 = vrot.slane %v8535_v47, 1 }
 0x7ef   : > { %v8661_v31 = vsel %vm8660_vm13, %v8652_v27, %v8369_v16  ;;  %v8592_v15 = vrot.slane %v8591_v49, 1  ;;  %v8125_v39 = vsel %vm394_vm6, %v8074_v53, -inf  ;;  %v8123_v60 = vsel %vm394_vm6, %v8072_v4, -inf  ;;  %v16080_v21 = vpop.f32.mrb[16].mxu1 }
 0x7f0   : > { %v8425_v62 = vmax.f32 %v8423_v63, %v8424_v23  ;;  %v8481_v19 = vmax.f32 %v8479_v32, %v8480_v44  ;;  %v8537_v10 = vmax.f32 %v8535_v47, %v8536_v56  ;;  %v8124_v9 = vmax.f32 %v16047_v38, %v8123_v60  ;;  %v16083_v54 = vpop.f32.mrb[17].mxu1 }
 0x7f1   : > { %v8593_v22 = vmax.f32 %v8591_v49, %v8592_v15  ;;  %v8130_v34 = vsel %vm394_vm6, %v8075_v48, -inf  ;;  %v8025_v52 = vadd.f32 %v16031_v41, %v16066_v26  ;;  %v8030_v58 = vadd.f32 %v13083_v11, %v16031_v41  ;;  %v16089_v12 = vpop.f32.mrb[18].mxu1 }
 0x7f2   : > { %v8669_v2 = vsel %vm4525_vm5, %v8661_v31, %v8425_v62  ;;  %v8126_v5 = vmax.f32 %v8124_v9, %v8125_v39  ;;  %v8028_v18 = vadd.f32 %v16031_v41, %v7818_v61  ;;  %v8031_v13 = vadd.f32 %v13084_v42, %v16031_v41  ;;  %v16094_v38 = vpop.f32.mrb[19].mxu1 }
 0x7f3   : > { %v8678_v43 = vsel %vm8677_vm14, %v8669_v2, %v8481_v19  ;;  %v8073_v36 = vmax.f32 %v8025_v52, 0.0  ;;  %v8078_v28 = vmax.f32 %v8030_v58, 0.0  ;;  %v8029_v17 = vadd.f32 %v16031_v41, %v7821_v33 }
 0x7f4   : > { %v8687_v26 = vsel %vm8686_vm15, %v8678_v43, %v8537_v10  ;;  %v8199_v45 = vsel %vm396_vm7, %v8126_v5, -inf  ;;  %v8256_v7 = vsel %vm8248_vm9, %v8126_v5, -inf  ;;  %v8313_v14 = vsel %vm8305_vm10, %v8126_v5, -inf }
 0x7f5   : > { %v8696_v29 = vsel %vm8695_vm1, %v8687_v26, %v8593_v22  ;;  %v8200_v37 = vrot.slane %v8199_v45, 4  ;;  %v8257_v11 = vrot.slane %v8256_v7, 4  ;;  %v8314_v46 = vrot.slane %v8313_v14, 4 }
 0x7f6   : > { %8705 = vst.msk [vmem:[#allocation3 + $0x11] sm:$0xff] %vm394_vm6, %v8696_v29  ;;  %v8370_v3 = vsel %vm8362_vm11, %v8126_v5, -inf  ;;  %v8128_v51 = vsel %vm394_vm6, %v8073_v36, -inf  ;;  %v16107_v25 = vsel %vm394_vm6, %v8078_v28, -inf  ;;  %v8076_v61 = vmax.f32 %v8028_v18, 0.0 }
 0x7f7   : > { %v8201_v0 = vmax.f32 %v8199_v45, %v8200_v37  ;;  %v8258_v20 = vmax.f32 %v8256_v7, %v8257_v11  ;;  %v8315_v57 = vmax.f32 %v8313_v14, %v8314_v46  ;;  %v8371_v6 = vrot.slane %v8370_v3, 4  ;;  %v16109_v42 = vpop.f32.mrb[20].mxu1 }
 0x7f8   : > { %v8129_v55 = vmax.f32 %v16050_v40, %v8128_v51  ;;  %v16113_v8 = vsel %vm394_vm6, %v8076_v61, -inf  ;;  %v8079_v59 = vmax.f32 %v8031_v13, 0.0  ;;  %v8077_v24 = vmax.f32 %v8029_v17, 0.0  ;;  %v16115_v33 = vpop.f32.mrb[21].mxu1 }
 0x7f9   : > { %v8202_v1 = vrot.slane %v8201_v0, 2  ;;  %v8259_v50 = vrot.slane %v8258_v20, 2  ;;  %v8316_v30 = vrot.slane %v8315_v57, 2  ;;  %v8372_v16 = vmax.f32 %v8370_v3, %v8371_v6  ;;  %v16117_v63 = vpop.f32.mrb[22].mxu1 }
 0x7fa   : > { %v8131_v32 = vmax.f32 %v8129_v55, %v8130_v34  ;;  %v8134_v47 = vmax.f32 %v16113_v8, %v16107_v25  ;;  %v16122_v49 = vsel %vm394_vm6, %v8079_v59, -inf  ;;  %v16125_v40 = vsel %vm394_vm6, %v8077_v24, -inf  ;;  %v16127_v35 = vpop.f32.mrb[23].mxu1 }
 0x7fb   : > { %v8203_v53 = vmax.f32 %v8201_v0, %v8202_v1  ;;  %v8260_v4 = vmax.f32 %v8258_v20, %v8259_v50  ;;  %v8317_v48 = vmax.f32 %v8315_v57, %v8316_v30  ;;  %v8373_v27 = vrot.slane %v8372_v16, 2 }
 0x7fc   : > { %v8426_v23 = vsel %vm396_vm7, %v8131_v32, -inf  ;;  %v8482_v44 = vsel %vm8248_vm9, %v8131_v32, -inf  ;;  %v8538_v56 = vsel %vm8305_vm10, %v8131_v32, -inf  ;;  %v8594_v31 = vsel %vm8362_vm11, %v8131_v32, -inf }
 0x7fd   : > { %v8204_v15 = vrot.slane %v8203_v53, 1  ;;  %v8261_v39 = vrot.slane %v8260_v4, 1  ;;  %v8318_v60 = vrot.slane %v8317_v48, 1  ;;  %v8374_v62 = vmax.f32 %v8372_v16, %v8373_v27 }
 0x7fe   : > { %v8427_v19 = vrot.slane %v8426_v23, 4  ;;  %v8483_v10 = vrot.slane %v8482_v44, 4  ;;  %v8539_v9 = vrot.slane %v8538_v56, 4  ;;  %v8595_v22 = vrot.slane %v8594_v31, 4 }
 0x7ff   : > { %v8205_v34 = vmax.f32 %v8203_v53, %v8204_v15  ;;  %v8262_v52 = vmax.f32 %v8260_v4, %v8261_v39  ;;  %v8319_v58 = vmax.f32 %v8317_v48, %v8318_v60  ;;  %v8375_v2 = vrot.slane %v8374_v62, 1  ;;  %v16133_v5 = vpop.f32.mrb[24].mxu1 }
 0x800   : > { %v8428_v18 = vmax.f32 %v8426_v23, %v8427_v19  ;;  %v8484_v13 = vmax.f32 %v8482_v44, %v8483_v10  ;;  %v8540_v43 = vmax.f32 %v8538_v56, %v8539_v9  ;;  %v8596_v36 = vmax.f32 %v8594_v31, %v8595_v22  ;;  %v16135_v28 = vpop.f32.mrb[25].mxu1 }
 0x801   : > { %v8376_v17 = vmax.f32 %v8374_v62, %v8375_v2  ;;  %v8644_v26 = vsel %vm667_vm0, %v8205_v34, %v8262_v52  ;;  %v8139_v45 = vmax.f32 %v16125_v40, %v16122_v49  ;;  %v8034_v7 = vadd.f32 %v16080_v21, %v16031_v41  ;;  %v16142_v14 = vpop.f32.mrb[26].mxu1 }
 0x802   : > { %v8653_v29 = vsel %vm8651_vm12, %v8644_v26, %v8319_v58  ;;  %v8429_v37 = vrot.slane %v8428_v18, 2  ;;  %v8485_v11 = vrot.slane %v8484_v13, 2  ;;  %v8541_v46 = vrot.slane %v8540_v43, 2  ;;  %v16145_v3 = vpop.f32.mrb[27].mxu1 }
 0x803   : > { %v8662_v51 = vsel %vm8660_vm13, %v8653_v29, %v8376_v17  ;;  %v8597_v61 = vrot.slane %v8596_v36, 2  ;;  %v8082_v0 = vmax.f32 %v8034_v7, 0.0  ;;  %v8032_v20 = vadd.f32 %v16031_v41, %v16083_v54 }
 0x804   : > { %v8430_v57 = vmax.f32 %v8428_v18, %v8429_v37  ;;  %v8486_v6 = vmax.f32 %v8484_v13, %v8485_v11  ;;  %v8542_v55 = vmax.f32 %v8540_v43, %v8541_v46  ;;  %v8035_v21 = vadd.f32 %v16089_v12, %v16031_v41 }
 0x805   : > { %v8598_v59 = vmax.f32 %v8596_v36, %v8597_v61  ;;  %v16153_v24 = vsel %vm394_vm6, %v8082_v0, -inf  ;;  %v8080_v1 = vmax.f32 %v8032_v20, 0.0  ;;  %v8033_v50 = vadd.f32 %v16031_v41, %v16094_v38 }
 0x806   : > { %v8431_v30 = vrot.slane %v8430_v57, 1  ;;  %v8487_v16 = vrot.slane %v8486_v6, 1  ;;  %v8543_v32 = vrot.slane %v8542_v55, 1  ;;  %v8083_v49 = vmax.f32 %v8035_v21, 0.0 }
 0x807   : > { %v8599_v40 = vrot.slane %v8598_v59, 1  ;;  %v8135_v54 = vsel %vm394_vm6, %v8080_v1, -inf  ;;  %v8081_v53 = vmax.f32 %v8033_v50, 0.0  ;;  %v8038_v4 = vadd.f32 %v16109_v42, %v16031_v41  ;;  %v16160_v12 = vpop.f32.mrb[28].mxu1 }
 0x808   : > { %v8432_v48 = vmax.f32 %v8430_v57, %v8431_v30  ;;  %v8488_v27 = vmax.f32 %v8486_v6, %v8487_v16  ;;  %v8544_v23 = vmax.f32 %v8542_v55, %v8543_v32  ;;  %v8136_v38 = vmax.f32 %v8134_v47, %v8135_v54  ;;  %v16165_v44 = vpop.f32.mrb[29].mxu1  ;;  %v16182_v47 = vld [vmem:[%s16716_s5] sm:$0xff]  }
 0x809   : > { %v8600_v56 = vmax.f32 %v8598_v59, %v8599_v40  ;;  %v16168_v31 = vsel %vm394_vm6, %v8083_v49, -inf  ;;  %v8140_v15 = vsel %vm394_vm6, %v8081_v53, -inf  ;;  %v8086_v39 = vmax.f32 %v8038_v4, 0.0  ;;  %v16171_v60 = vpop.f32.mrb[30].mxu1  ;;  %13127 = vmatprep.subr.bf16.mxu0 %v16182_v47 }
 0x80a   : > { %v8670_v42 = vsel %vm4525_vm5, %v8662_v51, %v8432_v48  ;;  %v8206_v62 = vsel %vm396_vm7, %v8136_v38, -inf  ;;  %v8263_v19 = vsel %vm8248_vm9, %v8136_v38, -inf  ;;  %v8320_v25 = vsel %vm8305_vm10, %v8136_v38, -inf  ;;  %v16177_v8 = vpop.f32.mrb[31].mxu1 }
 0x80b   : > { %v8679_v10 = vsel %vm8677_vm14, %v8670_v42, %v8488_v27  ;;  %v8207_v9 = vrot.slane %v8206_v62, 4  ;;  %v8264_v22 = vrot.slane %v8263_v19, 4  ;;  %v8321_v34 = vrot.slane %v8320_v25, 4 }
 0x80c   : > { %v8688_v52 = vsel %vm8686_vm15, %v8679_v10, %v8544_v23  ;;  %v8377_v58 = vsel %vm8362_vm11, %v8136_v38, -inf  ;;  %v8141_v2 = vmax.f32 %v8139_v45, %v8140_v15  ;;  %v16188_v18 = vsel %vm394_vm6, %v8086_v39, -inf }
 0x80d   : > { %v8697_v13 = vsel %vm8695_vm1, %v8688_v52, %v8600_v56  ;;  %v8208_v43 = vmax.f32 %v8206_v62, %v8207_v9  ;;  %v8265_v36 = vmax.f32 %v8263_v19, %v8264_v22  ;;  %v8322_v17 = vmax.f32 %v8320_v25, %v8321_v34 }
 0x80e   : > { %8706 = vst.msk [vmem:[#allocation3 + $0x21] sm:$0xff] %vm394_vm6, %v8697_v13  ;;  %v8378_v26 = vrot.slane %v8377_v58, 4  ;;  %v8433_v7 = vsel %vm396_vm7, %v8141_v2, -inf  ;;  %v8489_v29 = vsel %vm8248_vm9, %v8141_v2, -inf  ;;  %v8545_v37 = vsel %vm8305_vm10, %v8141_v2, -inf }
 0x80f   : > { %v8209_v45 = vrot.slane %v8208_v43, 2  ;;  %v8266_v11 = vrot.slane %v8265_v36, 2  ;;  %v8323_v46 = vrot.slane %v8322_v17, 2  ;;  %v8434_v51 = vrot.slane %v8433_v7, 4  ;;  %v16196_v61 = vpop.f32.mrb[32].mxu1 }
 0x810   : > { %v8379_v0 = vmax.f32 %v8377_v58, %v8378_v26  ;;  %v8490_v20 = vrot.slane %v8489_v29, 4  ;;  %v8546_v57 = vrot.slane %v8545_v37, 4  ;;  %v8601_v6 = vsel %vm8362_vm11, %v8141_v2, -inf  ;;  %v16199_v55 = vpop.f32.mrb[33].mxu1 }
 0x811   : > { %v8210_v21 = vmax.f32 %v8208_v43, %v8209_v45  ;;  %v8267_v59 = vmax.f32 %v8265_v36, %v8266_v11  ;;  %v8324_v1 = vmax.f32 %v8322_v17, %v8323_v46  ;;  %v8435_v50 = vmax.f32 %v8433_v7, %v8434_v51  ;;  %v16201_v30 = vpop.f32.mrb[34].mxu1  ;;  %v8727_v46 = vld [vmem:[#allocation3 + $0x1] sm:$0xff]  ;;  %v16215_v51 = vld [vmem:[#allocation3 + $0x11] sm:$0xff] }
 0x812   : > { %v8380_v16 = vrot.slane %v8379_v0, 2  ;;  %v8491_v32 = vmax.f32 %v8489_v29, %v8490_v20  ;;  %v8547_v49 = vmax.f32 %v8545_v37, %v8546_v57  ;;  %v8602_v40 = vrot.slane %v8601_v6, 4  ;;  %v16203_v54 = vpop.f32.mrb[35].mxu1 }
 0x813   : > { %v8211_v53 = vrot.slane %v8210_v21, 1  ;;  %v8268_v4 = vrot.slane %v8267_v59, 1  ;;  %v8325_v48 = vrot.slane %v8324_v1, 1  ;;  %v8436_v27 = vrot.slane %v8435_v50, 2 }
 0x814   : > { %v8381_v23 = vmax.f32 %v8379_v0, %v8380_v16  ;;  %v8492_v38 = vrot.slane %v8491_v32, 2  ;;  %v8548_v56 = vrot.slane %v8547_v49, 2  ;;  %v8603_v15 = vmax.f32 %v8601_v6, %v8602_v40 }
 0x815   : > { %v8212_v39 = vmax.f32 %v8210_v21, %v8211_v53  ;;  %v8269_v42 = vmax.f32 %v8267_v59, %v8268_v4  ;;  %v8326_v62 = vmax.f32 %v8324_v1, %v8325_v48  ;;  %v8437_v19 = vmax.f32 %v8435_v50, %v8436_v27 }
 0x816   : > { %v8382_v25 = vrot.slane %v8381_v23, 1  ;;  %v8493_v10 = vmax.f32 %v8491_v32, %v8492_v38  ;;  %v8549_v9 = vmax.f32 %v8547_v49, %v8548_v56  ;;  %v8604_v22 = vrot.slane %v8603_v15, 2 }
 0x817   : > { %v8645_v34 = vsel %vm667_vm0, %v8212_v39, %v8269_v42  ;;  %v8438_v52 = vrot.slane %v8437_v19, 1  ;;  %v8036_v58 = vadd.f32 %v16031_v41, %v16115_v33  ;;  %v8039_v2 = vadd.f32 %v16117_v63, %v16031_v41  ;;  %v16210_v13 = vpop.f32.mrb[36].mxu1 }
 0x818   : > { %v8383_v43 = vmax.f32 %v8381_v23, %v8382_v25  ;;  %v8654_v36 = vsel %vm8651_vm12, %v8645_v34, %v8326_v62  ;;  %v8494_v17 = vrot.slane %v8493_v10, 1  ;;  %v8550_v26 = vrot.slane %v8549_v9, 1  ;;  %v16213_v7 = vpop.f32.mrb[37].mxu1 }
 0x819   : > { %v8439_v29 = vmax.f32 %v8437_v19, %v8438_v52  ;;  %v8605_v37 = vmax.f32 %v8603_v15, %v8604_v22  ;;  %v8084_v45 = vmax.f32 %v8036_v58, 0.0  ;;  %v8087_v11 = vmax.f32 %v8039_v2, 0.0  ;;  %v16217_v33 = vpop.f32.mrb[38].mxu1 }
 0x81a   : > { %v8663_v63 = vsel %vm8660_vm13, %v8654_v36, %v8383_v43  ;;  %v8495_v0 = vmax.f32 %v8493_v10, %v8494_v17  ;;  %v8551_v20 = vmax.f32 %v8549_v9, %v8550_v26  ;;  %v8037_v57 = vadd.f32 %v16031_v41, %v16127_v35  ;;  %v16222_v6 = vpop.f32.mrb[39].mxu1 }
 0x81b   : > { %v8606_v21 = vrot.slane %v8605_v37, 1  ;;  %v8671_v59 = vsel %vm4525_vm5, %v8663_v63, %v8439_v29  ;;  %v8143_v1 = vsel %vm394_vm6, %v8084_v45, -inf  ;;  %v8150_v50 = vsel %vm394_vm6, %v8087_v11, -inf }
 0x81c   : > { %v8680_v16 = vsel %vm8677_vm14, %v8671_v59, %v8495_v0  ;;  %v8144_v32 = vmax.f32 %v16153_v24, %v8143_v1  ;;  %v8085_v49 = vmax.f32 %v8037_v57, 0.0  ;;  %v8735_v40 = vpack.c.bf16 %v16215_v51, %v8727_v46 }
 0x81d   : > { %v8607_v53 = vmax.f32 %v8605_v37, %v8606_v21  ;;  %v8689_v4 = vsel %vm8686_vm15, %v8680_v16, %v8551_v20  ;;  %v8042_v35 = vadd.f32 %v16133_v5, %v16031_v41  ;;  %v8040_v48 = vadd.f32 %v16031_v41, %v16135_v28 }
 0x81e   : > { %v8146_v27 = vmax.f32 %v8144_v32, %v16188_v18  ;;  %v8148_v23 = vsel %vm394_vm6, %v8085_v49, -inf  ;;  %13119 = vmatprep.mubr.msk.bf16.mxu0 %vm394_vm6, %v8735_v40  ;;  %v16240_v24 = vadd.f32 %v16142_v14, %v16031_v41  ;;  %v16244_v38 = vadd.f32 %v16031_v41, %v16145_v3 }
 0x81f   : > { %v8698_v56 = vsel %vm8695_vm1, %v8689_v4, %v8607_v53  ;;  %v8149_v5 = vmax.f32 %v16168_v31, %v8148_v23  ;;  %v8090_v15 = vmax.f32 %v8042_v35, 0.0  ;;  %v8088_v28 = vmax.f32 %v8040_v48, 0.0  ;;  %v16248_v39 = vpop.f32.mrb[40].mxu1 }
 0x820   : > { %8707 = vst.msk [vmem:[#allocation3 + $0x31] sm:$0xff] %vm394_vm6, %v8698_v56  ;;  %v8213_v18 = vsel %vm396_vm7, %v8146_v27, -inf  ;;  %v8270_v42 = vsel %vm8248_vm9, %v8146_v27, -inf  ;;  %v8327_v14 = vsel %vm8305_vm10, %v8146_v27, -inf  ;;  %v8384_v62 = vsel %vm8362_vm11, %v8146_v27, -inf  ;;  %v16255_v3 = vpop.f32.mrb[41].mxu1 }
 0x821   : > { %v8214_v19 = vrot.slane %v8213_v18, 4  ;;  %v8271_v25 = vrot.slane %v8270_v42, 4  ;;  %v8328_v10 = vrot.slane %v8327_v14, 4  ;;  %v8385_v31 = vrot.slane %v8384_v62, 4  ;;  %v16257_v9 = vpop.f32.mrb[42].mxu1 }
 0x822   : > { %v8151_v22 = vmax.f32 %v8149_v5, %v8150_v50  ;;  %v16260_v34 = vsel %vm394_vm6, %v8090_v15, -inf  ;;  %v16263_v52 = vsel %vm394_vm6, %v8088_v28, -inf  ;;  %v8091_v58 = vmax.f32 %v16240_v24, 0.0  ;;  %v16266_v2 = vpop.f32.mrb[43].mxu1 }
 0x823   : > { %v8215_v43 = vmax.f32 %v8213_v18, %v8214_v19  ;;  %v8272_v36 = vmax.f32 %v8270_v42, %v8271_v25  ;;  %v8329_v17 = vmax.f32 %v8327_v14, %v8328_v10  ;;  %v8386_v26 = vmax.f32 %v8384_v62, %v8385_v31 }
 0x824   : > { %v8440_v29 = vsel %vm396_vm7, %v8151_v22, -inf  ;;  %v8496_v37 = vsel %vm8248_vm9, %v8151_v22, -inf  ;;  %v8552_v45 = vsel %vm8305_vm10, %v8151_v22, -inf  ;;  %v8608_v11 = vsel %vm8362_vm11, %v8151_v22, -inf }
 0x825   : > { %v8216_v46 = vrot.slane %v8215_v43, 2  ;;  %v8273_v63 = vrot.slane %v8272_v36, 2  ;;  %v8330_v0 = vrot.slane %v8329_v17, 2  ;;  %v8387_v20 = vrot.slane %v8386_v26, 2 }
 0x826   : > { %v8441_v57 = vrot.slane %v8440_v29, 4  ;;  %v8497_v21 = vrot.slane %v8496_v37, 4  ;;  %v8553_v59 = vrot.slane %v8552_v45, 4  ;;  %v8609_v1 = vrot.slane %v8608_v11, 4 }
 0x827   : > { %v8217_v50 = vmax.f32 %v8215_v43, %v8216_v46  ;;  %v8274_v16 = vmax.f32 %v8272_v36, %v8273_v63  ;;  %v8331_v32 = vmax.f32 %v8329_v17, %v8330_v0  ;;  %v8388_v49 = vmax.f32 %v8386_v26, %v8387_v20  ;;  %v16272_v40 = vpop.f32.mrb[44].mxu1 }
 0x828   : > { %v8442_v53 = vmax.f32 %v8440_v29, %v8441_v57  ;;  %v8498_v4 = vmax.f32 %v8496_v37, %v8497_v21  ;;  %v8554_v35 = vmax.f32 %v8552_v45, %v8553_v59  ;;  %v8610_v48 = vmax.f32 %v8608_v11, %v8609_v1  ;;  %v16274_v27 = vpop.f32.mrb[45].mxu1 }
 0x829   : > { %v8218_v23 = vrot.slane %v8217_v50, 1  ;;  %v8275_v24 = vrot.slane %v8274_v16, 1  ;;  %v8332_v56 = vrot.slane %v8331_v32, 1  ;;  %v8389_v5 = vrot.slane %v8388_v49, 1  ;;  %v16276_v15 = vpop.f32.mrb[46].mxu1 }
 0x82a   : > { %v8443_v28 = vrot.slane %v8442_v53, 2  ;;  %v8499_v18 = vrot.slane %v8498_v4, 2  ;;  %v8555_v42 = vrot.slane %v8554_v35, 2  ;;  %v8611_v14 = vrot.slane %v8610_v48, 2  ;;  %v16278_v62 = vpop.f32.mrb[47].mxu1 }
 0x82b   : > { %v8219_v19 = vmax.f32 %v8217_v50, %v8218_v23  ;;  %v8276_v25 = vmax.f32 %v8274_v16, %v8275_v24  ;;  %v8333_v10 = vmax.f32 %v8331_v32, %v8332_v56  ;;  %v8390_v31 = vmax.f32 %v8388_v49, %v8389_v5 }
 0x82c   : > { %v8444_v22 = vmax.f32 %v8442_v53, %v8443_v28  ;;  %v8500_v43 = vmax.f32 %v8498_v4, %v8499_v18  ;;  %v8556_v36 = vmax.f32 %v8554_v35, %v8555_v42  ;;  %v8612_v17 = vmax.f32 %v8610_v48, %v8611_v14 }
 0x82d   : > { %v8646_v26 = vsel %vm667_vm0, %v8219_v19, %v8276_v25  ;;  %v8154_v29 = vmax.f32 %v16263_v52, %v16260_v34  ;;  %v8158_v37 = vsel %vm394_vm6, %v8091_v58, -inf  ;;  %v8089_v45 = vmax.f32 %v16244_v38, 0.0 }
 0x82e   : > { %v8655_v11 = vsel %vm8651_vm12, %v8646_v26, %v8333_v10  ;;  %v8445_v46 = vrot.slane %v8444_v22, 1  ;;  %v8501_v63 = vrot.slane %v8500_v43, 1  ;;  %v8557_v0 = vrot.slane %v8556_v36, 1 }
 0x82f   : > { %v8664_v20 = vsel %vm8660_vm13, %v8655_v11, %v8390_v31  ;;  %v8613_v57 = vrot.slane %v8612_v17, 1  ;;  %v8157_v21 = vsel %vm394_vm6, %v8089_v45, -inf  ;;  %v8046_v59 = vadd.f32 %v16160_v12, %v16031_v41 }
 0x830   : > { %v8446_v1 = vmax.f32 %v8444_v22, %v8445_v46  ;;  %v8502_v50 = vmax.f32 %v8500_v43, %v8501_v63  ;;  %v8558_v34 = vmax.f32 %v8556_v36, %v8557_v0  ;;  %v8159_v52 = vmax.f32 %v8157_v21, %v8158_v37 }
 0x831   : > { %v8614_v58 = vmax.f32 %v8612_v17, %v8613_v57  ;;  %v8094_v16 = vmax.f32 %v8046_v59, 0.0  ;;  %v8044_v38 = vadd.f32 %v16031_v41, %v16165_v44  ;;  %v8047_v32 = vadd.f32 %v16171_v60, %v16031_v41 }
 0x832   : > { %v8672_v49 = vsel %vm4525_vm5, %v8664_v20, %v8446_v1  ;;  %v8045_v53 = vadd.f32 %v16031_v41, %v16177_v8  ;;  %v8050_v12 = vadd.f32 %v16196_v61, %v16031_v41  ;;  %v8048_v4 = vadd.f32 %v16031_v41, %v16199_v55 }
 0x833   : > { %v8681_v35 = vsel %vm8677_vm14, %v8672_v49, %v8502_v50  ;;  %v16303_v48 = vsel %vm394_vm6, %v8094_v16, -inf  ;;  %v8092_v44 = vmax.f32 %v8044_v38, 0.0  ;;  %v8095_v23 = vmax.f32 %v8047_v32, 0.0 }
 0x834   : > { %v8690_v60 = vsel %vm8686_vm15, %v8681_v35, %v8558_v34  ;;  %v8093_v24 = vmax.f32 %v8045_v53, 0.0  ;;  %v8098_v56 = vmax.f32 %v8050_v12, 0.0  ;;  %v8096_v5 = vmax.f32 %v8048_v4, 0.0 }
 0x835   : > { %v8699_v8 = vsel %vm8695_vm1, %v8690_v60, %v8614_v58  ;;  %v8155_v28 = vsel %vm394_vm6, %v8092_v44, -inf  ;;  %v16309_v61 = vsel %vm394_vm6, %v8095_v23, -inf  ;;  %v16313_v55 = vadd.f32 %v16201_v30, %v16031_v41 }
 0x836   : > { %8708 = vst.msk [vmem:[#allocation3 + $0x41] sm:$0xff] %vm394_vm6, %v8699_v8  ;;  %v8156_v18 = vmax.f32 %v8154_v29, %v8155_v28  ;;  %v8160_v42 = vsel %vm394_vm6, %v8093_v24, -inf  ;;  %v8165_v14 = vsel %vm394_vm6, %v8098_v56, -inf  ;;  %v8163_v19 = vsel %vm394_vm6, %v8096_v5, -inf }
 0x837   : > { %v8161_v25 = vmax.f32 %v8159_v52, %v8160_v42  ;;  %v8164_v10 = vmax.f32 %v16303_v48, %v8163_v19  ;;  %v8099_v31 = vmax.f32 %v16313_v55, 0.0  ;;  %v16323_v22 = vadd.f32 %v16031_v41, %v16203_v54 }
 0x838   : > { %v8220_v30 = vsel %vm396_vm7, %v8156_v18, -inf  ;;  %v8277_v43 = vsel %vm8248_vm9, %v8156_v18, -inf  ;;  %v8334_v36 = vsel %vm8305_vm10, %v8156_v18, -inf  ;;  %v8391_v17 = vsel %vm8362_vm11, %v8156_v18, -inf }
 0x839   : > { %v8221_v26 = vrot.slane %v8220_v30, 4  ;;  %v8278_v29 = vrot.slane %v8277_v43, 4  ;;  %v8335_v37 = vrot.slane %v8334_v36, 4  ;;  %v8392_v45 = vrot.slane %v8391_v17, 4 }
 0x83a   : > { %v8447_v11 = vsel %vm396_vm7, %v8161_v25, -inf  ;;  %v8503_v46 = vsel %vm8248_vm9, %v8161_v25, -inf  ;;  %v8559_v63 = vsel %vm8305_vm10, %v8161_v25, -inf  ;;  %v8615_v41 = vsel %vm8362_vm11, %v8161_v25, -inf }
 0x83b   : > { %v8222_v54 = vmax.f32 %v8220_v30, %v8221_v26  ;;  %v8279_v0 = vmax.f32 %v8277_v43, %v8278_v29  ;;  %v8336_v20 = vmax.f32 %v8334_v36, %v8335_v37  ;;  %v8393_v57 = vmax.f32 %v8391_v17, %v8392_v45 }
 0x83c   : > { %v8448_v21 = vrot.slane %v8447_v11, 4  ;;  %v8504_v59 = vrot.slane %v8503_v46, 4  ;;  %v8560_v1 = vrot.slane %v8559_v63, 4  ;;  %v8616_v50 = vrot.slane %v8615_v41, 4 }
 0x83d   : > { %v8223_v34 = vrot.slane %v8222_v54, 2  ;;  %v8280_v52 = vrot.slane %v8279_v0, 2  ;;  %v8337_v58 = vrot.slane %v8336_v20, 2  ;;  %v8394_v16 = vrot.slane %v8393_v57, 2 }
 0x83e   : > { %v8449_v38 = vmax.f32 %v8447_v11, %v8448_v21  ;;  %v8505_v32 = vmax.f32 %v8503_v46, %v8504_v59  ;;  %v8561_v49 = vmax.f32 %v8559_v63, %v8560_v1  ;;  %v8617_v53 = vmax.f32 %v8615_v41, %v8616_v50 }
 0x83f   : > { %v8224_v12 = vmax.f32 %v8222_v54, %v8223_v34  ;;  %v8281_v4 = vmax.f32 %v8279_v0, %v8280_v52  ;;  %v8338_v35 = vmax.f32 %v8336_v20, %v8337_v58  ;;  %v8395_v48 = vmax.f32 %v8393_v57, %v8394_v16 }
 0x840   : > { %v8450_v44 = vrot.slane %v8449_v38, 2  ;;  %v8506_v23 = vrot.slane %v8505_v32, 2  ;;  %v8562_v60 = vrot.slane %v8561_v49, 2  ;;  %v8618_v24 = vrot.slane %v8617_v53, 2 }
 0x841   : > { %v8225_v56 = vrot.slane %v8224_v12, 1  ;;  %v8282_v5 = vrot.slane %v8281_v4, 1  ;;  %v8339_v8 = vrot.slane %v8338_v35, 1  ;;  %v8396_v28 = vrot.slane %v8395_v48, 1 }
 0x842   : > { %v8451_v55 = vmax.f32 %v8449_v38, %v8450_v44  ;;  %v8507_v18 = vmax.f32 %v8505_v32, %v8506_v23  ;;  %v8563_v42 = vmax.f32 %v8561_v49, %v8562_v60  ;;  %v8619_v19 = vmax.f32 %v8617_v53, %v8618_v24  ;;  %v16359_v23 = vld [vmem:[%s16716_s5 + $0x10] sm:$0xff]  }
 0x843   : > { %v8226_v25 = vmax.f32 %v8224_v12, %v8225_v56  ;;  %v8283_v30 = vmax.f32 %v8281_v4, %v8282_v5  ;;  %v8340_v43 = vmax.f32 %v8338_v35, %v8339_v8  ;;  %v8397_v36 = vmax.f32 %v8395_v48, %v8396_v28  ;;  %v16348_v12 = vld [vmem:[#allocation3 + $0x21] sm:$0xff]  ;;  %v16365_v5 = vld [vmem:[%s16715_s4] ss:$0 sm:$0xff] }
 0x844   : > { %v8452_v17 = vrot.slane %v8451_v55, 1  ;;  %v8508_v26 = vrot.slane %v8507_v18, 1  ;;  %v8564_v29 = vrot.slane %v8563_v42, 1  ;;  %v8620_v37 = vrot.slane %v8619_v19, 1 }
 0x845   : > { %v8647_v45 = vsel %vm667_vm0, %v8226_v25, %v8283_v30  ;;  %v8166_v11 = vmax.f32 %v8164_v10, %v8165_v14  ;;  %v8170_v46 = vsel %vm394_vm6, %v8099_v31, -inf  ;;  %v8097_v63 = vmax.f32 %v16323_v22, 0.0  ;;  %v16342_v31 = vld [vmem:[#allocation3 + $0x31] sm:$0xff] }
 0x846   : > { %v8656_v41 = vsel %vm8651_vm12, %v8647_v45, %v8340_v43  ;;  %v8453_v54 = vmax.f32 %v8451_v55, %v8452_v17  ;;  %v8509_v0 = vmax.f32 %v8507_v18, %v8508_v26  ;;  %v8565_v20 = vmax.f32 %v8563_v42, %v8564_v29 }
 0x847   : > { %v8665_v57 = vsel %vm8660_vm13, %v8656_v41, %v8397_v36  ;;  %v8621_v21 = vmax.f32 %v8619_v19, %v8620_v37  ;;  %v8227_v59 = vsel %vm396_vm7, %v8166_v11, -inf  ;;  %v8284_v1 = vsel %vm8248_vm9, %v8166_v11, -inf }
 0x848   : > { %v8673_v50 = vsel %vm4525_vm5, %v8665_v57, %v8453_v54  ;;  %v8228_v34 = vrot.slane %v8227_v59, 4  ;;  %v8285_v14 = vrot.slane %v8284_v1, 4  ;;  %v8341_v10 = vsel %vm8305_vm10, %v8166_v11, -inf }
 0x849   : > { %v8682_v22 = vsel %vm8677_vm14, %v8673_v50, %v8509_v0  ;;  %v8342_v52 = vrot.slane %v8341_v10, 4  ;;  %v8398_v58 = vsel %vm8362_vm11, %v8166_v11, -inf  ;;  %v8168_v16 = vsel %vm394_vm6, %v8097_v63, -inf }
 0x84a   : > { %v8691_v38 = vsel %vm8686_vm15, %v8682_v22, %v8565_v20  ;;  %v8229_v32 = vmax.f32 %v8227_v59, %v8228_v34  ;;  %v8286_v49 = vmax.f32 %v8284_v1, %v8285_v14  ;;  %v8399_v53 = vrot.slane %v8398_v58, 4 }
 0x84b   : > { %v8700_v4 = vsel %vm8695_vm1, %v8691_v38, %v8621_v21  ;;  %v8343_v35 = vmax.f32 %v8341_v10, %v8342_v52  ;;  %v8169_v48 = vmax.f32 %v16309_v61, %v8168_v16  ;;  %v16354_v44 = vpack.c.bf16 %v16342_v31, %v16348_v12 }
 0x84c   : > { %8709 = vst.msk [vmem:[#allocation3 + $0x51] sm:$0xff] %vm394_vm6, %v8700_v4  ;;  %v8230_v60 = vrot.slane %v8229_v32, 2  ;;  %v8287_v24 = vrot.slane %v8286_v49, 2  ;;  %v8400_v56 = vmax.f32 %v8398_v58, %v8399_v53  ;;  %v8054_v61 = vadd.f32 %v16365_v5, %v16210_v13 }
 0x84d   : > { %v8344_v8 = vrot.slane %v8343_v35, 2  ;;  %v8171_v28 = vmax.f32 %v8169_v48, %v8170_v46  ;;  %13120 = vmatmul.mubr.msk.bf16.vlgmr.msra.gmra.mrb[48].mxu0 %vm394_vm6, %v16354_v44  ;;  %v8052_v55 = vadd.f32 %v16365_v5, %v16213_v7  ;;  %v8055_v18 = vadd.f32 %v16365_v5, %v16217_v33 }
 0x84e   : > { %v8231_v42 = vmax.f32 %v8229_v32, %v8230_v60  ;;  %v8288_v19 = vmax.f32 %v8286_v49, %v8287_v24  ;;  %v8401_v25 = vrot.slane %v8400_v56, 2  ;;  %v8102_v30 = vmax.f32 %v8054_v61, 0.0  ;;  %13128 = vmatpush3.bf16.msra.mxu0 %v16182_v47 }
 0x84f   : > { %v8345_v43 = vmax.f32 %v8343_v35, %v8344_v8  ;;  %v8454_v13 = vsel %vm396_vm7, %v8171_v28, -inf  ;;  %v8510_v36 = vsel %vm8248_vm9, %v8171_v28, -inf  ;;  %v8566_v17 = vsel %vm8305_vm10, %v8171_v28, -inf  ;;  %13137 = vmatprep.subr.bf16.mxu0 %v16359_v23 }
 0x850   : > { %v8232_v26 = vrot.slane %v8231_v42, 1  ;;  %v8289_v7 = vrot.slane %v8288_v19, 1  ;;  %v8402_v29 = vmax.f32 %v8400_v56, %v8401_v25  ;;  %v8455_v37 = vrot.slane %v8454_v13, 4 }
 0x851   : > { %v8346_v33 = vrot.slane %v8345_v43, 1  ;;  %v8511_v45 = vrot.slane %v8510_v36, 4  ;;  %v8567_v11 = vrot.slane %v8566_v17, 4  ;;  %v8622_v46 = vsel %vm8362_vm11, %v8171_v28, -inf }
 0x852   : > { %v8233_v63 = vmax.f32 %v8231_v42, %v8232_v26  ;;  %v8290_v47 = vmax.f32 %v8288_v19, %v8289_v7  ;;  %v8403_v41 = vrot.slane %v8402_v29, 1  ;;  %v8456_v54 = vmax.f32 %v8454_v13, %v8455_v37 }
 0x853   : > { %v8347_v0 = vmax.f32 %v8345_v43, %v8346_v33  ;;  %v8512_v20 = vmax.f32 %v8510_v36, %v8511_v45  ;;  %v8568_v57 = vmax.f32 %v8566_v17, %v8567_v11  ;;  %v8623_v21 = vrot.slane %v8622_v46, 4 }
 0x854   : > { %v8404_v59 = vmax.f32 %v8402_v29, %v8403_v41  ;;  %v8648_v1 = vsel %vm667_vm0, %v8233_v63, %v8290_v47  ;;  %v8457_v50 = vrot.slane %v8456_v54, 2  ;;  %v8173_v34 = vsel %vm394_vm6, %v8102_v30, -inf }
 0x855   : > { %v8657_v14 = vsel %vm8651_vm12, %v8648_v1, %v8347_v0  ;;  %v8513_v10 = vrot.slane %v8512_v20, 2  ;;  %v8569_v22 = vrot.slane %v8568_v57, 2  ;;  %v8624_v52 = vmax.f32 %v8622_v46, %v8623_v21 }
 0x856   : > { %v8666_v58 = vsel %vm8660_vm13, %v8657_v14, %v8404_v59  ;;  %v8458_v16 = vmax.f32 %v8456_v54, %v8457_v50  ;;  %v8100_v38 = vmax.f32 %v8052_v55, 0.0  ;;  %v8103_v32 = vmax.f32 %v8055_v18, 0.0 }
 0x857   : > { %v8514_v49 = vmax.f32 %v8512_v20, %v8513_v10  ;;  %v8570_v53 = vmax.f32 %v8568_v57, %v8569_v22  ;;  %v8625_v4 = vrot.slane %v8624_v52, 2  ;;  %v8053_v35 = vadd.f32 %v16365_v5, %v16222_v6 }
 0x858   : > { %v8459_v48 = vrot.slane %v8458_v16, 1  ;;  %v8172_v60 = vsel %vm394_vm6, %v8100_v38, -inf  ;;  %v8178_v24 = vsel %vm394_vm6, %v8103_v32, -inf  ;;  %v8058_v56 = vadd.f32 %v16365_v5, %v16248_v39 }
 0x859   : > { %v8515_v61 = vrot.slane %v8514_v49, 1  ;;  %v8571_v8 = vrot.slane %v8570_v53, 1  ;;  %v8626_v28 = vmax.f32 %v8624_v52, %v8625_v4  ;;  %v8174_v42 = vmax.f32 %v8172_v60, %v8173_v34 }
 0x85a   : > { %v8460_v55 = vmax.f32 %v8458_v16, %v8459_v48  ;;  %v8101_v18 = vmax.f32 %v8053_v35, 0.0  ;;  %v8106_v19 = vmax.f32 %v8058_v56, 0.0  ;;  %v8056_v25 = vadd.f32 %v16365_v5, %v16255_v3 }
 0x85b   : > { %v8516_v30 = vmax.f32 %v8514_v49, %v8515_v61  ;;  %v8627_v6 = vrot.slane %v8626_v28, 1  ;;  %v8059_v43 = vadd.f32 %v16365_v5, %v16257_v9  ;;  %v8572_v13 = vmax.f32 %v8570_v53, %v8571_v8 }
 0x85c   : > { %v8674_v36 = vsel %vm4525_vm5, %v8666_v58, %v8460_v55  ;;  %v8177_v39 = vsel %vm394_vm6, %v8101_v18, -inf  ;;  %v8104_v17 = vmax.f32 %v8056_v25, 0.0  ;;  %v16399_v37 = vsel %vm394_vm6, %v8106_v19, -inf }
 0x85d   : > { %v8628_v26 = vmax.f32 %v8626_v28, %v8627_v6  ;;  %v8683_v7 = vsel %vm8677_vm14, %v8674_v36, %v8516_v30  ;;  %v8179_v29 = vmax.f32 %v8177_v39, %v8178_v24  ;;  %v8057_v9 = vadd.f32 %v16365_v5, %v16266_v2 }
 0x85e   : > { %v8692_v3 = vsel %vm8686_vm15, %v8683_v7, %v8572_v13  ;;  %v8175_v33 = vsel %vm394_vm6, %v8104_v17, -inf  ;;  %v8062_v45 = vadd.f32 %v16365_v5, %v16272_v40  ;;  %v8107_v63 = vmax.f32 %v8059_v43, 0.0  ;;  %v16432_v7 = vld [vmem:[#allocation3 + $0x51] sm:$0xff] }
 0x85f   : > { %v8701_v11 = vsel %vm8695_vm1, %v8692_v3, %v8628_v26  ;;  %v8176_v46 = vmax.f32 %v8174_v42, %v8175_v33  ;;  %v8060_v47 = vadd.f32 %v16365_v5, %v16274_v27  ;;  %v8105_v41 = vmax.f32 %v8057_v9, 0.0 }
 0x860   : > { %8710 = vst.msk [vmem:[#allocation3 + $0x61] sm:$0xff] %vm394_vm6, %v8701_v11  ;;  %v8110_v54 = vmax.f32 %v8062_v45, 0.0  ;;  %v16413_v0 = vadd.f32 %v16365_v5, %v16276_v15  ;;  %v8061_v2 = vadd.f32 %v16365_v5, %v16278_v62  ;;  %v16422_v34 = vsel %vm394_vm6, %v8107_v63, -inf }
 0x861   : > { %v8234_v40 = vsel %vm396_vm7, %v8176_v46, -inf  ;;  %v8291_v20 = vsel %vm8248_vm9, %v8176_v46, -inf  ;;  %v8348_v57 = vsel %vm8305_vm10, %v8176_v46, -inf  ;;  %v8405_v21 = vsel %vm8362_vm11, %v8176_v46, -inf }
 0x862   : > { %v8235_v27 = vrot.slane %v8234_v40, 4  ;;  %v8292_v59 = vrot.slane %v8291_v20, 4  ;;  %v8349_v1 = vrot.slane %v8348_v57, 4  ;;  %v8406_v50 = vrot.slane %v8405_v21, 4 }
 0x863   : > { %v8180_v15 = vsel %vm394_vm6, %v8105_v41, -inf  ;;  %v8185_v14 = vsel %vm394_vm6, %v8110_v54, -inf  ;;  %v8108_v62 = vmax.f32 %v8060_v47, 0.0  ;;  %v8111_v38 = vmax.f32 %v16413_v0, 0.0  ;;  %v16434_v47 = vld [vmem:[#allocation3 + $0x41] sm:$0xff] }
 0x864   : > { %v8236_v5 = vmax.f32 %v8234_v40, %v8235_v27  ;;  %v8293_v10 = vmax.f32 %v8291_v20, %v8292_v59  ;;  %v8350_v22 = vmax.f32 %v8348_v57, %v8349_v1  ;;  %v8407_v52 = vmax.f32 %v8405_v21, %v8406_v50 }
 0x865   : > { %v8181_v58 = vmax.f32 %v8179_v29, %v8180_v15  ;;  %v8183_v16 = vsel %vm394_vm6, %v8108_v62, -inf  ;;  %v8109_v32 = vmax.f32 %v8061_v2, 0.0  ;;  %v16441_v2 = vpack.c.bf16 %v16432_v7, %v16434_v47 }
 0x866   : > { %v8237_v49 = vrot.slane %v8236_v5, 2  ;;  %v8294_v53 = vrot.slane %v8293_v10, 2  ;;  %v8351_v4 = vrot.slane %v8350_v22, 2  ;;  %v8408_v35 = vrot.slane %v8407_v52, 2 }
 0x867   : > { %v8461_v48 = vsel %vm396_vm7, %v8181_v58, -inf  ;;  %v8517_v60 = vsel %vm8248_vm9, %v8181_v58, -inf  ;;  %v8573_v24 = vsel %vm8305_vm10, %v8181_v58, -inf  ;;  %v8629_v56 = vsel %vm8362_vm11, %v8181_v58, -inf  ;;  %13123 = vmatprep.mubr.msk.bf16.mxu0 %vm394_vm6, %v16441_v2 }
 0x868   : > { %v8238_v61 = vmax.f32 %v8236_v5, %v8237_v49  ;;  %v8295_v8 = vmax.f32 %v8293_v10, %v8294_v53  ;;  %v8352_v28 = vmax.f32 %v8350_v22, %v8351_v4  ;;  %v8409_v42 = vmax.f32 %v8407_v52, %v8408_v35 }
 0x869   : > { %v8462_v55 = vrot.slane %v8461_v48, 4  ;;  %v8518_v18 = vrot.slane %v8517_v60, 4  ;;  %v8574_v19 = vrot.slane %v8573_v24, 4  ;;  %v8630_v25 = vrot.slane %v8629_v56, 4 }
 0x86a   : > { %v8239_v30 = vrot.slane %v8238_v61, 1  ;;  %v8296_v6 = vrot.slane %v8295_v8, 1  ;;  %v8353_v43 = vrot.slane %v8352_v28, 1  ;;  %v8410_v13 = vrot.slane %v8409_v42, 1 }
 0x86b   : > { %v8463_v36 = vmax.f32 %v8461_v48, %v8462_v55  ;;  %v8519_v39 = vmax.f32 %v8517_v60, %v8518_v18  ;;  %v8575_v17 = vmax.f32 %v8573_v24, %v8574_v19  ;;  %v8631_v26 = vmax.f32 %v8629_v56, %v8630_v25 }
 0x86c   : > { %v8240_v29 = vmax.f32 %v8238_v61, %v8239_v30  ;;  %v8297_v3 = vmax.f32 %v8295_v8, %v8296_v6  ;;  %v8354_v33 = vmax.f32 %v8352_v28, %v8353_v43  ;;  %v8411_v9 = vmax.f32 %v8409_v42, %v8410_v13 }
 0x86d   : > { %v8464_v45 = vrot.slane %v8463_v36, 2  ;;  %v8520_v11 = vrot.slane %v8519_v39, 2  ;;  %v8576_v46 = vrot.slane %v8575_v17, 2  ;;  %v8632_v63 = vrot.slane %v8631_v26, 2 }
 0x86e   : > { %v8649_v41 = vsel %vm667_vm0, %v8240_v29, %v8297_v3  ;;  %v8184_v54 = vmax.f32 %v16399_v37, %v8183_v16  ;;  %v8188_v0 = vsel %vm394_vm6, %v8109_v32, -inf }
 0x86f   : > { %v8658_v40 = vsel %vm8651_vm12, %v8649_v41, %v8354_v33  ;;  %v8465_v20 = vmax.f32 %v8463_v36, %v8464_v45  ;;  %v8521_v57 = vmax.f32 %v8519_v39, %v8520_v11  ;;  %v8577_v21 = vmax.f32 %v8575_v17, %v8576_v46 }
 0x870   : > { %v8633_v27 = vmax.f32 %v8631_v26, %v8632_v63  ;;  %v8186_v59 = vmax.f32 %v8184_v54, %v8185_v14  ;;  %v8189_v1 = vmax.f32 %v16422_v34, %v8188_v0  ;;  %v8667_v37 = vsel %vm8660_vm13, %v8658_v40, %v8411_v9 }
 0x871   : > { %v8466_v50 = vrot.slane %v8465_v20, 1  ;;  %v8522_v15 = vrot.slane %v8521_v57, 1  ;;  %v8578_v62 = vrot.slane %v8577_v21, 1  ;;  %v8190_v34 = vsel %vm394_vm6, %v8111_v38, -inf }
 0x872   : > { %v8634_v5 = vrot.slane %v8633_v27, 1  ;;  %v8241_v10 = vsel %vm396_vm7, %v8186_v59, -inf  ;;  %v8298_v22 = vsel %vm8248_vm9, %v8186_v59, -inf  ;;  %v8355_v52 = vsel %vm8305_vm10, %v8186_v59, -inf }
 0x873   : > { %v8467_v58 = vmax.f32 %v8465_v20, %v8466_v50  ;;  %v8523_v16 = vmax.f32 %v8521_v57, %v8522_v15  ;;  %v8242_v14 = vrot.slane %v8241_v10, 4  ;;  %v8579_v32 = vmax.f32 %v8577_v21, %v8578_v62  ;;  %v8713_v15 = vld [vmem:[#allocation3] sm:$0xff]  ;;  %v16462_v62 = vld [vmem:[#allocation3 + $0x10] sm:$0xff] }
 0x874   : > { %v8299_v49 = vrot.slane %v8298_v22, 4  ;;  %v8356_v53 = vrot.slane %v8355_v52, 4  ;;  %v8412_v4 = vsel %vm8362_vm11, %v8186_v59, -inf  ;;  %v8191_v24 = vmax.f32 %v8189_v1, %v8190_v34 }
 0x875   : > { %v8675_v35 = vsel %vm4525_vm5, %v8667_v37, %v8467_v58  ;;  %v8243_v48 = vmax.f32 %v8241_v10, %v8242_v14  ;;  %v8413_v60 = vrot.slane %v8412_v4, 4  ;;  %v8635_v56 = vmax.f32 %v8633_v27, %v8634_v5  ;;  %v16465_v58 = vld [vmem:[#allocation3 + $0x61] sm:$0xff] }
 0x876   : > { %v8684_v61 = vsel %vm8677_vm14, %v8675_v35, %v8523_v16  ;;  %v8300_v8 = vmax.f32 %v8298_v22, %v8299_v49  ;;  %v8357_v28 = vmax.f32 %v8355_v52, %v8356_v53  ;;  %v8468_v38 = vsel %vm396_vm7, %v8191_v24, -inf }
 0x877   : > { %v8693_v42 = vsel %vm8686_vm15, %v8684_v61, %v8579_v32  ;;  %v8244_v55 = vrot.slane %v8243_v48, 2  ;;  %v8414_v18 = vmax.f32 %v8412_v4, %v8413_v60  ;;  %v8469_v6 = vrot.slane %v8468_v38, 4 }
 0x878   : > { %v8702_v19 = vsel %vm8695_vm1, %v8693_v42, %v8635_v56  ;;  %v8301_v25 = vrot.slane %v8300_v8, 2  ;;  %v8358_v30 = vrot.slane %v8357_v28, 2  ;;  %v8524_v36 = vsel %vm8248_vm9, %v8191_v24, -inf  ;;  %v14225_v56 = vld [vmem:[%s16718_s7 + $0x8] sm:$0xff]  }
 0x879   : > { %8711 = vst.msk [vmem:[#allocation3 + $0x71] sm:$0xff] %vm394_vm6, %v8702_v19  ;;  %v8245_v43 = vmax.f32 %v8243_v48, %v8244_v55  ;;  %v8415_v13 = vrot.slane %v8414_v18, 2  ;;  %v8580_v39 = vsel %vm8305_vm10, %v8191_v24, -inf  ;;  %v8470_v29 = vmax.f32 %v8468_v38, %v8469_v6  ;;  %13207 = vmatprep.subr.bf16.mxu1 %v14225_v56  ;;  %v8715_v6 = vld [vmem:[#allocation3 + $0x20] sm:$0xff] }
 0x87a   : > { %v8302_v17 = vmax.f32 %v8300_v8, %v8301_v25  ;;  %v8359_v26 = vmax.f32 %v8357_v28, %v8358_v30  ;;  %v8525_v3 = vrot.slane %v8524_v36, 4  ;;  %v8581_v45 = vrot.slane %v8580_v39, 4  ;;  %13208 = vmatpush3.bf16.msra.mxu1 %v14225_v56  ;;  %v8718_v30 = vld [vmem:[#allocation3 + $0x50] sm:$0xff] }
 0x87b   : > { %v8246_v33 = vrot.slane %v8245_v43, 1  ;;  %v8416_v9 = vmax.f32 %v8414_v18, %v8415_v13  ;;  %v8636_v11 = vsel %vm8362_vm11, %v8191_v24, -inf  ;;  %v8471_v41 = vrot.slane %v8470_v29, 2  ;;  %v8716_v18 = vld [vmem:[#allocation3 + $0x30] sm:$0xff] }
 0x87c   : > { %v8303_v46 = vrot.slane %v8302_v17, 1  ;;  %v8360_v63 = vrot.slane %v8359_v26, 1  ;;  %v8526_v54 = vmax.f32 %v8524_v36, %v8525_v3  ;;  %v8582_v20 = vmax.f32 %v8580_v39, %v8581_v45  ;;  %v8717_v36 = vld [vmem:[#allocation3 + $0x40] sm:$0xff]  ;;  %v14219_v39 = vld [vmem:[%s16716_s5 + $0x18] sm:$0xff]   ;;  %v8913_v45 = vld [vmem:[#allocation3 + $0x52] sm:$0xff] }
 0x87d   : > { %v8247_v0 = vmax.f32 %v8245_v43, %v8246_v33  ;;  %v8417_v40 = vrot.slane %v8416_v9, 1  ;;  %v8637_v57 = vrot.slane %v8636_v11, 4  ;;  %v8472_v59 = vmax.f32 %v8470_v29, %v8471_v41  ;;  %v8719_v29 = vld [vmem:[#allocation3 + $0x60] sm:$0xff] }
 0x87e   : > { %v8304_v21 = vmax.f32 %v8302_v17, %v8303_v46  ;;  %v8361_v27 = vmax.f32 %v8359_v26, %v8360_v63  ;;  %v8527_v1 = vrot.slane %v8526_v54, 2  ;;  %v8583_v37 = vrot.slane %v8582_v20, 2  ;;  %v8909_v26 = vld [vmem:[#allocation3 + $0x12] sm:$0xff] }
 0x87f   : > { %v8638_v50 = vmax.f32 %v8636_v11, %v8637_v57  ;;  %v8418_v5 = vmax.f32 %v8416_v9, %v8417_v40  ;;  %v8473_v22 = vrot.slane %v8472_v59, 1  ;;  %v8721_v48 = vpack.c.bf16 %v16462_v62, %v8713_v15  ;;  %v8911_v9 = vld [vmem:[#allocation3 + $0x32] sm:$0xff]  ;;  %v8910_v11 = vld [vmem:[#allocation3 + $0x22] sm:$0xff] }
 0x880   : > { %v8650_v10 = vsel %vm667_vm0, %v8247_v0, %v8304_v21  ;;  %v8528_v52 = vmax.f32 %v8526_v54, %v8527_v1  ;;  %v16467_v16 = vld [vmem:[#allocation3 + $0x71] sm:$0xff]  ;;  %v8584_v34 = vmax.f32 %v8582_v20, %v8583_v37  ;;  %v9129_v38 = vpack.c.bf16 %v16434_v47, %v16342_v31  ;;  %v8908_v47 = vld [vmem:[#allocation3 + $0x2] sm:$0xff] }
 0x881   : > { %v8659_v14 = vsel %vm8651_vm12, %v8650_v10, %v8361_v27  ;;  %v8639_v32 = vrot.slane %v8638_v50, 2  ;;  %v16472_v49 = vpack.c.bf16 %v16467_v16, %v16465_v58  ;;  %v8474_v4 = vmax.f32 %v8472_v59, %v8473_v22  ;;  %v8720_v31 = vld [vmem:[#allocation3 + $0x70] sm:$0xff]  ;;  %v8914_v0 = vld [vmem:[#allocation3 + $0x62] sm:$0xff]  ;;  %v14221_v21 = vld [vmem:[%s16716_s5 + $0x28] sm:$0xff]  }
 0x882   : > { %v8668_v53 = vsel %vm8660_vm13, %v8659_v14, %v8418_v5  ;;  %v8529_v35 = vrot.slane %v8528_v52, 1  ;;  %v8585_v60 = vrot.slane %v8584_v34, 1  ;;  %v16488_v13 = vpack.c.bf16 %v8716_v18, %v8715_v6  ;;  %v14220_v63 = vld [vmem:[%s16716_s5 + $0x20] sm:$0xff]   ;;  %v14223_v10 = vld [vmem:[%s16716_s5 + $0x38] sm:$0xff]  }
 0x883   : > { %v8640_v24 = vmax.f32 %v8638_v50, %v8639_v32  ;;  %13124 = vmatmul.mubr.msk.bf16.gmra.mrb[52].mxu0 %vm394_vm6, %v16472_v49  ;;  %v8676_v8 = vsel %vm4525_vm5, %v8668_v53, %v8474_v4  ;;  %v16494_v17 = vpack.c.bf16 %v8718_v30, %v8717_v36  ;;  %v8724_v3 = vpack.c.bf16 %v8720_v31, %v8719_v29  ;;  %v8915_v54 = vld [vmem:[#allocation3 + $0x72] sm:$0xff]  ;;  %v14222_v50 = vld [vmem:[%s16716_s5 + $0x30] sm:$0xff]  }
 0x884   : > { %v8530_v61 = vmax.f32 %v8528_v52, %v8529_v35  ;;  %13129 = vmatprep.mubr.msk.bf16.mxu0 %vm394_vm6, %v8721_v48  ;;  %v8586_v28 = vmax.f32 %v8584_v34, %v8585_v60  ;;  %v8916_v33 = vpack.c.bf16 %v8909_v26, %v8908_v47  ;;  %v16503_v46 = vpack.c.bf16 %v8911_v9, %v8910_v11  ;;  %v9446_v34 = vld [vmem:[#allocation3 + $0x91] sm:$0xff] }
 0x885   : > { %v8641_v42 = vrot.slane %v8640_v24, 1  ;;  %v8919_v40 = vpack.c.bf16 %v8915_v54, %v8914_v0  ;;  %v9022_v20 = vpack.c.bf16 %v8715_v6, %v16462_v62  ;;  %v9023_v57 = vpack.c.bf16 %v8717_v36, %v8716_v18  ;;  %v9552_v53 = vld [vmem:[#allocation3 + $0x92] sm:$0xff] }
 0x886   : > { %v8685_v55 = vsel %vm8677_vm14, %v8676_v8, %v8530_v61  ;;  %v9024_v27 = vpack.c.bf16 %v8719_v29, %v8718_v30  ;;  %v9128_v37 = vpack.c.bf16 %v16348_v12, %v16215_v51  ;;  %v9130_v15 = vpack.c.bf16 %v16465_v58, %v16432_v7  ;;  %v14224_v58 = vld [vmem:[%s16716_s5 + $0x40] sm:$0xff]  }
 0x887   : > { %v8642_v19 = vmax.f32 %v8640_v24, %v8641_v42  ;;  %v8694_v25 = vsel %vm8686_vm15, %v8685_v55, %v8586_v28  ;;  %v9234_v12 = vpack.c.bf16 %v8910_v11, %v8909_v26  ;;  %v9236_v7 = vpack.c.bf16 %v8914_v0, %v8913_v45  ;;  %v14227_v11 = vld [vmem:[%s16718_s7 + $0x10] sm:$0xff]  }
 0x888   : > { %vm10644_vm0 = vcmask 261120   ;;  %vm10659_vm5 = vcmask 254976   ;;  %vm10748_vm7 = vcmask 785408  }
 0x889   : > { %v8703_v43 = vsel %vm8695_vm1, %v8694_v25, %v8642_v19 }
 0x88a   : > { %8712 = vst.msk [vmem:[#allocation3 + $0x81] sm:$0xff] %vm394_vm6, %v8703_v43 }
 0x88b   : > { %13130 = vmatmul.mubr.msk.bf16.vlgmr.msra.gmra.mrb[48].mxu0 %vm394_vm6, %v16488_v13 }
 0x88c   : > { %13138 = vmatpush3.bf16.msra.mxu0 %v16359_v23  ;;  %13133 = vmatprep.mubr.msk.bf16.mxu0 %vm394_vm6, %v16494_v17  ;;  %v8912_v23 = vld [vmem:[#allocation3 + $0x42] sm:$0xff] }
 0x88d   : > { %13147 = vmatprep.subr.bf16.mxu0 %v14219_v39  ;;  %v8918_v41 = vpack.c.bf16 %v8913_v45, %v8912_v23  ;;  %v9235_v5 = vpack.c.bf16 %v8912_v23, %v8911_v9 }
 0x891   : > { %v9021_v59 = vld [vmem:[#allocation3 + $0x80] sm:$0xff] }
 0x892   : > { %v9025_v1 = vpack.c.bf16 %v9021_v59, %v8720_v31  ;;  %v9127_v62 = vld [vmem:[#allocation3 + $0x81] sm:$0xff] }
 0x893   : > { %13134 = vmatmul.mubr.msk.bf16.gmra.mrb[52].mxu0 %vm394_vm6, %v8724_v3  ;;  %v9131_v51 = vpack.c.bf16 %v9127_v62, %v16467_v16  ;;  %v9233_v22 = vld [vmem:[#allocation3 + $0x82] sm:$0xff]  ;;  %v9340_v16 = vld [vmem:[#allocation3 + $0x90] sm:$0xff]  ;;  %v9450_v32 = vpack.c.bf16 %v9446_v34, %v9127_v62 }
 0x894   : > { %13139 = vmatprep.mubr.msk.bf16.mxu0 %vm394_vm6, %v8916_v33  ;;  %v9237_v52 = vpack.c.bf16 %v9233_v22, %v8915_v54  ;;  %v9344_v14 = vpack.c.bf16 %v9340_v16, %v9021_v59  ;;  %v14229_v34 = vld [vmem:[%s16718_s7 + $0x20] sm:$0xff]  }
 0x89b   : > { %13140 = vmatmul.mubr.msk.bf16.vlgmr.msra.gmra.mrb[48].mxu0 %vm394_vm6, %v16503_v46 }
 0x89c   : > { %13148 = vmatpush3.bf16.msra.mxu0 %v14219_v39  ;;  %13143 = vmatprep.mubr.msk.bf16.mxu0 %vm394_vm6, %v8918_v41  ;;  %v9697_v39 = vld [vmem:[#allocation4 + $0x1] sm:$0xff] }
 0x89d   : > { %13157 = vmatprep.subr.bf16.mxu0 %v14220_v63 }
 0x8a3   : > { %13144 = vmatmul.mubr.msk.bf16.gmra.mrb[52].mxu0 %vm394_vm6, %v8919_v40 }
 0x8a4   : > { %13149 = vmatprep.mubr.msk.bf16.mxu0 %vm394_vm6, %v9022_v20 }
 0x8ab   : > { %13150 = vmatmul.mubr.msk.bf16.vlgmr.msra.gmra.mrb[48].mxu0 %vm394_vm6, %v9023_v57 }
 0x8ac   : > { %13158 = vmatpush3.bf16.msra.mxu0 %v14220_v63  ;;  %13153 = vmatprep.mubr.msk.bf16.mxu0 %vm394_vm6, %v9024_v27 }
 0x8ad   : > { %13167 = vmatprep.subr.bf16.mxu0 %v14221_v21 }
 0x8b3   : > { %13154 = vmatmul.mubr.msk.bf16.gmra.mrb[52].mxu0 %vm394_vm6, %v9025_v1 }
 0x8b4   : > { %13159 = vmatprep.mubr.msk.bf16.mxu0 %vm394_vm6, %v9128_v37 }
 0x8bb   : > { %13160 = vmatmul.mubr.msk.bf16.vlgmr.msra.gmra.mrb[48].mxu0 %vm394_vm6, %v9129_v38 }
 0x8bc   : > { %13168 = vmatpush3.bf16.msra.mxu0 %v14221_v21  ;;  %13163 = vmatprep.mubr.msk.bf16.mxu0 %vm394_vm6, %v9130_v15 }
 0x8bd   : > { %13177 = vmatprep.subr.bf16.mxu0 %v14222_v50 }
 0x8c3   : > { %13164 = vmatmul.mubr.msk.bf16.gmra.mrb[52].mxu0 %vm394_vm6, %v9131_v51  ;;  %v9878_v51 = vld [vmem:[#allocation4 + $0x2] sm:$0xff] }
 0x8c4   : > { %13169 = vmatprep.mubr.msk.bf16.mxu0 %vm394_vm6, %v9234_v12 }
 0x8cb   : > { %13170 = vmatmul.mubr.msk.bf16.vlgmr.msra.gmra.mrb[48].mxu0 %vm394_vm6, %v9235_v5 }
 0x8cc   : > { %13178 = vmatpush3.bf16.msra.mxu0 %v14222_v50  ;;  %13173 = vmatprep.mubr.msk.bf16.mxu0 %vm394_vm6, %v9236_v7  ;;  %v14228_v50 = vld [vmem:[%s16718_s7 + $0x18] sm:$0xff]  }
 0x8cd   : > { %13187 = vmatprep.subr.bf16.mxu0 %v14223_v10 }
 0x8d3   : > { %13174 = vmatmul.mubr.msk.bf16.gmra.mrb[52].mxu0 %vm394_vm6, %v9237_v52 }
 0x8d4   : > { %13179 = vmatprep.mubr.msk.bf16.mxu0 %vm394_vm6, %v16488_v13 }
 0x8db   : > { %13180 = vmatmul.mubr.msk.bf16.vlgmr.msra.gmra.mrb[48].mxu0 %vm394_vm6, %v16494_v17 }
 0x8dc   : > { %13188 = vmatpush3.bf16.msra.mxu0 %v14223_v10  ;;  %13183 = vmatprep.mubr.msk.bf16.mxu0 %vm394_vm6, %v8724_v3 }
 0x8dd   : > { %13197 = vmatprep.subr.bf16.mxu0 %v14224_v58 }
 0x8e3   : > { %13184 = vmatmul.mubr.msk.bf16.gmra.mrb[52].mxu0 %vm394_vm6, %v9344_v14 }
 0x8e4   : > { %13189 = vmatprep.mubr.msk.bf16.mxu0 %vm394_vm6, %v16354_v44  ;;  %v9556_v44 = vpack.c.bf16 %v9552_v53, %v9233_v22 }
 0x8eb   : > { %13190 = vmatmul.mubr.msk.bf16.vlgmr.msra.gmra.mrb[48].mxu0 %vm394_vm6, %v16441_v2  ;;  %v14226_v2 = vld [vmem:[%s16718_s7] sm:$0xff]  }
 0x8ec   : > { %13198 = vmatpush3.bf16.msra.mxu0 %v14224_v58  ;;  %13193 = vmatprep.mubr.msk.bf16.mxu0 %vm394_vm6, %v16472_v49  ;;  %v11612_v49 = vld [vmem:[%s16717_s6] ss:$0 sm:$0xff] }
 0x8ed   : > { %13217 = vmatprep.subr.bf16.mxu1 %v14226_v2 }
 0x8f3   : > { %13194 = vmatmul.mubr.msk.bf16.gmra.mrb[52].mxu0 %vm394_vm6, %v9450_v32 }
 0x8f4   : > { %13199 = vmatprep.mubr.msk.bf16.mxu0 %vm394_vm6, %v16503_v46 }
 0x8fb   : > { %13200 = vmatmul.mubr.msk.bf16.vlgmr.msra.gmra.mrb[48].mxu0 %vm394_vm6, %v8918_v41  ;;  %v9683_v41 = vld [vmem:[#allocation4] sm:$0xff] }
 0x8fc   : > { %13203 = vmatprep.mubr.msk.bf16.mxu0 %vm394_vm6, %v8919_v40 }
 0x903   : > { %13204 = vmatmul.mubr.msk.bf16.gmra.mrb[52].mxu0 %vm394_vm6, %v9556_v44 }
 0x9ce   : > { %v13201_v4 = vpop.f32.mrb[48].mxu0 }
 0x9cf   : > { %v9660_v35 = vadd.f32 %v13201_v4, %v11612_v49  ;;  %v9612_v48 = vpop.f32.mrb[49].mxu0 }
 0x9d0   : > { %v9658_v60 = vadd.f32 %v11612_v49, %v9612_v48  ;;  %v13202_v24 = vpop.f32.mrb[50].mxu0 }
 0x9d1   : > { %v9668_v56 = vmax.f32 %v9660_v35, 0.0  ;;  %v9661_v61 = vadd.f32 %v13202_v24, %v11612_v49  ;;  %v9615_v8 = vpop.f32.mrb[51].mxu0  ;;  %v14230_v35 = vld [vmem:[%s16718_s7 + $0x28] sm:$0xff]  }
 0x9d2   : > { %v9666_v28 = vmax.f32 %v9658_v60, 0.0  ;;  %v9659_v42 = vadd.f32 %v11612_v49, %v9615_v8  ;;  %v14231_v8 = vld [vmem:[%s16718_s7 + $0x30] sm:$0xff]  }
 0x9d3   : > { %9677 = vst.msk [vmem:[#allocation4 + $0x31] sm:$0xff] %vm394_vm6, %v9668_v56  ;;  %v9669_v55 = vmax.f32 %v9661_v61, 0.0 }
 0x9d4   : > { %9675 = vst.msk [vmem:[#allocation4 + $0x11] sm:$0xff] %vm394_vm6, %v9666_v28  ;;  %v9667_v18 = vmax.f32 %v9659_v42, 0.0 }
 0x9d5   : > { %9678 = vst.msk [vmem:[#allocation4 + $0x41] sm:$0xff] %vm394_vm6, %v9669_v55 }
 0x9d6   : > { %9676 = vst.msk [vmem:[#allocation4 + $0x21] sm:$0xff] %vm394_vm6, %v9667_v18  ;;  %v13205_v38 = vpop.f32.mrb[52].mxu0 }
 0x9d7   : > { %v9664_v19 = vadd.f32 %v13205_v38, %v11612_v49  ;;  %v9628_v25 = vpop.f32.mrb[53].mxu0 }
 0x9d8   : > { %v9662_v30 = vadd.f32 %v11612_v49, %v9628_v25  ;;  %v13206_v6 = vpop.f32.mrb[54].mxu0 }
 0x9d9   : > { %v9672_v43 = vmax.f32 %v9664_v19, 0.0  ;;  %v9665_v13 = vadd.f32 %v13206_v6, %v11612_v49  ;;  %v9631_v36 = vpop.f32.mrb[55].mxu0  ;;  %v14232_v19 = vld [vmem:[%s16718_s7 + $0x38] sm:$0xff]  }
 0x9da   : > { %v9670_v17 = vmax.f32 %v9662_v30, 0.0  ;;  %v9663_v31 = vadd.f32 %v11612_v49, %v9631_v36  ;;  %v16578_v9 = vld [vmem:[#allocation4 + $0x31] sm:$0xff] }
 0x9db   : > { %9681 = vst.msk [vmem:[#allocation4 + $0x71] sm:$0xff] %vm394_vm6, %v9672_v43  ;;  %v9673_v47 = vmax.f32 %v9665_v13, 0.0  ;;  %v16571_v26 = vld [vmem:[#allocation4 + $0x11] sm:$0xff] }
 0x9dc   : > { %9679 = vst.msk [vmem:[#allocation4 + $0x51] sm:$0xff] %vm394_vm6, %v9670_v17  ;;  %v9671_v29 = vmax.f32 %v9663_v31, 0.0  ;;  %v9705_v3 = vpack.c.bf16 %v16571_v26, %v9697_v39  ;;  %v16591_v46 = vld [vmem:[#allocation4 + $0x41] sm:$0xff]  ;;  %v9684_v54 = vld [vmem:[#allocation4 + $0x10] sm:$0xff] }
 0x9dd   : > { %9682 = vst.msk [vmem:[#allocation4 + $0x81] sm:$0xff] %vm394_vm6, %v9673_v47  ;;  %v16576_v33 = vld [vmem:[#allocation4 + $0x21] sm:$0xff]  ;;  %v9691_v57 = vpack.c.bf16 %v9684_v54, %v9683_v41  ;;  %v9686_v59 = vld [vmem:[#allocation4 + $0x30] sm:$0xff]  ;;  %v10099_v61 = vpack.c.bf16 %v16591_v46, %v16578_v9 }
 0x9de   : > { %9680 = vst.msk [vmem:[#allocation4 + $0x61] sm:$0xff] %vm394_vm6, %v9671_v29  ;;  %13209 = vmatprep.mubr.msk.bf16.mxu1 %vm394_vm6, %v9705_v3  ;;  %v16584_v45 = vpack.c.bf16 %v16578_v9, %v16576_v33  ;;  %v9685_v21 = vld [vmem:[#allocation4 + $0x20] sm:$0xff]  ;;  %v9879_v12 = vld [vmem:[#allocation4 + $0x12] sm:$0xff]  ;;  %v10098_v56 = vpack.c.bf16 %v16576_v33, %v16571_v26  ;;  %v11674_v26 = vld [vmem:[%s16719_s8] ss:$0 sm:$0xff] }
 0x9df   : > { %v16609_v1 = vpack.c.bf16 %v9686_v59, %v9685_v21  ;;  %v9687_v37 = vld [vmem:[#allocation4 + $0x40] sm:$0xff]  ;;  %v9886_v7 = vpack.c.bf16 %v9879_v12, %v9878_v51  ;;  %v9881_v58 = vld [vmem:[#allocation4 + $0x32] sm:$0xff]  ;;  %v9992_v49 = vpack.c.bf16 %v9685_v21, %v9684_v54 }
 0x9e0   : > { %13210 = vmatmul.mubr.msk.bf16.vlgmr.msra.gmra.mrb[48].mxu1 %vm394_vm6, %v16584_v45  ;;  %v9880_v22 = vld [vmem:[#allocation4 + $0x22] sm:$0xff]  ;;  %v9993_v4 = vpack.c.bf16 %v9687_v37, %v9686_v59  ;;  %v14233_v43 = vld [vmem:[%s16718_s7 + $0x40] sm:$0xff]  }
 0x9e1   : > { %13218 = vmatpush3.bf16.msra.mxu1 %v14226_v2  ;;  %v16622_v16 = vpack.c.bf16 %v9881_v58, %v9880_v22  ;;  %v9882_v14 = vld [vmem:[#allocation4 + $0x42] sm:$0xff]  ;;  %v10204_v18 = vpack.c.bf16 %v9880_v22, %v9879_v12  ;;  %v10310_v13 = vld [vmem:[#allocation4 + $0x90] sm:$0xff] }
 0x9e2   : > { %13227 = vmatprep.subr.bf16.mxu1 %v14227_v11  ;;  %v16599_v40 = vld [vmem:[#allocation4 + $0x71] sm:$0xff]  ;;  %v10205_v38 = vpack.c.bf16 %v9882_v14, %v9881_v58 }
 0x9e3   : > { %v16593_v23 = vld [vmem:[#allocation4 + $0x51] sm:$0xff] }
 0x9e4   : > { %v16597_v63 = vpack.c.bf16 %v16593_v23, %v16591_v46  ;;  %v9688_v27 = vld [vmem:[#allocation4 + $0x50] sm:$0xff]  ;;  %v9991_v60 = vld [vmem:[#allocation4 + $0x80] sm:$0xff] }
 0x9e5   : > { %v9703_v0 = vld [vmem:[#allocation4 + $0x61] sm:$0xff]  ;;  %v16614_v15 = vpack.c.bf16 %v9688_v27, %v9687_v37  ;;  %v9690_v5 = vld [vmem:[#allocation4 + $0x70] sm:$0xff]  ;;  %v10314_v36 = vpack.c.bf16 %v10310_v13, %v9991_v60 }
 0x9e6   : > { %13213 = vmatprep.mubr.msk.bf16.mxu1 %vm394_vm6, %v16597_v63  ;;  %v16604_v20 = vpack.c.bf16 %v16599_v40, %v9703_v0  ;;  %v9689_v62 = vld [vmem:[#allocation4 + $0x60] sm:$0xff]  ;;  %v9883_v52 = vld [vmem:[#allocation4 + $0x52] sm:$0xff]  ;;  %v9995_v24 = vpack.c.bf16 %v9991_v60, %v9690_v5  ;;  %v10100_v28 = vpack.c.bf16 %v9703_v0, %v16593_v23 }
 0x9e7   : > { %v9694_v10 = vpack.c.bf16 %v9690_v5, %v9689_v62  ;;  %v9888_v32 = vpack.c.bf16 %v9883_v52, %v9882_v14  ;;  %v9884_v53 = vld [vmem:[#allocation4 + $0x62] sm:$0xff]  ;;  %v9885_v44 = vld [vmem:[#allocation4 + $0x72] sm:$0xff]  ;;  %v9994_v48 = vpack.c.bf16 %v9689_v62, %v9688_v27 }
 0x9e8   : > { %13214 = vmatmul.mubr.msk.bf16.gmra.mrb[52].mxu1 %vm394_vm6, %v16604_v20  ;;  %v9889_v2 = vpack.c.bf16 %v9885_v44, %v9884_v53  ;;  %v10097_v42 = vld [vmem:[#allocation4 + $0x81] sm:$0xff]  ;;  %v10206_v25 = vpack.c.bf16 %v9884_v53, %v9883_v52  ;;  %v10416_v39 = vld [vmem:[#allocation4 + $0x91] sm:$0xff] }
 0x9e9   : > { %13219 = vmatprep.mubr.msk.bf16.mxu1 %vm394_vm6, %v9691_v57  ;;  %v10101_v55 = vpack.c.bf16 %v10097_v42, %v16599_v40  ;;  %v10203_v30 = vld [vmem:[#allocation4 + $0x82] sm:$0xff]  ;;  %v10420_v17 = vpack.c.bf16 %v10416_v39, %v10097_v42  ;;  %v10522_v31 = vld [vmem:[#allocation4 + $0x92] sm:$0xff] }
 0x9ea   : > { %v10207_v6 = vpack.c.bf16 %v10203_v30, %v9885_v44  ;;  %v10526_v47 = vpack.c.bf16 %v10522_v31, %v10203_v30 }
 0x9f0   : > { %13220 = vmatmul.mubr.msk.bf16.vlgmr.msra.gmra.mrb[48].mxu1 %vm394_vm6, %v16609_v1 }
 0x9f1   : > { %13228 = vmatpush3.bf16.msra.mxu1 %v14227_v11  ;;  %13223 = vmatprep.mubr.msk.bf16.mxu1 %vm394_vm6, %v16614_v15 }
 0x9f2   : > { %13237 = vmatprep.subr.bf16.mxu1 %v14228_v50 }
 0x9f8   : > { %13224 = vmatmul.mubr.msk.bf16.gmra.mrb[52].mxu1 %vm394_vm6, %v9694_v10 }
 0x9f9   : > { %13229 = vmatprep.mubr.msk.bf16.mxu1 %vm394_vm6, %v9886_v7 }
 0xa00   : > { %13230 = vmatmul.mubr.msk.bf16.vlgmr.msra.gmra.mrb[48].mxu1 %vm394_vm6, %v16622_v16 }
 0xa01   : > { %13238 = vmatpush3.bf16.msra.mxu1 %v14228_v50  ;;  %13233 = vmatprep.mubr.msk.bf16.mxu1 %vm394_vm6, %v9888_v32 }
 0xa02   : > { %13247 = vmatprep.subr.bf16.mxu1 %v14229_v34 }
 0xa08   : > { %13234 = vmatmul.mubr.msk.bf16.gmra.mrb[52].mxu1 %vm394_vm6, %v9889_v2 }
 0xa09   : > { %13239 = vmatprep.mubr.msk.bf16.mxu1 %vm394_vm6, %v9992_v49 }
 0xa10   : > { %13240 = vmatmul.mubr.msk.bf16.vlgmr.msra.gmra.mrb[48].mxu1 %vm394_vm6, %v9993_v4 }
 0xa11   : > { %13248 = vmatpush3.bf16.msra.mxu1 %v14229_v34  ;;  %13243 = vmatprep.mubr.msk.bf16.mxu1 %vm394_vm6, %v9994_v48 }
 0xa12   : > { %13257 = vmatprep.subr.bf16.mxu1 %v14230_v35 }
 0xa18   : > { %13244 = vmatmul.mubr.msk.bf16.gmra.mrb[52].mxu1 %vm394_vm6, %v9995_v24 }
 0xa19   : > { %13249 = vmatprep.mubr.msk.bf16.mxu1 %vm394_vm6, %v10098_v56 }
 0xa20   : > { %13250 = vmatmul.mubr.msk.bf16.vlgmr.msra.gmra.mrb[48].mxu1 %vm394_vm6, %v10099_v61 }
 0xa21   : > { %13258 = vmatpush3.bf16.msra.mxu1 %v14230_v35  ;;  %13253 = vmatprep.mubr.msk.bf16.mxu1 %vm394_vm6, %v10100_v28 }
 0xa22   : > { %13267 = vmatprep.subr.bf16.mxu1 %v14231_v8 }
 0xa28   : > { %13254 = vmatmul.mubr.msk.bf16.gmra.mrb[52].mxu1 %vm394_vm6, %v10101_v55 }
 0xa29   : > { %13259 = vmatprep.mubr.msk.bf16.mxu1 %vm394_vm6, %v10204_v18 }
 0xa30   : > { %13260 = vmatmul.mubr.msk.bf16.vlgmr.msra.gmra.mrb[48].mxu1 %vm394_vm6, %v10205_v38 }
 0xa31   : > { %13268 = vmatpush3.bf16.msra.mxu1 %v14231_v8  ;;  %13263 = vmatprep.mubr.msk.bf16.mxu1 %vm394_vm6, %v10206_v25 }
 0xa32   : > { %13277 = vmatprep.subr.bf16.mxu1 %v14232_v19 }
 0xa38   : > { %13264 = vmatmul.mubr.msk.bf16.gmra.mrb[52].mxu1 %vm394_vm6, %v10207_v6 }
 0xa39   : > { %13269 = vmatprep.mubr.msk.bf16.mxu1 %vm394_vm6, %v16609_v1 }
 0xa40   : > { %13270 = vmatmul.mubr.msk.bf16.vlgmr.msra.gmra.mrb[48].mxu1 %vm394_vm6, %v16614_v15 }
 0xa41   : > { %13278 = vmatpush3.bf16.msra.mxu1 %v14232_v19  ;;  %13273 = vmatprep.mubr.msk.bf16.mxu1 %vm394_vm6, %v9694_v10 }
 0xa42   : > { %13287 = vmatprep.subr.bf16.mxu1 %v14233_v43 }
 0xa48   : > { %13274 = vmatmul.mubr.msk.bf16.gmra.mrb[52].mxu1 %vm394_vm6, %v10314_v36 }
 0xa49   : > { %13279 = vmatprep.mubr.msk.bf16.mxu1 %vm394_vm6, %v16584_v45 }
 0xa50   : > { %13280 = vmatmul.mubr.msk.bf16.vlgmr.msra.gmra.mrb[48].mxu1 %vm394_vm6, %v16597_v63 }
 0xa51   : > { %13288 = vmatpush3.bf16.msra.mxu1 %v14233_v43  ;;  %13283 = vmatprep.mubr.msk.bf16.mxu1 %vm394_vm6, %v16604_v20 }
 0xa58   : > { %13284 = vmatmul.mubr.msk.bf16.gmra.mrb[52].mxu1 %vm394_vm6, %v10420_v17 }
 0xa59   : > { %13289 = vmatprep.mubr.msk.bf16.mxu1 %vm394_vm6, %v16622_v16 }
 0xa60   : > { %13290 = vmatmul.mubr.msk.bf16.vlgmr.msra.gmra.mrb[48].mxu1 %vm394_vm6, %v9888_v32 }
 0xa61   : > { %13293 = vmatprep.mubr.msk.bf16.mxu1 %vm394_vm6, %v9889_v2 }
 0xa68   : > { %13294 = vmatmul.mubr.msk.bf16.gmra.mrb[52].mxu1 %vm394_vm6, %v10526_v47  ;;  %vm10745_vm6 = vcmask 523264  }
 0xb33   : > { %v13291_v29 = vpop.f32.mrb[48].mxu1 }
 0xb34   : > { %v10630_v3 = vadd.f32 %v13291_v29, %v11674_v26  ;;  %v10582_v33 = vpop.f32.mrb[49].mxu1 }
 0xb35   : > { %v10628_v9 = vadd.f32 %v11674_v26, %v10582_v33  ;;  %v13292_v45 = vpop.f32.mrb[50].mxu1 }
 0xb36   : > { %v10638_v11 = vmax.f32 %v10630_v3, 0.0  ;;  %v10631_v46 = vadd.f32 %v13292_v45, %v11674_v26  ;;  %v10585_v23 = vpop.f32.mrb[51].mxu1 }
 0xb37   : > { %v10636_v63 = vmax.f32 %v10628_v9, 0.0  ;;  %v10629_v41 = vadd.f32 %v11674_v26, %v10585_v23 }
 0xb38   : > { %v10647_v54 = vsel %vm10644_vm0, %v10638_v11, -inf  ;;  %v10639_v0 = vmax.f32 %v10631_v46, 0.0 }
 0xb39   : > { %v10645_v40 = vsel %vm10644_vm0, %v10636_v63, -inf  ;;  %v10637_v20 = vmax.f32 %v10629_v41, 0.0 }
 0xb3a   : > { %v10648_v57 = vmax.f32 %v10645_v40, %v10647_v54  ;;  %v10649_v21 = vsel %vm10644_vm0, %v10639_v0, -inf }
 0xb3b   : > { %v10646_v27 = vsel %vm10644_vm0, %v10637_v20, -inf  ;;  %v13295_v59 = vpop.f32.mrb[52].mxu1 }
 0xb3c   : > { %v10650_v1 = vmax.f32 %v10646_v27, %v10649_v21  ;;  %v10634_v37 = vadd.f32 %v13295_v59, %v11674_v26  ;;  %v10598_v50 = vpop.f32.mrb[53].mxu1 }
 0xb3d   : > { %v10632_v15 = vadd.f32 %v11674_v26, %v10598_v50  ;;  %v13296_v62 = vpop.f32.mrb[54].mxu1 }
 0xb3e   : > { %v16686_v51 = vmax.f32 %v10648_v57, %v10650_v1  ;;  %v10642_v12 = vmax.f32 %v10634_v37, 0.0  ;;  %v10635_v5 = vadd.f32 %v13296_v62, %v11674_v26  ;;  %v10601_v10 = vpop.f32.mrb[55].mxu1 }
 0xb3f   : > { %v10640_v7 = vmax.f32 %v10632_v15, 0.0  ;;  %v10633_v22 = vadd.f32 %v11674_v26, %v10601_v10 }
 0xb40   : > { %v10654_v52 = vsel %vm10644_vm0, %v10642_v12, -inf  ;;  %v10643_v58 = vmax.f32 %v10635_v5, 0.0  ;;  %v10690_v16 = vsel %vm10689_vm2, %v16686_v51, -inf  ;;  %v10675_v14 = vsel %vm10674_vm3, %v16686_v51, -inf }
 0xb41   : > { %v10652_v34 = vsel %vm10644_vm0, %v10640_v7, -inf  ;;  %v10641_v32 = vmax.f32 %v10633_v22, 0.0  ;;  %v10691_v53 = vrot.slane %v10690_v16, 4  ;;  %v10676_v44 = vrot.slane %v10675_v14, 4 }
 0xb42   : > { %v10655_v2 = vmax.f32 %v10652_v34, %v10654_v52  ;;  %v10656_v49 = vsel %vm10644_vm0, %v10643_v58, -inf  ;;  %v10705_v4 = vsel %vm10704_vm4, %v16686_v51, -inf  ;;  %v10660_v27 = vsel %vm10659_vm5, %v16686_v51, -inf }
 0xb43   : > { %v10653_v35 = vsel %vm10644_vm0, %v10641_v32, -inf  ;;  %v10692_v48 = vmax.f32 %v10690_v16, %v10691_v53  ;;  %v10677_v60 = vmax.f32 %v10675_v14, %v10676_v44  ;;  %v10706_v24 = vrot.slane %v10705_v4, 4 }
 0xb44   : > { %v10657_v56 = vmax.f32 %v10653_v35, %v10656_v49  ;;  %v10661_v1 = vrot.slane %v10660_v27, 4 }
 0xb45   : > { %v10693_v61 = vrot.slane %v10692_v48, 2  ;;  %v10678_v8 = vrot.slane %v10677_v60, 2  ;;  %v10707_v42 = vmax.f32 %v10705_v4, %v10706_v24 }
 0xb46   : > { %v10658_v28 = vmax.f32 %v10655_v2, %v10657_v56  ;;  %v10662_v50 = vmax.f32 %v10660_v27, %v10661_v1 }
 0xb47   : > { %v10694_v55 = vmax.f32 %v10692_v48, %v10693_v61  ;;  %v10679_v18 = vmax.f32 %v10677_v60, %v10678_v8  ;;  %v10708_v39 = vrot.slane %v10707_v42, 2 }
 0xb48   : > { %v10697_v38 = vsel %vm10689_vm2, %v10658_v28, -inf  ;;  %v10682_v19 = vsel %vm10674_vm3, %v10658_v28, -inf  ;;  %v10712_v25 = vsel %vm10704_vm4, %v10658_v28, -inf  ;;  %v10667_v59 = vsel %vm10659_vm5, %v10658_v28, -inf }
 0xb49   : > { %v10695_v30 = vrot.slane %v10694_v55, 1  ;;  %v10698_v6 = vrot.slane %v10697_v38, 4  ;;  %v10680_v43 = vrot.slane %v10679_v18, 1  ;;  %v10683_v13 = vrot.slane %v10682_v19, 4 }
 0xb4a   : > { %v10713_v36 = vrot.slane %v10712_v25, 4  ;;  %v10709_v46 = vmax.f32 %v10707_v42, %v10708_v39  ;;  %v10668_v37 = vrot.slane %v10667_v59, 4  ;;  %v10663_v62 = vrot.slane %v10662_v50, 2 }
 0xb4b   : > { %v10696_v17 = vmax.f32 %v10694_v55, %v10695_v30  ;;  %v10681_v31 = vmax.f32 %v10679_v18, %v10680_v43  ;;  %v10699_v47 = vmax.f32 %v10697_v38, %v10698_v6  ;;  %v10684_v26 = vmax.f32 %v10682_v19, %v10683_v13 }
 0xb4c   : > { %v10714_v29 = vmax.f32 %v10712_v25, %v10713_v36  ;;  %v10710_v20 = vrot.slane %v10709_v46, 1  ;;  %v10669_v15 = vmax.f32 %v10667_v59, %v10668_v37  ;;  %v10664_v5 = vmax.f32 %v10662_v50, %v10663_v62 }
 0xb4d   : > { %10729 = vrot.lane.b32.xlu1 %v10696_v17, %s14245_s21  ;;  %10721 = vrot.lane.b32.xlu0 %v10681_v31, %s14246_s22  ;;  %v10700_v3 = vrot.slane %v10699_v47, 2  ;;  %v10685_v33 = vrot.slane %v10684_v26, 2 }
 0xb4e   : > { %v10715_v9 = vrot.slane %v10714_v29, 2  ;;  %v10711_v21 = vmax.f32 %v10709_v46, %v10710_v20  ;;  %v10670_v12 = vrot.slane %v10669_v15, 2  ;;  %v10665_v7 = vrot.slane %v10664_v5, 1 }
 0xb4f   : > { %v10701_v45 = vmax.f32 %v10699_v47, %v10700_v3  ;;  %v10686_v11 = vmax.f32 %v10684_v26, %v10685_v33 }
 0xb50   : > { %v10716_v23 = vmax.f32 %v10714_v29, %v10715_v9  ;;  %v10671_v10 = vmax.f32 %v10669_v15, %v10670_v12  ;;  %v10666_v16 = vmax.f32 %v10664_v5, %v10665_v7 }
 0xb51   : > { %v10702_v63 = vrot.slane %v10701_v45, 1  ;;  %v10687_v41 = vrot.slane %v10686_v11, 1 }
 0xb52   : > { %v10717_v40 = vrot.slane %v10716_v23, 1  ;;  %v10672_v22 = vrot.slane %v10671_v10, 1 }
 0xb53   : > { %v10703_v54 = vmax.f32 %v10701_v45, %v10702_v63  ;;  %v10688_v0 = vmax.f32 %v10686_v11, %v10687_v41 }
 0xb54   : > { %v10718_v57 = vmax.f32 %v10716_v23, %v10717_v40  ;;  %v10673_v14 = vmax.f32 %v10671_v10, %v10672_v22 }
 0xb55   : > { %10731 = vrot.lane.b32.xlu1 %v10703_v54, %s14245_s21  ;;  %10723 = vrot.lane.b32.xlu0 %v10688_v0, %s14246_s22 }
 0xb59   : > { %10739 = vrot.lane.b32.xlu1 %v10718_v57, %s14247_s23  ;;  %10737 = vrot.lane.b32.xlu0 %v10711_v21, %s14247_s23 }
 0xbbf   : > { %v10730_v52 = vpop.permute.xlu1 %10729  ;;  %v10722_v58 = vpop.permute.xlu0 %10721 }
 0xbc0   : > { %v10743_v51 = vsel %vm10644_vm0, %v10666_v16, %v10722_v58 }
 0xbc1   : > { %v10746_v49 = vsel %vm10745_vm6, %v10743_v51, %v10730_v52 }
 0xbc7   : > { %v10732_v34 = vpop.permute.xlu1 %10731  ;;  %v10724_v32 = vpop.permute.xlu0 %10723 }
 0xbc8   : > { %v10744_v53 = vsel %vm10644_vm0, %v10673_v14, %v10724_v32 }
 0xbc9   : > { %v10747_v2 = vsel %vm10745_vm6, %v10744_v53, %v10732_v34 }
 0xbcb   : > { %v10740_v44 = vpop.permute.xlu1 %10739  ;;  %v10738_v4 = vpop.permute.xlu0 %10737 }
 0xbcc   : > { %v10750_v35 = vsel %vm10748_vm7, %v10747_v2, %v10740_v44  ;;  %v10749_v48 = vsel %vm10748_vm7, %v10746_v49, %v10738_v4 }
 0xbcd   : > { %10752 = vst [vmem:[%s330_s27 + $0x1] sm:$0x1] %v10750_v35  ;;  %10751 = vst [vmem:[%s330_s27] sm:$0x1] %v10749_v48 }
 0xbce PF: > { %s19_s30 = sadd.s32 1, %s14241_s30  }
 0xbcf   : > { %p16_p4 = scmp.ge.s32.totalorder %s19_s30, 4  }
 0xbd1   :  { %18 = sbr.rel (!%p16_p4) target bundleno = 1 (0x1), region = 129 }

</bundles_post_ra>
